<compile_context>
chip_gen: v7x
topology: tpu7x:2x2x1
jax: 0.10.0
libtpu: 0.0.40
codegen_flags: <defaults>
</compile_context>

<pallas_src>
import numpy as np

import jax
import jax.numpy as jnp
from jax.experimental import pallas as pl
from jax.experimental.pallas import tpu as pltpu

# ---------------------------------------------------------------------------
# Static configuration
# ---------------------------------------------------------------------------
TB = 16     # batch tile (images per grid step)
C1P = 8     # conv1 out channels, padded (6 real)
C2P = 16    # conv2 out channels, padded (12 real)

CONST_KEYS = ("m1", "b1row", "s1e", "s1o", "r1e", "r1o",
              "m2", "b2row", "s2e", "s2o", "r2e", "r2o",
              "g", "hfw1", "fb1p", "fw2p", "fb2p", "fwop", "fbop")


# ---------------------------------------------------------------------------
# The single fused Pallas kernel
# ---------------------------------------------------------------------------
def network_kernel(x_ref, m1_ref, b1_ref, s1e_ref, s1o_ref, r1e_ref, r1o_ref,
                   m2_ref, b2_ref, s2e_ref, s2o_ref, r2e_ref, r2o_ref,
                   g_ref, hfw1_ref, fb1_ref, fw2_ref, fb2_ref, fwo_ref,
                   fbo_ref, o_ref, p1_scr):
    bf16 = jnp.bfloat16

    def mm(a, b):                       # bf16 x bf16 -> f32 accumulate (MXU)
        return jnp.dot(a, b, preferred_element_type=jnp.float32)

    vr1 = TB * 28 - 4                   # conv1 rows kept (last 4 never valid)
    vr2 = TB * 12 - 4                   # conv2 rows kept

    # ---- conv1 (1->6, k5): W-band matmuls; H-shift = sublane-offset slice --
    # y1[r] = sum_ki x[r+ki, :] @ m1[ki]; rows r = b*28 + i are valid for
    # i in 0..23, the cross-image rows are finite junk discarded by r1e/r1o.
    y1 = None
    for ki in range(5):
        xk = x_ref[pl.ds(ki, vr1), :].astype(bf16)            # (vr1, 28)
        t = mm(xk, m1_ref[ki])                                # (vr1, 24*C1P)
        y1 = t if y1 is None else y1 + t
    y1 = jnp.maximum(y1 + b1_ref[...], 0.0).astype(bf16)

    # ---- maxpool 2x2: even/odd column-group + row 0/1 selection matmuls ----
    cw = jnp.maximum(mm(y1, s1e_ref[...]),
                     mm(y1, s1o_ref[...])).astype(bf16)       # (vr1, 12*C1P)
    p1 = jnp.maximum(mm(r1e_ref[...], cw),
                     mm(r1o_ref[...], cw))                    # (TB*12, 12*C1P) f32
    p1_scr[...] = p1                                          # f32 scratch

    # ---- conv2 (6->12, k5): same band-matmul + sublane-offset-slice scheme -
    y2 = None
    for ki in range(5):
        pk = p1_scr[pl.ds(ki, vr2), :].astype(bf16)           # (vr2, 12*C1P)
        t = mm(pk, m2_ref[ki])                                # (vr2, 8*C2P)
        y2 = t if y2 is None else y2 + t
    y2 = jnp.maximum(y2 + b2_ref[...], 0.0).astype(bf16)

    # ---- maxpool 2x2 -------------------------------------------------------
    cw2 = jnp.maximum(mm(y2, s2e_ref[...]),
                      mm(y2, s2o_ref[...])).astype(bf16)      # (vr2, 4*C2P)
    p2 = jnp.maximum(mm(r2e_ref[...], cw2),
                     mm(r2o_ref[...], cw2)).astype(bf16)      # (TB*4, 4*C2P)

    # ---- flatten (NCHW order) folded into fc1: hfw1[i] = h[i] @ fw1 --------
    h1 = None
    for i in range(4):
        gi = mm(g_ref[i], p2).astype(bf16)                    # (TB, 4*C2P)
        t = mm(gi, hfw1_ref[i])                               # (TB, 128)
        h1 = t if h1 is None else h1 + t
    h1 = jnp.maximum(h1 + fb1_ref[...], 0.0).astype(bf16)     # (TB, 128)

    # ---- fc2 -> relu -> out (lane-dense padded) ----------------------------
    h2 = jnp.maximum(mm(h1, fw2_ref[...]) + fb2_ref[...], 0.0).astype(bf16)
    o_ref[...] = (mm(h2, fwo_ref[...]) + fbo_ref[...]).astype(o_ref.dtype)


# ---------------------------------------------------------------------------
# Wrapper: one pallas_call for the whole forward pass
# ---------------------------------------------------------------------------
def network_forward(x_nchw, consts):
    B = x_nchw.shape[0]
    bp = ((B + TB - 1) // TB) * TB
    x = x_nchw.reshape(B * 28, 28).astype(jnp.float32)        # rows = (b, h)
    if bp != B:
        x = jnp.pad(x, ((0, (bp - B) * 28), (0, 0)))
    cargs = [consts[k] for k in CONST_KEYS]

    def cspec(shape):
        nd = len(shape)
        return pl.BlockSpec(shape, lambda i, _nd=nd: (0,) * _nd)

    in_specs = [pl.BlockSpec((TB * 28, 28), lambda i: (i, 0))]
    in_specs += [cspec(c.shape) for c in cargs]

    out = pl.pallas_call(
        network_kernel,
        out_shape=jax.ShapeDtypeStruct((bp, 128), jnp.float32),
        grid=(bp // TB,),
        in_specs=in_specs,
        out_specs=pl.BlockSpec((TB, 128), lambda i: (i, 0)),
        scratch_shapes=[pltpu.VMEM((TB * 12, 12 * C1P), jnp.float32)],
        compiler_params=pltpu.CompilerParams(
            dimension_semantics=("parallel",),
            # ~5 MiB actually used at TB=16; 32 MiB is safe on v5e/v6e/v7x.
            vmem_limit_bytes=32 * 1024 * 1024),
    )(x, *cargs)
    return out[:B, :10]


# ---------------------------------------------------------------------------
# Host-side (one-time) packing of weights into MXU-friendly constant matrices
# (matmul operands cast to bf16; 0/1 selectors are exact in bf16, padded
#  lanes stay exact zeros through relu/max; biases stay f32)
# ---------------------------------------------------------------------------
def build_constants(p, tb):
    w1 = np.asarray(p["w1"], np.float32)   # (6,1,5,5)  OIHW
    b1 = np.asarray(p["b1"], np.float32)
    w2 = np.asarray(p["w2"], np.float32)   # (12,6,5,5) OIHW
    b2 = np.asarray(p["b2"], np.float32)

    vr1 = tb * 28 - 4
    vr2 = tb * 12 - 4

    # conv1 band matrices over W: m1[ki, j+kj, j*C1P+oc] = w1[oc,0,ki,kj]
    m1 = np.zeros((5, 28, 24 * C1P), np.float32)
    for ki in range(5):
        for kj in range(5):
            for j in range(24):
                m1[ki, j + kj, j * C1P: j * C1P + 6] = w1[:, 0, ki, kj]
    b1row = np.zeros((1, 24 * C1P), np.float32)
    for j in range(24):
        b1row[0, j * C1P: j * C1P + 6] = b1

    # pool1: even/odd column-group selectors (lane axis)
    s1e = np.zeros((24 * C1P, 12 * C1P), np.float32)
    s1o = np.zeros_like(s1e)
    for jp in range(12):
        for c in range(C1P):
            s1e[(2 * jp) * C1P + c, jp * C1P + c] = 1.0
            s1o[(2 * jp + 1) * C1P + c, jp * C1P + c] = 1.0
    # pool1: row selectors over the 28-row-per-image conv1 slab (vr1 rows)
    r1e = np.zeros((tb * 12, vr1), np.float32)
    r1o = np.zeros_like(r1e)
    for b in range(tb):
        for ip in range(12):
            r1e[b * 12 + ip, b * 28 + 2 * ip] = 1.0
            r1o[b * 12 + ip, b * 28 + 2 * ip + 1] = 1.0

    # conv2 band matrices: m2[ki, (j+kj)*C1P+c, j*C2P+oc] = w2[oc,c,ki,kj]
    m2 = np.zeros((5, 12 * C1P, 8 * C2P), np.float32)
    for ki in range(5):
        for kj in range(5):
            for j in range(8):
                for c in range(6):
                    m2[ki, (j + kj) * C1P + c,
                       j * C2P: j * C2P + 12] = w2[:, c, ki, kj]
    b2row = np.zeros((1, 8 * C2P), np.float32)
    for j in range(8):
        b2row[0, j * C2P: j * C2P + 12] = b2

    # pool2 selectors
    s2e = np.zeros((8 * C2P, 4 * C2P), np.float32)
    s2o = np.zeros_like(s2e)
    for jp in range(4):
        for c in range(C2P):
            s2e[(2 * jp) * C2P + c, jp * C2P + c] = 1.0
            s2o[(2 * jp + 1) * C2P + c, jp * C2P + c] = 1.0
    r2e = np.zeros((tb * 4, vr2), np.float32)
    r2o = np.zeros_like(r2e)
    for b in range(tb):
        for ip in range(4):
            r2e[b * 4 + ip, b * 12 + 2 * ip] = 1.0
            r2o[b * 4 + ip, b * 12 + 2 * ip + 1] = 1.0

    # NCHW-order flatten: flat[b, c*16 + i*4 + j] = pooled2[b, i, j, c]
    g = np.zeros((4, tb, tb * 4), np.float32)
    for i in range(4):
        for b in range(tb):
            g[i, b, b * 4 + i] = 1.0
    h = np.zeros((4, 4 * C2P, 192), np.float32)
    for i in range(4):
        for j in range(4):
            for c in range(12):
                h[i, j * C2P + c, c * 16 + i * 4 + j] = 1.0

    # FC weights, zero-padded to lane-friendly widths; fold h into fc1 (f32).
    fw1p = np.zeros((192, 128), np.float32); fw1p[:, :120] = np.asarray(p["fw1"], np.float32)
    hfw1 = np.einsum("ikl,lo->iko", h, fw1p)                 # (4, 64, 128)
    fb1p = np.zeros((1, 128), np.float32);   fb1p[0, :120] = np.asarray(p["fb1"], np.float32)
    fw2p = np.zeros((128, 64), np.float32);  fw2p[:120, :60] = np.asarray(p["fw2"], np.float32)
    fb2p = np.zeros((1, 64), np.float32);    fb2p[0, :60] = np.asarray(p["fb2"], np.float32)
    fwop = np.zeros((64, 128), np.float32);  fwop[:60, :10] = np.asarray(p["fwo"], np.float32)
    fbop = np.zeros((1, 128), np.float32);   fbop[0, :10] = np.asarray(p["fbo"], np.float32)

    bf = lambda a: jnp.asarray(a, jnp.bfloat16)   # matmul operands
    f32 = lambda a: jnp.asarray(a, jnp.float32)   # biases (elementwise path)
    return dict(
        m1=bf(m1), b1row=f32(b1row), s1e=bf(s1e), s1o=bf(s1o),
        r1e=bf(r1e), r1o=bf(r1o),
        m2=bf(m2), b2row=f32(b2row), s2e=bf(s2e), s2o=bf(s2o),
        r2e=bf(r2e), r2o=bf(r2o),
        g=bf(g), hfw1=bf(hfw1), fb1p=f32(fb1p), fw2p=bf(fw2p),
        fb2p=f32(fb2p), fwop=bf(fwop), fbop=f32(fbop))


# ---------------------------------------------------------------------------
# Pure-JAX reference (lax.conv / reduce_window) for a correctness check
# ---------------------------------------------------------------------------
def reference_forward(x_nchw, p):
    def conv(x, w, b):
        y = jax.lax.conv_general_dilated(
            x, w, (1, 1), "VALID", dimension_numbers=("NCHW", "OIHW", "NCHW"))
        return jax.nn.relu(y + b[None, :, None, None])

    def pool(x):
        return jax.lax.reduce_window(
            x, -jnp.inf, jax.lax.max, (1, 1, 2, 2), (1, 1, 2, 2), "VALID")

    y = pool(conv(x_nchw, p["w1"], p["b1"]))
    y = pool(conv(y, p["w2"], p["b2"]))
    y = y.reshape(y.shape[0], 12 * 4 * 4)
    y = jax.nn.relu(y @ p["fw1"] + p["fb1"])
    y = jax.nn.relu(y @ p["fw2"] + p["fb2"])
    return y @ p["fwo"] + p["fbo"]


# ---------------------------------------------------------------------------
# Deterministic parameter init (PyTorch-default-like uniform(+-1/sqrt(fan_in)))
# ---------------------------------------------------------------------------
def init_params(key):
    ks = jax.random.split(key, 10)

    def u(k, shape, fan_in):
        bound = 1.0 / np.sqrt(fan_in)
        return jax.random.uniform(k, shape, jnp.float32, -bound, bound)

    return {
        "w1": u(ks[0], (6, 1, 5, 5), 25),   "b1": u(ks[1], (6,), 25),
        "w2": u(ks[2], (12, 6, 5, 5), 150), "b2": u(ks[3], (12,), 150),
        "fw1": u(ks[4], (192, 120), 192),   "fb1": u(ks[5], (120,), 192),
        "fw2": u(ks[6], (120, 60), 120),    "fb2": u(ks[7], (60,), 120),
        "fwo": u(ks[8], (60, 10), 60),      "fbo": u(ks[9], (10,), 60),
    }


if __name__ == "__main__":
    key = jax.random.PRNGKey(0)
    kx, kp = jax.random.split(key)

    # 28x28 single-channel input is required by the 12*4*4 flatten; batch=2.
    x = jax.random.normal(kx, (2, 1, 28, 28), dtype=jnp.float32)
    params = init_params(kp)
    consts = build_constants(params, TB)

    fwd = jax.jit(network_forward)
    out = jax.block_until_ready(fwd(x, consts))

    ref = jax.block_until_ready(jax.jit(reference_forward)(x, params))
    # tolerance accounts for bf16 matmul operands (f32 accumulation) vs the
    # f32 reference path
    np.testing.assert_allclose(np.asarray(out), np.asarray(ref),
                               rtol=2e-2, atol=2e-2)
    assert out.shape == (2, 10) and out.dtype == jnp.float32

    print("KERNEL_OK")
</pallas_src>

<mosaic_0001>
module attributes {stable_mosaic.version = 11 : i64} {
  func.func @network_kernel(%arg0: i32, %arg1: memref<448x28xf32, #tpu.memory_space<vmem>>, %arg2: memref<5x28x192xbf16, #tpu.memory_space<vmem>>, %arg3: memref<1x192xf32, #tpu.memory_space<vmem>>, %arg4: memref<192x96xbf16, #tpu.memory_space<vmem>>, %arg5: memref<192x96xbf16, #tpu.memory_space<vmem>>, %arg6: memref<192x444xbf16, #tpu.memory_space<vmem>>, %arg7: memref<192x444xbf16, #tpu.memory_space<vmem>>, %arg8: memref<5x96x128xbf16, #tpu.memory_space<vmem>>, %arg9: memref<1x128xf32, #tpu.memory_space<vmem>>, %arg10: memref<128x64xbf16, #tpu.memory_space<vmem>>, %arg11: memref<128x64xbf16, #tpu.memory_space<vmem>>, %arg12: memref<64x188xbf16, #tpu.memory_space<vmem>>, %arg13: memref<64x188xbf16, #tpu.memory_space<vmem>>, %arg14: memref<4x16x64xbf16, #tpu.memory_space<vmem>>, %arg15: memref<4x64x128xbf16, #tpu.memory_space<vmem>>, %arg16: memref<1x128xf32, #tpu.memory_space<vmem>>, %arg17: memref<128x64xbf16, #tpu.memory_space<vmem>>, %arg18: memref<1x64xf32, #tpu.memory_space<vmem>>, %arg19: memref<64x128xbf16, #tpu.memory_space<vmem>>, %arg20: memref<1x128xf32, #tpu.memory_space<vmem>>, %arg21: memref<16x128xf32, #tpu.memory_space<vmem>>, %arg22: memref<192x96xf32, #tpu.memory_space<vmem>>) attributes {dimension_semantics = [#tpu.dimension_semantics<parallel>], iteration_bounds = array<i64: 1>, scalar_prefetch = 0 : i64, scratch_operands = 1 : i64, tpu.core_type = #tpu.core_type<tc>, window_params = [{transform_indices = @transform_0, window_bounds = array<i64: 448, 28>}, {pipeline_mode = #tpu.pipeline_mode<synchronous>, transform_indices = @transform_1, window_bounds = array<i64: 5, 28, 192>}, {pipeline_mode = #tpu.pipeline_mode<synchronous>, transform_indices = @transform_2, window_bounds = array<i64: 1, 192>}, {pipeline_mode = #tpu.pipeline_mode<synchronous>, transform_indices = @transform_3, window_bounds = array<i64: 192, 96>}, {pipeline_mode = #tpu.pipeline_mode<synchronous>, transform_indices = @transform_4, window_bounds = array<i64: 192, 96>}, {pipeline_mode = #tpu.pipeline_mode<synchronous>, transform_indices = @transform_5, window_bounds = array<i64: 192, 444>}, {pipeline_mode = #tpu.pipeline_mode<synchronous>, transform_indices = @transform_6, window_bounds = array<i64: 192, 444>}, {pipeline_mode = #tpu.pipeline_mode<synchronous>, transform_indices = @transform_7, window_bounds = array<i64: 5, 96, 128>}, {pipeline_mode = #tpu.pipeline_mode<synchronous>, transform_indices = @transform_8, window_bounds = array<i64: 1, 128>}, {pipeline_mode = #tpu.pipeline_mode<synchronous>, transform_indices = @transform_9, window_bounds = array<i64: 128, 64>}, {pipeline_mode = #tpu.pipeline_mode<synchronous>, transform_indices = @transform_10, window_bounds = array<i64: 128, 64>}, {pipeline_mode = #tpu.pipeline_mode<synchronous>, transform_indices = @transform_11, window_bounds = array<i64: 64, 188>}, {pipeline_mode = #tpu.pipeline_mode<synchronous>, transform_indices = @transform_12, window_bounds = array<i64: 64, 188>}, {pipeline_mode = #tpu.pipeline_mode<synchronous>, transform_indices = @transform_13, window_bounds = array<i64: 4, 16, 64>}, {pipeline_mode = #tpu.pipeline_mode<synchronous>, transform_indices = @transform_14, window_bounds = array<i64: 4, 64, 128>}, {pipeline_mode = #tpu.pipeline_mode<synchronous>, transform_indices = @transform_15, window_bounds = array<i64: 1, 128>}, {pipeline_mode = #tpu.pipeline_mode<synchronous>, transform_indices = @transform_16, window_bounds = array<i64: 128, 64>}, {pipeline_mode = #tpu.pipeline_mode<synchronous>, transform_indices = @transform_17, window_bounds = array<i64: 1, 64>}, {pipeline_mode = #tpu.pipeline_mode<synchronous>, transform_indices = @transform_18, window_bounds = array<i64: 64, 128>}, {pipeline_mode = #tpu.pipeline_mode<synchronous>, transform_indices = @transform_19, window_bounds = array<i64: 1, 128>}, {transform_indices = @transform_20, window_bounds = array<i64: 16, 128>}]} {
    %c0 = arith.constant 0 : index
    %c0_0 = arith.constant 0 : index
    %0 = vector.load %arg1[%c0, %c0_0] : memref<448x28xf32, #tpu.memory_space<vmem>>, vector<444x28xf32>
    %1 = arith.truncf %0 : vector<444x28xf32> to vector<444x28xbf16>
    %c0_1 = arith.constant 0 : index
    %c0_2 = arith.constant 0 : index
    %c0_3 = arith.constant 0 : index
    %2 = vector.load %arg2[%c0_1, %c0_2, %c0_3] : memref<5x28x192xbf16, #tpu.memory_space<vmem>>, vector<1x28x192xbf16>
    %3 = vector.shape_cast %2 : vector<1x28x192xbf16> to vector<28x192xbf16>
    %cst = arith.constant dense<0.000000e+00> : vector<444x192xf32>
    %4 = tpu.matmul %1, %3, %cst {dimension_numbers = #tpu.dot_dimension_numbers<[1], [0], [0], [1], [0, 0, 1, 1], [], []>} : vector<444x28xbf16>, vector<28x192xbf16>, vector<444x192xf32> -> vector<444x192xf32>
    %c1 = arith.constant 1 : index
    %c0_4 = arith.constant 0 : index
    %5 = vector.load %arg1[%c1, %c0_4] : memref<448x28xf32, #tpu.memory_space<vmem>>, vector<444x28xf32>
    %6 = arith.truncf %5 : vector<444x28xf32> to vector<444x28xbf16>
    %c1_5 = arith.constant 1 : index
    %c0_6 = arith.constant 0 : index
    %c0_7 = arith.constant 0 : index
    %7 = vector.load %arg2[%c1_5, %c0_6, %c0_7] : memref<5x28x192xbf16, #tpu.memory_space<vmem>>, vector<1x28x192xbf16>
    %8 = vector.shape_cast %7 : vector<1x28x192xbf16> to vector<28x192xbf16>
    %cst_8 = arith.constant dense<0.000000e+00> : vector<444x192xf32>
    %9 = tpu.matmul %6, %8, %cst_8 {dimension_numbers = #tpu.dot_dimension_numbers<[1], [0], [0], [1], [0, 0, 1, 1], [], []>} : vector<444x28xbf16>, vector<28x192xbf16>, vector<444x192xf32> -> vector<444x192xf32>
    %10 = arith.addf %4, %9 : vector<444x192xf32>
    %c2 = arith.constant 2 : index
    %c0_9 = arith.constant 0 : index
    %11 = vector.load %arg1[%c2, %c0_9] : memref<448x28xf32, #tpu.memory_space<vmem>>, vector<444x28xf32>
    %12 = arith.truncf %11 : vector<444x28xf32> to vector<444x28xbf16>
    %c2_10 = arith.constant 2 : index
    %c0_11 = arith.constant 0 : index
    %c0_12 = arith.constant 0 : index
    %13 = vector.load %arg2[%c2_10, %c0_11, %c0_12] : memref<5x28x192xbf16, #tpu.memory_space<vmem>>, vector<1x28x192xbf16>
    %14 = vector.shape_cast %13 : vector<1x28x192xbf16> to vector<28x192xbf16>
    %cst_13 = arith.constant dense<0.000000e+00> : vector<444x192xf32>
    %15 = tpu.matmul %12, %14, %cst_13 {dimension_numbers = #tpu.dot_dimension_numbers<[1], [0], [0], [1], [0, 0, 1, 1], [], []>} : vector<444x28xbf16>, vector<28x192xbf16>, vector<444x192xf32> -> vector<444x192xf32>
    %16 = arith.addf %10, %15 : vector<444x192xf32>
    %c3 = arith.constant 3 : index
    %c0_14 = arith.constant 0 : index
    %17 = vector.load %arg1[%c3, %c0_14] : memref<448x28xf32, #tpu.memory_space<vmem>>, vector<444x28xf32>
    %18 = arith.truncf %17 : vector<444x28xf32> to vector<444x28xbf16>
    %c3_15 = arith.constant 3 : index
    %c0_16 = arith.constant 0 : index
    %c0_17 = arith.constant 0 : index
    %19 = vector.load %arg2[%c3_15, %c0_16, %c0_17] : memref<5x28x192xbf16, #tpu.memory_space<vmem>>, vector<1x28x192xbf16>
    %20 = vector.shape_cast %19 : vector<1x28x192xbf16> to vector<28x192xbf16>
    %cst_18 = arith.constant dense<0.000000e+00> : vector<444x192xf32>
    %21 = tpu.matmul %18, %20, %cst_18 {dimension_numbers = #tpu.dot_dimension_numbers<[1], [0], [0], [1], [0, 0, 1, 1], [], []>} : vector<444x28xbf16>, vector<28x192xbf16>, vector<444x192xf32> -> vector<444x192xf32>
    %22 = arith.addf %16, %21 : vector<444x192xf32>
    %c4 = arith.constant 4 : index
    %c0_19 = arith.constant 0 : index
    %23 = vector.load %arg1[%c4, %c0_19] : memref<448x28xf32, #tpu.memory_space<vmem>>, vector<444x28xf32>
    %24 = arith.truncf %23 : vector<444x28xf32> to vector<444x28xbf16>
    %c4_20 = arith.constant 4 : index
    %c0_21 = arith.constant 0 : index
    %c0_22 = arith.constant 0 : index
    %25 = vector.load %arg2[%c4_20, %c0_21, %c0_22] : memref<5x28x192xbf16, #tpu.memory_space<vmem>>, vector<1x28x192xbf16>
    %26 = vector.shape_cast %25 : vector<1x28x192xbf16> to vector<28x192xbf16>
    %cst_23 = arith.constant dense<0.000000e+00> : vector<444x192xf32>
    %27 = tpu.matmul %24, %26, %cst_23 {dimension_numbers = #tpu.dot_dimension_numbers<[1], [0], [0], [1], [0, 0, 1, 1], [], []>} : vector<444x28xbf16>, vector<28x192xbf16>, vector<444x192xf32> -> vector<444x192xf32>
    %28 = arith.addf %22, %27 : vector<444x192xf32>
    %c0_24 = arith.constant 0 : index
    %c0_25 = arith.constant 0 : index
    %29 = vector.load %arg3[%c0_24, %c0_25] : memref<1x192xf32, #tpu.memory_space<vmem>>, vector<1x192xf32>
    %30 = vector.broadcast %29 : vector<1x192xf32> to vector<444x192xf32>
    %31 = arith.addf %28, %30 : vector<444x192xf32>
    %cst_26 = arith.constant 0.000000e+00 : f32
    %32 = vector.broadcast %cst_26 : f32 to vector<444x192xf32>
    %33 = arith.maximumf %31, %32 : vector<444x192xf32>
    %34 = arith.truncf %33 : vector<444x192xf32> to vector<444x192xbf16>
    %c0_27 = arith.constant 0 : index
    %c0_28 = arith.constant 0 : index
    %35 = vector.load %arg4[%c0_27, %c0_28] : memref<192x96xbf16, #tpu.memory_space<vmem>>, vector<192x96xbf16>
    %cst_29 = arith.constant dense<0.000000e+00> : vector<444x96xf32>
    %36 = tpu.matmul %34, %35, %cst_29 {dimension_numbers = #tpu.dot_dimension_numbers<[1], [0], [0], [1], [0, 0, 1, 1], [], []>} : vector<444x192xbf16>, vector<192x96xbf16>, vector<444x96xf32> -> vector<444x96xf32>
    %c0_30 = arith.constant 0 : index
    %c0_31 = arith.constant 0 : index
    %37 = vector.load %arg5[%c0_30, %c0_31] : memref<192x96xbf16, #tpu.memory_space<vmem>>, vector<192x96xbf16>
    %cst_32 = arith.constant dense<0.000000e+00> : vector<444x96xf32>
    %38 = tpu.matmul %34, %37, %cst_32 {dimension_numbers = #tpu.dot_dimension_numbers<[1], [0], [0], [1], [0, 0, 1, 1], [], []>} : vector<444x192xbf16>, vector<192x96xbf16>, vector<444x96xf32> -> vector<444x96xf32>
    %39 = arith.maximumf %36, %38 : vector<444x96xf32>
    %40 = arith.truncf %39 : vector<444x96xf32> to vector<444x96xbf16>
    %c0_33 = arith.constant 0 : index
    %c0_34 = arith.constant 0 : index
    %41 = vector.load %arg6[%c0_33, %c0_34] : memref<192x444xbf16, #tpu.memory_space<vmem>>, vector<192x444xbf16>
    %cst_35 = arith.constant dense<0.000000e+00> : vector<192x96xf32>
    %42 = tpu.matmul %41, %40, %cst_35 {dimension_numbers = #tpu.dot_dimension_numbers<[1], [0], [0], [1], [0, 0, 1, 1], [], []>} : vector<192x444xbf16>, vector<444x96xbf16>, vector<192x96xf32> -> vector<192x96xf32>
    %c0_36 = arith.constant 0 : index
    %c0_37 = arith.constant 0 : index
    %43 = vector.load %arg7[%c0_36, %c0_37] : memref<192x444xbf16, #tpu.memory_space<vmem>>, vector<192x444xbf16>
    %cst_38 = arith.constant dense<0.000000e+00> : vector<192x96xf32>
    %44 = tpu.matmul %43, %40, %cst_38 {dimension_numbers = #tpu.dot_dimension_numbers<[1], [0], [0], [1], [0, 0, 1, 1], [], []>} : vector<192x444xbf16>, vector<444x96xbf16>, vector<192x96xf32> -> vector<192x96xf32>
    %45 = arith.maximumf %42, %44 : vector<192x96xf32>
    %c0_39 = arith.constant 0 : index
    %c0_40 = arith.constant 0 : index
    %46 = vector.load %arg22[%c0_39, %c0_40] : memref<192x96xf32, #tpu.memory_space<vmem>>, vector<192x96xf32>
    tpu.vector_store %arg22[%c0_39, %c0_40], %45 {strides = array<i32>} : memref<192x96xf32, #tpu.memory_space<vmem>>, vector<192x96xf32>,
    %c0_41 = arith.constant 0 : index
    %c0_42 = arith.constant 0 : index
    %47 = vector.load %arg22[%c0_41, %c0_42] : memref<192x96xf32, #tpu.memory_space<vmem>>, vector<188x96xf32>
    %48 = arith.truncf %47 : vector<188x96xf32> to vector<188x96xbf16>
    %c0_43 = arith.constant 0 : index
    %c0_44 = arith.constant 0 : index
    %c0_45 = arith.constant 0 : index
    %49 = vector.load %arg8[%c0_43, %c0_44, %c0_45] : memref<5x96x128xbf16, #tpu.memory_space<vmem>>, vector<1x96x128xbf16>
    %50 = vector.shape_cast %49 : vector<1x96x128xbf16> to vector<96x128xbf16>
    %cst_46 = arith.constant dense<0.000000e+00> : vector<188x128xf32>
    %51 = tpu.matmul %48, %50, %cst_46 {dimension_numbers = #tpu.dot_dimension_numbers<[1], [0], [0], [1], [0, 0, 1, 1], [], []>} : vector<188x96xbf16>, vector<96x128xbf16>, vector<188x128xf32> -> vector<188x128xf32>
    %c1_47 = arith.constant 1 : index
    %c0_48 = arith.constant 0 : index
    %52 = vector.load %arg22[%c1_47, %c0_48] : memref<192x96xf32, #tpu.memory_space<vmem>>, vector<188x96xf32>
    %53 = arith.truncf %52 : vector<188x96xf32> to vector<188x96xbf16>
    %c1_49 = arith.constant 1 : index
    %c0_50 = arith.constant 0 : index
    %c0_51 = arith.constant 0 : index
    %54 = vector.load %arg8[%c1_49, %c0_50, %c0_51] : memref<5x96x128xbf16, #tpu.memory_space<vmem>>, vector<1x96x128xbf16>
    %55 = vector.shape_cast %54 : vector<1x96x128xbf16> to vector<96x128xbf16>
    %cst_52 = arith.constant dense<0.000000e+00> : vector<188x128xf32>
    %56 = tpu.matmul %53, %55, %cst_52 {dimension_numbers = #tpu.dot_dimension_numbers<[1], [0], [0], [1], [0, 0, 1, 1], [], []>} : vector<188x96xbf16>, vector<96x128xbf16>, vector<188x128xf32> -> vector<188x128xf32>
    %57 = arith.addf %51, %56 : vector<188x128xf32>
    %c2_53 = arith.constant 2 : index
    %c0_54 = arith.constant 0 : index
    %58 = vector.load %arg22[%c2_53, %c0_54] : memref<192x96xf32, #tpu.memory_space<vmem>>, vector<188x96xf32>
    %59 = arith.truncf %58 : vector<188x96xf32> to vector<188x96xbf16>
    %c2_55 = arith.constant 2 : index
    %c0_56 = arith.constant 0 : index
    %c0_57 = arith.constant 0 : index
    %60 = vector.load %arg8[%c2_55, %c0_56, %c0_57] : memref<5x96x128xbf16, #tpu.memory_space<vmem>>, vector<1x96x128xbf16>
    %61 = vector.shape_cast %60 : vector<1x96x128xbf16> to vector<96x128xbf16>
    %cst_58 = arith.constant dense<0.000000e+00> : vector<188x128xf32>
    %62 = tpu.matmul %59, %61, %cst_58 {dimension_numbers = #tpu.dot_dimension_numbers<[1], [0], [0], [1], [0, 0, 1, 1], [], []>} : vector<188x96xbf16>, vector<96x128xbf16>, vector<188x128xf32> -> vector<188x128xf32>
    %63 = arith.addf %57, %62 : vector<188x128xf32>
    %c3_59 = arith.constant 3 : index
    %c0_60 = arith.constant 0 : index
    %64 = vector.load %arg22[%c3_59, %c0_60] : memref<192x96xf32, #tpu.memory_space<vmem>>, vector<188x96xf32>
    %65 = arith.truncf %64 : vector<188x96xf32> to vector<188x96xbf16>
    %c3_61 = arith.constant 3 : index
    %c0_62 = arith.constant 0 : index
    %c0_63 = arith.constant 0 : index
    %66 = vector.load %arg8[%c3_61, %c0_62, %c0_63] : memref<5x96x128xbf16, #tpu.memory_space<vmem>>, vector<1x96x128xbf16>
    %67 = vector.shape_cast %66 : vector<1x96x128xbf16> to vector<96x128xbf16>
    %cst_64 = arith.constant dense<0.000000e+00> : vector<188x128xf32>
    %68 = tpu.matmul %65, %67, %cst_64 {dimension_numbers = #tpu.dot_dimension_numbers<[1], [0], [0], [1], [0, 0, 1, 1], [], []>} : vector<188x96xbf16>, vector<96x128xbf16>, vector<188x128xf32> -> vector<188x128xf32>
    %69 = arith.addf %63, %68 : vector<188x128xf32>
    %c4_65 = arith.constant 4 : index
    %c0_66 = arith.constant 0 : index
    %70 = vector.load %arg22[%c4_65, %c0_66] : memref<192x96xf32, #tpu.memory_space<vmem>>, vector<188x96xf32>
    %71 = arith.truncf %70 : vector<188x96xf32> to vector<188x96xbf16>
    %c4_67 = arith.constant 4 : index
    %c0_68 = arith.constant 0 : index
    %c0_69 = arith.constant 0 : index
    %72 = vector.load %arg8[%c4_67, %c0_68, %c0_69] : memref<5x96x128xbf16, #tpu.memory_space<vmem>>, vector<1x96x128xbf16>
    %73 = vector.shape_cast %72 : vector<1x96x128xbf16> to vector<96x128xbf16>
    %cst_70 = arith.constant dense<0.000000e+00> : vector<188x128xf32>
    %74 = tpu.matmul %71, %73, %cst_70 {dimension_numbers = #tpu.dot_dimension_numbers<[1], [0], [0], [1], [0, 0, 1, 1], [], []>} : vector<188x96xbf16>, vector<96x128xbf16>, vector<188x128xf32> -> vector<188x128xf32>
    %75 = arith.addf %69, %74 : vector<188x128xf32>
    %c0_71 = arith.constant 0 : index
    %c0_72 = arith.constant 0 : index
    %76 = vector.load %arg9[%c0_71, %c0_72] : memref<1x128xf32, #tpu.memory_space<vmem>>, vector<1x128xf32>
    %77 = vector.broadcast %76 : vector<1x128xf32> to vector<188x128xf32>
    %78 = arith.addf %75, %77 : vector<188x128xf32>
    %cst_73 = arith.constant 0.000000e+00 : f32
    %79 = vector.broadcast %cst_73 : f32 to vector<188x128xf32>
    %80 = arith.maximumf %78, %79 : vector<188x128xf32>
    %81 = arith.truncf %80 : vector<188x128xf32> to vector<188x128xbf16>
    %c0_74 = arith.constant 0 : index
    %c0_75 = arith.constant 0 : index
    %82 = vector.load %arg10[%c0_74, %c0_75] : memref<128x64xbf16, #tpu.memory_space<vmem>>, vector<128x64xbf16>
    %cst_76 = arith.constant dense<0.000000e+00> : vector<188x64xf32>
    %83 = tpu.matmul %81, %82, %cst_76 {dimension_numbers = #tpu.dot_dimension_numbers<[1], [0], [0], [1], [0, 0, 1, 1], [], []>} : vector<188x128xbf16>, vector<128x64xbf16>, vector<188x64xf32> -> vector<188x64xf32>
    %c0_77 = arith.constant 0 : index
    %c0_78 = arith.constant 0 : index
    %84 = vector.load %arg11[%c0_77, %c0_78] : memref<128x64xbf16, #tpu.memory_space<vmem>>, vector<128x64xbf16>
    %cst_79 = arith.constant dense<0.000000e+00> : vector<188x64xf32>
    %85 = tpu.matmul %81, %84, %cst_79 {dimension_numbers = #tpu.dot_dimension_numbers<[1], [0], [0], [1], [0, 0, 1, 1], [], []>} : vector<188x128xbf16>, vector<128x64xbf16>, vector<188x64xf32> -> vector<188x64xf32>
    %86 = arith.maximumf %83, %85 : vector<188x64xf32>
    %87 = arith.truncf %86 : vector<188x64xf32> to vector<188x64xbf16>
    %c0_80 = arith.constant 0 : index
    %c0_81 = arith.constant 0 : index
    %88 = vector.load %arg12[%c0_80, %c0_81] : memref<64x188xbf16, #tpu.memory_space<vmem>>, vector<64x188xbf16>
    %cst_82 = arith.constant dense<0.000000e+00> : vector<64x64xf32>
    %89 = tpu.matmul %88, %87, %cst_82 {dimension_numbers = #tpu.dot_dimension_numbers<[1], [0], [0], [1], [0, 0, 1, 1], [], []>} : vector<64x188xbf16>, vector<188x64xbf16>, vector<64x64xf32> -> vector<64x64xf32>
    %c0_83 = arith.constant 0 : index
    %c0_84 = arith.constant 0 : index
    %90 = vector.load %arg13[%c0_83, %c0_84] : memref<64x188xbf16, #tpu.memory_space<vmem>>, vector<64x188xbf16>
    %cst_85 = arith.constant dense<0.000000e+00> : vector<64x64xf32>
    %91 = tpu.matmul %90, %87, %cst_85 {dimension_numbers = #tpu.dot_dimension_numbers<[1], [0], [0], [1], [0, 0, 1, 1], [], []>} : vector<64x188xbf16>, vector<188x64xbf16>, vector<64x64xf32> -> vector<64x64xf32>
    %92 = arith.maximumf %89, %91 : vector<64x64xf32>
    %93 = arith.truncf %92 : vector<64x64xf32> to vector<64x64xbf16>
    %c0_86 = arith.constant 0 : index
    %c0_87 = arith.constant 0 : index
    %c0_88 = arith.constant 0 : index
    %94 = vector.load %arg14[%c0_86, %c0_87, %c0_88] : memref<4x16x64xbf16, #tpu.memory_space<vmem>>, vector<1x16x64xbf16>
    %95 = vector.shape_cast %94 : vector<1x16x64xbf16> to vector<16x64xbf16>
    %cst_89 = arith.constant dense<0.000000e+00> : vector<16x64xf32>
    %96 = tpu.matmul %95, %93, %cst_89 {dimension_numbers = #tpu.dot_dimension_numbers<[1], [0], [0], [1], [0, 0, 1, 1], [], []>} : vector<16x64xbf16>, vector<64x64xbf16>, vector<16x64xf32> -> vector<16x64xf32>
    %97 = arith.truncf %96 : vector<16x64xf32> to vector<16x64xbf16>
    %c0_90 = arith.constant 0 : index
    %c0_91 = arith.constant 0 : index
    %c0_92 = arith.constant 0 : index
    %98 = vector.load %arg15[%c0_90, %c0_91, %c0_92] : memref<4x64x128xbf16, #tpu.memory_space<vmem>>, vector<1x64x128xbf16>
    %99 = vector.shape_cast %98 : vector<1x64x128xbf16> to vector<64x128xbf16>
    %cst_93 = arith.constant dense<0.000000e+00> : vector<16x128xf32>
    %100 = tpu.matmul %97, %99, %cst_93 {dimension_numbers = #tpu.dot_dimension_numbers<[1], [0], [0], [1], [0, 0, 1, 1], [], []>} : vector<16x64xbf16>, vector<64x128xbf16>, vector<16x128xf32> -> vector<16x128xf32>
    %c1_94 = arith.constant 1 : index
    %c0_95 = arith.constant 0 : index
    %c0_96 = arith.constant 0 : index
    %101 = vector.load %arg14[%c1_94, %c0_95, %c0_96] : memref<4x16x64xbf16, #tpu.memory_space<vmem>>, vector<1x16x64xbf16>
    %102 = vector.shape_cast %101 : vector<1x16x64xbf16> to vector<16x64xbf16>
    %cst_97 = arith.constant dense<0.000000e+00> : vector<16x64xf32>
    %103 = tpu.matmul %102, %93, %cst_97 {dimension_numbers = #tpu.dot_dimension_numbers<[1], [0], [0], [1], [0, 0, 1, 1], [], []>} : vector<16x64xbf16>, vector<64x64xbf16>, vector<16x64xf32> -> vector<16x64xf32>
    %104 = arith.truncf %103 : vector<16x64xf32> to vector<16x64xbf16>
    %c1_98 = arith.constant 1 : index
    %c0_99 = arith.constant 0 : index
    %c0_100 = arith.constant 0 : index
    %105 = vector.load %arg15[%c1_98, %c0_99, %c0_100] : memref<4x64x128xbf16, #tpu.memory_space<vmem>>, vector<1x64x128xbf16>
    %106 = vector.shape_cast %105 : vector<1x64x128xbf16> to vector<64x128xbf16>
    %cst_101 = arith.constant dense<0.000000e+00> : vector<16x128xf32>
    %107 = tpu.matmul %104, %106, %cst_101 {dimension_numbers = #tpu.dot_dimension_numbers<[1], [0], [0], [1], [0, 0, 1, 1], [], []>} : vector<16x64xbf16>, vector<64x128xbf16>, vector<16x128xf32> -> vector<16x128xf32>
    %108 = arith.addf %100, %107 : vector<16x128xf32>
    %c2_102 = arith.constant 2 : index
    %c0_103 = arith.constant 0 : index
    %c0_104 = arith.constant 0 : index
    %109 = vector.load %arg14[%c2_102, %c0_103, %c0_104] : memref<4x16x64xbf16, #tpu.memory_space<vmem>>, vector<1x16x64xbf16>
    %110 = vector.shape_cast %109 : vector<1x16x64xbf16> to vector<16x64xbf16>
    %cst_105 = arith.constant dense<0.000000e+00> : vector<16x64xf32>
    %111 = tpu.matmul %110, %93, %cst_105 {dimension_numbers = #tpu.dot_dimension_numbers<[1], [0], [0], [1], [0, 0, 1, 1], [], []>} : vector<16x64xbf16>, vector<64x64xbf16>, vector<16x64xf32> -> vector<16x64xf32>
    %112 = arith.truncf %111 : vector<16x64xf32> to vector<16x64xbf16>
    %c2_106 = arith.constant 2 : index
    %c0_107 = arith.constant 0 : index
    %c0_108 = arith.constant 0 : index
    %113 = vector.load %arg15[%c2_106, %c0_107, %c0_108] : memref<4x64x128xbf16, #tpu.memory_space<vmem>>, vector<1x64x128xbf16>
    %114 = vector.shape_cast %113 : vector<1x64x128xbf16> to vector<64x128xbf16>
    %cst_109 = arith.constant dense<0.000000e+00> : vector<16x128xf32>
    %115 = tpu.matmul %112, %114, %cst_109 {dimension_numbers = #tpu.dot_dimension_numbers<[1], [0], [0], [1], [0, 0, 1, 1], [], []>} : vector<16x64xbf16>, vector<64x128xbf16>, vector<16x128xf32> -> vector<16x128xf32>
    %116 = arith.addf %108, %115 : vector<16x128xf32>
    %c3_110 = arith.constant 3 : index
    %c0_111 = arith.constant 0 : index
    %c0_112 = arith.constant 0 : index
    %117 = vector.load %arg14[%c3_110, %c0_111, %c0_112] : memref<4x16x64xbf16, #tpu.memory_space<vmem>>, vector<1x16x64xbf16>
    %118 = vector.shape_cast %117 : vector<1x16x64xbf16> to vector<16x64xbf16>
    %cst_113 = arith.constant dense<0.000000e+00> : vector<16x64xf32>
    %119 = tpu.matmul %118, %93, %cst_113 {dimension_numbers = #tpu.dot_dimension_numbers<[1], [0], [0], [1], [0, 0, 1, 1], [], []>} : vector<16x64xbf16>, vector<64x64xbf16>, vector<16x64xf32> -> vector<16x64xf32>
    %120 = arith.truncf %119 : vector<16x64xf32> to vector<16x64xbf16>
    %c3_114 = arith.constant 3 : index
    %c0_115 = arith.constant 0 : index
    %c0_116 = arith.constant 0 : index
    %121 = vector.load %arg15[%c3_114, %c0_115, %c0_116] : memref<4x64x128xbf16, #tpu.memory_space<vmem>>, vector<1x64x128xbf16>
    %122 = vector.shape_cast %121 : vector<1x64x128xbf16> to vector<64x128xbf16>
    %cst_117 = arith.constant dense<0.000000e+00> : vector<16x128xf32>
    %123 = tpu.matmul %120, %122, %cst_117 {dimension_numbers = #tpu.dot_dimension_numbers<[1], [0], [0], [1], [0, 0, 1, 1], [], []>} : vector<16x64xbf16>, vector<64x128xbf16>, vector<16x128xf32> -> vector<16x128xf32>
    %124 = arith.addf %116, %123 : vector<16x128xf32>
    %c0_118 = arith.constant 0 : index
    %c0_119 = arith.constant 0 : index
    %125 = vector.load %arg16[%c0_118, %c0_119] : memref<1x128xf32, #tpu.memory_space<vmem>>, vector<1x128xf32>
    %126 = vector.broadcast %125 : vector<1x128xf32> to vector<16x128xf32>
    %127 = arith.addf %124, %126 : vector<16x128xf32>
    %cst_120 = arith.constant 0.000000e+00 : f32
    %128 = vector.broadcast %cst_120 : f32 to vector<16x128xf32>
    %129 = arith.maximumf %127, %128 : vector<16x128xf32>
    %130 = arith.truncf %129 : vector<16x128xf32> to vector<16x128xbf16>
    %c0_121 = arith.constant 0 : index
    %c0_122 = arith.constant 0 : index
    %131 = vector.load %arg17[%c0_121, %c0_122] : memref<128x64xbf16, #tpu.memory_space<vmem>>, vector<128x64xbf16>
    %cst_123 = arith.constant dense<0.000000e+00> : vector<16x64xf32>
    %132 = tpu.matmul %130, %131, %cst_123 {dimension_numbers = #tpu.dot_dimension_numbers<[1], [0], [0], [1], [0, 0, 1, 1], [], []>} : vector<16x128xbf16>, vector<128x64xbf16>, vector<16x64xf32> -> vector<16x64xf32>
    %c0_124 = arith.constant 0 : index
    %c0_125 = arith.constant 0 : index
    %133 = vector.load %arg18[%c0_124, %c0_125] : memref<1x64xf32, #tpu.memory_space<vmem>>, vector<1x64xf32>
    %134 = vector.broadcast %133 : vector<1x64xf32> to vector<16x64xf32>
    %135 = arith.addf %132, %134 : vector<16x64xf32>
    %cst_126 = arith.constant 0.000000e+00 : f32
    %136 = vector.broadcast %cst_126 : f32 to vector<16x64xf32>
    %137 = arith.maximumf %135, %136 : vector<16x64xf32>
    %138 = arith.truncf %137 : vector<16x64xf32> to vector<16x64xbf16>
    %c0_127 = arith.constant 0 : index
    %c0_128 = arith.constant 0 : index
    %139 = vector.load %arg19[%c0_127, %c0_128] : memref<64x128xbf16, #tpu.memory_space<vmem>>, vector<64x128xbf16>
    %cst_129 = arith.constant dense<0.000000e+00> : vector<16x128xf32>
    %140 = tpu.matmul %138, %139, %cst_129 {dimension_numbers = #tpu.dot_dimension_numbers<[1], [0], [0], [1], [0, 0, 1, 1], [], []>} : vector<16x64xbf16>, vector<64x128xbf16>, vector<16x128xf32> -> vector<16x128xf32>
    %c0_130 = arith.constant 0 : index
    %c0_131 = arith.constant 0 : index
    %141 = vector.load %arg20[%c0_130, %c0_131] : memref<1x128xf32, #tpu.memory_space<vmem>>, vector<1x128xf32>
    %142 = vector.broadcast %141 : vector<1x128xf32> to vector<16x128xf32>
    %143 = arith.addf %140, %142 : vector<16x128xf32>
    %c0_132 = arith.constant 0 : index
    %c0_133 = arith.constant 0 : index
    %144 = vector.load %arg21[%c0_132, %c0_133] : memref<16x128xf32, #tpu.memory_space<vmem>>, vector<16x128xf32>
    tpu.vector_store %arg21[%c0_132, %c0_133], %143 {strides = array<i32>} : memref<16x128xf32, #tpu.memory_space<vmem>>, vector<16x128xf32>,
    return
  }
  func.func @transform_0(%arg0: i32) -> (i32, i32) {
    %c0_i32 = arith.constant 0 : i32
    %c0_i32_0 = arith.constant 0 : i32
    return %arg0, %c0_i32 : i32, i32
  }
  func.func @transform_1(%arg0: i32) -> (i32, i32, i32) {
    %c0_i32 = arith.constant 0 : i32
    %c0_i32_0 = arith.constant 0 : i32
    %c0_i32_1 = arith.constant 0 : i32
    %c0_i32_2 = arith.constant 0 : i32
    return %c0_i32, %c0_i32_0, %c0_i32_1 : i32, i32, i32
  }
  func.func @transform_2(%arg0: i32) -> (i32, i32) {
    %c0_i32 = arith.constant 0 : i32
    %c0_i32_0 = arith.constant 0 : i32
    %c0_i32_1 = arith.constant 0 : i32
    return %c0_i32, %c0_i32_0 : i32, i32
  }
  func.func @transform_3(%arg0: i32) -> (i32, i32) {
    %c0_i32 = arith.constant 0 : i32
    %c0_i32_0 = arith.constant 0 : i32
    %c0_i32_1 = arith.constant 0 : i32
    return %c0_i32, %c0_i32_0 : i32, i32
  }
  func.func @transform_4(%arg0: i32) -> (i32, i32) {
    %c0_i32 = arith.constant 0 : i32
    %c0_i32_0 = arith.constant 0 : i32
    %c0_i32_1 = arith.constant 0 : i32
    return %c0_i32, %c0_i32_0 : i32, i32
  }
  func.func @transform_5(%arg0: i32) -> (i32, i32) {
    %c0_i32 = arith.constant 0 : i32
    %c0_i32_0 = arith.constant 0 : i32
    %c0_i32_1 = arith.constant 0 : i32
    return %c0_i32, %c0_i32_0 : i32, i32
  }
  func.func @transform_6(%arg0: i32) -> (i32, i32) {
    %c0_i32 = arith.constant 0 : i32
    %c0_i32_0 = arith.constant 0 : i32
    %c0_i32_1 = arith.constant 0 : i32
    return %c0_i32, %c0_i32_0 : i32, i32
  }
  func.func @transform_7(%arg0: i32) -> (i32, i32, i32) {
    %c0_i32 = arith.constant 0 : i32
    %c0_i32_0 = arith.constant 0 : i32
    %c0_i32_1 = arith.constant 0 : i32
    %c0_i32_2 = arith.constant 0 : i32
    return %c0_i32, %c0_i32_0, %c0_i32_1 : i32, i32, i32
  }
  func.func @transform_8(%arg0: i32) -> (i32, i32) {
    %c0_i32 = arith.constant 0 : i32
    %c0_i32_0 = arith.constant 0 : i32
    %c0_i32_1 = arith.constant 0 : i32
    return %c0_i32, %c0_i32_0 : i32, i32
  }
  func.func @transform_9(%arg0: i32) -> (i32, i32) {
    %c0_i32 = arith.constant 0 : i32
    %c0_i32_0 = arith.constant 0 : i32
    %c0_i32_1 = arith.constant 0 : i32
    return %c0_i32, %c0_i32_0 : i32, i32
  }
  func.func @transform_10(%arg0: i32) -> (i32, i32) {
    %c0_i32 = arith.constant 0 : i32
    %c0_i32_0 = arith.constant 0 : i32
    %c0_i32_1 = arith.constant 0 : i32
    return %c0_i32, %c0_i32_0 : i32, i32
  }
  func.func @transform_11(%arg0: i32) -> (i32, i32) {
    %c0_i32 = arith.constant 0 : i32
    %c0_i32_0 = arith.constant 0 : i32
    %c0_i32_1 = arith.constant 0 : i32
    return %c0_i32, %c0_i32_0 : i32, i32
  }
  func.func @transform_12(%arg0: i32) -> (i32, i32) {
    %c0_i32 = arith.constant 0 : i32
    %c0_i32_0 = arith.constant 0 : i32
    %c0_i32_1 = arith.constant 0 : i32
    return %c0_i32, %c0_i32_0 : i32, i32
  }
  func.func @transform_13(%arg0: i32) -> (i32, i32, i32) {
    %c0_i32 = arith.constant 0 : i32
    %c0_i32_0 = arith.constant 0 : i32
    %c0_i32_1 = arith.constant 0 : i32
    %c0_i32_2 = arith.constant 0 : i32
    return %c0_i32, %c0_i32_0, %c0_i32_1 : i32, i32, i32
  }
  func.func @transform_14(%arg0: i32) -> (i32, i32, i32) {
    %c0_i32 = arith.constant 0 : i32
    %c0_i32_0 = arith.constant 0 : i32
    %c0_i32_1 = arith.constant 0 : i32
    %c0_i32_2 = arith.constant 0 : i32
    return %c0_i32, %c0_i32_0, %c0_i32_1 : i32, i32, i32
  }
  func.func @transform_15(%arg0: i32) -> (i32, i32) {
    %c0_i32 = arith.constant 0 : i32
    %c0_i32_0 = arith.constant 0 : i32
    %c0_i32_1 = arith.constant 0 : i32
    return %c0_i32, %c0_i32_0 : i32, i32
  }
  func.func @transform_16(%arg0: i32) -> (i32, i32) {
    %c0_i32 = arith.constant 0 : i32
    %c0_i32_0 = arith.constant 0 : i32
    %c0_i32_1 = arith.constant 0 : i32
    return %c0_i32, %c0_i32_0 : i32, i32
  }
  func.func @transform_17(%arg0: i32) -> (i32, i32) {
    %c0_i32 = arith.constant 0 : i32
    %c0_i32_0 = arith.constant 0 : i32
    %c0_i32_1 = arith.constant 0 : i32
    return %c0_i32, %c0_i32_0 : i32, i32
  }
  func.func @transform_18(%arg0: i32) -> (i32, i32) {
    %c0_i32 = arith.constant 0 : i32
    %c0_i32_0 = arith.constant 0 : i32
    %c0_i32_1 = arith.constant 0 : i32
    return %c0_i32, %c0_i32_0 : i32, i32
  }
  func.func @transform_19(%arg0: i32) -> (i32, i32) {
    %c0_i32 = arith.constant 0 : i32
    %c0_i32_0 = arith.constant 0 : i32
    %c0_i32_1 = arith.constant 0 : i32
    return %c0_i32, %c0_i32_0 : i32, i32
  }
  func.func @transform_20(%arg0: i32) -> (i32, i32) {
    %c0_i32 = arith.constant 0 : i32
    %c0_i32_0 = arith.constant 0 : i32
    return %arg0, %c0_i32 : i32, i32
  }
}

</mosaic_0001>

<bundles_post_ra>
// kernel: network_forward.1
= control target key start
LH: loop header
LB: loop body
LE: loop exit
PB: predicated region body
PF: predicated region fallthrough
CT: control target
= control target key end

     0   :  { %s13781_s0 = inlined_call_operand.vmem [shape: f32[448,28], index: 0, kind: input, shape index: {}]   ;;  %s13782_s1 = inlined_call_operand.hbm [shape: bf16[5,28,192], index: 1, kind: input, shape index: {}]   ;;  %s13783_s2 = inlined_call_operand.hbm [shape: f32[1,192], index: 2, kind: input, shape index: {}]   ;;  %s13784_s3 = inlined_call_operand.hbm [shape: bf16[192,96], index: 3, kind: input, shape index: {}]   ;;  %s13785_s4 = inlined_call_operand.hbm [shape: bf16[192,96], index: 4, kind: input, shape index: {}]   ;;  %s13786_s5 = inlined_call_operand.vmem [shape: bf16[192,444], index: 5, kind: input, shape index: {}]   ;;  %s13787_s6 = inlined_call_operand.vmem [shape: bf16[192,444], index: 6, kind: input, shape index: {}]   ;;  %s13788_s7 = inlined_call_operand.hbm [shape: bf16[5,96,128], index: 7, kind: input, shape index: {}]   ;;  %s13789_s8 = inlined_call_operand.hbm [shape: f32[1,128], index: 8, kind: input, shape index: {}]   ;;  %s13790_s9 = inlined_call_operand.vmem [shape: bf16[128,64], index: 9, kind: input, shape index: {}]   ;;  %s13791_s10 = inlined_call_operand.vmem [shape: bf16[128,64], index: 10, kind: input, shape index: {}]   ;;  %s13792_s11 = inlined_call_operand.vmem [shape: bf16[64,188], index: 11, kind: input, shape index: {}]   ;;  %s13793_s12 = inlined_call_operand.hbm [shape: bf16[64,188], index: 12, kind: input, shape index: {}]   ;;  %s13794_s13 = inlined_call_operand.hbm [shape: bf16[4,16,64], index: 13, kind: input, shape index: {}]   ;;  %s13795_s14 = inlined_call_operand.hbm [shape: bf16[4,64,128], index: 14, kind: input, shape index: {}]   ;;  %s13796_s15 = inlined_call_operand.hbm [shape: f32[1,128], index: 15, kind: input, shape index: {}]   ;;  %s13797_s16 = inlined_call_operand.vmem [shape: bf16[128,64], index: 16, kind: input, shape index: {}]   ;;  %s13798_s17 = inlined_call_operand.hbm [shape: f32[1,64], index: 17, kind: input, shape index: {}]   ;;  %s13799_s18 = inlined_call_operand.hbm [shape: bf16[64,128], index: 18, kind: input, shape index: {}]   ;;  %s13800_s19 = inlined_call_operand.hbm [shape: f32[1,128], index: 19, kind: input, shape index: {}]   ;;  %s13801_s20 = inlined_call_operand.vmem [shape: f32[16,128], index: 20, kind: output, shape index: {}]  }
   0x1   :  { %13818 = sst [smem:[#allocation38_spill]] %s13781_s0 }
   0x2   :  { %13819 = sst [smem:[#allocation39_spill]] %s13782_s1 }
   0x3   :  { %13820 = sst [smem:[#allocation40_spill]] %s13783_s2 }
   0x4   :  { %13821 = sst [smem:[#allocation41_spill]] %s13784_s3 }
   0x5   :  { %13822 = sst [smem:[#allocation42_spill]] %s13785_s4 }
   0x6   :  { %13823 = sst [smem:[#allocation43_spill]] %s13801_s20 }
   0x7   :  { %25 = vsyncpa [#allocation4], 0 }
   0x8   :  { %26 = vsyncpa [#allocation6], 0 }
   0x9   :  { %27 = vsyncpa [#allocation9], 0 }
   0xa   :  { %28 = vsyncpa [#allocation12], 0 }
   0xb   :  { %29 = vsyncpa [#allocation15], 0 }
   0xc   :  { %30 = vsyncpa [#allocation18], 0 }
   0xd   :  { %31 = vsyncpa [#allocation21], 0  ;;  %s10743_s1 = smov [#allocation5]   ;;  %s13824_s2 = sld [smem:[#allocation40_spill]] }
   0xe   :  { %s52_s22 = sshll.u32 %s10743_s1, 4  ;;  %s53_s22 = int_to_ptr.vmem [resolvable:$true] %s52_s22 }
  0x13   :  { %s10443_s25 = scalar_lea.hbm %s13824_s2, 32 }
  0x14   :  { %p10444_p0 = scmp.ne.s32.totalorder %s13824_s2, %s10443_s25  ;;  %p10447_p1 = scmp.lt.u32.totalorder %s10443_s25, %s13824_s2 }
  0x16   :  { %p10449_p2 = pnand %p10447_p1, %p10444_p0 }
  0x18   :  { %10452 = shalt.err (!%p10449_p2)
}
  0x19   :  { %s10453_s4 = scalar_lea.vmem %s53_s22, 32  ;;  %p10458_p4 = scmp.lt.s32.totalorder %s53_s22, %s53_s22 }
  0x1a   :  { %p10454_p3 = scmp.ne.s32.totalorder %s53_s22, %s10453_s4  ;;  %p10459_p5 = scmp.lt.s32.totalorder %s10453_s4, %s10453_s4 }
  0x1c   :  { %p10460_p6 = por %p10459_p5, %p10458_p4 }
  0x1e   :  { %p10461_p7 = pnand %p10460_p6, %p10454_p3 }
  0x20   :  { %10464 = shalt.err (!%p10461_p7)
}
  0x21   :  { %55 = dma.hbm_to_vmem [thread:$0]  %s13824_s2, 32, %s53_s22, [#allocation6]  }
  0x22   :  { %s10744_s0 = smov [#allocation8]   ;;  %s10745_s1 = smov [#allocation11]  }
  0x23   :  { %s73_s21 = sshll.u32 %s10744_s0, 4  ;;  %s102_s23 = sshll.u32 %s10745_s1, 4  ;;  %s74_s21 = int_to_ptr.vmem [resolvable:$true] %s73_s21  ;;  %s103_s23 = int_to_ptr.vmem [resolvable:$true] %s102_s23 }
  0x24   :  { %s13825_s3 = sld [smem:[#allocation42_spill]] }
  0x2a   :  { %s10465_s26 = scalar_lea.hbm %s13825_s3, 1536 }
  0x2b   :  { %p10466_p8 = scmp.ne.s32.totalorder %s13825_s3, %s10465_s26  ;;  %p10469_p9 = scmp.lt.u32.totalorder %s10465_s26, %s13825_s3 }
  0x2d   :  { %p10471_p10 = pnand %p10469_p9, %p10466_p8 }
  0x2f   :  { %10474 = shalt.err (!%p10471_p10)
}
  0x30   :  { %s10475_s22 = scalar_lea.vmem %s74_s21, 1536  ;;  %p10480_p12 = scmp.lt.s32.totalorder %s74_s21, %s74_s21 }
  0x31   :  { %p10476_p11 = scmp.ne.s32.totalorder %s74_s21, %s10475_s22  ;;  %p10481_p13 = scmp.lt.s32.totalorder %s10475_s22, %s10475_s22 }
  0x33   :  { %p10482_p0 = por %p10481_p13, %p10480_p12 }
  0x35   :  { %p10483_p1 = pnand %p10482_p0, %p10476_p11 }
  0x37   :  { %10486 = shalt.err (!%p10483_p1)
}
  0x38   :  { %s10746_s2 = smov 64   ;;  %s10747_s29 = smov 4  }
  0x39   :  { %79 = dma.hbm_to_vmem [thread:$0]  %s13825_s3, 1536, %s74_s21, [#allocation9], %s10746_s2, %s10746_s2, %s10747_s29  }
  0x3a   :  { %s10487_s24 = scalar_lea.hbm %s13789_s8, 16 }
  0x3b   :  { %p10488_p2 = scmp.ne.s32.totalorder %s13789_s8, %s10487_s24  ;;  %p10491_p3 = scmp.lt.u32.totalorder %s10487_s24, %s13789_s8 }
  0x3d   :  { %p10493_p4 = pnand %p10491_p3, %p10488_p2 }
  0x3f   :  { %10496 = shalt.err (!%p10493_p4)
}
  0x40   :  { %s10497_s4 = scalar_lea.vmem %s103_s23, 16  ;;  %s10501_s22 = scalar_lea.vmem %s103_s23, 32 }
  0x41   :  { %p10498_p5 = scmp.ne.s32.totalorder %s103_s23, %s10497_s4  ;;  %p10502_p6 = scmp.lt.s32.totalorder %s103_s23, %s103_s23 }
  0x42   :  { %p10503_p7 = scmp.lt.s32.totalorder %s10501_s22, %s10497_s4 }
  0x44   :  { %p10504_p8 = por %p10503_p7, %p10502_p6 }
  0x46   :  { %p10505_p9 = pnand %p10504_p8, %p10498_p5 }
  0x48   :  { %10508 = shalt.err (!%p10505_p9)
}
  0x49   :  { %105 = dma.hbm_to_vmem [thread:$0]  %s13789_s8, 16, %s103_s23, [#allocation12]  }
  0x4a   :  { %s10748_s30 = smov [#allocation14]   ;;  %s10749_s20 = smov [#allocation17]  }
  0x4b   :  { %s129_s0 = sshll.u32 %s10748_s30, 4  ;;  %s154_s1 = sshll.u32 %s10749_s20, 4  ;;  %s130_s0 = int_to_ptr.vmem [resolvable:$true] %s129_s0  ;;  %s155_s1 = int_to_ptr.vmem [resolvable:$true] %s154_s1 }
  0x4c   :  { %s10509_s26 = scalar_lea.hbm %s13794_s13, 512 }
  0x4d   :  { %p10510_p10 = scmp.ne.s32.totalorder %s13794_s13, %s10509_s26  ;;  %p10513_p11 = scmp.lt.u32.totalorder %s10509_s26, %s13794_s13 }
  0x4f   :  { %p10515_p12 = pnand %p10513_p11, %p10510_p10 }
  0x51   :  { %10518 = shalt.err (!%p10515_p12)
}
  0x52   :  { %s10519_s8 = scalar_lea.vmem %s130_s0, 512  ;;  %p10524_p0 = scmp.lt.s32.totalorder %s130_s0, %s130_s0 }
  0x53   :  { %p10520_p13 = scmp.ne.s32.totalorder %s130_s0, %s10519_s8  ;;  %p10525_p1 = scmp.lt.s32.totalorder %s10519_s8, %s10519_s8 }
  0x55   :  { %p10526_p2 = por %p10525_p1, %p10524_p0 }
  0x57   :  { %p10527_p3 = pnand %p10526_p2, %p10520_p13 }
  0x59   :  { %10530 = shalt.err (!%p10527_p3)
}
  0x5a   :  { %135 = dma.hbm_to_vmem [thread:$0]  %s13794_s13, 512, %s130_s0, [#allocation15], %s10746_s2, %s10746_s2, %s10747_s29  }
  0x5b   :  { %s10531_s20 = scalar_lea.hbm %s13796_s15, 16 }
  0x5c   :  { %p10532_p4 = scmp.ne.s32.totalorder %s13796_s15, %s10531_s20  ;;  %p10535_p5 = scmp.lt.u32.totalorder %s10531_s20, %s13796_s15 }
  0x5e   :  { %p10537_p6 = pnand %p10535_p5, %p10532_p4 }
  0x60   :  { %10540 = shalt.err (!%p10537_p6)
}
  0x61   :  { %s10541_s28 = scalar_lea.vmem %s155_s1, 16  ;;  %s10545_s4 = scalar_lea.vmem %s155_s1, 32 }
  0x62   :  { %p10542_p7 = scmp.ne.s32.totalorder %s155_s1, %s10541_s28  ;;  %p10546_p8 = scmp.lt.s32.totalorder %s155_s1, %s155_s1 }
  0x63   :  { %p10547_p9 = scmp.lt.s32.totalorder %s10545_s4, %s10541_s28 }
  0x65   :  { %p10548_p10 = por %p10547_p9, %p10546_p8 }
  0x67   :  { %p10549_p11 = pnand %p10548_p10, %p10542_p7 }
  0x69   :  { %10552 = shalt.err (!%p10549_p11)
}
  0x6a   :  { %157 = dma.hbm_to_vmem [thread:$0]  %s13796_s15, 16, %s155_s1, [#allocation18]  }
  0x6b   :  { %s10750_s22 = smov [#allocation20]   ;;  %s10751_s23 = smov [#allocation3]  }
  0x6c   :  { %s175_s8 = sshll.u32 %s10750_s22, 4  ;;  %s39_s21 = sshll.u32 %s10751_s23, 4  ;;  %s176_s8 = int_to_ptr.vmem [resolvable:$true] %s175_s8  ;;  %s40_s21 = int_to_ptr.vmem [resolvable:$true] %s39_s21 }
  0x6d   :  { %s10553_s20 = scalar_lea.hbm %s13799_s18, 512 }
  0x6e   :  { %p10554_p12 = scmp.ne.s32.totalorder %s13799_s18, %s10553_s20  ;;  %p10557_p13 = scmp.lt.u32.totalorder %s10553_s20, %s13799_s18 }
  0x70   :  { %p10559_p0 = pnand %p10557_p13, %p10554_p12 }
  0x72   :  { %10562 = shalt.err (!%p10559_p0)
}
  0x73   :  { %s10563_s15 = scalar_lea.vmem %s176_s8, 512  ;;  %p10568_p2 = scmp.lt.s32.totalorder %s176_s8, %s176_s8 }
  0x74   :  { %p10564_p1 = scmp.ne.s32.totalorder %s176_s8, %s10563_s15  ;;  %p10569_p3 = scmp.lt.s32.totalorder %s10563_s15, %s10563_s15 }
  0x76   :  { %p10570_p4 = por %p10569_p3, %p10568_p2 }
  0x78   :  { %p10571_p5 = pnand %p10570_p4, %p10564_p1 }
  0x7a   :  { %10574 = shalt.err (!%p10571_p5)
}
  0x7b   :  { %181 = dma.hbm_to_vmem [thread:$0]  %s13799_s18, 512, %s176_s8, [#allocation21], %s10746_s2, %s10746_s2, %s10747_s29  }
  0x7c   :  { %s13826_s0 = sld [smem:[#allocation39_spill]] }
  0x82   :  { %s10575_s22 = scalar_lea.hbm %s13826_s0, 2560 }
  0x83   :  { %p10576_p6 = scmp.ne.s32.totalorder %s13826_s0, %s10575_s22  ;;  %p10579_p7 = scmp.lt.u32.totalorder %s10575_s22, %s13826_s0 }
  0x85   :  { %p10581_p8 = pnand %p10579_p7, %p10576_p6 }
  0x87   :  { %10584 = shalt.err (!%p10581_p8)
}
  0x88   :  { %s10585_s24 = scalar_lea.vmem %s40_s21, 2560  ;;  %p10590_p10 = scmp.lt.s32.totalorder %s40_s21, %s40_s21 }
  0x89   :  { %p10586_p9 = scmp.ne.s32.totalorder %s40_s21, %s10585_s24  ;;  %p10591_p11 = scmp.lt.s32.totalorder %s10585_s24, %s10585_s24 }
  0x8b   :  { %p10592_p12 = por %p10591_p11, %p10590_p10 }
  0x8d   :  { %p10593_p13 = pnand %p10592_p12, %p10586_p9 }
  0x8f   :  { %10596 = shalt.err (!%p10593_p13)
}
  0x90   :  { %s10752_s18 = smov 128   ;;  %s10753_s8 = smov 8  }
  0x91   :  { %45 = dma.hbm_to_vmem [thread:$0]  %s13826_s0, 2560, %s40_s21, [#allocation4], %s10752_s18, %s10752_s18, %s10753_s8  }
  0x92   :  { %s10754_s27 = smov [#allocation7]   ;;  %s10755_s1 = smov [#allocation10]  }
  0x93   :  { %s61_s15 = sshll.u32 %s10754_s27, 4  ;;  %s89_s28 = sshll.u32 %s10755_s1, 4  ;;  %s62_s15 = int_to_ptr.vmem [resolvable:$true] %s61_s15  ;;  %s90_s28 = int_to_ptr.vmem [resolvable:$true] %s89_s28 }
  0x94   :  { %s13827_s22 = sld [smem:[#allocation41_spill]] }
  0x9a   :  { %s10597_s23 = scalar_lea.hbm %s13827_s22, 1536 }
  0x9b   :  { %p10598_p0 = scmp.ne.s32.totalorder %s13827_s22, %s10597_s23  ;;  %p10601_p1 = scmp.lt.u32.totalorder %s10597_s23, %s13827_s22 }
  0x9d   :  { %p10603_p2 = pnand %p10601_p1, %p10598_p0 }
  0x9f   :  { %10606 = shalt.err (!%p10603_p2)
}
  0xa0   :  { %s10607_s21 = scalar_lea.vmem %s62_s15, 1536  ;;  %p10612_p4 = scmp.lt.s32.totalorder %s62_s15, %s62_s15 }
  0xa1   :  { %p10608_p3 = scmp.ne.s32.totalorder %s62_s15, %s10607_s21  ;;  %p10613_p5 = scmp.lt.s32.totalorder %s10607_s21, %s10607_s21 }
  0xa3   :  { %p10614_p6 = por %p10613_p5, %p10612_p4 }
  0xa5   :  { %p10615_p7 = pnand %p10614_p6, %p10608_p3 }
  0xa7   :  { %10618 = shalt.err (!%p10615_p7)
}
  0xa8   :  { %67 = dma.hbm_to_vmem [thread:$0]  %s13827_s22, 1536, %s62_s15, [#allocation6], %s10746_s2, %s10746_s2, %s10747_s29  }
  0xa9   :  { %s10619_s1 = scalar_lea.hbm %s13788_s7, 3840 }
  0xaa   :  { %p10620_p8 = scmp.ne.s32.totalorder %s13788_s7, %s10619_s1  ;;  %p10623_p9 = scmp.lt.u32.totalorder %s10619_s1, %s13788_s7 }
  0xac   :  { %p10625_p10 = pnand %p10623_p9, %p10620_p8 }
  0xae   :  { %10628 = shalt.err (!%p10625_p10)
}
  0xaf   :  { %s10629_s30 = scalar_lea.vmem %s90_s28, 3840  ;;  %p10634_p12 = scmp.lt.s32.totalorder %s90_s28, %s90_s28 }
  0xb0   :  { %p10630_p11 = scmp.ne.s32.totalorder %s90_s28, %s10629_s30  ;;  %p10635_p13 = scmp.lt.s32.totalorder %s10629_s30, %s10629_s30 }
  0xb2   :  { %p10636_p0 = por %p10635_p13, %p10634_p12 }
  0xb4   :  { %p10637_p1 = pnand %p10636_p0, %p10630_p11 }
  0xb6   :  { %10640 = shalt.err (!%p10637_p1)
}
  0xb7   :  { %95 = dma.hbm_to_vmem [thread:$0]  %s13788_s7, 3840, %s90_s28, [#allocation9], %s10746_s2, %s10746_s2, %s10747_s29  }
  0xb8   :  { %s10756_s20 = smov [#allocation13]   ;;  %s10757_s21 = smov [#allocation16]  }
  0xb9   :  { %s117_s24 = sshll.u32 %s10756_s20, 4  ;;  %s141_s0 = sshll.u32 %s10757_s21, 4  ;;  %s118_s24 = int_to_ptr.vmem [resolvable:$true] %s117_s24  ;;  %s142_s0 = int_to_ptr.vmem [resolvable:$true] %s141_s0 }
  0xba   :  { %s10641_s27 = scalar_lea.hbm %s13793_s12, 1024 }
  0xbb   :  { %p10642_p2 = scmp.ne.s32.totalorder %s13793_s12, %s10641_s27  ;;  %p10645_p3 = scmp.lt.u32.totalorder %s10641_s27, %s13793_s12 }
  0xbd   :  { %p10647_p4 = pnand %p10645_p3, %p10642_p2 }
  0xbf   :  { %10650 = shalt.err (!%p10647_p4)
}
  0xc0   :  { %s10651_s7 = scalar_lea.vmem %s118_s24, 1024  ;;  %p10656_p6 = scmp.lt.s32.totalorder %s118_s24, %s118_s24 }
  0xc1   :  { %p10652_p5 = scmp.ne.s32.totalorder %s118_s24, %s10651_s7  ;;  %p10657_p7 = scmp.lt.s32.totalorder %s10651_s7, %s10651_s7 }
  0xc3   :  { %p10658_p8 = por %p10657_p7, %p10656_p6 }
  0xc5   :  { %p10659_p9 = pnand %p10658_p8, %p10652_p5 }
  0xc7   :  { %10662 = shalt.err (!%p10659_p9)
}
  0xc8   :  { %123 = dma.hbm_to_vmem [thread:$0]  %s13793_s12, 1024, %s118_s24, [#allocation12], %s10752_s18, %s10752_s18, %s10753_s8  }
  0xc9   :  { %s10663_s22 = scalar_lea.hbm %s13795_s14, 2048 }
  0xca   :  { %p10664_p10 = scmp.ne.s32.totalorder %s13795_s14, %s10663_s22  ;;  %p10667_p11 = scmp.lt.u32.totalorder %s10663_s22, %s13795_s14 }
  0xcc   :  { %p10669_p12 = pnand %p10667_p11, %p10664_p10 }
  0xce   :  { %10672 = shalt.err (!%p10669_p12)
}
  0xcf   :  { %s10673_s27 = scalar_lea.vmem %s142_s0, 2048  ;;  %p10678_p0 = scmp.lt.s32.totalorder %s142_s0, %s142_s0 }
  0xd0   :  { %p10674_p13 = scmp.ne.s32.totalorder %s142_s0, %s10673_s27  ;;  %p10679_p1 = scmp.lt.s32.totalorder %s10673_s27, %s10673_s27 }
  0xd2   :  { %p10680_p2 = por %p10679_p1, %p10678_p0 }
  0xd4   :  { %p10681_p3 = pnand %p10680_p2, %p10674_p13 }
  0xd6   :  { %10684 = shalt.err (!%p10681_p3)
}
  0xd7   :  { %147 = dma.hbm_to_vmem [thread:$0]  %s13795_s14, 2048, %s142_s0, [#allocation15], %s10746_s2, %s10746_s2, %s10747_s29  }
  0xd8   :  { %s10758_s8 = smov [#allocation19]   ;;  %s10759_s1 = smov [#allocation22]  }
  0xd9   :  { %s166_s24 = sshll.u32 %s10758_s8, 4  ;;  %s188_s4 = sshll.u32 %s10759_s1, 4  ;;  %s167_s24 = int_to_ptr.vmem [resolvable:$true] %s166_s24  ;;  %s189_s4 = int_to_ptr.vmem [resolvable:$true] %s188_s4 }
  0xda   :  { %s10685_s7 = scalar_lea.hbm %s13798_s17, 16 }
  0xdb   :  { %p10686_p4 = scmp.ne.s32.totalorder %s13798_s17, %s10685_s7  ;;  %p10689_p5 = scmp.lt.u32.totalorder %s10685_s7, %s13798_s17 }
  0xdd   :  { %p10691_p6 = pnand %p10689_p5, %p10686_p4 }
  0xdf   :  { %10694 = shalt.err (!%p10691_p6)
}
  0xe0   :  { %s10695_s14 = scalar_lea.vmem %s167_s24, 16  ;;  %s10699_s2 = scalar_lea.vmem %s167_s24, 32 }
  0xe1   :  { %p10696_p7 = scmp.ne.s32.totalorder %s167_s24, %s10695_s14  ;;  %p10700_p8 = scmp.lt.s32.totalorder %s167_s24, %s167_s24 }
  0xe2   :  { %p10701_p9 = scmp.lt.s32.totalorder %s10699_s2, %s10695_s14 }
  0xe4   :  { %p10702_p10 = por %p10701_p9, %p10700_p8 }
  0xe6   :  { %p10703_p11 = pnand %p10702_p10, %p10696_p7 }
  0xe8   :  { %10706 = shalt.err (!%p10703_p11)
}
  0xe9   :  { %169 = dma.hbm_to_vmem [thread:$0]  %s13798_s17, 16, %s167_s24, [#allocation18]  }
  0xea   :  { %s10707_s21 = scalar_lea.hbm %s13800_s19, 16 }
  0xeb   :  { %p10708_p12 = scmp.ne.s32.totalorder %s13800_s19, %s10707_s21  ;;  %p10711_p13 = scmp.lt.u32.totalorder %s10707_s21, %s13800_s19 }
  0xed   :  { %p10713_p0 = pnand %p10711_p13, %p10708_p12 }
  0xef   :  { %10716 = shalt.err (!%p10713_p0)
}
  0xf0   :  { %s10717_s18 = scalar_lea.vmem %s189_s4, 16  ;;  %s10721_s8 = scalar_lea.vmem %s189_s4, 32 }
  0xf1   :  { %p10718_p1 = scmp.ne.s32.totalorder %s189_s4, %s10717_s18  ;;  %p10722_p2 = scmp.lt.s32.totalorder %s189_s4, %s189_s4 }
  0xf2   :  { %p10723_p3 = scmp.lt.s32.totalorder %s10721_s8, %s10717_s18 }
  0xf4   :  { %p10724_p4 = por %p10723_p3, %p10722_p2 }
  0xf6   :  { %p10725_p5 = pnand %p10724_p4, %p10718_p1 }
  0xf8   :  { %10728 = shalt.err (!%p10725_p5)
}
  0xf9   :  { %191 = dma.hbm_to_vmem [thread:$0]  %s13800_s19, 16, %s189_s4, [#allocation21]  }
  0xfa   :  { %10729 = dma.done.wait [#allocation4], 2560  }
  0xfb   :  { %10730 = vsyncadd [#allocation4], 4294964736 }
  0xfc   :  { %10731 = dma.done.wait [#allocation6], 1568  }
  0xfd   :  { %10732 = vsyncadd [#allocation6], 4294965728 }
  0xfe   :  { %10733 = dma.done.wait [#allocation9], 5376  }
  0xff   :  { %10734 = vsyncadd [#allocation9], 4294961920 }
 0x100   :  { %10735 = dma.done.wait [#allocation12], 1040  }
 0x101   :  { %10736 = vsyncadd [#allocation12], 4294966256 }
 0x102   :  { %10737 = dma.done.wait [#allocation15], 2560  }
 0x103   :  { %10738 = vsyncadd [#allocation15], 4294964736 }
 0x104   :  { %10739 = dma.done.wait [#allocation18], 32  }
 0x105   :  { %10740 = vsyncadd [#allocation18], 4294967264 }
 0x106   :  { %10741 = dma.done.wait [#allocation21], 528  }
 0x107   :  { %10742 = vsyncadd [#allocation21], 4294966768  ;;  %v13808_v0 = vmov 0   ;;  %v10143_v1 = vld [vmem:[#allocation3 + $0x24] ss:$8 sps:$4 sm:$0xff]   ;;  %vm512_vm0 = vcmask 1045504  }
 0x108   :  { %551 = vmatprep.mubr.bf16.mxu0 %v13808_v0  ;;  %3592 = vmatprep.subr.bf16.mxu1 %v13808_v0  ;;  %v10145_v2 = vld [vmem:[#allocation3 + $0x20] ss:$8 sps:$4 sm:$0xff]   ;;  %v10146_v3 = vld [vmem:[#allocation3 + $0x34] ss:$8 sps:$4 sm:$0x3f]   ;;  %s13828_s4 = sld [smem:[#allocation38_spill]] }
 0x109   :  { %519 = vmatprep.subr.bf16.mxu0 %v10143_v1  ;;  %v10148_v4 = vld [vmem:[#allocation3 + $0x30] ss:$8 sps:$4 sm:$0x3f]   ;;  %vm427_vm1 = vcmask 228352   ;;  %v10149_v21 = vld [vmem:[#allocation3] ss:$8 sps:$4 sm:$0xff]  }
 0x10a   :  { %520 = vmatpush1.bf16.msra.mxu0 %v10145_v2  ;;  %v514_v7 = vsel %vm512_vm0, %v10148_v4, 0  ;;  %v10151_v22 = vld [vmem:[#allocation3 + $0x4] ss:$8 sps:$4 sm:$0xff]   ;;  %v10152_v44 = vld [vmem:[#allocation3 + $0x14] ss:$8 sps:$4 sm:$0x3f]  }
 0x10b   :  { %8295 = vmatprep.subr.msk.bf16.mxu0 %vm512_vm0, %v10146_v3  ;;  %v10154_v45 = vld [vmem:[#allocation3 + $0x10] ss:$8 sps:$4 sm:$0x3f]   ;;  %vm3507_vm2 = vcmask 523264   ;;  %vm4562_vm3 = vcmask 490496   ;;  %vm5454_vm4 = vcmask 785408  }
 0x10c   :  { %v935_v48 = vsel %vm512_vm0, %v10154_v45, 0  ;;  %vm10762_vm5 = vmmov 0   ;;  %s13860_s1 = sld [smem:[#allocation43_spill]] }
 0x10e   :  { %v320_v5 = vld [vmem:[%s13828_s4 + $0x1] sm:$0xff]  ;;  %v321_v6 = vld [vmem:[%s13828_s4 + $0x9] sm:$0xff]  ;;  %522 = vmatpush1.bf16.msra.mxu0 %v514_v7  ;;  %v322_v9 = vld [vmem:[%s13828_s4 + $0x11] sm:$0xff] }
 0x10f   :  { %v376_v8 = vpack.c.bf16 %v321_v6, %v320_v5  ;;  %v323_v10 = vld [vmem:[%s13828_s4 + $0x19] sm:$0xff]  ;;  %v324_v12 = vld [vmem:[%s13828_s4 + $0x21] sm:$0xff]  ;;  %v325_v13 = vld [vmem:[%s13828_s4 + $0x29] sm:$0xff]  ;;  %940 = vmatprep.subr.bf16.mxu0 %v10151_v22 }
 0x110   :  { %v377_v11 = vpack.c.bf16 %v323_v10, %v322_v9  ;;  %v378_v14 = vpack.c.bf16 %v325_v13, %v324_v12  ;;  %v326_v15 = vld [vmem:[%s13828_s4 + $0x31] sm:$0xff]  ;;  %v327_v16 = vld [vmem:[%s13828_s4 + $0x39] sm:$0xff]  ;;  %v328_v18 = vld [vmem:[%s13828_s4 + $0x41] sm:$0xff] }
 0x111   :  { %8296 = vmatmul.mubr.msk.bf16.vlgmr.msra.gmra.mrb[0].mxu0 %vm427_vm1, %v376_v8  ;;  %v379_v17 = vpack.c.bf16 %v327_v16, %v326_v15  ;;  %v329_v19 = vld [vmem:[%s13828_s4 + $0x49] sm:$0xff]  ;;  %v330_v23 = vld [vmem:[%s13828_s4 + $0x51] sm:$0xff]  ;;  %v331_v24 = vld [vmem:[%s13828_s4 + $0x59] sm:$0xff] }
 0x112   :  { %561 = vmatprep.mubr.bf16.mxu0 %v13808_v0  ;;  %v380_v20 = vpack.c.bf16 %v329_v19, %v328_v18  ;;  %941 = vmatpush1.bf16.msra.mxu0 %v10149_v21  ;;  %v381_v25 = vpack.c.bf16 %v331_v24, %v330_v23  ;;  %v332_v26 = vld [vmem:[%s13828_s4 + $0x61] sm:$0xff]  ;;  %v333_v27 = vld [vmem:[%s13828_s4 + $0x69] sm:$0xff]  ;;  %v334_v29 = vld [vmem:[%s13828_s4 + $0x71] sm:$0xff] }
 0x113   :  { %v382_v28 = vpack.c.bf16 %v333_v27, %v332_v26  ;;  %v335_v30 = vld [vmem:[%s13828_s4 + $0x79] sm:$0xff]  ;;  %v336_v32 = vld [vmem:[%s13828_s4 + $0x81] sm:$0xff]  ;;  %v337_v33 = vld [vmem:[%s13828_s4 + $0x89] sm:$0xff]  ;;  %8328 = vmatprep.subr.msk.bf16.mxu0 %vm512_vm0, %v10152_v44 }
 0x114   :  { %v383_v31 = vpack.c.bf16 %v335_v30, %v334_v29  ;;  %v384_v34 = vpack.c.bf16 %v337_v33, %v336_v32  ;;  %v338_v35 = vld [vmem:[%s13828_s4 + $0x91] sm:$0xff]  ;;  %v339_v36 = vld [vmem:[%s13828_s4 + $0x99] sm:$0xff]  ;;  %v340_v38 = vld [vmem:[%s13828_s4 + $0xa1] sm:$0xff] }
 0x115   :  { %v385_v37 = vpack.c.bf16 %v339_v36, %v338_v35  ;;  %v341_v39 = vld [vmem:[%s13828_s4 + $0xa9] sm:$0xff]  ;;  %v342_v41 = vld [vmem:[%s13828_s4 + $0xb1] sm:$0xff]  ;;  %v343_v42 = vld [vmem:[%s13828_s4 + $0xb9] sm:$0xff] }
 0x116   :  { %v386_v40 = vpack.c.bf16 %v341_v39, %v340_v38  ;;  %v387_v43 = vpack.c.bf16 %v343_v42, %v342_v41  ;;  %v344_v46 = vld [vmem:[%s13828_s4 + $0xc1] sm:$0xff]  ;;  %v345_v47 = vld [vmem:[%s13828_s4 + $0xc9] sm:$0xff]  ;;  %943 = vmatpush1.bf16.msra.mxu0 %v935_v48  ;;  %v346_v50 = vld [vmem:[%s13828_s4 + $0xd1] sm:$0xff] }
 0x117   :  { %v388_v49 = vpack.c.bf16 %v345_v47, %v344_v46  ;;  %v347_v51 = vld [vmem:[%s13828_s4 + $0xd9] sm:$0xff]  ;;  %v348_v53 = vld [vmem:[%s13828_s4 + $0xe1] sm:$0xff]  ;;  %v349_v54 = vld [vmem:[%s13828_s4 + $0xe9] sm:$0xff] }
 0x118   :  { %v389_v52 = vpack.c.bf16 %v347_v51, %v346_v50  ;;  %v390_v55 = vpack.c.bf16 %v349_v54, %v348_v53  ;;  %v350_v56 = vld [vmem:[%s13828_s4 + $0xf1] sm:$0xff]  ;;  %v351_v57 = vld [vmem:[%s13828_s4 + $0xf9] sm:$0xff]  ;;  %v352_v59 = vld [vmem:[%s13828_s4 + $0x101] sm:$0xff] }
 0x119   :  { %8297 = vmatmul.mubr.msk.bf16.gmra.mrb[4].mxu0 %vm427_vm1, %v377_v11  ;;  %v391_v58 = vpack.c.bf16 %v351_v57, %v350_v56  ;;  %v353_v60 = vld [vmem:[%s13828_s4 + $0x109] sm:$0xff]  ;;  %v354_v62 = vld [vmem:[%s13828_s4 + $0x111] sm:$0xff]  ;;  %v355_v63 = vld [vmem:[%s13828_s4 + $0x119] sm:$0xff] }
 0x11a   :  { %571 = vmatprep.mubr.bf16.mxu0 %v13808_v0  ;;  %v392_v61 = vpack.c.bf16 %v353_v60, %v352_v59  ;;  %v393_v1 = vpack.c.bf16 %v355_v63, %v354_v62  ;;  %v356_v2 = vld [vmem:[%s13828_s4 + $0x121] sm:$0xff]  ;;  %v357_v3 = vld [vmem:[%s13828_s4 + $0x129] sm:$0xff]  ;;  %v358_v5 = vld [vmem:[%s13828_s4 + $0x131] sm:$0xff] }
 0x11b   :  { %v394_v4 = vpack.c.bf16 %v357_v3, %v356_v2  ;;  %v359_v6 = vld [vmem:[%s13828_s4 + $0x139] sm:$0xff]  ;;  %v360_v8 = vld [vmem:[%s13828_s4 + $0x141] sm:$0xff]  ;;  %v361_v9 = vld [vmem:[%s13828_s4 + $0x149] sm:$0xff] }
 0x11c   :  { %v395_v7 = vpack.c.bf16 %v359_v6, %v358_v5  ;;  %v396_v10 = vpack.c.bf16 %v361_v9, %v360_v8  ;;  %v362_v11 = vld [vmem:[%s13828_s4 + $0x151] sm:$0xff]  ;;  %v363_v12 = vld [vmem:[%s13828_s4 + $0x159] sm:$0xff]  ;;  %v365_v15 = vld [vmem:[%s13828_s4 + $0x169] sm:$0xff] }
 0x11d   :  { %v397_v13 = vpack.c.bf16 %v363_v12, %v362_v11  ;;  %v367_v18 = vld [vmem:[%s13828_s4 + $0x179] sm:$0xff]  ;;  %v369_v21 = vld [vmem:[%s13828_s4 + $0x189] sm:$0xff]  ;;  %v370_v23 = vld [vmem:[%s13828_s4 + $0x191] sm:$0xff] }
 0x11e   :  { %v371_v24 = vld [vmem:[%s13828_s4 + $0x199] sm:$0xff]  ;;  %v372_v26 = vld [vmem:[%s13828_s4 + $0x1a1] sm:$0xff]  ;;  %v373_v27 = vld [vmem:[%s13828_s4 + $0x1a9] sm:$0xff] }
 0x11f   :  { %v374_v29 = vld [vmem:[%s13828_s4 + $0x1b1] sm:$0xff]  ;;  %v375_v30 = vld [vmem:[%s13828_s4 + $0x1b9] sm:$0xf]  ;;  %v232_v32 = vld [vmem:[%s13828_s4] sm:$0xff] }
 0x120   :  { %v233_v33 = vld [vmem:[%s13828_s4 + $0x8] sm:$0xff]  ;;  %v234_v35 = vld [vmem:[%s13828_s4 + $0x10] sm:$0xff]  ;;  %v235_v36 = vld [vmem:[%s13828_s4 + $0x18] sm:$0xff] }
 0x121   :  { %8298 = vmatmul.mubr.msk.bf16.gmra.mrb[8].mxu0 %vm427_vm1, %v378_v14  ;;  %v364_v14 = vld [vmem:[%s13828_s4 + $0x161] sm:$0xff]  ;;  %v238_v41 = vld [vmem:[%s13828_s4 + $0x30] sm:$0xff]  ;;  %v239_v42 = vld [vmem:[%s13828_s4 + $0x38] sm:$0xff] }
 0x122   :  { %581 = vmatprep.mubr.bf16.mxu0 %v13808_v0  ;;  %v398_v16 = vpack.c.bf16 %v365_v15, %v364_v14  ;;  %v236_v38 = vld [vmem:[%s13828_s4 + $0x20] sm:$0xff]  ;;  %v237_v39 = vld [vmem:[%s13828_s4 + $0x28] sm:$0xff]  ;;  %v243_v50 = vld [vmem:[%s13828_s4 + $0x58] sm:$0xff] }
 0x123   :  { %v240_v44 = vld [vmem:[%s13828_s4 + $0x40] sm:$0xff]  ;;  %v241_v45 = vld [vmem:[%s13828_s4 + $0x48] sm:$0xff]  ;;  %v247_v56 = vld [vmem:[%s13828_s4 + $0x78] sm:$0xff] }
 0x124   :  { %v292_v46 = vpack.c.bf16 %v241_v45, %v240_v44  ;;  %v10155_v47 = vld [vmem:[#allocation3 + $0x40] ss:$8 sps:$4 sm:$0xff]   ;;  %v10157_v48 = vld [vmem:[#allocation3 + $0x44] ss:$8 sps:$4 sm:$0xff]   ;;  %v251_v62 = vld [vmem:[%s13828_s4 + $0x98] sm:$0xff] }
 0x125   :  { %1450 = vmatprep.subr.bf16.mxu0 %v10157_v48  ;;  %v245_v53 = vld [vmem:[%s13828_s4 + $0x68] sm:$0xff]  ;;  %v255_v5 = vld [vmem:[%s13828_s4 + $0xb8] sm:$0xff]  ;;  %v256_v9 = vld [vmem:[%s13828_s4 + $0xc0] sm:$0xff] }
 0x126   :  { %v249_v59 = vld [vmem:[%s13828_s4 + $0x88] sm:$0xff]  ;;  %v10160_v8 = vld [vmem:[#allocation3 + $0x50] ss:$8 sps:$4 sm:$0x3f]  }
 0x127   :  { %v253_v2 = vld [vmem:[%s13828_s4 + $0xa8] sm:$0xff]  ;;  %v1445_v11 = vsel %vm512_vm0, %v10160_v8, 0  ;;  %v259_v14 = vld [vmem:[%s13828_s4 + $0xd8] sm:$0xff] }
 0x128   :  { %v279_v44 = vld [vmem:[%s13828_s4 + $0x178] sm:$0xff]  ;;  %v1262_v8 = vld [vmem:[%s13828_s4 + $0x4a] sm:$0xff] }
 0x129   :  { %8299 = vmatmul.mubr.msk.bf16.gmra.mrb[12].mxu0 %vm427_vm1, %v379_v17  ;;  %v366_v17 = vld [vmem:[%s13828_s4 + $0x171] sm:$0xff] }
 0x12a   :  { %591 = vmatprep.mubr.bf16.mxu0 %v13808_v0  ;;  %v399_v19 = vpack.c.bf16 %v367_v18, %v366_v17  ;;  %v261_v17 = vld [vmem:[%s13828_s4 + $0xe8] sm:$0xff] }
 0x131   :  { %8300 = vmatmul.mubr.msk.bf16.gmra.mrb[16].mxu0 %vm427_vm1, %v380_v20  ;;  %v368_v20 = vld [vmem:[%s13828_s4 + $0x181] sm:$0xff] }
 0x132   :  { %601 = vmatprep.mubr.bf16.mxu0 %v13808_v0  ;;  %v400_v22 = vpack.c.bf16 %v369_v21, %v368_v20  ;;  %v263_v20 = vld [vmem:[%s13828_s4 + $0xf8] sm:$0xff] }
 0x139   :  { %8301 = vmatmul.mubr.msk.bf16.gmra.mrb[20].mxu0 %vm427_vm1, %v381_v25  ;;  %v401_v25 = vpack.c.bf16 %v371_v24, %v370_v23  ;;  %v265_v23 = vld [vmem:[%s13828_s4 + $0x108] sm:$0xff] }
 0x13a   :  { %611 = vmatprep.mubr.bf16.mxu0 %v13808_v0 }
 0x141   :  { %8302 = vmatmul.mubr.msk.bf16.gmra.mrb[24].mxu0 %vm427_vm1, %v382_v28  ;;  %v402_v28 = vpack.c.bf16 %v373_v27, %v372_v26  ;;  %v267_v26 = vld [vmem:[%s13828_s4 + $0x118] sm:$0xff] }
 0x142   :  { %621 = vmatprep.mubr.bf16.mxu0 %v13808_v0 }
 0x149   :  { %8303 = vmatmul.mubr.msk.bf16.gmra.mrb[28].mxu0 %vm427_vm1, %v383_v31  ;;  %v403_v31 = vpack.c.bf16 %v375_v30, %v374_v29  ;;  %v269_v29 = vld [vmem:[%s13828_s4 + $0x128] sm:$0xff] }
 0x14a   :  { %631 = vmatprep.mubr.bf16.mxu0 %v13808_v0 }
 0x151   :  { %8304 = vmatmul.mubr.msk.bf16.gmra.mrb[32].mxu0 %vm427_vm1, %v384_v34  ;;  %v288_v34 = vpack.c.bf16 %v233_v33, %v232_v32  ;;  %v271_v32 = vld [vmem:[%s13828_s4 + $0x138] sm:$0xff] }
 0x152   :  { %641 = vmatprep.mubr.bf16.mxu0 %v13808_v0 }
 0x159   :  { %8305 = vmatmul.mubr.msk.bf16.gmra.mrb[36].mxu0 %vm427_vm1, %v385_v37  ;;  %v289_v37 = vpack.c.bf16 %v235_v36, %v234_v35  ;;  %v273_v35 = vld [vmem:[%s13828_s4 + $0x148] sm:$0xff] }
 0x15a   :  { %651 = vmatprep.mubr.bf16.mxu0 %v13808_v0 }
 0x161   :  { %8306 = vmatmul.mubr.msk.bf16.gmra.mrb[40].mxu0 %vm427_vm1, %v386_v40  ;;  %v290_v40 = vpack.c.bf16 %v237_v39, %v236_v38  ;;  %v275_v38 = vld [vmem:[%s13828_s4 + $0x158] sm:$0xff] }
 0x162   :  { %661 = vmatprep.mubr.bf16.mxu0 %v13808_v0 }
 0x169   :  { %8307 = vmatmul.mubr.msk.bf16.gmra.mrb[44].mxu0 %vm427_vm1, %v387_v43  ;;  %v291_v43 = vpack.c.bf16 %v239_v42, %v238_v41  ;;  %v277_v41 = vld [vmem:[%s13828_s4 + $0x168] sm:$0xff] }
 0x16a   :  { %671 = vmatprep.mubr.bf16.mxu0 %v13808_v0 }
 0x171   :  { %8308 = vmatmul.mubr.msk.bf16.gmra.mrb[48].mxu0 %vm427_vm1, %v388_v49  ;;  %v242_v49 = vld [vmem:[%s13828_s4 + $0x50] sm:$0xff] }
 0x172   :  { %681 = vmatprep.mubr.bf16.mxu0 %v13808_v0  ;;  %v293_v51 = vpack.c.bf16 %v243_v50, %v242_v49  ;;  %v282_v49 = vld [vmem:[%s13828_s4 + $0x190] sm:$0xff]  ;;  %v283_v50 = vld [vmem:[%s13828_s4 + $0x198] sm:$0xff] }
 0x179   :  { %8309 = vmatmul.mubr.msk.bf16.gmra.mrb[52].mxu0 %vm427_vm1, %v389_v52  ;;  %v244_v52 = vld [vmem:[%s13828_s4 + $0x60] sm:$0xff] }
 0x17a   :  { %691 = vmatprep.mubr.bf16.mxu0 %v13808_v0  ;;  %v294_v54 = vpack.c.bf16 %v245_v53, %v244_v52  ;;  %v284_v52 = vld [vmem:[%s13828_s4 + $0x1a0] sm:$0xff]  ;;  %v285_v53 = vld [vmem:[%s13828_s4 + $0x1a8] sm:$0xff] }
 0x181   :  { %8310 = vmatmul.mubr.msk.bf16.gmra.mrb[56].mxu0 %vm427_vm1, %v390_v55  ;;  %v246_v55 = vld [vmem:[%s13828_s4 + $0x70] sm:$0xff] }
 0x182   :  { %701 = vmatprep.mubr.bf16.mxu0 %v13808_v0  ;;  %v295_v57 = vpack.c.bf16 %v247_v56, %v246_v55  ;;  %v286_v55 = vld [vmem:[%s13828_s4 + $0x1b0] sm:$0xff]  ;;  %v287_v56 = vld [vmem:[%s13828_s4 + $0x1b8] sm:$0xf] }
 0x189   :  { %8311 = vmatmul.mubr.msk.bf16.gmra.mrb[60].mxu0 %vm427_vm1, %v391_v58  ;;  %v248_v58 = vld [vmem:[%s13828_s4 + $0x80] sm:$0xff] }
 0x18a   :  { %711 = vmatprep.mubr.bf16.mxu0 %v13808_v0  ;;  %v296_v60 = vpack.c.bf16 %v249_v59, %v248_v58  ;;  %v1253_v58 = vld [vmem:[%s13828_s4 + $0x2] sm:$0xff]  ;;  %v1254_v59 = vld [vmem:[%s13828_s4 + $0xa] sm:$0xff] }
 0x191   :  { %8312 = vmatmul.mubr.msk.bf16.gmra.mrb[64].mxu0 %vm427_vm1, %v392_v61  ;;  %v250_v61 = vld [vmem:[%s13828_s4 + $0x90] sm:$0xff] }
 0x192   :  { %721 = vmatprep.mubr.bf16.mxu0 %v13808_v0  ;;  %v297_v63 = vpack.c.bf16 %v251_v62, %v250_v61  ;;  %v1255_v61 = vld [vmem:[%s13828_s4 + $0x12] sm:$0xff]  ;;  %v1256_v62 = vld [vmem:[%s13828_s4 + $0x1a] sm:$0xff] }
 0x199   :  { %8313 = vmatmul.mubr.msk.bf16.gmra.mrb[68].mxu0 %vm427_vm1, %v393_v1  ;;  %v252_v1 = vld [vmem:[%s13828_s4 + $0xa0] sm:$0xff] }
 0x19a   :  { %731 = vmatprep.mubr.bf16.mxu0 %v13808_v0  ;;  %v298_v3 = vpack.c.bf16 %v253_v2, %v252_v1  ;;  %v1257_v1 = vld [vmem:[%s13828_s4 + $0x22] sm:$0xff]  ;;  %v1258_v2 = vld [vmem:[%s13828_s4 + $0x2a] sm:$0xff] }
 0x1a1   :  { %8314 = vmatmul.mubr.msk.bf16.gmra.mrb[72].mxu0 %vm427_vm1, %v394_v4  ;;  %v254_v4 = vld [vmem:[%s13828_s4 + $0xb0] sm:$0xff] }
 0x1a2   :  { %741 = vmatprep.mubr.bf16.mxu0 %v13808_v0  ;;  %v299_v6 = vpack.c.bf16 %v255_v5, %v254_v4  ;;  %v1259_v4 = vld [vmem:[%s13828_s4 + $0x32] sm:$0xff]  ;;  %v1260_v5 = vld [vmem:[%s13828_s4 + $0x3a] sm:$0xff] }
 0x1a9   :  { %8315 = vmatmul.mubr.msk.bf16.gmra.mrb[76].mxu0 %vm427_vm1, %v395_v7  ;;  %v10158_v7 = vld [vmem:[#allocation3 + $0x54] ss:$8 sps:$4 sm:$0x3f]  }
 0x1aa   :  { %751 = vmatprep.mubr.bf16.mxu0 %v13808_v0 }
 0x1b1   :  { %8316 = vmatmul.mubr.msk.bf16.gmra.mrb[80].mxu0 %vm427_vm1, %v396_v10  ;;  %v257_v10 = vld [vmem:[%s13828_s4 + $0xc8] sm:$0xff] }
 0x1b2   :  { %761 = vmatprep.mubr.bf16.mxu0 %v13808_v0  ;;  %v300_v12 = vpack.c.bf16 %v257_v10, %v256_v9  ;;  %v10161_v10 = vld [vmem:[#allocation3 + $0x60] ss:$8 sps:$4 sm:$0xff]  }
 0x1b9   :  { %8317 = vmatmul.mubr.msk.bf16.gmra.mrb[84].mxu0 %vm427_vm1, %v397_v13  ;;  %v258_v13 = vld [vmem:[%s13828_s4 + $0xd0] sm:$0xff] }
 0x1ba   :  { %771 = vmatprep.mubr.bf16.mxu0 %v13808_v0  ;;  %v301_v15 = vpack.c.bf16 %v259_v14, %v258_v13  ;;  %v1264_v13 = vld [vmem:[%s13828_s4 + $0x5a] sm:$0xff] }
 0x1c1   :  { %8318 = vmatmul.mubr.msk.bf16.gmra.mrb[88].mxu0 %vm427_vm1, %v398_v16  ;;  %v260_v16 = vld [vmem:[%s13828_s4 + $0xe0] sm:$0xff] }
 0x1c2   :  { %781 = vmatprep.mubr.bf16.mxu0 %v13808_v0  ;;  %v302_v18 = vpack.c.bf16 %v261_v17, %v260_v16  ;;  %v1266_v16 = vld [vmem:[%s13828_s4 + $0x6a] sm:$0xff] }
 0x1c9   :  { %8319 = vmatmul.mubr.msk.bf16.gmra.mrb[92].mxu0 %vm427_vm1, %v399_v19  ;;  %v262_v19 = vld [vmem:[%s13828_s4 + $0xf0] sm:$0xff] }
 0x1ca   :  { %791 = vmatprep.mubr.bf16.mxu0 %v13808_v0  ;;  %v303_v21 = vpack.c.bf16 %v263_v20, %v262_v19  ;;  %v1268_v19 = vld [vmem:[%s13828_s4 + $0x7a] sm:$0xff] }
 0x1d1   :  { %8320 = vmatmul.mubr.msk.bf16.gmra.mrb[96].mxu0 %vm427_vm1, %v400_v22  ;;  %v264_v22 = vld [vmem:[%s13828_s4 + $0x100] sm:$0xff] }
 0x1d2   :  { %801 = vmatprep.mubr.bf16.mxu0 %v13808_v0  ;;  %v304_v24 = vpack.c.bf16 %v265_v23, %v264_v22  ;;  %v1270_v22 = vld [vmem:[%s13828_s4 + $0x8a] sm:$0xff] }
 0x1d9   :  { %8321 = vmatmul.mubr.msk.bf16.gmra.mrb[100].mxu0 %vm427_vm1, %v401_v25  ;;  %v266_v25 = vld [vmem:[%s13828_s4 + $0x110] sm:$0xff] }
 0x1da   :  { %811 = vmatprep.mubr.bf16.mxu0 %v13808_v0  ;;  %v305_v27 = vpack.c.bf16 %v267_v26, %v266_v25  ;;  %v1272_v25 = vld [vmem:[%s13828_s4 + $0x9a] sm:$0xff] }
 0x1e1   :  { %8322 = vmatmul.mubr.msk.bf16.gmra.mrb[104].mxu0 %vm427_vm1, %v402_v28  ;;  %v268_v28 = vld [vmem:[%s13828_s4 + $0x120] sm:$0xff] }
 0x1e2   :  { %821 = vmatprep.mubr.bf16.mxu0 %v13808_v0  ;;  %v306_v30 = vpack.c.bf16 %v269_v29, %v268_v28  ;;  %v1274_v28 = vld [vmem:[%s13828_s4 + $0xaa] sm:$0xff] }
 0x1e9   :  { %8323 = vmatmul.mubr.msk.bf16.gmra.mrb[108].mxu0 %vm427_vm1, %v403_v31  ;;  %v270_v31 = vld [vmem:[%s13828_s4 + $0x130] sm:$0xff] }
 0x1ea   :  { %972 = vmatprep.mubr.bf16.mxu0 %v13808_v0  ;;  %v307_v33 = vpack.c.bf16 %v271_v32, %v270_v31  ;;  %v1276_v31 = vld [vmem:[%s13828_s4 + $0xba] sm:$0xff] }
 0x1f1   :  { %8329 = vmatmul.mubr.msk.bf16.vlgmr.msra.gmra.mrb[0].mxu0 %vm427_vm1, %v288_v34  ;;  %v272_v34 = vld [vmem:[%s13828_s4 + $0x140] sm:$0xff] }
 0x1f2   :  { %982 = vmatprep.mubr.bf16.mxu0 %v13808_v0  ;;  %1451 = vmatpush1.bf16.msra.mxu0 %v10155_v47  ;;  %v308_v36 = vpack.c.bf16 %v273_v35, %v272_v34  ;;  %v281_v47 = vld [vmem:[%s13828_s4 + $0x188] sm:$0xff]  ;;  %v10166_v34 = vld [vmem:[#allocation3 + $0x70] ss:$8 sps:$4 sm:$0x3f]  }
 0x1f3   :  { %8361 = vmatprep.subr.msk.bf16.mxu0 %vm512_vm0, %v10158_v7  ;;  %v1261_v7 = vld [vmem:[%s13828_s4 + $0x42] sm:$0xff] }
 0x1f4   :  { %v1313_v9 = vpack.c.bf16 %v1262_v8, %v1261_v7  ;;  %v1277_v35 = vld [vmem:[%s13828_s4 + $0xc2] sm:$0xff]  ;;  %v1300_v7 = vld [vmem:[%s13828_s4 + $0x17a] sm:$0xff] }
 0x1f6   :  { %1453 = vmatpush1.bf16.msra.mxu0 %v1445_v11  ;;  %v10163_v11 = vld [vmem:[#allocation3 + $0x64] ss:$8 sps:$4 sm:$0xff]  }
 0x1f7   :  { %2072 = vmatprep.subr.bf16.mxu0 %v10163_v11 }
 0x1f9   :  { %8330 = vmatmul.mubr.msk.bf16.gmra.mrb[4].mxu0 %vm427_vm1, %v289_v37  ;;  %v274_v37 = vld [vmem:[%s13828_s4 + $0x150] sm:$0xff] }
 0x1fa   :  { %992 = vmatprep.mubr.bf16.mxu0 %v13808_v0  ;;  %v309_v39 = vpack.c.bf16 %v275_v38, %v274_v37  ;;  %v2067_v37 = vsel %vm512_vm0, %v10166_v34, 0  ;;  %v1884_v34 = vld [vmem:[%s13828_s4 + $0x4b] sm:$0xff] }
 0x201   :  { %8331 = vmatmul.mubr.msk.bf16.gmra.mrb[8].mxu0 %vm427_vm1, %v290_v40  ;;  %v276_v40 = vld [vmem:[%s13828_s4 + $0x160] sm:$0xff] }
 0x202   :  { %1002 = vmatprep.mubr.bf16.mxu0 %v13808_v0  ;;  %v310_v42 = vpack.c.bf16 %v277_v41, %v276_v40  ;;  %v1280_v40 = vld [vmem:[%s13828_s4 + $0xda] sm:$0xff] }
 0x209   :  { %8332 = vmatmul.mubr.msk.bf16.gmra.mrb[12].mxu0 %vm427_vm1, %v291_v43  ;;  %v278_v43 = vld [vmem:[%s13828_s4 + $0x170] sm:$0xff] }
 0x20a   :  { %1012 = vmatprep.mubr.bf16.mxu0 %v13808_v0  ;;  %v311_v45 = vpack.c.bf16 %v279_v44, %v278_v43  ;;  %v1282_v43 = vld [vmem:[%s13828_s4 + $0xea] sm:$0xff] }
 0x211   :  { %8333 = vmatmul.mubr.msk.bf16.gmra.mrb[16].mxu0 %vm427_vm1, %v292_v46  ;;  %v280_v46 = vld [vmem:[%s13828_s4 + $0x180] sm:$0xff] }
 0x212   :  { %1022 = vmatprep.mubr.bf16.mxu0 %v13808_v0  ;;  %v312_v48 = vpack.c.bf16 %v281_v47, %v280_v46  ;;  %v1284_v46 = vld [vmem:[%s13828_s4 + $0xfa] sm:$0xff] }
 0x219   :  { %8334 = vmatmul.mubr.msk.bf16.gmra.mrb[20].mxu0 %vm427_vm1, %v293_v51  ;;  %v313_v51 = vpack.c.bf16 %v283_v50, %v282_v49  ;;  %v1286_v49 = vld [vmem:[%s13828_s4 + $0x10a] sm:$0xff] }
 0x21a   :  { %1032 = vmatprep.mubr.bf16.mxu0 %v13808_v0 }
 0x221   :  { %8335 = vmatmul.mubr.msk.bf16.gmra.mrb[24].mxu0 %vm427_vm1, %v294_v54  ;;  %v314_v54 = vpack.c.bf16 %v285_v53, %v284_v52  ;;  %v1288_v52 = vld [vmem:[%s13828_s4 + $0x11a] sm:$0xff] }
 0x222   :  { %1042 = vmatprep.mubr.bf16.mxu0 %v13808_v0 }
 0x229   :  { %8336 = vmatmul.mubr.msk.bf16.gmra.mrb[28].mxu0 %vm427_vm1, %v295_v57  ;;  %v315_v57 = vpack.c.bf16 %v287_v56, %v286_v55  ;;  %v1290_v55 = vld [vmem:[%s13828_s4 + $0x12a] sm:$0xff] }
 0x22a   :  { %1052 = vmatprep.mubr.bf16.mxu0 %v13808_v0 }
 0x231   :  { %8337 = vmatmul.mubr.msk.bf16.gmra.mrb[32].mxu0 %vm427_vm1, %v296_v60  ;;  %v1309_v60 = vpack.c.bf16 %v1254_v59, %v1253_v58  ;;  %v1292_v58 = vld [vmem:[%s13828_s4 + $0x13a] sm:$0xff] }
 0x232   :  { %1062 = vmatprep.mubr.bf16.mxu0 %v13808_v0 }
 0x239   :  { %8338 = vmatmul.mubr.msk.bf16.gmra.mrb[36].mxu0 %vm427_vm1, %v297_v63  ;;  %v1310_v63 = vpack.c.bf16 %v1256_v62, %v1255_v61  ;;  %v1294_v61 = vld [vmem:[%s13828_s4 + $0x14a] sm:$0xff] }
 0x23a   :  { %1072 = vmatprep.mubr.bf16.mxu0 %v13808_v0 }
 0x241   :  { %8339 = vmatmul.mubr.msk.bf16.gmra.mrb[40].mxu0 %vm427_vm1, %v298_v3  ;;  %v1311_v3 = vpack.c.bf16 %v1258_v2, %v1257_v1  ;;  %v1296_v1 = vld [vmem:[%s13828_s4 + $0x15a] sm:$0xff] }
 0x242   :  { %1082 = vmatprep.mubr.bf16.mxu0 %v13808_v0 }
 0x249   :  { %8340 = vmatmul.mubr.msk.bf16.gmra.mrb[44].mxu0 %vm427_vm1, %v299_v6  ;;  %v1312_v6 = vpack.c.bf16 %v1260_v5, %v1259_v4  ;;  %v1298_v4 = vld [vmem:[%s13828_s4 + $0x16a] sm:$0xff] }
 0x24a   :  { %1092 = vmatprep.mubr.bf16.mxu0 %v13808_v0 }
 0x251   :  { %8341 = vmatmul.mubr.msk.bf16.gmra.mrb[48].mxu0 %vm427_vm1, %v300_v12  ;;  %v1263_v12 = vld [vmem:[%s13828_s4 + $0x52] sm:$0xff] }
 0x252   :  { %1102 = vmatprep.mubr.bf16.mxu0 %v13808_v0  ;;  %v1314_v14 = vpack.c.bf16 %v1264_v13, %v1263_v12  ;;  %v1303_v12 = vld [vmem:[%s13828_s4 + $0x192] sm:$0xff]  ;;  %v1304_v13 = vld [vmem:[%s13828_s4 + $0x19a] sm:$0xff] }
 0x259   :  { %8342 = vmatmul.mubr.msk.bf16.gmra.mrb[52].mxu0 %vm427_vm1, %v301_v15  ;;  %v1265_v15 = vld [vmem:[%s13828_s4 + $0x62] sm:$0xff] }
 0x25a   :  { %1112 = vmatprep.mubr.bf16.mxu0 %v13808_v0  ;;  %v1315_v17 = vpack.c.bf16 %v1266_v16, %v1265_v15  ;;  %v1305_v15 = vld [vmem:[%s13828_s4 + $0x1a2] sm:$0xff]  ;;  %v1306_v16 = vld [vmem:[%s13828_s4 + $0x1aa] sm:$0xff] }
 0x261   :  { %8343 = vmatmul.mubr.msk.bf16.gmra.mrb[56].mxu0 %vm427_vm1, %v302_v18  ;;  %v1267_v18 = vld [vmem:[%s13828_s4 + $0x72] sm:$0xff] }
 0x262   :  { %1122 = vmatprep.mubr.bf16.mxu0 %v13808_v0  ;;  %v1316_v20 = vpack.c.bf16 %v1268_v19, %v1267_v18  ;;  %v1307_v18 = vld [vmem:[%s13828_s4 + $0x1b2] sm:$0xff]  ;;  %v1308_v19 = vld [vmem:[%s13828_s4 + $0x1ba] sm:$0xf] }
 0x269   :  { %8344 = vmatmul.mubr.msk.bf16.gmra.mrb[60].mxu0 %vm427_vm1, %v303_v21  ;;  %v1269_v21 = vld [vmem:[%s13828_s4 + $0x82] sm:$0xff] }
 0x26a   :  { %1132 = vmatprep.mubr.bf16.mxu0 %v13808_v0  ;;  %v1317_v23 = vpack.c.bf16 %v1270_v22, %v1269_v21  ;;  %v1875_v21 = vld [vmem:[%s13828_s4 + $0x3] sm:$0xff]  ;;  %v1876_v22 = vld [vmem:[%s13828_s4 + $0xb] sm:$0xff] }
 0x271   :  { %8345 = vmatmul.mubr.msk.bf16.gmra.mrb[64].mxu0 %vm427_vm1, %v304_v24  ;;  %v1271_v24 = vld [vmem:[%s13828_s4 + $0x92] sm:$0xff] }
 0x272   :  { %1142 = vmatprep.mubr.bf16.mxu0 %v13808_v0  ;;  %v1318_v26 = vpack.c.bf16 %v1272_v25, %v1271_v24  ;;  %v1877_v24 = vld [vmem:[%s13828_s4 + $0x13] sm:$0xff]  ;;  %v1878_v25 = vld [vmem:[%s13828_s4 + $0x1b] sm:$0xff] }
 0x279   :  { %8346 = vmatmul.mubr.msk.bf16.gmra.mrb[68].mxu0 %vm427_vm1, %v305_v27  ;;  %v1273_v27 = vld [vmem:[%s13828_s4 + $0xa2] sm:$0xff] }
 0x27a   :  { %1152 = vmatprep.mubr.bf16.mxu0 %v13808_v0  ;;  %v1319_v29 = vpack.c.bf16 %v1274_v28, %v1273_v27  ;;  %v1879_v27 = vld [vmem:[%s13828_s4 + $0x23] sm:$0xff]  ;;  %v1880_v28 = vld [vmem:[%s13828_s4 + $0x2b] sm:$0xff] }
 0x281   :  { %8347 = vmatmul.mubr.msk.bf16.gmra.mrb[72].mxu0 %vm427_vm1, %v306_v30  ;;  %v1275_v30 = vld [vmem:[%s13828_s4 + $0xb2] sm:$0xff] }
 0x282   :  { %1162 = vmatprep.mubr.bf16.mxu0 %v13808_v0  ;;  %v1320_v32 = vpack.c.bf16 %v1276_v31, %v1275_v30  ;;  %v1881_v30 = vld [vmem:[%s13828_s4 + $0x33] sm:$0xff]  ;;  %v1882_v31 = vld [vmem:[%s13828_s4 + $0x3b] sm:$0xff] }
 0x289   :  { %8348 = vmatmul.mubr.msk.bf16.gmra.mrb[76].mxu0 %vm427_vm1, %v307_v33  ;;  %v10164_v33 = vld [vmem:[#allocation3 + $0x74] ss:$8 sps:$4 sm:$0x3f]  }
 0x28a   :  { %1172 = vmatprep.mubr.bf16.mxu0 %v13808_v0 }
 0x291   :  { %8349 = vmatmul.mubr.msk.bf16.gmra.mrb[80].mxu0 %vm427_vm1, %v308_v36  ;;  %v1278_v36 = vld [vmem:[%s13828_s4 + $0xca] sm:$0xff] }
 0x292   :  { %1182 = vmatprep.mubr.bf16.mxu0 %v13808_v0  ;;  %v1321_v38 = vpack.c.bf16 %v1278_v36, %v1277_v35  ;;  %v10167_v36 = vld [vmem:[#allocation3 + $0x80] ss:$8 sps:$4 sm:$0xff]  }
 0x299   :  { %8350 = vmatmul.mubr.msk.bf16.gmra.mrb[84].mxu0 %vm427_vm1, %v309_v39  ;;  %v1279_v39 = vld [vmem:[%s13828_s4 + $0xd2] sm:$0xff] }
 0x29a   :  { %1192 = vmatprep.mubr.bf16.mxu0 %v13808_v0  ;;  %v1322_v41 = vpack.c.bf16 %v1280_v40, %v1279_v39  ;;  %v1886_v39 = vld [vmem:[%s13828_s4 + $0x5b] sm:$0xff] }
 0x2a1   :  { %8351 = vmatmul.mubr.msk.bf16.gmra.mrb[88].mxu0 %vm427_vm1, %v310_v42  ;;  %v1281_v42 = vld [vmem:[%s13828_s4 + $0xe2] sm:$0xff] }
 0x2a2   :  { %1202 = vmatprep.mubr.bf16.mxu0 %v13808_v0  ;;  %v1323_v44 = vpack.c.bf16 %v1282_v43, %v1281_v42  ;;  %v1888_v42 = vld [vmem:[%s13828_s4 + $0x6b] sm:$0xff] }
 0x2a9   :  { %8352 = vmatmul.mubr.msk.bf16.gmra.mrb[92].mxu0 %vm427_vm1, %v311_v45  ;;  %v1283_v45 = vld [vmem:[%s13828_s4 + $0xf2] sm:$0xff] }
 0x2aa   :  { %1212 = vmatprep.mubr.bf16.mxu0 %v13808_v0  ;;  %v1324_v47 = vpack.c.bf16 %v1284_v46, %v1283_v45  ;;  %v1890_v45 = vld [vmem:[%s13828_s4 + $0x7b] sm:$0xff] }
 0x2b1   :  { %8353 = vmatmul.mubr.msk.bf16.gmra.mrb[96].mxu0 %vm427_vm1, %v312_v48  ;;  %v1285_v48 = vld [vmem:[%s13828_s4 + $0x102] sm:$0xff] }
 0x2b2   :  { %1222 = vmatprep.mubr.bf16.mxu0 %v13808_v0  ;;  %v1325_v50 = vpack.c.bf16 %v1286_v49, %v1285_v48  ;;  %v1892_v48 = vld [vmem:[%s13828_s4 + $0x8b] sm:$0xff] }
 0x2b9   :  { %8354 = vmatmul.mubr.msk.bf16.gmra.mrb[100].mxu0 %vm427_vm1, %v313_v51  ;;  %v1287_v51 = vld [vmem:[%s13828_s4 + $0x112] sm:$0xff] }
 0x2ba   :  { %1232 = vmatprep.mubr.bf16.mxu0 %v13808_v0  ;;  %v1326_v53 = vpack.c.bf16 %v1288_v52, %v1287_v51  ;;  %v1894_v51 = vld [vmem:[%s13828_s4 + $0x9b] sm:$0xff] }
 0x2c1   :  { %8355 = vmatmul.mubr.msk.bf16.gmra.mrb[104].mxu0 %vm427_vm1, %v314_v54  ;;  %v1289_v54 = vld [vmem:[%s13828_s4 + $0x122] sm:$0xff] }
 0x2c2   :  { %1242 = vmatprep.mubr.bf16.mxu0 %v13808_v0  ;;  %v1327_v56 = vpack.c.bf16 %v1290_v55, %v1289_v54  ;;  %v1896_v54 = vld [vmem:[%s13828_s4 + $0xab] sm:$0xff] }
 0x2c9   :  { %8356 = vmatmul.mubr.msk.bf16.gmra.mrb[108].mxu0 %vm427_vm1, %v315_v57  ;;  %v1291_v57 = vld [vmem:[%s13828_s4 + $0x132] sm:$0xff] }
 0x2ca   :  { %1482 = vmatprep.mubr.bf16.mxu0 %v13808_v0  ;;  %v1328_v59 = vpack.c.bf16 %v1292_v58, %v1291_v57  ;;  %v1898_v57 = vld [vmem:[%s13828_s4 + $0xbb] sm:$0xff] }
 0x2d1   :  { %8362 = vmatmul.mubr.msk.bf16.vlgmr.msra.gmra.mrb[0].mxu0 %vm427_vm1, %v1309_v60  ;;  %v1293_v60 = vld [vmem:[%s13828_s4 + $0x142] sm:$0xff] }
 0x2d2   :  { %1492 = vmatprep.mubr.bf16.mxu0 %v13808_v0  ;;  %2073 = vmatpush1.bf16.msra.mxu0 %v10161_v10  ;;  %v1329_v62 = vpack.c.bf16 %v1294_v61, %v1293_v60  ;;  %v1302_v10 = vld [vmem:[%s13828_s4 + $0x18a] sm:$0xff] }
 0x2d3   :  { %8394 = vmatprep.subr.msk.bf16.mxu0 %vm512_vm0, %v10164_v33  ;;  %v1883_v33 = vld [vmem:[%s13828_s4 + $0x43] sm:$0xff]  ;;  %v10172_v60 = vld [vmem:[#allocation3 + $0x90] ss:$8 sps:$4 sm:$0x3f]  }
 0x2d4   :  { %v1935_v35 = vpack.c.bf16 %v1884_v34, %v1883_v33  ;;  %v1899_v61 = vld [vmem:[%s13828_s4 + $0xc3] sm:$0xff]  ;;  %v1922_v33 = vld [vmem:[%s13828_s4 + $0x17b] sm:$0xff] }
 0x2d6   :  { %2075 = vmatpush1.bf16.msra.mxu0 %v2067_v37  ;;  %v10169_v37 = vld [vmem:[#allocation3 + $0x84] ss:$8 sps:$4 sm:$0xff]  }
 0x2d7   :  { %2694 = vmatprep.subr.bf16.mxu0 %v10169_v37 }
 0x2d9   :  { %8363 = vmatmul.mubr.msk.bf16.gmra.mrb[4].mxu0 %vm427_vm1, %v1310_v63  ;;  %v1295_v63 = vld [vmem:[%s13828_s4 + $0x152] sm:$0xff] }
 0x2da   :  { %1502 = vmatprep.mubr.bf16.mxu0 %v13808_v0  ;;  %v1330_v2 = vpack.c.bf16 %v1296_v1, %v1295_v63  ;;  %v2689_v63 = vsel %vm512_vm0, %v10172_v60, 0  ;;  %v2506_v60 = vld [vmem:[%s13828_s4 + $0x4c] sm:$0xff] }
 0x2e1   :  { %8364 = vmatmul.mubr.msk.bf16.gmra.mrb[8].mxu0 %vm427_vm1, %v1311_v3  ;;  %v1297_v3 = vld [vmem:[%s13828_s4 + $0x162] sm:$0xff] }
 0x2e2   :  { %1512 = vmatprep.mubr.bf16.mxu0 %v13808_v0  ;;  %v1331_v5 = vpack.c.bf16 %v1298_v4, %v1297_v3  ;;  %v1902_v3 = vld [vmem:[%s13828_s4 + $0xdb] sm:$0xff] }
 0x2e9   :  { %8365 = vmatmul.mubr.msk.bf16.gmra.mrb[12].mxu0 %vm427_vm1, %v1312_v6  ;;  %v1299_v6 = vld [vmem:[%s13828_s4 + $0x172] sm:$0xff] }
 0x2ea   :  { %1522 = vmatprep.mubr.bf16.mxu0 %v13808_v0  ;;  %v1332_v8 = vpack.c.bf16 %v1300_v7, %v1299_v6  ;;  %v1904_v6 = vld [vmem:[%s13828_s4 + $0xeb] sm:$0xff] }
 0x2f1   :  { %8366 = vmatmul.mubr.msk.bf16.gmra.mrb[16].mxu0 %vm427_vm1, %v1313_v9  ;;  %v1301_v9 = vld [vmem:[%s13828_s4 + $0x182] sm:$0xff] }
 0x2f2   :  { %1532 = vmatprep.mubr.bf16.mxu0 %v13808_v0  ;;  %v1333_v11 = vpack.c.bf16 %v1302_v10, %v1301_v9  ;;  %v1906_v9 = vld [vmem:[%s13828_s4 + $0xfb] sm:$0xff] }
 0x2f9   :  { %8367 = vmatmul.mubr.msk.bf16.gmra.mrb[20].mxu0 %vm427_vm1, %v1314_v14  ;;  %v1334_v14 = vpack.c.bf16 %v1304_v13, %v1303_v12  ;;  %v1908_v12 = vld [vmem:[%s13828_s4 + $0x10b] sm:$0xff] }
 0x2fa   :  { %1542 = vmatprep.mubr.bf16.mxu0 %v13808_v0 }
 0x301   :  { %8368 = vmatmul.mubr.msk.bf16.gmra.mrb[24].mxu0 %vm427_vm1, %v1315_v17  ;;  %v1335_v17 = vpack.c.bf16 %v1306_v16, %v1305_v15  ;;  %v1910_v15 = vld [vmem:[%s13828_s4 + $0x11b] sm:$0xff] }
 0x302   :  { %1552 = vmatprep.mubr.bf16.mxu0 %v13808_v0 }
 0x309   :  { %8369 = vmatmul.mubr.msk.bf16.gmra.mrb[28].mxu0 %vm427_vm1, %v1316_v20  ;;  %v1336_v20 = vpack.c.bf16 %v1308_v19, %v1307_v18  ;;  %v1912_v18 = vld [vmem:[%s13828_s4 + $0x12b] sm:$0xff] }
 0x30a   :  { %1562 = vmatprep.mubr.bf16.mxu0 %v13808_v0 }
 0x311   :  { %8370 = vmatmul.mubr.msk.bf16.gmra.mrb[32].mxu0 %vm427_vm1, %v1317_v23  ;;  %v1931_v23 = vpack.c.bf16 %v1876_v22, %v1875_v21  ;;  %v1914_v21 = vld [vmem:[%s13828_s4 + $0x13b] sm:$0xff] }
 0x312   :  { %1572 = vmatprep.mubr.bf16.mxu0 %v13808_v0 }
 0x319   :  { %8371 = vmatmul.mubr.msk.bf16.gmra.mrb[36].mxu0 %vm427_vm1, %v1318_v26  ;;  %v1932_v26 = vpack.c.bf16 %v1878_v25, %v1877_v24  ;;  %v1916_v24 = vld [vmem:[%s13828_s4 + $0x14b] sm:$0xff] }
 0x31a   :  { %1582 = vmatprep.mubr.bf16.mxu0 %v13808_v0 }
 0x321   :  { %8372 = vmatmul.mubr.msk.bf16.gmra.mrb[40].mxu0 %vm427_vm1, %v1319_v29  ;;  %v1933_v29 = vpack.c.bf16 %v1880_v28, %v1879_v27  ;;  %v1918_v27 = vld [vmem:[%s13828_s4 + $0x15b] sm:$0xff] }
 0x322   :  { %1592 = vmatprep.mubr.bf16.mxu0 %v13808_v0 }
 0x329   :  { %8373 = vmatmul.mubr.msk.bf16.gmra.mrb[44].mxu0 %vm427_vm1, %v1320_v32  ;;  %v1934_v32 = vpack.c.bf16 %v1882_v31, %v1881_v30  ;;  %v1920_v30 = vld [vmem:[%s13828_s4 + $0x16b] sm:$0xff] }
 0x32a   :  { %1602 = vmatprep.mubr.bf16.mxu0 %v13808_v0 }
 0x331   :  { %8374 = vmatmul.mubr.msk.bf16.gmra.mrb[48].mxu0 %vm427_vm1, %v1321_v38  ;;  %v1885_v38 = vld [vmem:[%s13828_s4 + $0x53] sm:$0xff] }
 0x332   :  { %1612 = vmatprep.mubr.bf16.mxu0 %v13808_v0  ;;  %v1936_v40 = vpack.c.bf16 %v1886_v39, %v1885_v38  ;;  %v1925_v38 = vld [vmem:[%s13828_s4 + $0x193] sm:$0xff]  ;;  %v1926_v39 = vld [vmem:[%s13828_s4 + $0x19b] sm:$0xff] }
 0x339   :  { %8375 = vmatmul.mubr.msk.bf16.gmra.mrb[52].mxu0 %vm427_vm1, %v1322_v41  ;;  %v1887_v41 = vld [vmem:[%s13828_s4 + $0x63] sm:$0xff] }
 0x33a   :  { %1622 = vmatprep.mubr.bf16.mxu0 %v13808_v0  ;;  %v1937_v43 = vpack.c.bf16 %v1888_v42, %v1887_v41  ;;  %v1927_v41 = vld [vmem:[%s13828_s4 + $0x1a3] sm:$0xff]  ;;  %v1928_v42 = vld [vmem:[%s13828_s4 + $0x1ab] sm:$0xff] }
 0x341   :  { %8376 = vmatmul.mubr.msk.bf16.gmra.mrb[56].mxu0 %vm427_vm1, %v1323_v44  ;;  %v1889_v44 = vld [vmem:[%s13828_s4 + $0x73] sm:$0xff] }
 0x342   :  { %1632 = vmatprep.mubr.bf16.mxu0 %v13808_v0  ;;  %v1938_v46 = vpack.c.bf16 %v1890_v45, %v1889_v44  ;;  %v1929_v44 = vld [vmem:[%s13828_s4 + $0x1b3] sm:$0xff]  ;;  %v1930_v45 = vld [vmem:[%s13828_s4 + $0x1bb] sm:$0xf] }
 0x349   :  { %8377 = vmatmul.mubr.msk.bf16.gmra.mrb[60].mxu0 %vm427_vm1, %v1324_v47  ;;  %v1891_v47 = vld [vmem:[%s13828_s4 + $0x83] sm:$0xff] }
 0x34a   :  { %1642 = vmatprep.mubr.bf16.mxu0 %v13808_v0  ;;  %v1939_v49 = vpack.c.bf16 %v1892_v48, %v1891_v47  ;;  %v2497_v47 = vld [vmem:[%s13828_s4 + $0x4] sm:$0xff]  ;;  %v2498_v48 = vld [vmem:[%s13828_s4 + $0xc] sm:$0xff] }
 0x351   :  { %8378 = vmatmul.mubr.msk.bf16.gmra.mrb[64].mxu0 %vm427_vm1, %v1325_v50  ;;  %v1893_v50 = vld [vmem:[%s13828_s4 + $0x93] sm:$0xff] }
 0x352   :  { %1652 = vmatprep.mubr.bf16.mxu0 %v13808_v0  ;;  %v1940_v52 = vpack.c.bf16 %v1894_v51, %v1893_v50  ;;  %v2499_v50 = vld [vmem:[%s13828_s4 + $0x14] sm:$0xff]  ;;  %v2500_v51 = vld [vmem:[%s13828_s4 + $0x1c] sm:$0xff] }
 0x359   :  { %8379 = vmatmul.mubr.msk.bf16.gmra.mrb[68].mxu0 %vm427_vm1, %v1326_v53  ;;  %v1895_v53 = vld [vmem:[%s13828_s4 + $0xa3] sm:$0xff] }
 0x35a   :  { %1662 = vmatprep.mubr.bf16.mxu0 %v13808_v0  ;;  %v1941_v55 = vpack.c.bf16 %v1896_v54, %v1895_v53  ;;  %v2501_v53 = vld [vmem:[%s13828_s4 + $0x24] sm:$0xff]  ;;  %v2502_v54 = vld [vmem:[%s13828_s4 + $0x2c] sm:$0xff] }
 0x361   :  { %8380 = vmatmul.mubr.msk.bf16.gmra.mrb[72].mxu0 %vm427_vm1, %v1327_v56  ;;  %v1897_v56 = vld [vmem:[%s13828_s4 + $0xb3] sm:$0xff] }
 0x362   :  { %1672 = vmatprep.mubr.bf16.mxu0 %v13808_v0  ;;  %v1942_v58 = vpack.c.bf16 %v1898_v57, %v1897_v56  ;;  %v2503_v56 = vld [vmem:[%s13828_s4 + $0x34] sm:$0xff]  ;;  %v2504_v57 = vld [vmem:[%s13828_s4 + $0x3c] sm:$0xff] }
 0x369   :  { %8381 = vmatmul.mubr.msk.bf16.gmra.mrb[76].mxu0 %vm427_vm1, %v1328_v59  ;;  %v10170_v59 = vld [vmem:[#allocation3 + $0x94] ss:$8 sps:$4 sm:$0x3f]  }
 0x36a   :  { %1682 = vmatprep.mubr.bf16.mxu0 %v13808_v0 }
 0x371   :  { %8382 = vmatmul.mubr.msk.bf16.gmra.mrb[80].mxu0 %vm427_vm1, %v1329_v62  ;;  %v1900_v62 = vld [vmem:[%s13828_s4 + $0xcb] sm:$0xff] }
 0x372   :  { %1692 = vmatprep.mubr.bf16.mxu0 %v13808_v0  ;;  %v1943_v1 = vpack.c.bf16 %v1900_v62, %v1899_v61  ;;  %v2507_v62 = vld [vmem:[%s13828_s4 + $0x54] sm:$0xff] }
 0x379   :  { %8383 = vmatmul.mubr.msk.bf16.gmra.mrb[84].mxu0 %vm427_vm1, %v1330_v2  ;;  %v1901_v2 = vld [vmem:[%s13828_s4 + $0xd3] sm:$0xff] }
 0x37a   :  { %1702 = vmatprep.mubr.bf16.mxu0 %v13808_v0  ;;  %v1944_v4 = vpack.c.bf16 %v1902_v3, %v1901_v2  ;;  %v2509_v2 = vld [vmem:[%s13828_s4 + $0x64] sm:$0xff]  ;;  %v2510_v3 = vld [vmem:[%s13828_s4 + $0x6c] sm:$0xff] }
 0x381   :  { %8384 = vmatmul.mubr.msk.bf16.gmra.mrb[88].mxu0 %vm427_vm1, %v1331_v5  ;;  %v1903_v5 = vld [vmem:[%s13828_s4 + $0xe3] sm:$0xff] }
 0x382   :  { %1712 = vmatprep.mubr.bf16.mxu0 %v13808_v0  ;;  %v1945_v7 = vpack.c.bf16 %v1904_v6, %v1903_v5  ;;  %v2559_v5 = vpack.c.bf16 %v2510_v3, %v2509_v2  ;;  %v10174_v6 = vld [vmem:[#allocation7 + $0x8] sm:$0xff]   ;;  %v2543_v2 = vld [vmem:[%s13828_s4 + $0x174] sm:$0xff]  ;;  %v2544_v3 = vld [vmem:[%s13828_s4 + $0x17c] sm:$0xff] }
 0x389   :  { %8385 = vmatmul.mubr.msk.bf16.gmra.mrb[92].mxu0 %vm427_vm1, %v1332_v8  ;;  %v1905_v8 = vld [vmem:[%s13828_s4 + $0xf3] sm:$0xff] }
 0x38a   :  { %1722 = vmatprep.mubr.bf16.mxu0 %v13808_v0  ;;  %v1946_v10 = vpack.c.bf16 %v1906_v9, %v1905_v8  ;;  %v2512_v8 = vld [vmem:[%s13828_s4 + $0x7c] sm:$0xff]  ;;  %v10175_v9 = vld [vmem:[#allocation7 + $0x10] sm:$0xff]  }
 0x391   :  { %8386 = vmatmul.mubr.msk.bf16.gmra.mrb[96].mxu0 %vm427_vm1, %v1333_v11  ;;  %v1907_v11 = vld [vmem:[%s13828_s4 + $0x103] sm:$0xff] }
 0x392   :  { %1732 = vmatprep.mubr.bf16.mxu0 %v13808_v0  ;;  %v1947_v13 = vpack.c.bf16 %v1908_v12, %v1907_v11  ;;  %v10176_v11 = vld [vmem:[#allocation7 + $0x18] sm:$0xff]   ;;  %v2513_v12 = vld [vmem:[%s13828_s4 + $0x84] sm:$0xff] }
 0x399   :  { %8387 = vmatmul.mubr.msk.bf16.gmra.mrb[100].mxu0 %vm427_vm1, %v1334_v14  ;;  %v1909_v14 = vld [vmem:[%s13828_s4 + $0x113] sm:$0xff] }
 0x39a   :  { %1742 = vmatprep.mubr.bf16.mxu0 %v13808_v0  ;;  %v1948_v16 = vpack.c.bf16 %v1910_v15, %v1909_v14  ;;  %v10177_v14 = vld [vmem:[#allocation7 + $0x20] sm:$0xff]  }
 0x3a1   :  { %8388 = vmatmul.mubr.msk.bf16.gmra.mrb[104].mxu0 %vm427_vm1, %v1335_v17  ;;  %v1911_v17 = vld [vmem:[%s13828_s4 + $0x123] sm:$0xff] }
 0x3a2   :  { %1752 = vmatprep.mubr.bf16.mxu0 %v13808_v0  ;;  %v1949_v19 = vpack.c.bf16 %v1912_v18, %v1911_v17  ;;  %v2515_v17 = vld [vmem:[%s13828_s4 + $0x94] sm:$0xff]  ;;  %v2516_v18 = vld [vmem:[%s13828_s4 + $0x9c] sm:$0xff] }
 0x3a9   :  { %8389 = vmatmul.mubr.msk.bf16.gmra.mrb[108].mxu0 %vm427_vm1, %v1336_v20  ;;  %v1913_v20 = vld [vmem:[%s13828_s4 + $0x133] sm:$0xff] }
 0x3aa   :  { %2104 = vmatprep.mubr.bf16.mxu0 %v13808_v0  ;;  %v1950_v22 = vpack.c.bf16 %v1914_v21, %v1913_v20  ;;  %v2562_v20 = vpack.c.bf16 %v2516_v18, %v2515_v17  ;;  %v10180_v21 = vld [vmem:[#allocation7 + $0x38] sm:$0xff]  }
 0x3ab   :  { %v3119_v17 = vld [vmem:[#allocation5] sm:$0x3] }
 0x3b1   :  { %8395 = vmatmul.mubr.msk.bf16.vlgmr.msra.gmra.mrb[0].mxu0 %vm427_vm1, %v1931_v23  ;;  %v1915_v23 = vld [vmem:[%s13828_s4 + $0x143] sm:$0xff] }
 0x3b2   :  { %2114 = vmatprep.mubr.bf16.mxu0 %v13808_v0  ;;  %2695 = vmatpush1.bf16.msra.mxu0 %v10167_v36  ;;  %v1951_v25 = vpack.c.bf16 %v1916_v24, %v1915_v23  ;;  %v1924_v36 = vld [vmem:[%s13828_s4 + $0x18b] sm:$0xff]  ;;  %v10181_v24 = vld [vmem:[#allocation7 + $0x40] sm:$0xff]  }
 0x3b3   :  { %8427 = vmatprep.subr.msk.bf16.mxu0 %vm512_vm0, %v10170_v59  ;;  %v2505_v59 = vld [vmem:[%s13828_s4 + $0x44] sm:$0xff]  ;;  %v2518_v23 = vld [vmem:[%s13828_s4 + $0xac] sm:$0xff] }
 0x3b4   :  { %v2557_v61 = vpack.c.bf16 %v2506_v60, %v2505_v59  ;;  %v2539_v59 = vld [vmem:[%s13828_s4 + $0x154] sm:$0xff]  ;;  %v2540_v60 = vld [vmem:[%s13828_s4 + $0x15c] sm:$0xff] }
 0x3b6   :  { %2697 = vmatpush1.bf16.msra.mxu0 %v2689_v63  ;;  %v2508_v63 = vld [vmem:[%s13828_s4 + $0x5c] sm:$0xff] }
 0x3b9   :  { %8396 = vmatmul.mubr.msk.bf16.gmra.mrb[4].mxu0 %vm427_vm1, %v1932_v26  ;;  %v1917_v26 = vld [vmem:[%s13828_s4 + $0x153] sm:$0xff] }
 0x3ba   :  { %2124 = vmatprep.mubr.bf16.mxu0 %v13808_v0  ;;  %v1952_v28 = vpack.c.bf16 %v1918_v27, %v1917_v26  ;;  %v2519_v26 = vld [vmem:[%s13828_s4 + $0xb4] sm:$0xff]  ;;  %v2520_v27 = vld [vmem:[%s13828_s4 + $0xbc] sm:$0xff] }
 0x3c1   :  { %8397 = vmatmul.mubr.msk.bf16.gmra.mrb[8].mxu0 %vm427_vm1, %v1933_v29  ;;  %v1919_v29 = vld [vmem:[%s13828_s4 + $0x163] sm:$0xff] }
 0x3c2   :  { %2134 = vmatprep.mubr.bf16.mxu0 %v13808_v0  ;;  %v1953_v31 = vpack.c.bf16 %v1920_v30, %v1919_v29  ;;  %v2564_v29 = vpack.c.bf16 %v2520_v27, %v2519_v26  ;;  %v10183_v30 = vld [vmem:[#allocation7 + $0x50] sm:$0xff]  }
 0x3c9   :  { %8398 = vmatmul.mubr.msk.bf16.gmra.mrb[12].mxu0 %vm427_vm1, %v1934_v32  ;;  %v1921_v32 = vld [vmem:[%s13828_s4 + $0x173] sm:$0xff] }
 0x3ca   :  { %2144 = vmatprep.mubr.bf16.mxu0 %v13808_v0  ;;  %v1954_v34 = vpack.c.bf16 %v1922_v33, %v1921_v32  ;;  %v2522_v32 = vld [vmem:[%s13828_s4 + $0xcc] sm:$0xff]  ;;  %v10184_v33 = vld [vmem:[#allocation7 + $0x58] sm:$0xff]  }
 0x3d1   :  { %8399 = vmatmul.mubr.msk.bf16.gmra.mrb[16].mxu0 %vm427_vm1, %v1935_v35  ;;  %v1923_v35 = vld [vmem:[%s13828_s4 + $0x183] sm:$0xff] }
 0x3d2   :  { %2154 = vmatprep.mubr.bf16.mxu0 %v13808_v0  ;;  %v1955_v37 = vpack.c.bf16 %v1924_v36, %v1923_v35  ;;  %v2523_v35 = vld [vmem:[%s13828_s4 + $0xd4] sm:$0xff]  ;;  %v2524_v36 = vld [vmem:[%s13828_s4 + $0xdc] sm:$0xff] }
 0x3d9   :  { %8400 = vmatmul.mubr.msk.bf16.gmra.mrb[20].mxu0 %vm427_vm1, %v1936_v40  ;;  %v1956_v40 = vpack.c.bf16 %v1926_v39, %v1925_v38  ;;  %v2525_v38 = vld [vmem:[%s13828_s4 + $0xe4] sm:$0xff]  ;;  %v2526_v39 = vld [vmem:[%s13828_s4 + $0xec] sm:$0xff] }
 0x3da   :  { %2164 = vmatprep.mubr.bf16.mxu0 %v13808_v0 }
 0x3e1   :  { %8401 = vmatmul.mubr.msk.bf16.gmra.mrb[24].mxu0 %vm427_vm1, %v1937_v43  ;;  %v1957_v43 = vpack.c.bf16 %v1928_v42, %v1927_v41  ;;  %v2527_v41 = vld [vmem:[%s13828_s4 + $0xf4] sm:$0xff]  ;;  %v2528_v42 = vld [vmem:[%s13828_s4 + $0xfc] sm:$0xff] }
 0x3e2   :  { %2174 = vmatprep.mubr.bf16.mxu0 %v13808_v0 }
 0x3e9   :  { %8402 = vmatmul.mubr.msk.bf16.gmra.mrb[28].mxu0 %vm427_vm1, %v1938_v46  ;;  %v1958_v46 = vpack.c.bf16 %v1930_v45, %v1929_v44  ;;  %v2529_v44 = vld [vmem:[%s13828_s4 + $0x104] sm:$0xff]  ;;  %v2530_v45 = vld [vmem:[%s13828_s4 + $0x10c] sm:$0xff] }
 0x3ea   :  { %2184 = vmatprep.mubr.bf16.mxu0 %v13808_v0 }
 0x3f1   :  { %8403 = vmatmul.mubr.msk.bf16.gmra.mrb[32].mxu0 %vm427_vm1, %v1939_v49  ;;  %v2553_v49 = vpack.c.bf16 %v2498_v48, %v2497_v47  ;;  %v2531_v47 = vld [vmem:[%s13828_s4 + $0x114] sm:$0xff]  ;;  %v2532_v48 = vld [vmem:[%s13828_s4 + $0x11c] sm:$0xff] }
 0x3f2   :  { %2194 = vmatprep.mubr.bf16.mxu0 %v13808_v0 }
 0x3f9   :  { %8404 = vmatmul.mubr.msk.bf16.gmra.mrb[36].mxu0 %vm427_vm1, %v1940_v52  ;;  %v2554_v52 = vpack.c.bf16 %v2500_v51, %v2499_v50  ;;  %v2533_v50 = vld [vmem:[%s13828_s4 + $0x124] sm:$0xff]  ;;  %v2534_v51 = vld [vmem:[%s13828_s4 + $0x12c] sm:$0xff] }
 0x3fa   :  { %2204 = vmatprep.mubr.bf16.mxu0 %v13808_v0 }
 0x401   :  { %8405 = vmatmul.mubr.msk.bf16.gmra.mrb[40].mxu0 %vm427_vm1, %v1941_v55  ;;  %v2555_v55 = vpack.c.bf16 %v2502_v54, %v2501_v53  ;;  %v2535_v53 = vld [vmem:[%s13828_s4 + $0x134] sm:$0xff]  ;;  %v2536_v54 = vld [vmem:[%s13828_s4 + $0x13c] sm:$0xff] }
 0x402   :  { %2214 = vmatprep.mubr.bf16.mxu0 %v13808_v0 }
 0x409   :  { %8406 = vmatmul.mubr.msk.bf16.gmra.mrb[44].mxu0 %vm427_vm1, %v1942_v58  ;;  %v2556_v58 = vpack.c.bf16 %v2504_v57, %v2503_v56  ;;  %v2537_v56 = vld [vmem:[%s13828_s4 + $0x144] sm:$0xff]  ;;  %v2538_v57 = vld [vmem:[%s13828_s4 + $0x14c] sm:$0xff] }
 0x40a   :  { %2224 = vmatprep.mubr.bf16.mxu0 %v13808_v0 }
 0x411   :  { %8407 = vmatmul.mubr.msk.bf16.gmra.mrb[48].mxu0 %vm427_vm1, %v1943_v1  ;;  %v2558_v1 = vpack.c.bf16 %v2508_v63, %v2507_v62  ;;  %v2541_v62 = vld [vmem:[%s13828_s4 + $0x164] sm:$0xff]  ;;  %v2542_v63 = vld [vmem:[%s13828_s4 + $0x16c] sm:$0xff] }
 0x412   :  { %2234 = vmatprep.mubr.bf16.mxu0 %v13808_v0 }
 0x419   :  { %8408 = vmatmul.mubr.msk.bf16.gmra.mrb[52].mxu0 %vm427_vm1, %v1944_v4  ;;  %v10173_v4 = vld [vmem:[#allocation7] sm:$0xff]  }
 0x41a   :  { %2244 = vmatprep.mubr.bf16.mxu0 %v13808_v0  ;;  %3593 = vmatpush1.bf16.msra.mxu1 %v10173_v4  ;;  %v2576_v4 = vpack.c.bf16 %v2544_v3, %v2543_v2 }
 0x41b   :  { %3594 = vmatprep.subr.bf16.mxu1 %v13808_v0 }
 0x41e   :  { %3595 = vmatpush1.bf16.msra.mxu1 %v10174_v6  ;;  %v2546_v6 = vld [vmem:[%s13828_s4 + $0x18c] sm:$0xff] }
 0x41f   :  { %3596 = vmatprep.subr.bf16.mxu1 %v13808_v0 }
 0x421   :  { %8409 = vmatmul.mubr.msk.bf16.gmra.mrb[56].mxu0 %vm427_vm1, %v1945_v7  ;;  %v2511_v7 = vld [vmem:[%s13828_s4 + $0x74] sm:$0xff] }
 0x422   :  { %2254 = vmatprep.mubr.bf16.mxu0 %v13808_v0  ;;  %3597 = vmatpush1.bf16.msra.mxu1 %v10175_v9  ;;  %v2548_v9 = vld [vmem:[%s13828_s4 + $0x19c] sm:$0xff] }
 0x423   :  { %3598 = vmatprep.subr.bf16.mxu1 %v13808_v0 }
 0x426   :  { %3599 = vmatpush1.bf16.msra.mxu1 %v10176_v11  ;;  %v3121_v11 = vlaneseq }
 0x427   :  { %3600 = vmatprep.subr.bf16.mxu1 %v13808_v0 }
 0x429   :  { %8410 = vmatmul.mubr.msk.bf16.gmra.mrb[60].mxu0 %vm427_vm1, %v1946_v10  ;;  %v2560_v10 = vpack.c.bf16 %v2512_v8, %v2511_v7  ;;  %v2547_v8 = vld [vmem:[%s13828_s4 + $0x194] sm:$0xff] }
 0x42a   :  { %2264 = vmatprep.mubr.bf16.mxu0 %v13808_v0  ;;  %3601 = vmatpush1.bf16.msra.mxu1 %v10177_v14  ;;  %v2550_v14 = vld [vmem:[%s13828_s4 + $0x1ac] sm:$0xff] }
 0x42b   :  { %3602 = vmatprep.subr.bf16.mxu1 %v13808_v0 }
 0x431   :  { %8411 = vmatmul.mubr.msk.bf16.gmra.mrb[64].mxu0 %vm427_vm1, %v1947_v13  ;;  %v2514_v13 = vld [vmem:[%s13828_s4 + $0x8c] sm:$0xff] }
 0x432   :  { %2274 = vmatprep.mubr.bf16.mxu0 %v13808_v0  ;;  %v2561_v15 = vpack.c.bf16 %v2514_v13, %v2513_v12  ;;  %v3122_v12 = vshrl.u32 %v3121_v11, 7  ;;  %v2549_v13 = vld [vmem:[%s13828_s4 + $0x1a4] sm:$0xff] }
 0x434   :  { %v3127_v18 = vsub.s32 1, %v3122_v12 }
 0x439   :  { %8412 = vmatmul.mubr.msk.bf16.gmra.mrb[68].mxu0 %vm427_vm1, %v1948_v16  ;;  %v10178_v16 = vld [vmem:[#allocation7 + $0x28] sm:$0xff]  }
 0x43a   :  { %2284 = vmatprep.mubr.bf16.mxu0 %v13808_v0  ;;  %3603 = vmatpush1.bf16.msra.mxu1 %v10178_v16  ;;  %v3123_v16 = vsub.s32 0, %v3122_v12 }
 0x43b   :  { %3604 = vmatprep.subr.bf16.mxu1 %v13808_v0 }
 0x441   :  { %8413 = vmatmul.mubr.msk.bf16.gmra.mrb[72].mxu0 %vm427_vm1, %v1949_v19  ;;  %v10179_v19 = vld [vmem:[#allocation7 + $0x30] sm:$0xff]  }
 0x442   :  { %2294 = vmatprep.mubr.bf16.mxu0 %v13808_v0  ;;  %3605 = vmatpush1.bf16.msra.mxu1 %v10179_v19  ;;  %v12183_v19 = vrot.slane %v3119_v17, %v3123_v16 }
 0x443   :  { %3606 = vmatprep.subr.bf16.mxu1 %v13808_v0 }
 0x446   :  { %3607 = vmatpush1.bf16.msra.mxu1 %v10180_v21  ;;  %v2551_v21 = vld [vmem:[%s13828_s4 + $0x1b4] sm:$0xff] }
 0x447   :  { %3608 = vmatprep.subr.bf16.mxu1 %v13808_v0 }
 0x449   :  { %8414 = vmatmul.mubr.msk.bf16.gmra.mrb[76].mxu0 %vm427_vm1, %v1950_v22  ;;  %v2517_v22 = vld [vmem:[%s13828_s4 + $0xa4] sm:$0xff] }
 0x44a   :  { %2304 = vmatprep.mubr.bf16.mxu0 %v13808_v0  ;;  %3609 = vmatpush1.bf16.msra.mxu1 %v10181_v24 }
 0x44b   :  { %3610 = vmatprep.subr.bf16.mxu1 %v13808_v0 }
 0x451   :  { %8415 = vmatmul.mubr.msk.bf16.gmra.mrb[80].mxu0 %vm427_vm1, %v1951_v25  ;;  %v2563_v25 = vpack.c.bf16 %v2518_v23, %v2517_v22  ;;  %v2552_v22 = vld [vmem:[%s13828_s4 + $0x1bc] sm:$0xf] }
 0x452   :  { %2314 = vmatprep.mubr.bf16.mxu0 %v13808_v0  ;;  %v2580_v26 = vpack.c.bf16 %v2552_v22, %v2551_v21 }
 0x459   :  { %8416 = vmatmul.mubr.msk.bf16.gmra.mrb[84].mxu0 %vm427_vm1, %v1952_v28  ;;  %v10182_v28 = vld [vmem:[#allocation7 + $0x48] sm:$0xff]  }
 0x45a   :  { %2324 = vmatprep.mubr.bf16.mxu0 %v13808_v0  ;;  %3611 = vmatpush1.bf16.msra.mxu1 %v10182_v28 }
 0x45b   :  { %3612 = vmatprep.subr.bf16.mxu1 %v13808_v0 }
 0x45e   :  { %3613 = vmatpush1.bf16.msra.mxu1 %v10183_v30 }
 0x45f   :  { %3614 = vmatprep.subr.bf16.mxu1 %v13808_v0 }
 0x461   :  { %8417 = vmatmul.mubr.msk.bf16.gmra.mrb[88].mxu0 %vm427_vm1, %v1953_v31  ;;  %v2521_v31 = vld [vmem:[%s13828_s4 + $0xc4] sm:$0xff] }
 0x462   :  { %2334 = vmatprep.mubr.bf16.mxu0 %v13808_v0  ;;  %3615 = vmatpush1.bf16.msra.mxu1 %v10184_v33 }
 0x463   :  { %3945 = vmatprep.subr.bf16.mxu1 %v13808_v0 }
 0x469   :  { %8418 = vmatmul.mubr.msk.bf16.gmra.mrb[92].mxu0 %vm427_vm1, %v1954_v34  ;;  %v2565_v34 = vpack.c.bf16 %v2522_v32, %v2521_v31 }
 0x46a   :  { %2344 = vmatprep.mubr.bf16.mxu0 %v13808_v0 }
 0x471   :  { %8419 = vmatmul.mubr.msk.bf16.gmra.mrb[96].mxu0 %vm427_vm1, %v1955_v37  ;;  %v2566_v37 = vpack.c.bf16 %v2524_v36, %v2523_v35 }
 0x472   :  { %2354 = vmatprep.mubr.bf16.mxu0 %v13808_v0 }
 0x479   :  { %8420 = vmatmul.mubr.msk.bf16.gmra.mrb[100].mxu0 %vm427_vm1, %v1956_v40  ;;  %v2567_v40 = vpack.c.bf16 %v2526_v39, %v2525_v38 }
 0x47a   :  { %2364 = vmatprep.mubr.bf16.mxu0 %v13808_v0 }
 0x481   :  { %8421 = vmatmul.mubr.msk.bf16.gmra.mrb[104].mxu0 %vm427_vm1, %v1957_v43  ;;  %v2568_v43 = vpack.c.bf16 %v2528_v42, %v2527_v41 }
 0x482   :  { %2374 = vmatprep.mubr.bf16.mxu0 %v13808_v0 }
 0x489   :  { %8422 = vmatmul.mubr.msk.bf16.gmra.mrb[108].mxu0 %vm427_vm1, %v1958_v46  ;;  %v2569_v46 = vpack.c.bf16 %v2530_v45, %v2529_v44 }
 0x48a   :  { %2726 = vmatprep.mubr.bf16.mxu0 %v13808_v0 }
 0x491   :  { %8428 = vmatmul.mubr.msk.bf16.vlgmr.msra.gmra.mrb[0].mxu0 %vm427_vm1, %v2553_v49  ;;  %v2570_v49 = vpack.c.bf16 %v2532_v48, %v2531_v47 }
 0x492   :  { %2736 = vmatprep.mubr.bf16.mxu0 %v13808_v0 }
 0x499   :  { %8429 = vmatmul.mubr.msk.bf16.gmra.mrb[4].mxu0 %vm427_vm1, %v2554_v52  ;;  %v2571_v52 = vpack.c.bf16 %v2534_v51, %v2533_v50 }
 0x49a   :  { %2746 = vmatprep.mubr.bf16.mxu0 %v13808_v0 }
 0x4a1   :  { %8430 = vmatmul.mubr.msk.bf16.gmra.mrb[8].mxu0 %vm427_vm1, %v2555_v55  ;;  %v2572_v55 = vpack.c.bf16 %v2536_v54, %v2535_v53 }
 0x4a2   :  { %2756 = vmatprep.mubr.bf16.mxu0 %v13808_v0 }
 0x4a9   :  { %8431 = vmatmul.mubr.msk.bf16.gmra.mrb[12].mxu0 %vm427_vm1, %v2556_v58  ;;  %v2573_v58 = vpack.c.bf16 %v2538_v57, %v2537_v56 }
 0x4aa   :  { %2766 = vmatprep.mubr.bf16.mxu0 %v13808_v0 }
 0x4b1   :  { %8432 = vmatmul.mubr.msk.bf16.gmra.mrb[16].mxu0 %vm427_vm1, %v2557_v61  ;;  %v2574_v61 = vpack.c.bf16 %v2540_v60, %v2539_v59 }
 0x4b2   :  { %2776 = vmatprep.mubr.bf16.mxu0 %v13808_v0 }
 0x4b9   :  { %8433 = vmatmul.mubr.msk.bf16.gmra.mrb[20].mxu0 %vm427_vm1, %v2558_v1  ;;  %v2575_v1 = vpack.c.bf16 %v2542_v63, %v2541_v62 }
 0x4ba   :  { %2786 = vmatprep.mubr.bf16.mxu0 %v13808_v0 }
 0x4c1   :  { %8434 = vmatmul.mubr.msk.bf16.gmra.mrb[24].mxu0 %vm427_vm1, %v2559_v5  ;;  %v2545_v5 = vld [vmem:[%s13828_s4 + $0x184] sm:$0xff] }
 0x4c2   :  { %2796 = vmatprep.mubr.bf16.mxu0 %v13808_v0  ;;  %v2577_v7 = vpack.c.bf16 %v2546_v6, %v2545_v5 }
 0x4c9   :  { %8435 = vmatmul.mubr.msk.bf16.gmra.mrb[28].mxu0 %vm427_vm1, %v2560_v10  ;;  %v2578_v10 = vpack.c.bf16 %v2548_v9, %v2547_v8 }
 0x4ca   :  { %2806 = vmatprep.mubr.bf16.mxu0 %v13808_v0 }
 0x4d1   :  { %8436 = vmatmul.mubr.msk.bf16.gmra.mrb[32].mxu0 %vm427_vm1, %v2561_v15  ;;  %v2579_v15 = vpack.c.bf16 %v2550_v14, %v2549_v13 }
 0x4d2   :  { %2816 = vmatprep.mubr.bf16.mxu0 %v13808_v0 }
 0x4d9   :  { %8437 = vmatmul.mubr.msk.bf16.gmra.mrb[36].mxu0 %vm427_vm1, %v2562_v20  ;;  %v12185_v20 = vrot.slane %v3119_v17, %v3127_v18 }
 0x4da   :  { %2826 = vmatprep.mubr.bf16.mxu0 %v13808_v0 }
 0x4e1   :  { %8438 = vmatmul.mubr.msk.bf16.gmra.mrb[40].mxu0 %vm427_vm1, %v2563_v25 }
 0x4e2   :  { %2836 = vmatprep.mubr.bf16.mxu0 %v13808_v0 }
 0x4e9   :  { %8439 = vmatmul.mubr.msk.bf16.gmra.mrb[44].mxu0 %vm427_vm1, %v2564_v29 }
 0x4ea   :  { %2846 = vmatprep.mubr.bf16.mxu0 %v13808_v0 }
 0x4f1   :  { %8440 = vmatmul.mubr.msk.bf16.gmra.mrb[48].mxu0 %vm427_vm1, %v2565_v34 }
 0x4f2   :  { %2856 = vmatprep.mubr.bf16.mxu0 %v13808_v0 }
 0x4f9   :  { %8441 = vmatmul.mubr.msk.bf16.gmra.mrb[52].mxu0 %vm427_vm1, %v2566_v37 }
 0x4fa   :  { %2866 = vmatprep.mubr.bf16.mxu0 %v13808_v0 }
 0x501   :  { %8442 = vmatmul.mubr.msk.bf16.gmra.mrb[56].mxu0 %vm427_vm1, %v2567_v40 }
 0x502   :  { %2876 = vmatprep.mubr.bf16.mxu0 %v13808_v0 }
 0x509   :  { %8443 = vmatmul.mubr.msk.bf16.gmra.mrb[60].mxu0 %vm427_vm1, %v2568_v43 }
 0x50a   :  { %2886 = vmatprep.mubr.bf16.mxu0 %v13808_v0 }
 0x511   :  { %8444 = vmatmul.mubr.msk.bf16.gmra.mrb[64].mxu0 %vm427_vm1, %v2569_v46 }
 0x512   :  { %2896 = vmatprep.mubr.bf16.mxu0 %v13808_v0 }
 0x519   :  { %8445 = vmatmul.mubr.msk.bf16.gmra.mrb[68].mxu0 %vm427_vm1, %v2570_v49 }
 0x51a   :  { %2906 = vmatprep.mubr.bf16.mxu0 %v13808_v0 }
 0x521   :  { %8446 = vmatmul.mubr.msk.bf16.gmra.mrb[72].mxu0 %vm427_vm1, %v2571_v52 }
 0x522   :  { %2916 = vmatprep.mubr.bf16.mxu0 %v13808_v0 }
 0x529   :  { %8447 = vmatmul.mubr.msk.bf16.gmra.mrb[76].mxu0 %vm427_vm1, %v2572_v55 }
 0x52a   :  { %2926 = vmatprep.mubr.bf16.mxu0 %v13808_v0 }
 0x531   :  { %8448 = vmatmul.mubr.msk.bf16.gmra.mrb[80].mxu0 %vm427_vm1, %v2573_v58 }
 0x532   :  { %2936 = vmatprep.mubr.bf16.mxu0 %v13808_v0 }
 0x539   :  { %8449 = vmatmul.mubr.msk.bf16.gmra.mrb[84].mxu0 %vm427_vm1, %v2574_v61 }
 0x53a   :  { %2946 = vmatprep.mubr.bf16.mxu0 %v13808_v0 }
 0x541   :  { %8450 = vmatmul.mubr.msk.bf16.gmra.mrb[88].mxu0 %vm427_vm1, %v2575_v1 }
 0x542   :  { %2956 = vmatprep.mubr.bf16.mxu0 %v13808_v0 }
 0x549   :  { %8451 = vmatmul.mubr.msk.bf16.gmra.mrb[92].mxu0 %vm427_vm1, %v2576_v4 }
 0x54a   :  { %2966 = vmatprep.mubr.bf16.mxu0 %v13808_v0 }
 0x551   :  { %8452 = vmatmul.mubr.msk.bf16.gmra.mrb[96].mxu0 %vm427_vm1, %v2577_v7 }
 0x552   :  { %2976 = vmatprep.mubr.bf16.mxu0 %v13808_v0 }
 0x559   :  { %8453 = vmatmul.mubr.msk.bf16.gmra.mrb[100].mxu0 %vm427_vm1, %v2578_v10 }
 0x55a   :  { %2986 = vmatprep.mubr.bf16.mxu0 %v13808_v0 }
 0x561   :  { %8454 = vmatmul.mubr.msk.bf16.gmra.mrb[104].mxu0 %vm427_vm1, %v2579_v15 }
 0x562   :  { %2996 = vmatprep.mubr.bf16.mxu0 %v13808_v0 }
 0x564   :  { %v2728_v23 = vpop.f32.mrb[0].mxu0 }
 0x565   :  { %v3131_v24 = vadd.f32 %v12183_v19, %v2728_v23  ;;  %v2730_v25 = vpop.f32.mrb[1].mxu0 }
 0x566   :  { %v3132_v27 = vadd.f32 %v12185_v20, %v2730_v25  ;;  %v2732_v28 = vpop.f32.mrb[2].mxu0 }
 0x567   :  { %v3133_v29 = vadd.f32 %v12183_v19, %v2732_v28  ;;  %v2734_v30 = vpop.f32.mrb[3].mxu0  ;;  %v3243_v32 = vmax.f32 %v3131_v24, 0.0 }
 0x568   :  { %v3134_v31 = vadd.f32 %v12185_v20, %v2734_v30  ;;  %v3244_v34 = vmax.f32 %v3132_v27, 0.0 }
 0x569   :  { %v3245_v33 = vmax.f32 %v3133_v29, 0.0  ;;  %8455 = vmatmul.mubr.msk.bf16.gmra.mrb[108].mxu0 %vm427_vm1, %v2580_v26 }
 0x56a   :  { %v3246_v35 = vmax.f32 %v3134_v31, 0.0 }
 0x56b   :  { %v12199_v36 = vpack.c.bf16 %v3245_v33, %v3243_v32 }
 0x56c   :  { %v2738_v37 = vpop.f32.mrb[4].mxu0  ;;  %v12201_v38 = vpack.c.bf16 %v3246_v35, %v3244_v34 }
 0x56d   :  { %v3135_v39 = vadd.f32 %v12183_v19, %v2738_v37  ;;  %v2740_v40 = vpop.f32.mrb[5].mxu0 }
 0x56e   :  { %v3136_v41 = vadd.f32 %v12185_v20, %v2740_v40  ;;  %v2742_v42 = vpop.f32.mrb[6].mxu0  ;;  %8468 = vmatprep.mubr.msk.bf16.mxu1 %vm3507_vm2, %v12201_v38 }
 0x56f   :  { %v3137_v43 = vadd.f32 %v12183_v19, %v2742_v42  ;;  %v2744_v44 = vpop.f32.mrb[7].mxu0  ;;  %3625 = vmatmul.mubr.bf16.vlgmr.msra.gmra.mrb[0].mxu1 %v12199_v36  ;;  %v3247_v46 = vmax.f32 %v3135_v39, 0.0 }
 0x570   :  { %v3138_v45 = vadd.f32 %v12185_v20, %v2744_v44  ;;  %v3248_v48 = vmax.f32 %v3136_v41, 0.0 }
 0x571   :  { %v3249_v47 = vmax.f32 %v3137_v43, 0.0 }
 0x572   :  { %v3250_v49 = vmax.f32 %v3138_v45, 0.0 }
 0x573   :  { %v12210_v50 = vpack.c.bf16 %v3249_v47, %v3247_v46 }
 0x574   :  { %v12212_v51 = vpack.c.bf16 %v3250_v49, %v3248_v48  ;;  %v2748_v52 = vpop.f32.mrb[8].mxu0 }
 0x575   :  { %v3139_v53 = vadd.f32 %v12183_v19, %v2748_v52  ;;  %v2750_v54 = vpop.f32.mrb[9].mxu0 }
 0x576   :  { %v3140_v55 = vadd.f32 %v12185_v20, %v2750_v54  ;;  %v2752_v56 = vpop.f32.mrb[10].mxu0  ;;  %8469 = vmatprep.mubr.msk.bf16.mxu1 %vm3507_vm2, %v12212_v51 }
 0x577   :  { %v3141_v57 = vadd.f32 %v12183_v19, %v2752_v56  ;;  %v2754_v58 = vpop.f32.mrb[11].mxu0  ;;  %3633 = vmatmul.mubr.bf16.gmra.mrb[4].mxu1 %v12210_v50  ;;  %v3251_v60 = vmax.f32 %v3139_v53, 0.0 }
 0x578   :  { %v3142_v59 = vadd.f32 %v12185_v20, %v2754_v58  ;;  %v3252_v62 = vmax.f32 %v3140_v55, 0.0  ;;  %v10185_v58 = vld [vmem:[#allocation8] sm:$0xff]  }
 0x579   :  { %v3253_v61 = vmax.f32 %v3141_v57, 0.0  ;;  %3946 = vmatpush1.bf16.msra.mxu1 %v10185_v58 }
 0x57a   :  { %v3254_v63 = vmax.f32 %v3142_v59, 0.0  ;;  %3947 = vmatprep.subr.bf16.mxu1 %v13808_v0 }
 0x57b   :  { %v12221_v1 = vpack.c.bf16 %v3253_v61, %v3251_v60 }
 0x57c   :  { %v12223_v2 = vpack.c.bf16 %v3254_v63, %v3252_v62  ;;  %v2758_v3 = vpop.f32.mrb[12].mxu0 }
 0x57d   :  { %v3143_v4 = vadd.f32 %v12183_v19, %v2758_v3  ;;  %v2760_v5 = vpop.f32.mrb[13].mxu0 }
 0x57e   :  { %v3144_v6 = vadd.f32 %v12185_v20, %v2760_v5  ;;  %v2762_v7 = vpop.f32.mrb[14].mxu0  ;;  %8470 = vmatprep.mubr.msk.bf16.mxu1 %vm3507_vm2, %v12223_v2 }
 0x57f   :  { %v3145_v8 = vadd.f32 %v12183_v19, %v2762_v7  ;;  %v2764_v9 = vpop.f32.mrb[15].mxu0  ;;  %3641 = vmatmul.mubr.bf16.gmra.mrb[8].mxu1 %v12221_v1  ;;  %v3255_v11 = vmax.f32 %v3143_v4, 0.0 }
 0x580   :  { %v3146_v10 = vadd.f32 %v12185_v20, %v2764_v9  ;;  %v3256_v13 = vmax.f32 %v3144_v6, 0.0 }
 0x581   :  { %v3257_v12 = vmax.f32 %v3145_v8, 0.0 }
 0x582   :  { %v3258_v14 = vmax.f32 %v3146_v10, 0.0 }
 0x583   :  { %v12232_v15 = vpack.c.bf16 %v3257_v12, %v3255_v11 }
 0x584   :  { %v12234_v16 = vpack.c.bf16 %v3258_v14, %v3256_v13  ;;  %v2768_v17 = vpop.f32.mrb[16].mxu0 }
 0x585   :  { %v3147_v18 = vadd.f32 %v12183_v19, %v2768_v17  ;;  %v2770_v21 = vpop.f32.mrb[17].mxu0 }
 0x586   :  { %v3148_v22 = vadd.f32 %v12185_v20, %v2770_v21  ;;  %v2772_v23 = vpop.f32.mrb[18].mxu0  ;;  %8471 = vmatprep.mubr.msk.bf16.mxu1 %vm3507_vm2, %v12234_v16  ;;  %v10186_v21 = vld [vmem:[#allocation8 + $0x8] sm:$0xff]  }
 0x587   :  { %v3149_v24 = vadd.f32 %v12183_v19, %v2772_v23  ;;  %v2774_v25 = vpop.f32.mrb[19].mxu0  ;;  %3649 = vmatmul.mubr.bf16.gmra.mrb[12].mxu1 %v12232_v15  ;;  %v3259_v27 = vmax.f32 %v3147_v18, 0.0 }
 0x588   :  { %v3150_v26 = vadd.f32 %v12185_v20, %v2774_v25  ;;  %v3260_v29 = vmax.f32 %v3148_v22, 0.0  ;;  %3948 = vmatpush1.bf16.msra.mxu1 %v10186_v21 }
 0x589   :  { %v3261_v28 = vmax.f32 %v3149_v24, 0.0  ;;  %3949 = vmatprep.subr.bf16.mxu1 %v13808_v0 }
 0x58a   :  { %v3262_v30 = vmax.f32 %v3150_v26, 0.0 }
 0x58b   :  { %v12243_v31 = vpack.c.bf16 %v3261_v28, %v3259_v27 }
 0x58c   :  { %v12245_v32 = vpack.c.bf16 %v3262_v30, %v3260_v29  ;;  %v2778_v33 = vpop.f32.mrb[20].mxu0  ;;  %v10187_v29 = vld [vmem:[#allocation8 + $0x10] sm:$0xff]  }
 0x58d   :  { %v3151_v34 = vadd.f32 %v12183_v19, %v2778_v33  ;;  %v2780_v35 = vpop.f32.mrb[21].mxu0  ;;  %3950 = vmatpush1.bf16.msra.mxu1 %v10187_v29 }
 0x58e   :  { %v3152_v37 = vadd.f32 %v12185_v20, %v2780_v35  ;;  %v2782_v39 = vpop.f32.mrb[22].mxu0  ;;  %8472 = vmatprep.mubr.msk.bf16.mxu1 %vm3507_vm2, %v12245_v32  ;;  %3951 = vmatprep.subr.bf16.mxu1 %v13808_v0 }
 0x58f   :  { %v3153_v40 = vadd.f32 %v12183_v19, %v2782_v39  ;;  %v2784_v41 = vpop.f32.mrb[23].mxu0  ;;  %3657 = vmatmul.mubr.bf16.gmra.mrb[16].mxu1 %v12243_v31  ;;  %v3263_v43 = vmax.f32 %v3151_v34, 0.0 }
 0x590   :  { %v3154_v42 = vadd.f32 %v12185_v20, %v2784_v41  ;;  %v3264_v45 = vmax.f32 %v3152_v37, 0.0  ;;  %v10188_v41 = vld [vmem:[#allocation8 + $0x18] sm:$0xff]  }
 0x591   :  { %v3265_v44 = vmax.f32 %v3153_v40, 0.0  ;;  %3952 = vmatpush1.bf16.msra.mxu1 %v10188_v41 }
 0x592   :  { %v3266_v46 = vmax.f32 %v3154_v42, 0.0  ;;  %3953 = vmatprep.subr.bf16.mxu1 %v13808_v0 }
 0x593   :  { %v12254_v47 = vpack.c.bf16 %v3265_v44, %v3263_v43 }
 0x594   :  { %v12256_v48 = vpack.c.bf16 %v3266_v46, %v3264_v45  ;;  %v2788_v49 = vpop.f32.mrb[24].mxu0 }
 0x595   :  { %v3155_v52 = vadd.f32 %v12183_v19, %v2788_v49  ;;  %v2790_v53 = vpop.f32.mrb[25].mxu0 }
 0x596   :  { %v3156_v54 = vadd.f32 %v12185_v20, %v2790_v53  ;;  %v2792_v55 = vpop.f32.mrb[26].mxu0  ;;  %8473 = vmatprep.mubr.msk.bf16.mxu1 %vm3507_vm2, %v12256_v48  ;;  %v10189_v53 = vld [vmem:[#allocation8 + $0x20] sm:$0xff]  }
 0x597   :  { %v3157_v56 = vadd.f32 %v12183_v19, %v2792_v55  ;;  %v2794_v57 = vpop.f32.mrb[27].mxu0  ;;  %3665 = vmatmul.mubr.bf16.gmra.mrb[20].mxu1 %v12254_v47  ;;  %v3267_v60 = vmax.f32 %v3155_v52, 0.0 }
 0x598   :  { %v3158_v59 = vadd.f32 %v12185_v20, %v2794_v57  ;;  %v3268_v62 = vmax.f32 %v3156_v54, 0.0  ;;  %3954 = vmatpush1.bf16.msra.mxu1 %v10189_v53 }
 0x599   :  { %v3269_v61 = vmax.f32 %v3157_v56, 0.0  ;;  %3955 = vmatprep.subr.bf16.mxu1 %v13808_v0 }
 0x59a   :  { %v3270_v63 = vmax.f32 %v3158_v59, 0.0 }
 0x59b   :  { %v12266_v3 = vpack.c.bf16 %v3269_v61, %v3267_v60  ;;  %v10190_v61 = vld [vmem:[#allocation8 + $0x28] sm:$0xff]  }
 0x59c   :  { %v12268_v4 = vpack.c.bf16 %v3270_v63, %v3268_v62  ;;  %v2798_v5 = vpop.f32.mrb[28].mxu0  ;;  %3956 = vmatpush1.bf16.msra.mxu1 %v10190_v61 }
 0x59d   :  { %v3159_v6 = vadd.f32 %v12183_v19, %v2798_v5  ;;  %v2800_v7 = vpop.f32.mrb[29].mxu0  ;;  %3957 = vmatprep.subr.bf16.mxu1 %v13808_v0 }
 0x59e   :  { %v3160_v8 = vadd.f32 %v12185_v20, %v2800_v7  ;;  %v2802_v9 = vpop.f32.mrb[30].mxu0  ;;  %8474 = vmatprep.mubr.msk.bf16.mxu1 %vm3507_vm2, %v12268_v4 }
 0x59f   :  { %v3161_v10 = vadd.f32 %v12183_v19, %v2802_v9  ;;  %v2804_v11 = vpop.f32.mrb[31].mxu0  ;;  %3673 = vmatmul.mubr.bf16.gmra.mrb[24].mxu1 %v12266_v3  ;;  %v3271_v13 = vmax.f32 %v3159_v6, 0.0 }
 0x5a0   :  { %v3162_v12 = vadd.f32 %v12185_v20, %v2804_v11  ;;  %v3272_v17 = vmax.f32 %v3160_v8, 0.0 }
 0x5a1   :  { %v3273_v14 = vmax.f32 %v3161_v10, 0.0  ;;  %v10191_v10 = vld [vmem:[#allocation8 + $0x30] sm:$0xff]  }
 0x5a2   :  { %v3274_v18 = vmax.f32 %v3162_v12, 0.0  ;;  %3958 = vmatpush1.bf16.msra.mxu1 %v10191_v10 }
 0x5a3   :  { %v12277_v22 = vpack.c.bf16 %v3273_v14, %v3271_v13  ;;  %3959 = vmatprep.subr.bf16.mxu1 %v13808_v0 }
 0x5a4   :  { %v12279_v23 = vpack.c.bf16 %v3274_v18, %v3272_v17  ;;  %v2808_v24 = vpop.f32.mrb[32].mxu0 }
 0x5a5   :  { %v3163_v25 = vadd.f32 %v12183_v19, %v2808_v24  ;;  %v2810_v26 = vpop.f32.mrb[33].mxu0  ;;  %v10192_v24 = vld [vmem:[#allocation8 + $0x38] sm:$0xff]  }
 0x5a6   :  { %v3164_v27 = vadd.f32 %v12185_v20, %v2810_v26  ;;  %v2812_v28 = vpop.f32.mrb[34].mxu0  ;;  %8475 = vmatprep.mubr.msk.bf16.mxu1 %vm3507_vm2, %v12279_v23  ;;  %3960 = vmatpush1.bf16.msra.mxu1 %v10192_v24 }
 0x5a7   :  { %v3165_v30 = vadd.f32 %v12183_v19, %v2812_v28  ;;  %v2814_v33 = vpop.f32.mrb[35].mxu0  ;;  %3681 = vmatmul.mubr.bf16.gmra.mrb[28].mxu1 %v12277_v22  ;;  %v3275_v35 = vmax.f32 %v3163_v25, 0.0  ;;  %3961 = vmatprep.subr.bf16.mxu1 %v13808_v0 }
 0x5a8   :  { %v3166_v34 = vadd.f32 %v12185_v20, %v2814_v33  ;;  %v3276_v39 = vmax.f32 %v3164_v27, 0.0 }
 0x5a9   :  { %v3277_v37 = vmax.f32 %v3165_v30, 0.0 }
 0x5aa   :  { %v3278_v40 = vmax.f32 %v3166_v34, 0.0  ;;  %v10193_v34 = vld [vmem:[#allocation8 + $0x40] sm:$0xff]  }
 0x5ab   :  { %v12290_v42 = vpack.c.bf16 %v3277_v37, %v3275_v35  ;;  %3962 = vmatpush1.bf16.msra.mxu1 %v10193_v34 }
 0x5ac   :  { %v12292_v43 = vpack.c.bf16 %v3278_v40, %v3276_v39  ;;  %v2818_v44 = vpop.f32.mrb[36].mxu0  ;;  %3963 = vmatprep.subr.bf16.mxu1 %v13808_v0 }
 0x5ad   :  { %v3167_v45 = vadd.f32 %v12183_v19, %v2818_v44  ;;  %v2820_v46 = vpop.f32.mrb[37].mxu0 }
 0x5ae   :  { %v3168_v49 = vadd.f32 %v12185_v20, %v2820_v46  ;;  %v2822_v52 = vpop.f32.mrb[38].mxu0  ;;  %8476 = vmatprep.mubr.msk.bf16.mxu1 %vm3507_vm2, %v12292_v43  ;;  %v10194_v46 = vld [vmem:[#allocation8 + $0x48] sm:$0xff]  }
 0x5af   :  { %v3169_v54 = vadd.f32 %v12183_v19, %v2822_v52  ;;  %v2824_v55 = vpop.f32.mrb[39].mxu0  ;;  %3689 = vmatmul.mubr.bf16.gmra.mrb[32].mxu1 %v12290_v42  ;;  %v3279_v57 = vmax.f32 %v3167_v45, 0.0 }
 0x5b0   :  { %v3170_v56 = vadd.f32 %v12185_v20, %v2824_v55  ;;  %v3280_v59 = vmax.f32 %v3168_v49, 0.0  ;;  %3964 = vmatpush1.bf16.msra.mxu1 %v10194_v46 }
 0x5b1   :  { %v3281_v58 = vmax.f32 %v3169_v54, 0.0  ;;  %3965 = vmatprep.subr.bf16.mxu1 %v13808_v0 }
 0x5b2   :  { %v3282_v60 = vmax.f32 %v3170_v56, 0.0 }
 0x5b3   :  { %v12303_v62 = vpack.c.bf16 %v3281_v58, %v3279_v57  ;;  %v10195_v58 = vld [vmem:[#allocation8 + $0x50] sm:$0xff]  }
 0x5b4   :  { %v12305_v63 = vpack.c.bf16 %v3282_v60, %v3280_v59  ;;  %v2828_v5 = vpop.f32.mrb[40].mxu0  ;;  %3966 = vmatpush1.bf16.msra.mxu1 %v10195_v58 }
 0x5b5   :  { %v3171_v6 = vadd.f32 %v12183_v19, %v2828_v5  ;;  %v2830_v7 = vpop.f32.mrb[41].mxu0  ;;  %3967 = vmatprep.subr.bf16.mxu1 %v13808_v0 }
 0x5b6   :  { %v3172_v8 = vadd.f32 %v12185_v20, %v2830_v7  ;;  %v2832_v9 = vpop.f32.mrb[42].mxu0  ;;  %8477 = vmatprep.mubr.msk.bf16.mxu1 %vm3507_vm2, %v12305_v63 }
 0x5b7   :  { %v3173_v11 = vadd.f32 %v12183_v19, %v2832_v9  ;;  %v2834_v12 = vpop.f32.mrb[43].mxu0  ;;  %3697 = vmatmul.mubr.bf16.gmra.mrb[36].mxu1 %v12303_v62  ;;  %v3283_v14 = vmax.f32 %v3171_v6, 0.0  ;;  %v10196_v9 = vld [vmem:[#allocation8 + $0x58] sm:$0xff]  }
 0x5b8   :  { %v3174_v13 = vadd.f32 %v12185_v20, %v2834_v12  ;;  %v3284_v18 = vmax.f32 %v3172_v8, 0.0  ;;  %3968 = vmatpush1.bf16.msra.mxu1 %v10196_v9 }
 0x5b9   :  { %v3285_v17 = vmax.f32 %v3173_v11, 0.0 }
 0x5ba   :  { %v3286_v21 = vmax.f32 %v3174_v13, 0.0 }
 0x5bb   :  { %v12316_v25 = vpack.c.bf16 %v3285_v17, %v3283_v14 }
 0x5bc   :  { %v12318_v26 = vpack.c.bf16 %v3286_v21, %v3284_v18  ;;  %v2838_v27 = vpop.f32.mrb[44].mxu0 }
 0x5bd   :  { %v3175_v28 = vadd.f32 %v12183_v19, %v2838_v27  ;;  %v2840_v29 = vpop.f32.mrb[45].mxu0 }
 0x5be   :  { %v3176_v30 = vadd.f32 %v12185_v20, %v2840_v29  ;;  %v2842_v33 = vpop.f32.mrb[46].mxu0  ;;  %8478 = vmatprep.mubr.msk.bf16.mxu1 %vm3507_vm2, %v12318_v26 }
 0x5bf   :  { %v3177_v35 = vadd.f32 %v12183_v19, %v2842_v33  ;;  %v2844_v37 = vpop.f32.mrb[47].mxu0  ;;  %3705 = vmatmul.mubr.bf16.gmra.mrb[40].mxu1 %v12316_v25  ;;  %v3287_v40 = vmax.f32 %v3175_v28, 0.0 }
 0x5c0   :  { %v3178_v39 = vadd.f32 %v12185_v20, %v2844_v37  ;;  %v3288_v44 = vmax.f32 %v3176_v30, 0.0 }
 0x5c1   :  { %v3289_v41 = vmax.f32 %v3177_v35, 0.0 }
 0x5c2   :  { %v3290_v45 = vmax.f32 %v3178_v39, 0.0 }
 0x5c3   :  { %v12329_v49 = vpack.c.bf16 %v3289_v41, %v3287_v40 }
 0x5c4   :  { %v12331_v52 = vpack.c.bf16 %v3290_v45, %v3288_v44  ;;  %v2848_v53 = vpop.f32.mrb[48].mxu0 }
 0x5c5   :  { %v3179_v54 = vadd.f32 %v12183_v19, %v2848_v53  ;;  %v2850_v55 = vpop.f32.mrb[49].mxu0 }
 0x5c6   :  { %v3180_v56 = vadd.f32 %v12185_v20, %v2850_v55  ;;  %v2852_v57 = vpop.f32.mrb[50].mxu0  ;;  %8479 = vmatprep.mubr.msk.bf16.mxu1 %vm3507_vm2, %v12331_v52 }
 0x5c7   :  { %v3181_v59 = vadd.f32 %v12183_v19, %v2852_v57  ;;  %v2854_v60 = vpop.f32.mrb[51].mxu0  ;;  %3713 = vmatmul.mubr.bf16.gmra.mrb[44].mxu1 %v12329_v49  ;;  %v3291_v5 = vmax.f32 %v3179_v54, 0.0 }
 0x5c8   :  { %v3182_v61 = vadd.f32 %v12185_v20, %v2854_v60  ;;  %v3292_v7 = vmax.f32 %v3180_v56, 0.0 }
 0x5c9   :  { %v3293_v6 = vmax.f32 %v3181_v59, 0.0 }
 0x5ca   :  { %v3294_v8 = vmax.f32 %v3182_v61, 0.0 }
 0x5cb   :  { %v12342_v10 = vpack.c.bf16 %v3293_v6, %v3291_v5 }
 0x5cc   :  { %v12344_v11 = vpack.c.bf16 %v3294_v8, %v3292_v7  ;;  %v2858_v12 = vpop.f32.mrb[52].mxu0 }
 0x5cd   :  { %v3183_v13 = vadd.f32 %v12183_v19, %v2858_v12  ;;  %v2860_v14 = vpop.f32.mrb[53].mxu0 }
 0x5ce   :  { %v3184_v17 = vadd.f32 %v12185_v20, %v2860_v14  ;;  %v2862_v18 = vpop.f32.mrb[54].mxu0  ;;  %8480 = vmatprep.mubr.msk.bf16.mxu1 %vm3507_vm2, %v12344_v11 }
 0x5cf   :  { %v3185_v21 = vadd.f32 %v12183_v19, %v2862_v18  ;;  %v2864_v24 = vpop.f32.mrb[55].mxu0  ;;  %3721 = vmatmul.mubr.bf16.gmra.mrb[48].mxu1 %v12342_v10  ;;  %v3295_v28 = vmax.f32 %v3183_v13, 0.0 }
 0x5d0   :  { %v3186_v27 = vadd.f32 %v12185_v20, %v2864_v24  ;;  %v3296_v30 = vmax.f32 %v3184_v17, 0.0 }
 0x5d1   :  { %v3297_v29 = vmax.f32 %v3185_v21, 0.0 }
 0x5d2   :  { %v3298_v33 = vmax.f32 %v3186_v27, 0.0 }
 0x5d3   :  { %v12353_v34 = vpack.c.bf16 %v3297_v29, %v3295_v28 }
 0x5d4   :  { %v12355_v35 = vpack.c.bf16 %v3298_v33, %v3296_v30  ;;  %v2868_v37 = vpop.f32.mrb[56].mxu0 }
 0x5d5   :  { %v3187_v39 = vadd.f32 %v12183_v19, %v2868_v37  ;;  %v2870_v40 = vpop.f32.mrb[57].mxu0 }
 0x5d6   :  { %v3188_v41 = vadd.f32 %v12185_v20, %v2870_v40  ;;  %v2872_v44 = vpop.f32.mrb[58].mxu0  ;;  %8481 = vmatprep.mubr.msk.bf16.mxu1 %vm3507_vm2, %v12355_v35 }
 0x5d7   :  { %v3189_v45 = vadd.f32 %v12183_v19, %v2872_v44  ;;  %v2874_v46 = vpop.f32.mrb[59].mxu0  ;;  %3729 = vmatmul.mubr.bf16.gmra.mrb[52].mxu1 %v12353_v34  ;;  %v3299_v54 = vmax.f32 %v3187_v39, 0.0 }
 0x5d8   :  { %v3190_v53 = vadd.f32 %v12185_v20, %v2874_v46  ;;  %v3300_v56 = vmax.f32 %v3188_v41, 0.0 }
 0x5d9   :  { %v3301_v55 = vmax.f32 %v3189_v45, 0.0 }
 0x5da   :  { %v3302_v57 = vmax.f32 %v3190_v53, 0.0 }
 0x5db   :  { %v12364_v58 = vpack.c.bf16 %v3301_v55, %v3299_v54 }
 0x5dc   :  { %v12366_v59 = vpack.c.bf16 %v3302_v57, %v3300_v56  ;;  %v2878_v60 = vpop.f32.mrb[60].mxu0 }
 0x5dd   :  { %v3191_v61 = vadd.f32 %v12183_v19, %v2878_v60  ;;  %v2880_v5 = vpop.f32.mrb[61].mxu0 }
 0x5de   :  { %v3192_v6 = vadd.f32 %v12185_v20, %v2880_v5  ;;  %v2882_v7 = vpop.f32.mrb[62].mxu0  ;;  %8482 = vmatprep.mubr.msk.bf16.mxu1 %vm3507_vm2, %v12366_v59 }
 0x5df   :  { %v3193_v8 = vadd.f32 %v12183_v19, %v2882_v7  ;;  %v2884_v9 = vpop.f32.mrb[63].mxu0  ;;  %3737 = vmatmul.mubr.bf16.gmra.mrb[56].mxu1 %v12364_v58  ;;  %v3303_v13 = vmax.f32 %v3191_v61, 0.0 }
 0x5e0   :  { %v3194_v12 = vadd.f32 %v12185_v20, %v2884_v9  ;;  %v3304_v17 = vmax.f32 %v3192_v6, 0.0 }
 0x5e1   :  { %v3305_v14 = vmax.f32 %v3193_v8, 0.0 }
 0x5e2   :  { %v3306_v18 = vmax.f32 %v3194_v12, 0.0 }
 0x5e3   :  { %v12375_v21 = vpack.c.bf16 %v3305_v14, %v3303_v13 }
 0x5e4   :  { %v12377_v24 = vpack.c.bf16 %v3306_v18, %v3304_v17  ;;  %v2888_v27 = vpop.f32.mrb[64].mxu0 }
 0x5e5   :  { %v3195_v28 = vadd.f32 %v12183_v19, %v2888_v27  ;;  %v2890_v29 = vpop.f32.mrb[65].mxu0 }
 0x5e6   :  { %v3196_v30 = vadd.f32 %v12185_v20, %v2890_v29  ;;  %v2892_v33 = vpop.f32.mrb[66].mxu0  ;;  %8483 = vmatprep.mubr.msk.bf16.mxu1 %vm3507_vm2, %v12377_v24 }
 0x5e7   :  { %v3197_v37 = vadd.f32 %v12183_v19, %v2892_v33  ;;  %v2894_v39 = vpop.f32.mrb[67].mxu0  ;;  %3745 = vmatmul.mubr.bf16.gmra.mrb[60].mxu1 %v12375_v21  ;;  %v3307_v41 = vmax.f32 %v3195_v28, 0.0 }
 0x5e8   :  { %v3198_v40 = vadd.f32 %v12185_v20, %v2894_v39  ;;  %v3308_v45 = vmax.f32 %v3196_v30, 0.0 }
 0x5e9   :  { %v3309_v44 = vmax.f32 %v3197_v37, 0.0 }
 0x5ea   :  { %v3310_v46 = vmax.f32 %v3198_v40, 0.0 }
 0x5eb   :  { %v12386_v53 = vpack.c.bf16 %v3309_v44, %v3307_v41 }
 0x5ec   :  { %v12388_v54 = vpack.c.bf16 %v3310_v46, %v3308_v45  ;;  %v2898_v55 = vpop.f32.mrb[68].mxu0 }
 0x5ed   :  { %v3199_v56 = vadd.f32 %v12183_v19, %v2898_v55  ;;  %v2900_v57 = vpop.f32.mrb[69].mxu0 }
 0x5ee   :  { %v3200_v60 = vadd.f32 %v12185_v20, %v2900_v57  ;;  %v2902_v61 = vpop.f32.mrb[70].mxu0  ;;  %8484 = vmatprep.mubr.msk.bf16.mxu1 %vm3507_vm2, %v12388_v54 }
 0x5ef   :  { %v3201_v5 = vadd.f32 %v12183_v19, %v2902_v61  ;;  %v2904_v6 = vpop.f32.mrb[71].mxu0  ;;  %3753 = vmatmul.mubr.bf16.gmra.mrb[64].mxu1 %v12386_v53  ;;  %v3311_v8 = vmax.f32 %v3199_v56, 0.0 }
 0x5f0   :  { %v3202_v7 = vadd.f32 %v12185_v20, %v2904_v6  ;;  %v3312_v12 = vmax.f32 %v3200_v60, 0.0 }
 0x5f1   :  { %v3313_v9 = vmax.f32 %v3201_v5, 0.0 }
 0x5f2   :  { %v3314_v13 = vmax.f32 %v3202_v7, 0.0 }
 0x5f3   :  { %v12397_v14 = vpack.c.bf16 %v3313_v9, %v3311_v8 }
 0x5f4   :  { %v12399_v17 = vpack.c.bf16 %v3314_v13, %v3312_v12  ;;  %v2908_v18 = vpop.f32.mrb[72].mxu0 }
 0x5f5   :  { %v3203_v27 = vadd.f32 %v12183_v19, %v2908_v18  ;;  %v2910_v28 = vpop.f32.mrb[73].mxu0 }
 0x5f6   :  { %v3204_v29 = vadd.f32 %v12185_v20, %v2910_v28  ;;  %v2912_v30 = vpop.f32.mrb[74].mxu0  ;;  %8485 = vmatprep.mubr.msk.bf16.mxu1 %vm3507_vm2, %v12399_v17 }
 0x5f7   :  { %v3205_v33 = vadd.f32 %v12183_v19, %v2912_v30  ;;  %v2914_v37 = vpop.f32.mrb[75].mxu0  ;;  %3761 = vmatmul.mubr.bf16.gmra.mrb[68].mxu1 %v12397_v14  ;;  %v3315_v40 = vmax.f32 %v3203_v27, 0.0 }
 0x5f8   :  { %v3206_v39 = vadd.f32 %v12185_v20, %v2914_v37  ;;  %v3316_v44 = vmax.f32 %v3204_v29, 0.0 }
 0x5f9   :  { %v3317_v41 = vmax.f32 %v3205_v33, 0.0 }
 0x5fa   :  { %v3318_v45 = vmax.f32 %v3206_v39, 0.0 }
 0x5fb   :  { %v12408_v46 = vpack.c.bf16 %v3317_v41, %v3315_v40 }
 0x5fc   :  { %v12410_v55 = vpack.c.bf16 %v3318_v45, %v3316_v44  ;;  %v2918_v56 = vpop.f32.mrb[76].mxu0 }
 0x5fd   :  { %v3207_v57 = vadd.f32 %v12183_v19, %v2918_v56  ;;  %v2920_v60 = vpop.f32.mrb[77].mxu0 }
 0x5fe   :  { %v3208_v61 = vadd.f32 %v12185_v20, %v2920_v60  ;;  %v2922_v5 = vpop.f32.mrb[78].mxu0  ;;  %8486 = vmatprep.mubr.msk.bf16.mxu1 %vm3507_vm2, %v12410_v55 }
 0x5ff   :  { %v3209_v6 = vadd.f32 %v12183_v19, %v2922_v5  ;;  %v2924_v7 = vpop.f32.mrb[79].mxu0  ;;  %3769 = vmatmul.mubr.bf16.gmra.mrb[72].mxu1 %v12408_v46  ;;  %v3319_v9 = vmax.f32 %v3207_v57, 0.0 }
 0x600   :  { %v3210_v8 = vadd.f32 %v12185_v20, %v2924_v7  ;;  %v3320_v13 = vmax.f32 %v3208_v61, 0.0 }
 0x601   :  { %v3321_v12 = vmax.f32 %v3209_v6, 0.0 }
 0x602   :  { %v3322_v18 = vmax.f32 %v3210_v8, 0.0 }
 0x603   :  { %v12419_v27 = vpack.c.bf16 %v3321_v12, %v3319_v9 }
 0x604   :  { %v12421_v28 = vpack.c.bf16 %v3322_v18, %v3320_v13  ;;  %v2928_v29 = vpop.f32.mrb[80].mxu0 }
 0x605   :  { %v3211_v30 = vadd.f32 %v12183_v19, %v2928_v29  ;;  %v2930_v33 = vpop.f32.mrb[81].mxu0 }
 0x606   :  { %v3212_v37 = vadd.f32 %v12185_v20, %v2930_v33  ;;  %v2932_v39 = vpop.f32.mrb[82].mxu0  ;;  %8487 = vmatprep.mubr.msk.bf16.mxu1 %vm3507_vm2, %v12421_v28 }
 0x607   :  { %v3213_v40 = vadd.f32 %v12183_v19, %v2932_v39  ;;  %v2934_v41 = vpop.f32.mrb[83].mxu0  ;;  %3777 = vmatmul.mubr.bf16.gmra.mrb[76].mxu1 %v12419_v27  ;;  %v3323_v45 = vmax.f32 %v3211_v30, 0.0 }
 0x608   :  { %v3214_v44 = vadd.f32 %v12185_v20, %v2934_v41  ;;  %v3324_v57 = vmax.f32 %v3212_v37, 0.0 }
 0x609   :  { %v3325_v56 = vmax.f32 %v3213_v40, 0.0 }
 0x60a   :  { %v3326_v60 = vmax.f32 %v3214_v44, 0.0 }
 0x60b   :  { %v12430_v61 = vpack.c.bf16 %v3325_v56, %v3323_v45 }
 0x60c   :  { %v12432_v5 = vpack.c.bf16 %v3326_v60, %v3324_v57  ;;  %v2938_v6 = vpop.f32.mrb[84].mxu0 }
 0x60d   :  { %v3215_v7 = vadd.f32 %v12183_v19, %v2938_v6  ;;  %v2940_v8 = vpop.f32.mrb[85].mxu0 }
 0x60e   :  { %v3216_v9 = vadd.f32 %v12185_v20, %v2940_v8  ;;  %v2942_v12 = vpop.f32.mrb[86].mxu0  ;;  %8488 = vmatprep.mubr.msk.bf16.mxu1 %vm3507_vm2, %v12432_v5 }
 0x60f   :  { %v3217_v13 = vadd.f32 %v12183_v19, %v2942_v12  ;;  %v2944_v18 = vpop.f32.mrb[87].mxu0  ;;  %3785 = vmatmul.mubr.bf16.gmra.mrb[80].mxu1 %v12430_v61  ;;  %v3327_v30 = vmax.f32 %v3215_v7, 0.0 }
 0x610   :  { %v3218_v29 = vadd.f32 %v12185_v20, %v2944_v18  ;;  %v3328_v37 = vmax.f32 %v3216_v9, 0.0 }
 0x611   :  { %v3329_v33 = vmax.f32 %v3217_v13, 0.0 }
 0x612   :  { %v3330_v39 = vmax.f32 %v3218_v29, 0.0 }
 0x613   :  { %v12441_v40 = vpack.c.bf16 %v3329_v33, %v3327_v30 }
 0x614   :  { %v12443_v41 = vpack.c.bf16 %v3330_v39, %v3328_v37  ;;  %v2948_v44 = vpop.f32.mrb[88].mxu0 }
 0x615   :  { %v3219_v45 = vadd.f32 %v12183_v19, %v2948_v44  ;;  %v2950_v56 = vpop.f32.mrb[89].mxu0 }
 0x616   :  { %v3220_v57 = vadd.f32 %v12185_v20, %v2950_v56  ;;  %v2952_v60 = vpop.f32.mrb[90].mxu0  ;;  %8489 = vmatprep.mubr.msk.bf16.mxu1 %vm3507_vm2, %v12443_v41 }
 0x617   :  { %v3221_v6 = vadd.f32 %v12183_v19, %v2952_v60  ;;  %v2954_v7 = vpop.f32.mrb[91].mxu0  ;;  %3793 = vmatmul.mubr.bf16.gmra.mrb[84].mxu1 %v12441_v40  ;;  %v3331_v9 = vmax.f32 %v3219_v45, 0.0 }
 0x618   :  { %v3222_v8 = vadd.f32 %v12185_v20, %v2954_v7  ;;  %v3332_v13 = vmax.f32 %v3220_v57, 0.0 }
 0x619   :  { %v3333_v12 = vmax.f32 %v3221_v6, 0.0 }
 0x61a   :  { %v3334_v18 = vmax.f32 %v3222_v8, 0.0 }
 0x61b   :  { %v12452_v29 = vpack.c.bf16 %v3333_v12, %v3331_v9 }
 0x61c   :  { %v12454_v30 = vpack.c.bf16 %v3334_v18, %v3332_v13  ;;  %v2958_v33 = vpop.f32.mrb[92].mxu0 }
 0x61d   :  { %13829 = vst [vmem:[#allocation30_spill] sm:$0xff] %v12452_v29  ;;  %v3223_v37 = vadd.f32 %v12183_v19, %v2958_v33  ;;  %v2960_v39 = vpop.f32.mrb[93].mxu0 }
 0x61e   :  { %v3224_v44 = vadd.f32 %v12185_v20, %v2960_v39  ;;  %v2962_v56 = vpop.f32.mrb[94].mxu0  ;;  %8490 = vmatprep.mubr.msk.bf16.mxu1 %vm3507_vm2, %v12454_v30 }
 0x61f   :  { %v3225_v60 = vadd.f32 %v12183_v19, %v2962_v56  ;;  %v2964_v45 = vpop.f32.mrb[95].mxu0  ;;  %3801 = vmatmul.mubr.bf16.gmra.mrb[88].mxu1 %v12452_v29  ;;  %v3335_v6 = vmax.f32 %v3223_v37, 0.0 }
 0x620   :  { %v3226_v57 = vadd.f32 %v12185_v20, %v2964_v45  ;;  %v3336_v8 = vmax.f32 %v3224_v44, 0.0 }
 0x621   :  { %v3337_v7 = vmax.f32 %v3225_v60, 0.0 }
 0x622   :  { %v3338_v9 = vmax.f32 %v3226_v57, 0.0 }
 0x623   :  { %v12463_v12 = vpack.c.bf16 %v3337_v7, %v3335_v6 }
 0x624   :  { %v12465_v13 = vpack.c.bf16 %v3338_v9, %v3336_v8  ;;  %v2968_v18 = vpop.f32.mrb[96].mxu0 }
 0x625   :  { %13830 = vst [vmem:[#allocation31_spill] sm:$0xff] %v12463_v12  ;;  %v3227_v33 = vadd.f32 %v12183_v19, %v2968_v18  ;;  %v2970_v39 = vpop.f32.mrb[97].mxu0 }
 0x626   :  { %13831 = vst [vmem:[#allocation32_spill] sm:$0xff] %v12465_v13  ;;  %v3228_v0 = vadd.f32 %v12185_v20, %v2970_v39  ;;  %v2972_v56 = vpop.f32.mrb[98].mxu0  ;;  %8491 = vmatprep.mubr.msk.bf16.mxu1 %vm3507_vm2, %v12465_v13 }
 0x627   :  { %v3229_v45 = vadd.f32 %v12183_v19, %v2972_v56  ;;  %v2974_v37 = vpop.f32.mrb[99].mxu0  ;;  %3809 = vmatmul.mubr.bf16.gmra.mrb[92].mxu1 %v12463_v12  ;;  %v3339_v60 = vmax.f32 %v3227_v33, 0.0 }
 0x628   :  { %v3230_v44 = vadd.f32 %v12185_v20, %v2974_v37  ;;  %v3340_v6 = vmax.f32 %v3228_v0, 0.0 }
 0x629   :  { %v3341_v57 = vmax.f32 %v3229_v45, 0.0 }
 0x62a   :  { %v3342_v7 = vmax.f32 %v3230_v44, 0.0 }
 0x62b   :  { %v12474_v8 = vpack.c.bf16 %v3341_v57, %v3339_v60 }
 0x62c   :  { %v12476_v9 = vpack.c.bf16 %v3342_v7, %v3340_v6  ;;  %v2978_v18 = vpop.f32.mrb[100].mxu0 }
 0x62d   :  { %13832 = vst [vmem:[#allocation33_spill] sm:$0xff] %v12474_v8  ;;  %v3231_v39 = vadd.f32 %v12183_v19, %v2978_v18  ;;  %v2980_v29 = vpop.f32.mrb[101].mxu0 }
 0x62e   :  { %13833 = vst [vmem:[#allocation34_spill] sm:$0xff] %v12476_v9  ;;  %v3232_v13 = vadd.f32 %v12185_v20, %v2980_v29  ;;  %v2982_v56 = vpop.f32.mrb[102].mxu0  ;;  %8492 = vmatprep.mubr.msk.bf16.mxu1 %vm3507_vm2, %v12476_v9 }
 0x62f   :  { %v3233_v37 = vadd.f32 %v12183_v19, %v2982_v56  ;;  %v2984_v33 = vpop.f32.mrb[103].mxu0  ;;  %3817 = vmatmul.mubr.bf16.gmra.mrb[96].mxu1 %v12474_v8  ;;  %v3343_v45 = vmax.f32 %v3231_v39, 0.0 }
 0x630   :  { %v3234_v0 = vadd.f32 %v12185_v20, %v2984_v33  ;;  %v3344_v60 = vmax.f32 %v3232_v13, 0.0 }
 0x631   :  { %v3345_v44 = vmax.f32 %v3233_v37, 0.0 }
 0x632   :  { %v3346_v57 = vmax.f32 %v3234_v0, 0.0 }
 0x633   :  { %v12485_v6 = vpack.c.bf16 %v3345_v44, %v3343_v45 }
 0x634   :  { %v12487_v7 = vpack.c.bf16 %v3346_v57, %v3344_v60  ;;  %v2988_v29 = vpop.f32.mrb[104].mxu0 }
 0x635   :  { %13834 = vst [vmem:[#allocation35_spill] sm:$0xff] %v12485_v6  ;;  %v3235_v18 = vadd.f32 %v12183_v19, %v2988_v29  ;;  %v2990_v12 = vpop.f32.mrb[105].mxu0 }
 0x636   :  { %13835 = vst [vmem:[#allocation36_spill] sm:$0xff] %v12487_v7  ;;  %v3236_v9 = vadd.f32 %v12185_v20, %v2990_v12  ;;  %v2992_v56 = vpop.f32.mrb[106].mxu0  ;;  %8493 = vmatprep.mubr.msk.bf16.mxu1 %vm3507_vm2, %v12487_v7 }
 0x637   :  { %v3237_v33 = vadd.f32 %v12183_v19, %v2992_v56  ;;  %v2994_v39 = vpop.f32.mrb[107].mxu0  ;;  %3825 = vmatmul.mubr.bf16.gmra.mrb[100].mxu1 %v12485_v6  ;;  %v3347_v37 = vmax.f32 %v3235_v18, 0.0 }
 0x638   :  { %v3238_v13 = vadd.f32 %v12185_v20, %v2994_v39  ;;  %v3348_v45 = vmax.f32 %v3236_v9, 0.0 }
 0x639   :  { %v3349_v0 = vmax.f32 %v3237_v33, 0.0 }
 0x63a   :  { %v3350_v44 = vmax.f32 %v3238_v13, 0.0 }
 0x63b   :  { %v12496_v60 = vpack.c.bf16 %v3349_v0, %v3347_v37 }
 0x63c   :  { %v12498_v57 = vpack.c.bf16 %v3350_v44, %v3348_v45  ;;  %v2998_v12 = vpop.f32.mrb[108].mxu0 }
 0x63d   :  { %v3239_v29 = vadd.f32 %v12183_v19, %v2998_v12  ;;  %v3000_v8 = vpop.f32.mrb[109].mxu0 }
 0x63e   :  { %13836 = vst [vmem:[#allocation37_spill] sm:$0xff] %v12498_v57  ;;  %v3240_v7 = vadd.f32 %v12185_v20, %v3000_v8  ;;  %v3002_v56 = vpop.f32.mrb[110].mxu0  ;;  %8494 = vmatprep.mubr.msk.bf16.mxu1 %vm3507_vm2, %v12498_v57 }
 0x63f   :  { %v3241_v39 = vadd.f32 %v12183_v19, %v3002_v56  ;;  %v3004_v18 = vpop.f32.mrb[111].mxu0  ;;  %3833 = vmatmul.mubr.bf16.gmra.mrb[104].mxu1 %v12496_v60  ;;  %v3351_v33 = vmax.f32 %v3239_v29, 0.0 }
 0x640   :  { %v3242_v9 = vadd.f32 %v12185_v20, %v3004_v18  ;;  %v3352_v37 = vmax.f32 %v3240_v7, 0.0 }
 0x641   :  { %v3353_v13 = vmax.f32 %v3241_v39, 0.0 }
 0x642   :  { %v3354_v0 = vmax.f32 %v3242_v9, 0.0  ;;  %v12507_v45 = vpop.f32.mrb[0].mxu1 }
 0x643   :  { %v12509_v44 = vpack.c.bf16 %v3353_v13, %v3351_v33  ;;  %v3628_v8 = vpop.f32.mrb[1].mxu1 }
 0x644   :  { %v12511_v12 = vpack.c.bf16 %v3354_v0, %v3352_v37  ;;  %v12513_v6 = vpop.f32.mrb[2].mxu1 }
 0x645   :  { %v3631_v57 = vpop.f32.mrb[3].mxu1 }
 0x646   :  { %8495 = vmatprep.mubr.msk.bf16.mxu1 %vm3507_vm2, %v12511_v12 }
 0x647   :  { %3841 = vmatmul.mubr.bf16.gmra.mrb[108].mxu1 %v12509_v44 }
 0x648   :  { %8508 = vmatprep.mubr.msk.bf16.mxu1 %vm3507_vm2, %v12201_v38 }
 0x64a   :  { %v12520_v19 = vpop.f32.mrb[4].mxu1 }
 0x64b   :  { %v3636_v20 = vpop.f32.mrb[5].mxu1 }
 0x64c   :  { %v12522_v7 = vpop.f32.mrb[6].mxu1 }
 0x64d   :  { %v3639_v29 = vpop.f32.mrb[7].mxu1 }
 0x64f   :  { %3978 = vmatmul.mubr.bf16.vlgmr.msra.gmra.mrb[112].mxu1 %v12199_v36 }
 0x650   :  { %8509 = vmatprep.mubr.msk.bf16.mxu1 %vm3507_vm2, %v12212_v51 }
 0x652   :  { %v12527_v57 = vpop.f32.mrb[8].mxu1 }
 0x653   :  { %v3644_v56 = vpop.f32.mrb[9].mxu1 }
 0x654   :  { %v12529_v39 = vpop.f32.mrb[10].mxu1 }
 0x655   :  { %v3647_v18 = vpop.f32.mrb[11].mxu1 }
 0x657   :  { %3986 = vmatmul.mubr.bf16.gmra.mrb[116].mxu1 %v12210_v50 }
 0x658   :  { %8510 = vmatprep.mubr.msk.bf16.mxu1 %vm3507_vm2, %v12223_v2 }
 0x65a   :  { %v12534_v38 = vpop.f32.mrb[12].mxu1 }
 0x65b   :  { %v3652_v9 = vpop.f32.mrb[13].mxu1 }
 0x65c   :  { %v12536_v33 = vpop.f32.mrb[14].mxu1 }
 0x65d   :  { %v3655_v36 = vpop.f32.mrb[15].mxu1 }
 0x65f   :  { %3994 = vmatmul.mubr.bf16.gmra.mrb[120].mxu1 %v12221_v1 }
 0x660   :  { %8511 = vmatprep.mubr.msk.bf16.mxu1 %vm3507_vm2, %v12234_v16 }
 0x662   :  { %v12541_v51 = vpop.f32.mrb[16].mxu1 }
 0x663   :  { %v3660_v13 = vpop.f32.mrb[17].mxu1 }
 0x664   :  { %v12543_v37 = vpop.f32.mrb[18].mxu1 }
 0x665   :  { %v3663_v50 = vpop.f32.mrb[19].mxu1 }
 0x667   :  { %4002 = vmatmul.mubr.bf16.gmra.mrb[124].mxu1 %v12232_v15 }
 0x668   :  { %8512 = vmatprep.mubr.msk.bf16.mxu1 %vm3507_vm2, %v12245_v32 }
 0x66a   :  { %v12548_v2 = vpop.f32.mrb[20].mxu1 }
 0x66b   :  { %v3668_v0 = vpop.f32.mrb[21].mxu1 }
 0x66c   :  { %v12550_v8 = vpop.f32.mrb[22].mxu1 }
 0x66d   :  { %v3671_v1 = vpop.f32.mrb[23].mxu1 }
 0x66f   :  { %4010 = vmatmul.mubr.bf16.gmra.mrb[128].mxu1 %v12243_v31 }
 0x670   :  { %8513 = vmatprep.mubr.msk.bf16.mxu1 %vm3507_vm2, %v12256_v48 }
 0x672   :  { %v12555_v16 = vpop.f32.mrb[24].mxu1 }
 0x673   :  { %v3676_v20 = vpop.f32.mrb[25].mxu1 }
 0x674   :  { %v12557_v29 = vpop.f32.mrb[26].mxu1 }
 0x675   :  { %v3679_v15 = vpop.f32.mrb[27].mxu1 }
 0x677   :  { %4018 = vmatmul.mubr.bf16.gmra.mrb[132].mxu1 %v12254_v47 }
 0x678   :  { %8514 = vmatprep.mubr.msk.bf16.mxu1 %vm3507_vm2, %v12268_v4 }
 0x67a   :  { %v12562_v32 = vpop.f32.mrb[28].mxu1 }
 0x67b   :  { %v3684_v56 = vpop.f32.mrb[29].mxu1 }
 0x67c   :  { %v12564_v18 = vpop.f32.mrb[30].mxu1 }
 0x67d   :  { %v3687_v31 = vpop.f32.mrb[31].mxu1 }
 0x67f   :  { %4026 = vmatmul.mubr.bf16.gmra.mrb[136].mxu1 %v12266_v3 }
 0x680   :  { %8515 = vmatprep.mubr.msk.bf16.mxu1 %vm3507_vm2, %v12279_v23 }
 0x682   :  { %v12569_v48 = vpop.f32.mrb[32].mxu1 }
 0x683   :  { %v3692_v9 = vpop.f32.mrb[33].mxu1 }
 0x684   :  { %v12571_v36 = vpop.f32.mrb[34].mxu1 }
 0x685   :  { %v3695_v47 = vpop.f32.mrb[35].mxu1 }
 0x687   :  { %4034 = vmatmul.mubr.bf16.gmra.mrb[140].mxu1 %v12277_v22 }
 0x688   :  { %8516 = vmatprep.mubr.msk.bf16.mxu1 %vm3507_vm2, %v12292_v43 }
 0x68a   :  { %v12576_v4 = vpop.f32.mrb[36].mxu1 }
 0x68b   :  { %v3700_v13 = vpop.f32.mrb[37].mxu1 }
 0x68c   :  { %v12578_v50 = vpop.f32.mrb[38].mxu1 }
 0x68d   :  { %v3703_v3 = vpop.f32.mrb[39].mxu1 }
 0x68f   :  { %4042 = vmatmul.mubr.bf16.gmra.mrb[144].mxu1 %v12290_v42 }
 0x690   :  { %8517 = vmatprep.mubr.msk.bf16.mxu1 %vm3507_vm2, %v12305_v63 }
 0x692   :  { %v12583_v23 = vpop.f32.mrb[40].mxu1 }
 0x693   :  { %v3708_v0 = vpop.f32.mrb[41].mxu1 }
 0x694   :  { %v12585_v1 = vpop.f32.mrb[42].mxu1 }
 0x695   :  { %v3711_v22 = vpop.f32.mrb[43].mxu1 }
 0x697   :  { %4050 = vmatmul.mubr.bf16.gmra.mrb[148].mxu1 %v12303_v62 }
 0x698   :  { %8518 = vmatprep.mubr.msk.bf16.mxu1 %vm3507_vm2, %v12318_v26 }
 0x69a   :  { %v12590_v43 = vpop.f32.mrb[44].mxu1 }
 0x69b   :  { %v3716_v20 = vpop.f32.mrb[45].mxu1 }
 0x69c   :  { %v12592_v15 = vpop.f32.mrb[46].mxu1 }
 0x69d   :  { %v3719_v42 = vpop.f32.mrb[47].mxu1 }
 0x69f   :  { %4058 = vmatmul.mubr.bf16.gmra.mrb[152].mxu1 %v12316_v25 }
 0x6a0   :  { %8519 = vmatprep.mubr.msk.bf16.mxu1 %vm3507_vm2, %v12331_v52 }
 0x6a2   :  { %v12597_v63 = vpop.f32.mrb[48].mxu1 }
 0x6a3   :  { %v3724_v56 = vpop.f32.mrb[49].mxu1 }
 0x6a4   :  { %v12599_v31 = vpop.f32.mrb[50].mxu1 }
 0x6a5   :  { %v3727_v62 = vpop.f32.mrb[51].mxu1 }
 0x6a7   :  { %4066 = vmatmul.mubr.bf16.gmra.mrb[156].mxu1 %v12329_v49 }
 0x6a8   :  { %8520 = vmatprep.mubr.msk.bf16.mxu1 %vm3507_vm2, %v12344_v11 }
 0x6aa   :  { %v12604_v26 = vpop.f32.mrb[52].mxu1 }
 0x6ab   :  { %v3732_v9 = vpop.f32.mrb[53].mxu1 }
 0x6ac   :  { %v12606_v47 = vpop.f32.mrb[54].mxu1 }
 0x6ad   :  { %v3735_v25 = vpop.f32.mrb[55].mxu1 }
 0x6af   :  { %4074 = vmatmul.mubr.bf16.gmra.mrb[160].mxu1 %v12342_v10 }
 0x6b0   :  { %8521 = vmatprep.mubr.msk.bf16.mxu1 %vm3507_vm2, %v12355_v35 }
 0x6b2   :  { %v12611_v52 = vpop.f32.mrb[56].mxu1 }
 0x6b3   :  { %v3740_v13 = vpop.f32.mrb[57].mxu1 }
 0x6b4   :  { %v12613_v3 = vpop.f32.mrb[58].mxu1 }
 0x6b5   :  { %v3743_v49 = vpop.f32.mrb[59].mxu1 }
 0x6b7   :  { %4082 = vmatmul.mubr.bf16.gmra.mrb[164].mxu1 %v12353_v34 }
 0x6b8   :  { %8522 = vmatprep.mubr.msk.bf16.mxu1 %vm3507_vm2, %v12366_v59 }
 0x6ba   :  { %v12618_v11 = vpop.f32.mrb[60].mxu1 }
 0x6bb   :  { %v3748_v0 = vpop.f32.mrb[61].mxu1 }
 0x6bc   :  { %v12620_v22 = vpop.f32.mrb[62].mxu1 }
 0x6bd   :  { %v3751_v10 = vpop.f32.mrb[63].mxu1 }
 0x6bf   :  { %4090 = vmatmul.mubr.bf16.gmra.mrb[168].mxu1 %v12364_v58 }
 0x6c0   :  { %8523 = vmatprep.mubr.msk.bf16.mxu1 %vm3507_vm2, %v12377_v24 }
 0x6c2   :  { %v12625_v35 = vpop.f32.mrb[64].mxu1 }
 0x6c3   :  { %v3756_v20 = vpop.f32.mrb[65].mxu1 }
 0x6c4   :  { %v12627_v42 = vpop.f32.mrb[66].mxu1 }
 0x6c5   :  { %v3759_v34 = vpop.f32.mrb[67].mxu1 }
 0x6c7   :  { %4098 = vmatmul.mubr.bf16.gmra.mrb[172].mxu1 %v12375_v21 }
 0x6c8   :  { %8524 = vmatprep.mubr.msk.bf16.mxu1 %vm3507_vm2, %v12388_v54 }
 0x6ca   :  { %v12632_v59 = vpop.f32.mrb[68].mxu1 }
 0x6cb   :  { %v3764_v56 = vpop.f32.mrb[69].mxu1 }
 0x6cc   :  { %v12634_v62 = vpop.f32.mrb[70].mxu1 }
 0x6cd   :  { %v3767_v58 = vpop.f32.mrb[71].mxu1 }
 0x6cf   :  { %4106 = vmatmul.mubr.bf16.gmra.mrb[176].mxu1 %v12386_v53 }
 0x6d0   :  { %8525 = vmatprep.mubr.msk.bf16.mxu1 %vm3507_vm2, %v12399_v17 }
 0x6d2   :  { %v12639_v24 = vpop.f32.mrb[72].mxu1 }
 0x6d3   :  { %v3772_v9 = vpop.f32.mrb[73].mxu1 }
 0x6d4   :  { %v12641_v25 = vpop.f32.mrb[74].mxu1 }
 0x6d5   :  { %v3775_v21 = vpop.f32.mrb[75].mxu1 }
 0x6d7   :  { %4114 = vmatmul.mubr.bf16.gmra.mrb[180].mxu1 %v12397_v14 }
 0x6d8   :  { %8526 = vmatprep.mubr.msk.bf16.mxu1 %vm3507_vm2, %v12410_v55 }
 0x6da   :  { %v12646_v54 = vpop.f32.mrb[76].mxu1 }
 0x6db   :  { %v3780_v13 = vpop.f32.mrb[77].mxu1 }
 0x6dc   :  { %v12648_v49 = vpop.f32.mrb[78].mxu1  ;;  %v13837_v13 = vld [vmem:[#allocation30_spill] sm:$0xff] }
 0x6dd   :  { %v3783_v53 = vpop.f32.mrb[79].mxu1 }
 0x6df   :  { %4122 = vmatmul.mubr.bf16.gmra.mrb[184].mxu1 %v12408_v46 }
 0x6e0   :  { %8527 = vmatprep.mubr.msk.bf16.mxu1 %vm3507_vm2, %v12421_v28 }
 0x6e2   :  { %v12653_v17 = vpop.f32.mrb[80].mxu1 }
 0x6e3   :  { %v3788_v0 = vpop.f32.mrb[81].mxu1 }
 0x6e4   :  { %v12655_v10 = vpop.f32.mrb[82].mxu1 }
 0x6e5   :  { %v3791_v14 = vpop.f32.mrb[83].mxu1 }
 0x6e7   :  { %4130 = vmatmul.mubr.bf16.gmra.mrb[188].mxu1 %v12419_v27 }
 0x6e8   :  { %8528 = vmatprep.mubr.msk.bf16.mxu1 %vm3507_vm2, %v12432_v5 }
 0x6ea   :  { %v12660_v55 = vpop.f32.mrb[84].mxu1 }
 0x6eb   :  { %v3796_v20 = vpop.f32.mrb[85].mxu1 }
 0x6ec   :  { %v12662_v34 = vpop.f32.mrb[86].mxu1  ;;  %v13840_v20 = vld [vmem:[#allocation31_spill] sm:$0xff] }
 0x6ed   :  { %v3799_v46 = vpop.f32.mrb[87].mxu1 }
 0x6ef   :  { %4138 = vmatmul.mubr.bf16.gmra.mrb[192].mxu1 %v12430_v61 }
 0x6f0   :  { %8529 = vmatprep.mubr.msk.bf16.mxu1 %vm3507_vm2, %v12443_v41  ;;  %v13838_v41 = vld [vmem:[#allocation32_spill] sm:$0xff] }
 0x6f2   :  { %v12667_v28 = vpop.f32.mrb[88].mxu1 }
 0x6f3   :  { %v3804_v56 = vpop.f32.mrb[89].mxu1 }
 0x6f4   :  { %v12669_v58 = vpop.f32.mrb[90].mxu1 }
 0x6f5   :  { %v3807_v27 = vpop.f32.mrb[91].mxu1 }
 0x6f7   :  { %4146 = vmatmul.mubr.bf16.gmra.mrb[196].mxu1 %v12441_v40 }
 0x6f8   :  { %8530 = vmatprep.mubr.msk.bf16.mxu1 %vm3507_vm2, %v12454_v30  ;;  %v13841_v30 = vld [vmem:[#allocation34_spill] sm:$0xff] }
 0x6fa   :  { %v12674_v5 = vpop.f32.mrb[92].mxu1 }
 0x6fb   :  { %v3812_v9 = vpop.f32.mrb[93].mxu1 }
 0x6fc   :  { %v12676_v21 = vpop.f32.mrb[94].mxu1 }
 0x6fd   :  { %v3815_v61 = vpop.f32.mrb[95].mxu1 }
 0x6fe   :  { %v13844_v61 = vld [vmem:[#allocation33_spill] sm:$0xff] }
 0x6ff   :  { %4154 = vmatmul.mubr.bf16.gmra.mrb[200].mxu1 %v13837_v13  ;;  %v13845_v13 = vld [vmem:[#allocation36_spill] sm:$0xff] }
 0x700   :  { %8531 = vmatprep.mubr.msk.bf16.mxu1 %vm3507_vm2, %v13838_v41 }
 0x702   :  { %v12681_v53 = vpop.f32.mrb[96].mxu1 }
 0x703   :  { %v3820_v0 = vpop.f32.mrb[97].mxu1 }
 0x704   :  { %v12683_v14 = vpop.f32.mrb[98].mxu1 }
 0x705   :  { %13839 = vst [vmem:[#allocation30_spill] sm:$0xff] %v12683_v14  ;;  %v3823_v40 = vpop.f32.mrb[99].mxu1  ;;  %v13848_v14 = vld [vmem:[#allocation35_spill] sm:$0xff] }
 0x707   :  { %4162 = vmatmul.mubr.bf16.gmra.mrb[204].mxu1 %v13840_v20 }
 0x708   :  { %8532 = vmatprep.mubr.msk.bf16.mxu1 %vm3507_vm2, %v13841_v30  ;;  %v13849_v30 = vld [vmem:[#allocation37_spill] sm:$0xff] }
 0x70a   :  { %v12688_v46 = vpop.f32.mrb[100].mxu1 }
 0x70b   :  { %13842 = vst [vmem:[#allocation32_spill] sm:$0xff] %v12688_v46  ;;  %v3828_v56 = vpop.f32.mrb[101].mxu1 }
 0x70c   :  { %v12690_v27 = vpop.f32.mrb[102].mxu1 }
 0x70d   :  { %13843 = vst [vmem:[#allocation31_spill] sm:$0xff] %v12690_v27  ;;  %v3831_v9 = vpop.f32.mrb[103].mxu1 }
 0x70f   :  { %4170 = vmatmul.mubr.bf16.gmra.mrb[208].mxu1 %v13844_v61 }
 0x710   :  { %8533 = vmatprep.mubr.msk.bf16.mxu1 %vm3507_vm2, %v13845_v13 }
 0x712   :  { %v12695_v41 = vpop.f32.mrb[104].mxu1 }
 0x713   :  { %13846 = vst [vmem:[#allocation34_spill] sm:$0xff] %v12695_v41  ;;  %v3836_v0 = vpop.f32.mrb[105].mxu1 }
 0x714   :  { %v12697_v40 = vpop.f32.mrb[106].mxu1 }
 0x715   :  { %13847 = vst [vmem:[#allocation33_spill] sm:$0xff] %v12697_v40  ;;  %v3839_v20 = vpop.f32.mrb[107].mxu1 }
 0x717   :  { %4178 = vmatmul.mubr.bf16.gmra.mrb[212].mxu1 %v13848_v14  ;;  %v10199_v14 = vld [vmem:[%s13786_s5 + $0x4] ss:$16 sps:$4 sm:$0xff]  }
 0x718   :  { %8534 = vmatprep.mubr.msk.bf16.mxu1 %vm3507_vm2, %v13849_v30 }
 0x71a   :  { %v12702_v56 = vpop.f32.mrb[108].mxu1 }
 0x71b   :  { %13850 = vst [vmem:[#allocation36_spill] sm:$0xff] %v12702_v56  ;;  %v3844_v27 = vpop.f32.mrb[109].mxu1 }
 0x71c   :  { %v12704_v9 = vpop.f32.mrb[110].mxu1 }
 0x71d   :  { %13851 = vst [vmem:[#allocation35_spill] sm:$0xff] %v12704_v9  ;;  %v3847_v61 = vpop.f32.mrb[111].mxu1 }
 0x71f   :  { %4186 = vmatmul.mubr.bf16.gmra.mrb[216].mxu1 %v12496_v60 }
 0x720   :  { %8535 = vmatprep.mubr.msk.bf16.mxu1 %vm3507_vm2, %v12511_v12 }
 0x722   :  { %v3979_v13 = vpop.f32.mrb[112].mxu1 }
 0x723   :  { %v4202_v0 = vmax.f32 %v12507_v45, %v3979_v13  ;;  %v3981_v20 = vpop.f32.mrb[113].mxu1 }
 0x724   :  { %v3982_v40 = vpop.f32.mrb[114].mxu1 }
 0x725   :  { %v4203_v30 = vmax.f32 %v12513_v6, %v3982_v40  ;;  %v3984_v27 = vpop.f32.mrb[115].mxu1 }
 0x727   :  { %v12714_v56 = vpack.c.bf16 %v4203_v30, %v4202_v0  ;;  %4194 = vmatmul.mubr.bf16.gmra.mrb[220].mxu1 %v12509_v44 }
 0x728   :  { %4634 = vmatprep.mubr.bf16.mxu1 %v10199_v14 }
 0x72a   :  { %v3987_v60 = vpop.f32.mrb[116].mxu1 }
 0x72b   :  { %v4204_v12 = vmax.f32 %v12520_v19, %v3987_v60  ;;  %v3989_v61 = vpop.f32.mrb[117].mxu1 }
 0x72c   :  { %v3990_v9 = vpop.f32.mrb[118].mxu1 }
 0x72d   :  { %v4205_v45 = vmax.f32 %v12522_v7, %v3990_v9  ;;  %v3992_v13 = vpop.f32.mrb[119].mxu1 }
 0x72f   :  { %v12719_v20 = vpack.c.bf16 %v4205_v45, %v4204_v12 }
 0x732   :  { %v3995_v41 = vpop.f32.mrb[120].mxu1 }
 0x733   :  { %v4206_v46 = vmax.f32 %v12527_v57, %v3995_v41  ;;  %v3997_v6 = vpop.f32.mrb[121].mxu1 }
 0x734   :  { %v3998_v40 = vpop.f32.mrb[122].mxu1 }
 0x735   :  { %v4207_v0 = vmax.f32 %v12529_v39, %v3998_v40  ;;  %v4000_v30 = vpop.f32.mrb[123].mxu1 }
 0x737   :  { %v12723_v44 = vpack.c.bf16 %v4207_v0, %v4206_v46 }
 0x73a   :  { %v4003_v14 = vpop.f32.mrb[124].mxu1 }
 0x73b   :  { %v4208_v19 = vmax.f32 %v12534_v38, %v4003_v14  ;;  %v4005_v27 = vpop.f32.mrb[125].mxu1 }
 0x73c   :  { %v4006_v60 = vpop.f32.mrb[126].mxu1 }
 0x73d   :  { %v4209_v7 = vmax.f32 %v12536_v33, %v4006_v60  ;;  %v4008_v9 = vpop.f32.mrb[127].mxu1 }
 0x73f   :  { %v12727_v12 = vpack.c.bf16 %v4209_v7, %v4208_v19 }
 0x742   :  { %v4011_v61 = vpop.f32.mrb[128].mxu1 }
 0x743   :  { %v4210_v57 = vmax.f32 %v12541_v51, %v4011_v61  ;;  %v4013_v41 = vpop.f32.mrb[129].mxu1 }
 0x744   :  { %v4014_v45 = vpop.f32.mrb[130].mxu1 }
 0x745   :  { %v4211_v39 = vmax.f32 %v12543_v37, %v4014_v45  ;;  %v4016_v13 = vpop.f32.mrb[131].mxu1 }
 0x747   :  { %v12731_v46 = vpack.c.bf16 %v4211_v39, %v4210_v57 }
 0x74a   :  { %v4019_v6 = vpop.f32.mrb[132].mxu1 }
 0x74b   :  { %v4212_v38 = vmax.f32 %v12548_v2, %v4019_v6  ;;  %v4021_v40 = vpop.f32.mrb[133].mxu1 }
 0x74c   :  { %v4022_v0 = vpop.f32.mrb[134].mxu1 }
 0x74d   :  { %v4213_v33 = vmax.f32 %v12550_v8, %v4022_v0  ;;  %v4024_v30 = vpop.f32.mrb[135].mxu1 }
 0x74f   :  { %v12735_v14 = vpack.c.bf16 %v4213_v33, %v4212_v38 }
 0x752   :  { %v4027_v19 = vpop.f32.mrb[136].mxu1 }
 0x753   :  { %v4214_v51 = vmax.f32 %v12555_v16, %v4027_v19  ;;  %v4029_v27 = vpop.f32.mrb[137].mxu1 }
 0x754   :  { %v4030_v60 = vpop.f32.mrb[138].mxu1 }
 0x755   :  { %v4215_v37 = vmax.f32 %v12557_v29, %v4030_v60  ;;  %v4032_v7 = vpop.f32.mrb[139].mxu1 }
 0x757   :  { %v12739_v9 = vpack.c.bf16 %v4215_v37, %v4214_v51 }
 0x75a   :  { %v4035_v61 = vpop.f32.mrb[140].mxu1 }
 0x75b   :  { %v4216_v2 = vmax.f32 %v12562_v32, %v4035_v61  ;;  %v4037_v57 = vpop.f32.mrb[141].mxu1 }
 0x75c   :  { %v4038_v41 = vpop.f32.mrb[142].mxu1 }
 0x75d   :  { %v4217_v8 = vmax.f32 %v12564_v18, %v4038_v41  ;;  %v4040_v45 = vpop.f32.mrb[143].mxu1 }
 0x75f   :  { %v12743_v39 = vpack.c.bf16 %v4217_v8, %v4216_v2 }
 0x762   :  { %v4043_v13 = vpop.f32.mrb[144].mxu1 }
 0x763   :  { %v4218_v16 = vmax.f32 %v12569_v48, %v4043_v13  ;;  %v4045_v6 = vpop.f32.mrb[145].mxu1 }
 0x764   :  { %v4046_v38 = vpop.f32.mrb[146].mxu1 }
 0x765   :  { %v4219_v29 = vmax.f32 %v12571_v36, %v4046_v38  ;;  %v4048_v40 = vpop.f32.mrb[147].mxu1 }
 0x767   :  { %v12747_v0 = vpack.c.bf16 %v4219_v29, %v4218_v16 }
 0x769   :  { %8831 = vmatprep.subr.bf16.mxu1 %v12747_v0 }
 0x76a   :  { %v4051_v32 = vpop.f32.mrb[148].mxu1  ;;  %8832 = vmatpush3.bf16.msra.mxu1 %v12714_v56 }
 0x76b   :  { %v4220_v18 = vmax.f32 %v12576_v4, %v4051_v32  ;;  %v4053_v33 = vpop.f32.mrb[149].mxu1 }
 0x76c   :  { %v4054_v30 = vpop.f32.mrb[150].mxu1 }
 0x76d   :  { %v4221_v19 = vmax.f32 %v12578_v50, %v4054_v30  ;;  %v4056_v51 = vpop.f32.mrb[151].mxu1 }
 0x76f   :  { %v12753_v48 = vpack.c.bf16 %v4221_v19, %v4220_v18 }
 0x771   :  { %8833 = vmatprep.subr.bf16.mxu1 %v12753_v48 }
 0x772   :  { %v4059_v36 = vpop.f32.mrb[152].mxu1  ;;  %8834 = vmatpush3.bf16.msra.mxu1 %v12719_v20 }
 0x773   :  { %v4222_v27 = vmax.f32 %v12583_v23, %v4059_v36  ;;  %v4061_v60 = vpop.f32.mrb[153].mxu1 }
 0x774   :  { %v4062_v37 = vpop.f32.mrb[154].mxu1 }
 0x775   :  { %v4223_v7 = vmax.f32 %v12585_v1, %v4062_v37  ;;  %v4064_v61 = vpop.f32.mrb[155].mxu1 }
 0x777   :  { %v12759_v4 = vpack.c.bf16 %v4223_v7, %v4222_v27 }
 0x779   :  { %8835 = vmatprep.subr.bf16.mxu1 %v12759_v4 }
 0x77a   :  { %v4067_v50 = vpop.f32.mrb[156].mxu1  ;;  %8836 = vmatpush3.bf16.msra.mxu1 %v12723_v44 }
 0x77b   :  { %v4224_v2 = vmax.f32 %v12590_v43, %v4067_v50  ;;  %v4069_v57 = vpop.f32.mrb[157].mxu1 }
 0x77c   :  { %v4070_v41 = vpop.f32.mrb[158].mxu1 }
 0x77d   :  { %v4225_v8 = vmax.f32 %v12592_v15, %v4070_v41  ;;  %v4072_v45 = vpop.f32.mrb[159].mxu1  ;;  %v10200_v41 = vld [vmem:[%s13786_s5 + $0x24] ss:$16 sps:$4 sm:$0xff]  }
 0x77f   :  { %v12765_v23 = vpack.c.bf16 %v4225_v8, %v4224_v2  ;;  %v13852_v8 = vmov 0  }
 0x781   :  { %8837 = vmatprep.subr.bf16.mxu1 %v12765_v23 }
 0x782   :  { %v4075_v1 = vpop.f32.mrb[160].mxu1  ;;  %8838 = vmatpush3.bf16.msra.mxu1 %v12727_v12 }
 0x783   :  { %v4077_v13 = vpop.f32.mrb[161].mxu1  ;;  %v4226_v16 = vmax.f32 %v12597_v63, %v4075_v1 }
 0x784   :  { %v4078_v6 = vpop.f32.mrb[162].mxu1 }
 0x785   :  { %v4080_v38 = vpop.f32.mrb[163].mxu1  ;;  %v4227_v29 = vmax.f32 %v12599_v31, %v4078_v6  ;;  %v10202_v6 = vld [vmem:[%s13786_s5 + $0x20] ss:$16 sps:$4 sm:$0xff]  }
 0x787   :  { %v12771_v43 = vpack.c.bf16 %v4227_v29, %v4226_v16 }
 0x789   :  { %8839 = vmatprep.subr.bf16.mxu1 %v12771_v43 }
 0x78a   :  { %v4083_v15 = vpop.f32.mrb[164].mxu1  ;;  %8840 = vmatpush3.bf16.msra.mxu1 %v12731_v46 }
 0x78b   :  { %v4085_v40 = vpop.f32.mrb[165].mxu1  ;;  %v4228_v32 = vmax.f32 %v12604_v26, %v4083_v15 }
 0x78c   :  { %v4086_v18 = vpop.f32.mrb[166].mxu1 }
 0x78d   :  { %v4088_v33 = vpop.f32.mrb[167].mxu1  ;;  %v4229_v30 = vmax.f32 %v12606_v47, %v4086_v18 }
 0x78e   :  { %v10205_v33 = vld [vmem:[%s13786_s5 + $0x40] ss:$16 sps:$4 sm:$0xff]  }
 0x78f   :  { %v12777_v19 = vpack.c.bf16 %v4229_v30, %v4228_v32 }
 0x791   :  { %8841 = vmatprep.subr.bf16.mxu1 %v12777_v19 }
 0x792   :  { %v4091_v63 = vpop.f32.mrb[168].mxu1  ;;  %8842 = vmatpush3.bf16.msra.mxu1 %v12735_v14 }
 0x793   :  { %v4093_v31 = vpop.f32.mrb[169].mxu1  ;;  %v4230_v51 = vmax.f32 %v12611_v52, %v4091_v63  ;;  %v10197_v52 = vld [vmem:[%s13786_s5] ss:$16 sps:$4 sm:$0xff]  }
 0x794   :  { %v4094_v36 = vpop.f32.mrb[170].mxu1 }
 0x795   :  { %v4096_v27 = vpop.f32.mrb[171].mxu1  ;;  %v4231_v60 = vmax.f32 %v12613_v3, %v4094_v36 }
 0x797   :  { %v12783_v37 = vpack.c.bf16 %v4231_v60, %v4230_v51  ;;  %v10208_v60 = vld [vmem:[%s13786_s5 + $0x60] ss:$16 sps:$4 sm:$0xff]  }
 0x799   :  { %8843 = vmatprep.subr.bf16.mxu1 %v12783_v37 }
 0x79a   :  { %v4099_v26 = vpop.f32.mrb[172].mxu1  ;;  %8844 = vmatpush3.bf16.msra.mxu1 %v12739_v9 }
 0x79b   :  { %v4101_v47 = vpop.f32.mrb[173].mxu1  ;;  %v4232_v7 = vmax.f32 %v12618_v11, %v4099_v26 }
 0x79c   :  { %v4102_v61 = vpop.f32.mrb[174].mxu1 }
 0x79d   :  { %v4104_v50 = vpop.f32.mrb[175].mxu1  ;;  %v4233_v2 = vmax.f32 %v12620_v22, %v4102_v61 }
 0x79f   :  { %v12789_v57 = vpack.c.bf16 %v4233_v2, %v4232_v7 }
 0x7a1   :  { %8845 = vmatprep.subr.bf16.mxu1 %v12789_v57 }
 0x7a2   :  { %v4107_v3 = vpop.f32.mrb[176].mxu1  ;;  %8846 = vmatpush3.bf16.msra.mxu1 %v12743_v39 }
 0x7a3   :  { %v4109_v11 = vpop.f32.mrb[177].mxu1  ;;  %4731 = vmatprep.subr.bf16.mxu1 %v13852_v8  ;;  %v4234_v22 = vmax.f32 %v12625_v35, %v4107_v3  ;;  %v10203_v35 = vld [vmem:[%s13786_s5 + $0x44] ss:$16 sps:$4 sm:$0xff]  }
 0x7a4   :  { %v4110_v45 = vpop.f32.mrb[178].mxu1 }
 0x7a5   :  { %v4112_v1 = vpop.f32.mrb[179].mxu1  ;;  %4635 = vmatmul.mubr.bf16.vlgmr.msra.gmra.mrb[224].mxu1 %v10197_v52  ;;  %v4235_v13 = vmax.f32 %v12627_v42, %v4110_v45  ;;  %v10211_v52 = vld [vmem:[%s13786_s5 + $0x80] ss:$16 sps:$4 sm:$0xff]  }
 0x7a6   :  { %4642 = vmatprep.mubr.bf16.mxu1 %v10200_v41 }
 0x7a7   :  { %v12802_v16 = vpack.c.bf16 %v4235_v13, %v4234_v22  ;;  %v10214_v13 = vld [vmem:[%s13786_s5 + $0xa0] ss:$16 sps:$4 sm:$0xff]  }
 0x7a9   :  { %4732 = vmatpush1.bf16.msra.mxu1 %v12802_v16 }
 0x7aa   :  { %v4115_v38 = vpop.f32.mrb[180].mxu1  ;;  %4733 = vmatprep.subr.bf16.mxu1 %v13852_v8 }
 0x7ab   :  { %v4117_v29 = vpop.f32.mrb[181].mxu1  ;;  %v4236_v15 = vmax.f32 %v12632_v59, %v4115_v38  ;;  %v10206_v59 = vld [vmem:[%s13786_s5 + $0x64] ss:$16 sps:$4 sm:$0xff]  }
 0x7ac   :  { %v4118_v42 = vpop.f32.mrb[182].mxu1 }
 0x7ad   :  { %v4120_v40 = vpop.f32.mrb[183].mxu1  ;;  %4643 = vmatmul.mubr.bf16.gmra.mrb[228].mxu1 %v10202_v6  ;;  %v4237_v32 = vmax.f32 %v12634_v62, %v4118_v42 }
 0x7ae   :  { %4650 = vmatprep.mubr.bf16.mxu1 %v10203_v35  ;;  %v10217_v40 = vld [vmem:[%s13786_s5 + $0xc0] ss:$16 sps:$4 sm:$0xff]  }
 0x7af   :  { %v12814_v18 = vpack.c.bf16 %v4237_v32, %v4236_v15 }
 0x7b1   :  { %4734 = vmatpush1.bf16.msra.mxu1 %v12814_v18 }
 0x7b2   :  { %v4123_v30 = vpop.f32.mrb[184].mxu1  ;;  %4735 = vmatprep.subr.bf16.mxu1 %v13852_v8 }
 0x7b3   :  { %v4238_v63 = vmax.f32 %v12639_v24, %v4123_v30  ;;  %v4125_v31 = vpop.f32.mrb[185].mxu1  ;;  %v10209_v24 = vld [vmem:[%s13786_s5 + $0x84] ss:$16 sps:$4 sm:$0xff]  }
 0x7b4   :  { %v4126_v62 = vpop.f32.mrb[186].mxu1 }
 0x7b5   :  { %v4239_v51 = vmax.f32 %v12641_v25, %v4126_v62  ;;  %v4128_v36 = vpop.f32.mrb[187].mxu1  ;;  %4651 = vmatmul.mubr.bf16.gmra.mrb[232].mxu1 %v10205_v33  ;;  %v10220_v62 = vld [vmem:[%s13786_s5 + $0xe0] ss:$16 sps:$4 sm:$0xff]  }
 0x7b6   :  { %4658 = vmatprep.mubr.bf16.mxu1 %v10206_v59 }
 0x7b7   :  { %v12826_v27 = vpack.c.bf16 %v4239_v51, %v4238_v63 }
 0x7b9   :  { %4736 = vmatpush1.bf16.msra.mxu1 %v12826_v27 }
 0x7ba   :  { %v4131_v26 = vpop.f32.mrb[188].mxu1  ;;  %4737 = vmatprep.subr.bf16.mxu1 %v13852_v8 }
 0x7bb   :  { %v4240_v25 = vmax.f32 %v12646_v54, %v4131_v26  ;;  %v4133_v47 = vpop.f32.mrb[189].mxu1  ;;  %v10212_v54 = vld [vmem:[%s13786_s5 + $0xa4] ss:$16 sps:$4 sm:$0xff]  }
 0x7bc   :  { %v4134_v7 = vpop.f32.mrb[190].mxu1  ;;  %v10221_v47 = vld [vmem:[%s13786_s5 + $0x100] ss:$16 sps:$4 sm:$0xff]  }
 0x7bd   :  { %v4241_v61 = vmax.f32 %v12648_v49, %v4134_v7  ;;  %v4136_v50 = vpop.f32.mrb[191].mxu1  ;;  %4659 = vmatmul.mubr.bf16.gmra.mrb[236].mxu1 %v10208_v60 }
 0x7be   :  { %4666 = vmatprep.mubr.bf16.mxu1 %v10209_v24 }
 0x7bf   :  { %v12838_v2 = vpack.c.bf16 %v4241_v61, %v4240_v25 }
 0x7c1   :  { %4738 = vmatpush1.bf16.msra.mxu1 %v12838_v2 }
 0x7c2   :  { %v4139_v3 = vpop.f32.mrb[192].mxu1  ;;  %4739 = vmatprep.subr.bf16.mxu1 %v13852_v8 }
 0x7c3   :  { %v4242_v49 = vmax.f32 %v12653_v17, %v4139_v3  ;;  %v4141_v41 = vpop.f32.mrb[193].mxu1  ;;  %v10215_v17 = vld [vmem:[%s13786_s5 + $0xc4] ss:$16 sps:$4 sm:$0xff]  }
 0x7c4   :  { %v4142_v11 = vpop.f32.mrb[194].mxu1  ;;  %v10224_v41 = vld [vmem:[%s13786_s5 + $0x120] ss:$16 sps:$4 sm:$0xff]  }
 0x7c5   :  { %v4243_v22 = vmax.f32 %v12655_v10, %v4142_v11  ;;  %v4144_v45 = vpop.f32.mrb[195].mxu1  ;;  %4667 = vmatmul.mubr.bf16.gmra.mrb[240].mxu1 %v10211_v52  ;;  %v13853_v52 = vld [vmem:[#allocation30_spill] sm:$0xff] }
 0x7c6   :  { %4674 = vmatprep.mubr.bf16.mxu1 %v10212_v54 }
 0x7c7   :  { %v12850_v1 = vpack.c.bf16 %v4243_v22, %v4242_v49  ;;  %v13854_v22 = vld [vmem:[#allocation32_spill] sm:$0xff] }
 0x7c9   :  { %4740 = vmatpush1.bf16.msra.mxu1 %v12850_v1 }
 0x7ca   :  { %v4147_v6 = vpop.f32.mrb[196].mxu1  ;;  %4741 = vmatprep.subr.bf16.mxu1 %v13852_v8 }
 0x7cb   :  { %v4244_v10 = vmax.f32 %v12660_v55, %v4147_v6  ;;  %v4149_v38 = vpop.f32.mrb[197].mxu1  ;;  %v10218_v55 = vld [vmem:[%s13786_s5 + $0xe4] ss:$16 sps:$4 sm:$0xff]  }
 0x7cc   :  { %v4150_v35 = vpop.f32.mrb[198].mxu1 }
 0x7cd   :  { %v4245_v29 = vmax.f32 %v12662_v34, %v4150_v35  ;;  %v4152_v15 = vpop.f32.mrb[199].mxu1  ;;  %4675 = vmatmul.mubr.bf16.gmra.mrb[244].mxu1 %v10214_v13 }
 0x7ce   :  { %4682 = vmatprep.mubr.bf16.mxu1 %v10215_v17  ;;  %v13855_v17 = vld [vmem:[#allocation31_spill] sm:$0xff] }
 0x7cf   :  { %v12862_v42 = vpack.c.bf16 %v4245_v29, %v4244_v10  ;;  %v10227_v29 = vld [vmem:[%s13786_s5 + $0x140] ss:$16 sps:$4 sm:$0xff]  }
 0x7d1   :  { %4742 = vmatpush1.bf16.msra.mxu1 %v12862_v42 }
 0x7d2   :  { %v4155_v32 = vpop.f32.mrb[200].mxu1  ;;  %4743 = vmatprep.subr.bf16.mxu1 %v13852_v8 }
 0x7d3   :  { %v4246_v34 = vmax.f32 %v12667_v28, %v4155_v32  ;;  %v4157_v33 = vpop.f32.mrb[201].mxu1  ;;  %v10223_v28 = vld [vmem:[%s13786_s5 + $0x104] ss:$16 sps:$4 sm:$0xff]   ;;  %v13856_v32 = vld [vmem:[#allocation34_spill] sm:$0xff] }
 0x7d4   :  { %v4158_v30 = vpop.f32.mrb[202].mxu1 }
 0x7d5   :  { %v4247_v59 = vmax.f32 %v12669_v58, %v4158_v30  ;;  %v4160_v63 = vpop.f32.mrb[203].mxu1  ;;  %4683 = vmatmul.mubr.bf16.gmra.mrb[248].mxu1 %v10217_v40  ;;  %v10232_v40 = vld [vmem:[%s13786_s5 + $0x164] ss:$16 sps:$4 sm:$0xff]  }
 0x7d6   :  { %4690 = vmatprep.mubr.bf16.mxu1 %v10218_v55  ;;  %v13857_v30 = vld [vmem:[#allocation33_spill] sm:$0xff] }
 0x7d7   :  { %v12874_v31 = vpack.c.bf16 %v4247_v59, %v4246_v34 }
 0x7d9   :  { %4744 = vmatpush1.bf16.msra.mxu1 %v12874_v31 }
 0x7da   :  { %v4163_v51 = vpop.f32.mrb[204].mxu1  ;;  %4745 = vmatprep.subr.bf16.mxu1 %v13852_v8 }
 0x7db   :  { %v4248_v58 = vmax.f32 %v12674_v5, %v4163_v51  ;;  %v4165_v36 = vpop.f32.mrb[205].mxu1  ;;  %v10226_v5 = vld [vmem:[%s13786_s5 + $0x124] ss:$16 sps:$4 sm:$0xff]   ;;  %v10230_v51 = vld [vmem:[%s13786_s5 + $0x160] ss:$16 sps:$4 sm:$0xff]  }
 0x7dc   :  { %v4166_v60 = vpop.f32.mrb[206].mxu1  ;;  %v13858_v36 = vld [vmem:[#allocation36_spill] sm:$0xff] }
 0x7dd   :  { %v4249_v26 = vmax.f32 %v12676_v21, %v4166_v60  ;;  %v4168_v24 = vpop.f32.mrb[207].mxu1  ;;  %4691 = vmatmul.mubr.bf16.gmra.mrb[252].mxu1 %v10220_v62 }
 0x7de   :  { %4698 = vmatprep.mubr.bf16.mxu1 %v10223_v28 }
 0x7df   :  { %v12886_v25 = vpack.c.bf16 %v4249_v26, %v4248_v58  ;;  %v10235_v58 = vld [vmem:[%s13786_s5 + $0xc] ss:$16 sps:$4 sm:$0xff]  }
 0x7e1   :  { %4746 = vmatpush1.bf16.msra.mxu1 %v12886_v25 }
 0x7e2   :  { %v4171_v7 = vpop.f32.mrb[208].mxu1  ;;  %4747 = vmatprep.subr.bf16.mxu1 %v13852_v8 }
 0x7e3   :  { %v4250_v21 = vmax.f32 %v12681_v53, %v4171_v7  ;;  %v4173_v61 = vpop.f32.mrb[209].mxu1  ;;  %v10229_v53 = vld [vmem:[%s13786_s5 + $0x144] ss:$16 sps:$4 sm:$0xff]  }
 0x7e4   :  { %v4174_v50 = vpop.f32.mrb[210].mxu1 }
 0x7e5   :  { %v4251_v3 = vmax.f32 %v13853_v52, %v4174_v50  ;;  %v4176_v54 = vpop.f32.mrb[211].mxu1  ;;  %4699 = vmatmul.mubr.bf16.gmra.mrb[0].mxu1 %v10221_v47  ;;  %v13859_v47 = vld [vmem:[#allocation35_spill] sm:$0xff]  ;;  %v10238_v52 = vld [vmem:[%s13786_s5 + $0x2c] ss:$16 sps:$4 sm:$0xff]  }
 0x7e6   :  { %4706 = vmatprep.mubr.bf16.mxu1 %v10226_v5  ;;  %v10233_v50 = vld [vmem:[%s13786_s5 + $0x8] ss:$16 sps:$4 sm:$0xff]   ;;  %v10241_v54 = vld [vmem:[%s13786_s5 + $0x4c] ss:$16 sps:$4 sm:$0xff]  }
 0x7e7   :  { %v12898_v49 = vpack.c.bf16 %v4251_v3, %v4250_v21  ;;  %v10236_v3 = vld [vmem:[%s13786_s5 + $0x28] ss:$16 sps:$4 sm:$0xff]  }
 0x7e9   :  { %4748 = vmatpush1.bf16.msra.mxu1 %v12898_v49 }
 0x7ea   :  { %v4179_v11 = vpop.f32.mrb[212].mxu1  ;;  %4749 = vmatprep.subr.bf16.mxu1 %v13852_v8 }
 0x7eb   :  { %v4252_v45 = vmax.f32 %v13854_v22, %v4179_v11  ;;  %v4181_v13 = vpop.f32.mrb[213].mxu1  ;;  %v10268_v11 = vld [vmem:[%s13786_s5 + $0x16c] ss:$16 sps:$4 sm:$0xff]   ;;  %v10271_v22 = vld [vmem:[%s13787_s6 + $0x4] ss:$16 sps:$4 sm:$0xff]  }
 0x7ec   :  { %v4182_v6 = vpop.f32.mrb[214].mxu1  ;;  %v10274_v13 = vld [vmem:[%s13787_s6 + $0x24] ss:$16 sps:$4 sm:$0xff]  }
 0x7ed   :  { %v4253_v10 = vmax.f32 %v13855_v17, %v4182_v6  ;;  %v4184_v38 = vpop.f32.mrb[215].mxu1  ;;  %4707 = vmatmul.mubr.bf16.gmra.mrb[4].mxu1 %v10224_v41  ;;  %v10263_v41 = vld [vmem:[%s13786_s5 + $0x148] ss:$16 sps:$4 sm:$0xff]   ;;  %v10272_v6 = vld [vmem:[%s13787_s6 + $0x20] ss:$16 sps:$4 sm:$0xff]  }
 0x7ee   :  { %4714 = vmatprep.mubr.bf16.mxu1 %v10229_v53  ;;  %v10266_v53 = vld [vmem:[%s13786_s5 + $0x168] ss:$16 sps:$4 sm:$0xff]   ;;  %v10277_v17 = vld [vmem:[%s13787_s6 + $0x44] ss:$16 sps:$4 sm:$0xff]  }
 0x7ef   :  { %v12910_v35 = vpack.c.bf16 %v4253_v10, %v4252_v45  ;;  %v10269_v45 = vld [vmem:[%s13787_s6] ss:$16 sps:$4 sm:$0xff]  }
 0x7f0   :  { %v10278_v10 = vld [vmem:[%s13787_s6 + $0x60] ss:$16 sps:$4 sm:$0xff]  }
 0x7f1   :  { %4750 = vmatpush1.bf16.msra.mxu1 %v12910_v35 }
 0x7f2   :  { %v4187_v15 = vpop.f32.mrb[216].mxu1  ;;  %4751 = vmatprep.subr.bf16.mxu1 %v13852_v8 }
 0x7f3   :  { %v4254_v55 = vmax.f32 %v13856_v32, %v4187_v15  ;;  %v4189_v34 = vpop.f32.mrb[217].mxu1 }
 0x7f4   :  { %v4190_v33 = vpop.f32.mrb[218].mxu1  ;;  %v10286_v34 = vld [vmem:[%s13787_s6 + $0xa4] ss:$16 sps:$4 sm:$0xff]  }
 0x7f5   :  { %v4255_v59 = vmax.f32 %v13857_v30, %v4190_v33  ;;  %v4192_v63 = vpop.f32.mrb[219].mxu1  ;;  %4715 = vmatmul.mubr.bf16.gmra.mrb[8].mxu1 %v10227_v29 }
 0x7f6   :  { %4722 = vmatprep.mubr.bf16.mxu1 %v10232_v40 }
 0x7f7   :  { %v12922_v62 = vpack.c.bf16 %v4255_v59, %v4254_v55 }
 0x7f9   :  { %4752 = vmatpush1.bf16.msra.mxu1 %v12922_v62 }
 0x7fa   :  { %v4195_v28 = vpop.f32.mrb[220].mxu1  ;;  %4753 = vmatprep.subr.bf16.mxu1 %v13852_v8 }
 0x7fb   :  { %v4256_v60 = vmax.f32 %v13858_v36, %v4195_v28  ;;  %v4197_v26 = vpop.f32.mrb[221].mxu1  ;;  %v10289_v28 = vld [vmem:[%s13787_s6 + $0xc4] ss:$16 sps:$4 sm:$0xff]  }
 0x7fc   :  { %v4198_v24 = vpop.f32.mrb[222].mxu1 }
 0x7fd   :  { %v4257_v7 = vmax.f32 %v13859_v47, %v4198_v24  ;;  %v4200_v5 = vpop.f32.mrb[223].mxu1  ;;  %4723 = vmatmul.mubr.bf16.gmra.mrb[12].mxu1 %v10230_v51  ;;  %v10292_v47 = vld [vmem:[%s13787_s6 + $0xe4] ss:$16 sps:$4 sm:$0xff]  }
 0x7fe   :  { %8584 = vmatprep.mubr.msk.bf16.mxu1 %vm4562_vm3, %v10235_v58 }
 0x7ff   :  { %v4285_v21 = vpack.c.bf16 %v4257_v7, %v4256_v60 }
 0x801   :  { %v12936_v61 = vsel %vm512_vm0, %v4285_v21, 0 }
 0x802   :  { %4754 = vmatpush1.bf16.msra.mxu1 %v12936_v61 }
 0x803   :  { %8919 = vmatprep.subr.bf16.mxu1 %v12747_v0  ;;  %v10253_v0 = vld [vmem:[%s13786_s5 + $0xcc] ss:$16 sps:$4 sm:$0xff]  }
 0x805   :  { %4764 = vmatmul.mubr.bf16.vlgmr.msra.gmra.mrb[16].mxu1 %v10233_v50 }
 0x806   :  { %8920 = vmatpush3.bf16.msra.mxu1 %v12714_v56  ;;  %8585 = vmatprep.mubr.msk.bf16.mxu1 %vm4562_vm3, %v10238_v52  ;;  %v10239_v56 = vld [vmem:[%s13786_s5 + $0x48] ss:$16 sps:$4 sm:$0xff]   ;;  %v10290_v52 = vld [vmem:[%s13787_s6 + $0xe0] ss:$16 sps:$4 sm:$0xff]  }
 0x807   :  { %8921 = vmatprep.subr.bf16.mxu1 %v12753_v48  ;;  %v10256_v48 = vld [vmem:[%s13786_s5 + $0xec] ss:$16 sps:$4 sm:$0xff]  }
 0x80a   :  { %8922 = vmatpush3.bf16.msra.mxu1 %v12719_v20  ;;  %v10244_v20 = vld [vmem:[%s13786_s5 + $0x6c] ss:$16 sps:$4 sm:$0xff]  }
 0x80b   :  { %8923 = vmatprep.subr.bf16.mxu1 %v12759_v4  ;;  %v10254_v4 = vld [vmem:[%s13786_s5 + $0xe8] ss:$16 sps:$4 sm:$0xff]  }
 0x80d   :  { %4772 = vmatmul.mubr.bf16.gmra.mrb[20].mxu1 %v10236_v3 }
 0x80e   :  { %8924 = vmatpush3.bf16.msra.mxu1 %v12723_v44  ;;  %8586 = vmatprep.mubr.msk.bf16.mxu1 %vm4562_vm3, %v10241_v54  ;;  %v10242_v44 = vld [vmem:[%s13786_s5 + $0x68] ss:$16 sps:$4 sm:$0xff]  }
 0x80f   :  { %8925 = vmatprep.subr.bf16.mxu1 %v12765_v23  ;;  %v10259_v23 = vld [vmem:[%s13786_s5 + $0x10c] ss:$16 sps:$4 sm:$0xff]  }
 0x812   :  { %8926 = vmatpush3.bf16.msra.mxu1 %v12727_v12  ;;  %v10247_v12 = vld [vmem:[%s13786_s5 + $0x8c] ss:$16 sps:$4 sm:$0xff]  }
 0x813   :  { %8927 = vmatprep.subr.bf16.mxu1 %v12771_v43  ;;  %v10257_v43 = vld [vmem:[%s13786_s5 + $0x108] ss:$16 sps:$4 sm:$0xff]  }
 0x815   :  { %4780 = vmatmul.mubr.bf16.gmra.mrb[24].mxu1 %v10239_v56 }
 0x816   :  { %8928 = vmatpush3.bf16.msra.mxu1 %v12731_v46  ;;  %8587 = vmatprep.mubr.msk.bf16.mxu1 %vm4562_vm3, %v10244_v20  ;;  %v10245_v46 = vld [vmem:[%s13786_s5 + $0x88] ss:$16 sps:$4 sm:$0xff]  }
 0x817   :  { %8929 = vmatprep.subr.bf16.mxu1 %v12777_v19  ;;  %v10262_v19 = vld [vmem:[%s13786_s5 + $0x12c] ss:$16 sps:$4 sm:$0xff]  }
 0x81a   :  { %8930 = vmatpush3.bf16.msra.mxu1 %v12735_v14  ;;  %v10250_v14 = vld [vmem:[%s13786_s5 + $0xac] ss:$16 sps:$4 sm:$0xff]  }
 0x81b   :  { %8931 = vmatprep.subr.bf16.mxu1 %v12783_v37  ;;  %v10260_v37 = vld [vmem:[%s13786_s5 + $0x128] ss:$16 sps:$4 sm:$0xff]  }
 0x81d   :  { %4788 = vmatmul.mubr.bf16.gmra.mrb[28].mxu1 %v10242_v44 }
 0x81e   :  { %8932 = vmatpush3.bf16.msra.mxu1 %v12739_v9  ;;  %8588 = vmatprep.mubr.msk.bf16.mxu1 %vm4562_vm3, %v10247_v12  ;;  %v10248_v9 = vld [vmem:[%s13786_s5 + $0xa8] ss:$16 sps:$4 sm:$0xff]  }
 0x81f   :  { %8933 = vmatprep.subr.bf16.mxu1 %v12789_v57  ;;  %v10265_v57 = vld [vmem:[%s13786_s5 + $0x14c] ss:$16 sps:$4 sm:$0xff]  }
 0x822   :  { %8934 = vmatpush3.bf16.msra.mxu1 %v12743_v39  ;;  %v10251_v39 = vld [vmem:[%s13786_s5 + $0xc8] ss:$16 sps:$4 sm:$0xff]  }
 0x823   :  { %5301 = vmatprep.subr.bf16.mxu1 %v13852_v8 }
 0x825   :  { %4796 = vmatmul.mubr.bf16.gmra.mrb[32].mxu1 %v10245_v46  ;;  %v10293_v46 = vld [vmem:[%s13787_s6 + $0x100] ss:$16 sps:$4 sm:$0xff]  }
 0x826   :  { %8589 = vmatprep.mubr.msk.bf16.mxu1 %vm4562_vm3, %v10250_v14 }
 0x82d   :  { %4804 = vmatmul.mubr.bf16.gmra.mrb[36].mxu1 %v10248_v9  ;;  %v10298_v9 = vld [vmem:[%s13787_s6 + $0x124] ss:$16 sps:$4 sm:$0xff]  }
 0x82e   :  { %8590 = vmatprep.mubr.msk.bf16.mxu1 %vm4562_vm3, %v10253_v0 }
 0x835   :  { %4812 = vmatmul.mubr.bf16.gmra.mrb[40].mxu1 %v10251_v39 }
 0x836   :  { %8591 = vmatprep.mubr.msk.bf16.mxu1 %vm4562_vm3, %v10256_v48 }
 0x83d   :  { %4820 = vmatmul.mubr.bf16.gmra.mrb[44].mxu1 %v10254_v4 }
 0x83e   :  { %8592 = vmatprep.mubr.msk.bf16.mxu1 %vm4562_vm3, %v10259_v23 }
 0x845   :  { %4828 = vmatmul.mubr.bf16.gmra.mrb[48].mxu1 %v10257_v43  ;;  %v10296_v43 = vld [vmem:[%s13787_s6 + $0x120] ss:$16 sps:$4 sm:$0xff]  }
 0x846   :  { %8593 = vmatprep.mubr.msk.bf16.mxu1 %vm4562_vm3, %v10262_v19 }
 0x84d   :  { %4836 = vmatmul.mubr.bf16.gmra.mrb[52].mxu1 %v10260_v37  ;;  %v10301_v37 = vld [vmem:[%s13787_s6 + $0x144] ss:$16 sps:$4 sm:$0xff]  }
 0x84e   :  { %8594 = vmatprep.mubr.msk.bf16.mxu1 %vm4562_vm3, %v10265_v57 }
 0x855   :  { %4844 = vmatmul.mubr.bf16.gmra.mrb[56].mxu1 %v10263_v41 }
 0x856   :  { %8595 = vmatprep.mubr.msk.bf16.mxu1 %vm4562_vm3, %v10268_v11 }
 0x85d   :  { %4852 = vmatmul.mubr.bf16.gmra.mrb[60].mxu1 %v10266_v53 }
 0x85e   :  { %5204 = vmatprep.mubr.bf16.mxu1 %v10271_v22 }
 0x865   :  { %5205 = vmatmul.mubr.bf16.vlgmr.msra.gmra.mrb[64].mxu1 %v10269_v45  ;;  %v10299_v45 = vld [vmem:[%s13787_s6 + $0x140] ss:$16 sps:$4 sm:$0xff]  }
 0x866   :  { %5302 = vmatpush1.bf16.msra.mxu1 %v12802_v16  ;;  %5212 = vmatprep.mubr.bf16.mxu1 %v10274_v13  ;;  %v10275_v16 = vld [vmem:[%s13787_s6 + $0x40] ss:$16 sps:$4 sm:$0xff]  }
 0x867   :  { %5303 = vmatprep.subr.bf16.mxu1 %v13852_v8 }
 0x86a   :  { %5304 = vmatpush1.bf16.msra.mxu1 %v12814_v18  ;;  %v10280_v18 = vld [vmem:[%s13787_s6 + $0x64] ss:$16 sps:$4 sm:$0xff]  }
 0x86b   :  { %5305 = vmatprep.subr.bf16.mxu1 %v13852_v8 }
 0x86d   :  { %5213 = vmatmul.mubr.bf16.gmra.mrb[68].mxu1 %v10272_v6  ;;  %v10304_v6 = vld [vmem:[%s13787_s6 + $0x164] ss:$16 sps:$4 sm:$0xff]  }
 0x86e   :  { %5306 = vmatpush1.bf16.msra.mxu1 %v12826_v27  ;;  %5220 = vmatprep.mubr.bf16.mxu1 %v10277_v17 }
 0x86f   :  { %5307 = vmatprep.subr.bf16.mxu1 %v13852_v8 }
 0x872   :  { %5308 = vmatpush1.bf16.msra.mxu1 %v12838_v2  ;;  %v10283_v2 = vld [vmem:[%s13787_s6 + $0x84] ss:$16 sps:$4 sm:$0xff]  }
 0x873   :  { %5309 = vmatprep.subr.bf16.mxu1 %v13852_v8 }
 0x875   :  { %5221 = vmatmul.mubr.bf16.gmra.mrb[72].mxu1 %v10275_v16 }
 0x876   :  { %5310 = vmatpush1.bf16.msra.mxu1 %v12850_v1  ;;  %5228 = vmatprep.mubr.bf16.mxu1 %v10280_v18 }
 0x877   :  { %5311 = vmatprep.subr.bf16.mxu1 %v13852_v8 }
 0x878   :  { %v8847_v27 = vpop.f32.mrb[224].mxu1 }
 0x879   :  { %v8848_v38 = vpop.f32.mrb[225].mxu1 }
 0x87a   :  { %5312 = vmatpush1.bf16.msra.mxu1 %v12862_v42  ;;  %v8850_v29 = vpop.f32.mrb[226].mxu1  ;;  %v13074_v15 = vadd.f32 %v8848_v38, %v8847_v27  ;;  %v10281_v42 = vld [vmem:[%s13787_s6 + $0x80] ss:$16 sps:$4 sm:$0xff]  }
 0x87b   :  { %5313 = vmatprep.subr.bf16.mxu1 %v13852_v8  ;;  %v8851_v1 = vpop.f32.mrb[227].mxu1  ;;  %v10302_v38 = vld [vmem:[%s13787_s6 + $0x160] ss:$16 sps:$4 sm:$0xff]  }
 0x87c   :  { %v13077_v40 = vadd.f32 %v8851_v1, %v8850_v29  ;;  %v10307_v29 = vld [vmem:[%s13787_s6 + $0xc] ss:$16 sps:$4 sm:$0xff]  }
 0x87d   :  { %5229 = vmatmul.mubr.bf16.gmra.mrb[76].mxu1 %v10278_v10 }
 0x87e   :  { %5314 = vmatpush1.bf16.msra.mxu1 %v12874_v31  ;;  %5236 = vmatprep.mubr.bf16.mxu1 %v10283_v2 }
 0x87f   :  { %5315 = vmatprep.subr.bf16.mxu1 %v13852_v8 }
 0x880   :  { %v8853_v32 = vpop.f32.mrb[228].mxu1 }
 0x881   :  { %v8854_v55 = vpop.f32.mrb[229].mxu1 }
 0x882   :  { %5316 = vmatpush1.bf16.msra.mxu1 %v12886_v25  ;;  %v8856_v33 = vpop.f32.mrb[230].mxu1  ;;  %v13088_v30 = vadd.f32 %v8854_v55, %v8853_v32  ;;  %v10284_v25 = vld [vmem:[%s13787_s6 + $0xa0] ss:$16 sps:$4 sm:$0xff]  }
 0x883   :  { %5317 = vmatprep.subr.bf16.mxu1 %v13852_v8  ;;  %v8857_v31 = vpop.f32.mrb[231].mxu1 }
 0x884   :  { %v13091_v59 = vadd.f32 %v8857_v31, %v8856_v33  ;;  %v10305_v33 = vld [vmem:[%s13787_s6 + $0x8] ss:$16 sps:$4 sm:$0xff]  }
 0x885   :  { %5237 = vmatmul.mubr.bf16.gmra.mrb[80].mxu1 %v10281_v42 }
 0x886   :  { %5318 = vmatpush1.bf16.msra.mxu1 %v12898_v49  ;;  %5244 = vmatprep.mubr.bf16.mxu1 %v10286_v34 }
 0x887   :  { %5319 = vmatprep.subr.bf16.mxu1 %v13852_v8 }
 0x888   :  { %v8859_v63 = vpop.f32.mrb[232].mxu1 }
 0x889   :  { %v8860_v51 = vpop.f32.mrb[233].mxu1 }
 0x88a   :  { %5320 = vmatpush1.bf16.msra.mxu1 %v12910_v35  ;;  %v8862_v58 = vpop.f32.mrb[234].mxu1  ;;  %v13102_v36 = vadd.f32 %v8860_v51, %v8859_v63  ;;  %v10287_v35 = vld [vmem:[%s13787_s6 + $0xc0] ss:$16 sps:$4 sm:$0xff]   ;;  %v10310_v63 = vld [vmem:[%s13787_s6 + $0x2c] ss:$16 sps:$4 sm:$0xff]  }
 0x88b   :  { %5321 = vmatprep.subr.bf16.mxu1 %v13852_v8  ;;  %v8863_v49 = vpop.f32.mrb[235].mxu1 }
 0x88c   :  { %v13105_v60 = vadd.f32 %v8863_v49, %v8862_v58 }
 0x88d   :  { %5245 = vmatmul.mubr.bf16.gmra.mrb[84].mxu1 %v10284_v25 }
 0x88e   :  { %5322 = vmatpush1.bf16.msra.mxu1 %v12922_v62  ;;  %5252 = vmatprep.mubr.bf16.mxu1 %v10289_v28 }
 0x88f   :  { %5323 = vmatprep.subr.bf16.mxu1 %v13852_v8 }
 0x890   :  { %v8865_v26 = vpop.f32.mrb[236].mxu1 }
 0x891   :  { %v8866_v24 = vpop.f32.mrb[237].mxu1 }
 0x892   :  { %5324 = vmatpush1.bf16.msra.mxu1 %v12936_v61  ;;  %v8868_v7 = vpop.f32.mrb[238].mxu1  ;;  %v13116_v5 = vadd.f32 %v8866_v24, %v8865_v26  ;;  %v10295_v61 = vld [vmem:[%s13787_s6 + $0x104] ss:$16 sps:$4 sm:$0xff]   ;;  %v10308_v26 = vld [vmem:[%s13787_s6 + $0x28] ss:$16 sps:$4 sm:$0xff]  }
 0x893   :  { %v8869_v21 = vpop.f32.mrb[239].mxu1  ;;  %v10313_v24 = vld [vmem:[%s13787_s6 + $0x4c] ss:$16 sps:$4 sm:$0xff]  }
 0x894   :  { %v13118_v62 = vadd.f32 %v8869_v21, %v8868_v7 }
 0x895   :  { %5253 = vmatmul.mubr.bf16.gmra.mrb[88].mxu1 %v10287_v35 }
 0x896   :  { %5260 = vmatprep.mubr.bf16.mxu1 %v10292_v47 }
 0x898   :  { %v8871_v50 = vpop.f32.mrb[240].mxu1 }
 0x899   :  { %v8872_v3 = vpop.f32.mrb[241].mxu1 }
 0x89a   :  { %v8874_v54 = vpop.f32.mrb[242].mxu1  ;;  %v13126_v56 = vadd.f32 %v8872_v3, %v8871_v50  ;;  %v10311_v3 = vld [vmem:[%s13787_s6 + $0x48] ss:$16 sps:$4 sm:$0xff]  }
 0x89b   :  { %v8875_v20 = vpop.f32.mrb[243].mxu1 }
 0x89c   :  { %v13128_v44 = vadd.f32 %v8875_v20, %v8874_v54  ;;  %v10316_v54 = vld [vmem:[%s13787_s6 + $0x6c] ss:$16 sps:$4 sm:$0xff]  }
 0x89d   :  { %5261 = vmatmul.mubr.bf16.gmra.mrb[92].mxu1 %v10290_v52 }
 0x89e   :  { %5268 = vmatprep.mubr.bf16.mxu1 %v10295_v61 }
 0x8a0   :  { %v8877_v12 = vpop.f32.mrb[244].mxu1 }
 0x8a1   :  { %v8878_v14 = vpop.f32.mrb[245].mxu1 }
 0x8a2   :  { %v13136_v0 = vadd.f32 %v8878_v14, %v8877_v12  ;;  %v8880_v39 = vpop.f32.mrb[246].mxu1 }
 0x8a3   :  { %v8881_v48 = vpop.f32.mrb[247].mxu1 }
 0x8a4   :  { %v13138_v4 = vadd.f32 %v8881_v48, %v8880_v39  ;;  %v10314_v39 = vld [vmem:[%s13787_s6 + $0x68] ss:$16 sps:$4 sm:$0xff]  }
 0x8a5   :  { %5269 = vmatmul.mubr.bf16.gmra.mrb[96].mxu1 %v10293_v46 }
 0x8a6   :  { %5276 = vmatprep.mubr.bf16.mxu1 %v10298_v9 }
 0x8a8   :  { %v8883_v23 = vpop.f32.mrb[248].mxu1 }
 0x8a9   :  { %v8884_v19 = vpop.f32.mrb[249].mxu1 }
 0x8aa   :  { %v13146_v57 = vadd.f32 %v8884_v19, %v8883_v23  ;;  %v8886_v41 = vpop.f32.mrb[250].mxu1 }
 0x8ab   :  { %v8887_v11 = vpop.f32.mrb[251].mxu1 }
 0x8ac   :  { %v13148_v53 = vadd.f32 %v8887_v11, %v8886_v41 }
 0x8ad   :  { %5277 = vmatmul.mubr.bf16.gmra.mrb[100].mxu1 %v10296_v43  ;;  %v10319_v43 = vld [vmem:[%s13787_s6 + $0x8c] ss:$16 sps:$4 sm:$0xff]  }
 0x8ae   :  { %5284 = vmatprep.mubr.bf16.mxu1 %v10301_v37 }
 0x8b0   :  { %v8889_v22 = vpop.f32.mrb[252].mxu1 }
 0x8b1   :  { %v8890_v13 = vpop.f32.mrb[253].mxu1 }
 0x8b2   :  { %v13156_v17 = vadd.f32 %v8890_v13, %v8889_v22  ;;  %v8892_v16 = vpop.f32.mrb[254].mxu1  ;;  %v10317_v22 = vld [vmem:[%s13787_s6 + $0x88] ss:$16 sps:$4 sm:$0xff]   ;;  %v10322_v13 = vld [vmem:[%s13787_s6 + $0xac] ss:$16 sps:$4 sm:$0xff]  }
 0x8b3   :  { %v8893_v18 = vpop.f32.mrb[255].mxu1 }
 0x8b4   :  { %v13158_v27 = vadd.f32 %v8893_v18, %v8892_v16 }
 0x8b5   :  { %5285 = vmatmul.mubr.bf16.gmra.mrb[104].mxu1 %v10299_v45 }
 0x8b6   :  { %5292 = vmatprep.mubr.bf16.mxu1 %v10304_v6 }
 0x8b8   :  { %v8895_v10 = vpop.f32.mrb[0].mxu1 }
 0x8b9   :  { %v8896_v2 = vpop.f32.mrb[1].mxu1 }
 0x8ba   :  { %v13166_v1 = vadd.f32 %v8896_v2, %v8895_v10  ;;  %v8898_v32 = vpop.f32.mrb[2].mxu1  ;;  %v10320_v10 = vld [vmem:[%s13787_s6 + $0xa8] ss:$16 sps:$4 sm:$0xff]   ;;  %v10325_v2 = vld [vmem:[%s13787_s6 + $0xcc] ss:$16 sps:$4 sm:$0xff]  }
 0x8bb   :  { %v8899_v42 = vpop.f32.mrb[3].mxu1 }
 0x8bc   :  { %v13168_v55 = vadd.f32 %v8899_v42, %v8898_v32 }
 0x8bd   :  { %5293 = vmatmul.mubr.bf16.gmra.mrb[108].mxu1 %v10302_v38 }
 0x8be   :  { %8644 = vmatprep.mubr.msk.bf16.mxu1 %vm4562_vm3, %v10307_v29 }
 0x8c0   :  { %v8901_v34 = vpop.f32.mrb[4].mxu1 }
 0x8c1   :  { %v8902_v31 = vpop.f32.mrb[5].mxu1 }
 0x8c2   :  { %v13177_v25 = vadd.f32 %v8902_v31, %v8901_v34  ;;  %v8904_v51 = vpop.f32.mrb[6].mxu1  ;;  %v10323_v34 = vld [vmem:[%s13787_s6 + $0xc8] ss:$16 sps:$4 sm:$0xff]   ;;  %v10328_v31 = vld [vmem:[%s13787_s6 + $0xec] ss:$16 sps:$4 sm:$0xff]  }
 0x8c3   :  { %v8905_v28 = vpop.f32.mrb[7].mxu1 }
 0x8c4   :  { %v13179_v58 = vadd.f32 %v8905_v28, %v8904_v51 }
 0x8c5   :  { %5334 = vmatmul.mubr.bf16.vlgmr.msra.gmra.mrb[112].mxu1 %v10305_v33 }
 0x8c6   :  { %8645 = vmatprep.mubr.msk.bf16.mxu1 %vm4562_vm3, %v10310_v63 }
 0x8c8   :  { %v8907_v49 = vpop.f32.mrb[8].mxu1 }
 0x8c9   :  { %v8908_v35 = vpop.f32.mrb[9].mxu1 }
 0x8ca   :  { %v13188_v47 = vadd.f32 %v8908_v35, %v8907_v49  ;;  %v8910_v7 = vpop.f32.mrb[10].mxu1  ;;  %v10326_v49 = vld [vmem:[%s13787_s6 + $0xe8] ss:$16 sps:$4 sm:$0xff]   ;;  %v10331_v35 = vld [vmem:[%s13787_s6 + $0x10c] ss:$16 sps:$4 sm:$0xff]  }
 0x8cb   :  { %v8911_v21 = vpop.f32.mrb[11].mxu1 }
 0x8cc   :  { %v13190_v50 = vadd.f32 %v8911_v21, %v8910_v7 }
 0x8cd   :  { %5342 = vmatmul.mubr.bf16.gmra.mrb[116].mxu1 %v10308_v26 }
 0x8ce   :  { %8646 = vmatprep.mubr.msk.bf16.mxu1 %vm4562_vm3, %v10313_v24 }
 0x8d0   :  { %v8913_v52 = vpop.f32.mrb[12].mxu1 }
 0x8d1   :  { %v8914_v61 = vpop.f32.mrb[13].mxu1 }
 0x8d2   :  { %v13199_v20 = vadd.f32 %v8914_v61, %v8913_v52  ;;  %v8916_v12 = vpop.f32.mrb[14].mxu1  ;;  %v10329_v52 = vld [vmem:[%s13787_s6 + $0x108] ss:$16 sps:$4 sm:$0xff]   ;;  %v10334_v61 = vld [vmem:[%s13787_s6 + $0x12c] ss:$16 sps:$4 sm:$0xff]  }
 0x8d3   :  { %v8917_v46 = vpop.f32.mrb[15].mxu1 }
 0x8d4   :  { %v13201_v14 = vadd.f32 %v8917_v46, %v8916_v12 }
 0x8d5   :  { %5350 = vmatmul.mubr.bf16.gmra.mrb[120].mxu1 %v10311_v3 }
 0x8d6   :  { %8647 = vmatprep.mubr.msk.bf16.mxu1 %vm4562_vm3, %v10316_v54 }
 0x8d8   :  { %v4765_v9 = vpop.f32.mrb[16].mxu1 }
 0x8d9   :  { %v13208_v48 = vadd.f32 %v13074_v15, %v4765_v9  ;;  %v4767_v23 = vpop.f32.mrb[17].mxu1  ;;  %v10332_v9 = vld [vmem:[%s13787_s6 + $0x128] ss:$16 sps:$4 sm:$0xff]  }
 0x8da   :  { %v4768_v19 = vpop.f32.mrb[18].mxu1  ;;  %v10337_v23 = vld [vmem:[%s13787_s6 + $0x14c] ss:$16 sps:$4 sm:$0xff]  }
 0x8db   :  { %v13214_v37 = vadd.f32 %v13077_v40, %v4768_v19  ;;  %v4770_v41 = vpop.f32.mrb[19].mxu1 }
 0x8dd   :  { %5358 = vmatmul.mubr.bf16.gmra.mrb[124].mxu1 %v10314_v39 }
 0x8de   :  { %8648 = vmatprep.mubr.msk.bf16.mxu1 %vm4562_vm3, %v10319_v43 }
 0x8e0   :  { %v4773_v11 = vpop.f32.mrb[20].mxu1 }
 0x8e1   :  { %v13221_v15 = vadd.f32 %v13088_v30, %v4773_v11  ;;  %v4775_v45 = vpop.f32.mrb[21].mxu1  ;;  %v10335_v11 = vld [vmem:[%s13787_s6 + $0x148] ss:$16 sps:$4 sm:$0xff]  }
 0x8e2   :  { %v4776_v6 = vpop.f32.mrb[22].mxu1  ;;  %v10340_v45 = vld [vmem:[%s13787_s6 + $0x16c] ss:$16 sps:$4 sm:$0xff]  }
 0x8e3   :  { %v13227_v40 = vadd.f32 %v13091_v59, %v4776_v6  ;;  %v4778_v16 = vpop.f32.mrb[23].mxu1 }
 0x8e5   :  { %5366 = vmatmul.mubr.bf16.gmra.mrb[128].mxu1 %v10317_v22 }
 0x8e6   :  { %8649 = vmatprep.mubr.msk.bf16.mxu1 %vm4562_vm3, %v10322_v13 }
 0x8e8   :  { %v4781_v18 = vpop.f32.mrb[24].mxu1 }
 0x8e9   :  { %v13234_v30 = vadd.f32 %v13102_v36, %v4781_v18  ;;  %v4783_v38 = vpop.f32.mrb[25].mxu1  ;;  %v10338_v18 = vld [vmem:[%s13787_s6 + $0x168] ss:$16 sps:$4 sm:$0xff]  }
 0x8ea   :  { %v4784_v29 = vpop.f32.mrb[26].mxu1 }
 0x8eb   :  { %v13240_v59 = vadd.f32 %v13105_v60, %v4784_v29  ;;  %v4786_v32 = vpop.f32.mrb[27].mxu1 }
 0x8ed   :  { %5374 = vmatmul.mubr.bf16.gmra.mrb[132].mxu1 %v10320_v10 }
 0x8ee   :  { %8650 = vmatprep.mubr.msk.bf16.mxu1 %vm4562_vm3, %v10325_v2 }
 0x8f0   :  { %v4789_v42 = vpop.f32.mrb[28].mxu1 }
 0x8f1   :  { %v13247_v36 = vadd.f32 %v13116_v5, %v4789_v42  ;;  %v4791_v33 = vpop.f32.mrb[29].mxu1 }
 0x8f2   :  { %v4792_v63 = vpop.f32.mrb[30].mxu1 }
 0x8f3   :  { %v13253_v60 = vadd.f32 %v13118_v62, %v4792_v63  ;;  %v4794_v51 = vpop.f32.mrb[31].mxu1 }
 0x8f5   :  { %5382 = vmatmul.mubr.bf16.gmra.mrb[136].mxu1 %v10323_v34 }
 0x8f6   :  { %8651 = vmatprep.mubr.msk.bf16.mxu1 %vm4562_vm3, %v10328_v31  ;;  %v10342_v31 = vld [vmem:[#allocation10 + $0x38] sm:$0xff]  }
 0x8f8   :  { %v4797_v28 = vpop.f32.mrb[32].mxu1 }
 0x8f9   :  { %v13260_v5 = vadd.f32 %v13126_v56, %v4797_v28  ;;  %v4799_v26 = vpop.f32.mrb[33].mxu1 }
 0x8fa   :  { %v4800_v24 = vpop.f32.mrb[34].mxu1  ;;  %v10344_v26 = vld [vmem:[#allocation10 + $0x48] sm:$0xff]  }
 0x8fb   :  { %v13266_v62 = vadd.f32 %v13128_v44, %v4800_v24  ;;  %v4802_v7 = vpop.f32.mrb[35].mxu1 }
 0x8fd   :  { %5390 = vmatmul.mubr.bf16.gmra.mrb[140].mxu1 %v10326_v49 }
 0x8fe   :  { %8652 = vmatprep.mubr.msk.bf16.mxu1 %vm4562_vm3, %v10331_v35 }
 0x900   :  { %v4805_v21 = vpop.f32.mrb[36].mxu1 }
 0x901   :  { %v13273_v56 = vadd.f32 %v13136_v0, %v4805_v21  ;;  %v4807_v3 = vpop.f32.mrb[37].mxu1 }
 0x902   :  { %v4808_v54 = vpop.f32.mrb[38].mxu1  ;;  %v10346_v3 = vld [vmem:[#allocation10 + $0x58] sm:$0xff]  }
 0x903   :  { %v13279_v44 = vadd.f32 %v13138_v4, %v4808_v54  ;;  %v4810_v12 = vpop.f32.mrb[39].mxu1 }
 0x905   :  { %5398 = vmatmul.mubr.bf16.gmra.mrb[144].mxu1 %v10329_v52 }
 0x906   :  { %8653 = vmatprep.mubr.msk.bf16.mxu1 %vm4562_vm3, %v10334_v61 }
 0x908   :  { %v4813_v46 = vpop.f32.mrb[40].mxu1 }
 0x909   :  { %v13286_v0 = vadd.f32 %v13146_v57, %v4813_v46  ;;  %v4815_v39 = vpop.f32.mrb[41].mxu1 }
 0x90a   :  { %v4816_v43 = vpop.f32.mrb[42].mxu1 }
 0x90b   :  { %v13292_v4 = vadd.f32 %v13148_v53, %v4816_v43  ;;  %v4818_v19 = vpop.f32.mrb[43].mxu1 }
 0x90d   :  { %5406 = vmatmul.mubr.bf16.gmra.mrb[148].mxu1 %v10332_v9 }
 0x90e   :  { %8654 = vmatprep.mubr.msk.bf16.mxu1 %vm4562_vm3, %v10337_v23 }
 0x910   :  { %v4821_v41 = vpop.f32.mrb[44].mxu1 }
 0x911   :  { %v13299_v57 = vadd.f32 %v13156_v17, %v4821_v41  ;;  %v4823_v22 = vpop.f32.mrb[45].mxu1 }
 0x912   :  { %v4824_v13 = vpop.f32.mrb[46].mxu1 }
 0x913   :  { %v13305_v53 = vadd.f32 %v13158_v27, %v4824_v13  ;;  %v4826_v6 = vpop.f32.mrb[47].mxu1  ;;  %v10341_v27 = vld [vmem:[#allocation10 + $0x30] sm:$0xff]  }
 0x914   :  { %9191 = vmatprep.subr.bf16.mxu1 %v10341_v27 }
 0x915   :  { %5414 = vmatmul.mubr.bf16.gmra.mrb[152].mxu1 %v10335_v11 }
 0x916   :  { %8655 = vmatprep.mubr.msk.bf16.mxu1 %vm4562_vm3, %v10340_v45  ;;  %9192 = vmatpush3.bf16.msra.mxu1 %v10341_v27 }
 0x917   :  { %9193 = vmatprep.subr.bf16.mxu1 %v10342_v31 }
 0x918   :  { %v4829_v16 = vpop.f32.mrb[48].mxu1 }
 0x919   :  { %v13312_v17 = vadd.f32 %v13166_v1, %v4829_v16  ;;  %v4831_v10 = vpop.f32.mrb[49].mxu1 }
 0x91a   :  { %v4832_v38 = vpop.f32.mrb[50].mxu1  ;;  %9194 = vmatpush3.bf16.msra.mxu1 %v10342_v31 }
 0x91b   :  { %v13315_v2 = vadd.f32 %v13168_v55, %v4832_v38  ;;  %v4834_v29 = vpop.f32.mrb[51].mxu1  ;;  %v10343_v55 = vld [vmem:[#allocation10 + $0x40] sm:$0xff]  }
 0x91c   :  { %9195 = vmatprep.subr.bf16.mxu1 %v10343_v55 }
 0x91d   :  { %5422 = vmatmul.mubr.bf16.gmra.mrb[156].mxu1 %v10338_v18 }
 0x91e   :  { %9196 = vmatpush3.bf16.msra.mxu1 %v10343_v55 }
 0x91f   :  { %9197 = vmatprep.subr.bf16.mxu1 %v10344_v26 }
 0x920   :  { %v4837_v32 = vpop.f32.mrb[52].mxu1 }
 0x921   :  { %v13318_v42 = vadd.f32 %v13177_v25, %v4837_v32  ;;  %v4839_v34 = vpop.f32.mrb[53].mxu1 }
 0x922   :  { %v4840_v33 = vpop.f32.mrb[54].mxu1  ;;  %9198 = vmatpush3.bf16.msra.mxu1 %v10344_v26 }
 0x923   :  { %v13321_v1 = vadd.f32 %v13179_v58, %v4840_v33  ;;  %v4842_v63 = vpop.f32.mrb[55].mxu1  ;;  %v10345_v58 = vld [vmem:[#allocation10 + $0x50] sm:$0xff]  }
 0x924   :  { %9199 = vmatprep.subr.bf16.mxu1 %v10345_v58 }
 0x926   :  { %9200 = vmatpush3.bf16.msra.mxu1 %v10345_v58 }
 0x927   :  { %9201 = vmatprep.subr.bf16.mxu1 %v10346_v3 }
 0x928   :  { %v4845_v51 = vpop.f32.mrb[56].mxu1 }
 0x929   :  { %v13324_v28 = vadd.f32 %v13188_v47, %v4845_v51  ;;  %v4847_v49 = vpop.f32.mrb[57].mxu1 }
 0x92a   :  { %v4848_v25 = vpop.f32.mrb[58].mxu1  ;;  %9202 = vmatpush3.bf16.msra.mxu1 %v10346_v3 }
 0x92b   :  { %v13327_v35 = vadd.f32 %v13190_v50, %v4848_v25  ;;  %v4850_v24 = vpop.f32.mrb[59].mxu1 }
 0x930   :  { %v4853_v7 = vpop.f32.mrb[60].mxu1 }
 0x931   :  { %v13330_v21 = vadd.f32 %v13199_v20, %v4853_v7  ;;  %v4855_v52 = vpop.f32.mrb[61].mxu1 }
 0x932   :  { %v4856_v47 = vpop.f32.mrb[62].mxu1 }
 0x933   :  { %v13333_v61 = vadd.f32 %v13201_v14, %v4856_v47  ;;  %v4858_v54 = vpop.f32.mrb[63].mxu1 }
 0x938   :  { %v8935_v50 = vpop.f32.mrb[64].mxu1 }
 0x939   :  { %v8936_v12 = vpop.f32.mrb[65].mxu1 }
 0x93a   :  { %v13335_v46 = vadd.f32 %v8936_v12, %v8935_v50  ;;  %v8938_v9 = vpop.f32.mrb[66].mxu1 }
 0x93b   :  { %v8939_v39 = vpop.f32.mrb[67].mxu1 }
 0x93c   :  { %v13337_v23 = vadd.f32 %v8939_v39, %v8938_v9 }
 0x940   :  { %v8941_v20 = vpop.f32.mrb[68].mxu1 }
 0x941   :  { %v8942_v43 = vpop.f32.mrb[69].mxu1 }
 0x942   :  { %v13339_v19 = vadd.f32 %v8942_v43, %v8941_v20  ;;  %v8944_v41 = vpop.f32.mrb[70].mxu1  ;;  %v13363_v20 = vld [vmem:[#allocation10] sm:$0xff]  }
 0x943   :  { %v8945_v11 = vpop.f32.mrb[71].mxu1  ;;  %9227 = vmatprep.subr.bf16.mxu1 %v13363_v20 }
 0x944   :  { %v13341_v22 = vadd.f32 %v8945_v11, %v8944_v41 }
 0x948   :  { %v8947_v14 = vpop.f32.mrb[72].mxu1 }
 0x949   :  { %v8948_v45 = vpop.f32.mrb[73].mxu1 }
 0x94a   :  { %v13343_v13 = vadd.f32 %v8948_v45, %v8947_v14  ;;  %v8950_v6 = vpop.f32.mrb[74].mxu1 }
 0x94b   :  { %v8951_v16 = vpop.f32.mrb[75].mxu1 }
 0x94c   :  { %v13345_v18 = vadd.f32 %v8951_v16, %v8950_v6 }
 0x950   :  { %v8953_v10 = vpop.f32.mrb[76].mxu1 }
 0x951   :  { %v8954_v38 = vpop.f32.mrb[77].mxu1 }
 0x952   :  { %v13347_v29 = vadd.f32 %v8954_v38, %v8953_v10  ;;  %v8956_v27 = vpop.f32.mrb[78].mxu1 }
 0x953   :  { %v8957_v32 = vpop.f32.mrb[79].mxu1 }
 0x954   :  { %v13349_v34 = vadd.f32 %v8957_v32, %v8956_v27 }
 0x958   :  { %v8959_v33 = vpop.f32.mrb[80].mxu1 }
 0x959   :  { %v8960_v31 = vpop.f32.mrb[81].mxu1 }
 0x95a   :  { %v13351_v63 = vadd.f32 %v8960_v31, %v8959_v33  ;;  %v8962_v55 = vpop.f32.mrb[82].mxu1 }
 0x95b   :  { %v8963_v51 = vpop.f32.mrb[83].mxu1 }
 0x95c   :  { %v13353_v49 = vadd.f32 %v8963_v51, %v8962_v55 }
 0x960   :  { %v8965_v25 = vpop.f32.mrb[84].mxu1 }
 0x961   :  { %v8966_v26 = vpop.f32.mrb[85].mxu1 }
 0x962   :  { %v13355_v24 = vadd.f32 %v8966_v26, %v8965_v25  ;;  %v8968_v58 = vpop.f32.mrb[86].mxu1 }
 0x963   :  { %v8969_v7 = vpop.f32.mrb[87].mxu1 }
 0x964   :  { %v13357_v52 = vadd.f32 %v8969_v7, %v8968_v58 }
 0x968   :  { %v8971_v47 = vpop.f32.mrb[88].mxu1 }
 0x969   :  { %v8972_v3 = vpop.f32.mrb[89].mxu1 }
 0x96a   :  { %v13359_v54 = vadd.f32 %v8972_v3, %v8971_v47  ;;  %v8974_v50 = vpop.f32.mrb[90].mxu1 }
 0x96b   :  { %v8975_v12 = vpop.f32.mrb[91].mxu1 }
 0x96c   :  { %v13361_v9 = vadd.f32 %v8975_v12, %v8974_v50 }
 0x970   :  { %v8977_v39 = vpop.f32.mrb[92].mxu1 }
 0x971   :  { %v8978_v43 = vpop.f32.mrb[93].mxu1 }
 0x972   :  { %v13365_v41 = vadd.f32 %v8978_v43, %v8977_v39  ;;  %v8980_v11 = vpop.f32.mrb[94].mxu1 }
 0x973   :  { %v8981_v14 = vpop.f32.mrb[95].mxu1 }
 0x974   :  { %v13368_v45 = vadd.f32 %v8981_v14, %v8980_v11 }
 0x978   :  { %v8983_v6 = vpop.f32.mrb[96].mxu1 }
 0x979   :  { %v8984_v16 = vpop.f32.mrb[97].mxu1 }
 0x97a   :  { %v13370_v10 = vadd.f32 %v8984_v16, %v8983_v6  ;;  %v8986_v38 = vpop.f32.mrb[98].mxu1 }
 0x97b   :  { %v8987_v27 = vpop.f32.mrb[99].mxu1 }
 0x97c   :  { %v13372_v32 = vadd.f32 %v8987_v27, %v8986_v38 }
 0x980   :  { %v8989_v33 = vpop.f32.mrb[100].mxu1 }
 0x981   :  { %v8990_v31 = vpop.f32.mrb[101].mxu1 }
 0x982   :  { %v13374_v55 = vadd.f32 %v8990_v31, %v8989_v33  ;;  %v8992_v51 = vpop.f32.mrb[102].mxu1 }
 0x983   :  { %v8993_v25 = vpop.f32.mrb[103].mxu1 }
 0x984   :  { %v13376_v26 = vadd.f32 %v8993_v25, %v8992_v51 }
 0x988   :  { %v8995_v58 = vpop.f32.mrb[104].mxu1 }
 0x989   :  { %v8996_v7 = vpop.f32.mrb[105].mxu1 }
 0x98a   :  { %v13378_v47 = vadd.f32 %v8996_v7, %v8995_v58  ;;  %v8998_v3 = vpop.f32.mrb[106].mxu1 }
 0x98b   :  { %v8999_v50 = vpop.f32.mrb[107].mxu1 }
 0x98c   :  { %v13380_v12 = vadd.f32 %v8999_v50, %v8998_v3 }
 0x990   :  { %v9001_v39 = vpop.f32.mrb[108].mxu1 }
 0x991   :  { %v9002_v43 = vpop.f32.mrb[109].mxu1 }
 0x992   :  { %v13382_v11 = vadd.f32 %v9002_v43, %v9001_v39  ;;  %v9004_v14 = vpop.f32.mrb[110].mxu1 }
 0x993   :  { %v9005_v6 = vpop.f32.mrb[111].mxu1 }
 0x994   :  { %v13384_v16 = vadd.f32 %v9005_v6, %v9004_v14 }
 0x998   :  { %v5335_v38 = vpop.f32.mrb[112].mxu1 }
 0x999   :  { %v5336_v27 = vadd.f32 %v13335_v46, %v5335_v38  ;;  %v5337_v33 = vpop.f32.mrb[113].mxu1 }
 0x99a   :  { %v5338_v31 = vpop.f32.mrb[114].mxu1 }
 0x99b   :  { %v5430_v51 = vmax.f32 %v13208_v48, %v5336_v27  ;;  %v5339_v25 = vadd.f32 %v13337_v23, %v5338_v31  ;;  %v5340_v58 = vpop.f32.mrb[115].mxu1 }
 0x99d   :  { %5455 = vst.msk [vmem:[#allocation2] sm:$0xff] %vm5454_vm4, %v5430_v51  ;;  %v5431_v7 = vmax.f32 %v13214_v37, %v5339_v25 }
 0x99f   :  { %5456 = vst.msk [vmem:[#allocation2 + $0x8] sm:$0xff] %vm5454_vm4, %v5431_v7 }
 0x9a0   :  { %v5343_v3 = vpop.f32.mrb[116].mxu1 }
 0x9a1   :  { %v5344_v50 = vadd.f32 %v13339_v19, %v5343_v3  ;;  %v5345_v39 = vpop.f32.mrb[117].mxu1 }
 0x9a2   :  { %v5346_v43 = vpop.f32.mrb[118].mxu1 }
 0x9a3   :  { %v5432_v46 = vmax.f32 %v13221_v15, %v5344_v50  ;;  %v5347_v14 = vadd.f32 %v13341_v22, %v5346_v43  ;;  %v5348_v6 = vpop.f32.mrb[119].mxu1 }
 0x9a5   :  { %5457 = vst.msk [vmem:[#allocation2 + $0x10] sm:$0xff] %vm5454_vm4, %v5432_v46  ;;  %v5433_v48 = vmax.f32 %v13227_v40, %v5347_v14  ;;  %v10348_v46 = vld [vmem:[#allocation10 + $0x8] sm:$0xff]  }
 0x9a6   :  { %v5527_v15 = vld [vmem:[#allocation2 + $0x1] sm:$0xff] }
 0x9a7   :  { %5458 = vst.msk [vmem:[#allocation2 + $0x18] sm:$0xff] %vm5454_vm4, %v5433_v48 }
 0x9a8   :  { %v5351_v23 = vpop.f32.mrb[120].mxu1 }
 0x9a9   :  { %v5352_v37 = vadd.f32 %v13343_v13, %v5351_v23  ;;  %v5353_v38 = vpop.f32.mrb[121].mxu1 }
 0x9aa   :  { %v5354_v27 = vpop.f32.mrb[122].mxu1 }
 0x9ab   :  { %v5434_v19 = vmax.f32 %v13234_v30, %v5352_v37  ;;  %v5355_v33 = vadd.f32 %v13345_v18, %v5354_v27  ;;  %v5356_v31 = vpop.f32.mrb[123].mxu1 }
 0x9ac   :  { %v5528_v51 = vld [vmem:[#allocation2 + $0x9] sm:$0xff] }
 0x9ad   :  { %5459 = vst.msk [vmem:[#allocation2 + $0x20] sm:$0xff] %vm5454_vm4, %v5434_v19  ;;  %v5435_v22 = vmax.f32 %v13240_v59, %v5355_v33  ;;  %v5551_v25 = vpack.c.bf16 %v5528_v51, %v5527_v15  ;;  %v10351_v33 = vld [vmem:[#allocation10 + $0x20] sm:$0xff]  }
 0x9ae   :  { %v5529_v50 = vld [vmem:[#allocation2 + $0x11] sm:$0xff] }
 0x9af   :  { %5460 = vst.msk [vmem:[#allocation2 + $0x28] sm:$0xff] %vm5454_vm4, %v5435_v22  ;;  %9203 = vmatprep.mubr.msk.bf16.mxu1 %vm5454_vm4, %v5551_v25 }
 0x9b0   :  { %v5359_v40 = vpop.f32.mrb[124].mxu1 }
 0x9b1   :  { %v5360_v13 = vadd.f32 %v13347_v29, %v5359_v40  ;;  %v5361_v58 = vpop.f32.mrb[125].mxu1 }
 0x9b2   :  { %v5362_v7 = vpop.f32.mrb[126].mxu1  ;;  %v10352_v58 = vld [vmem:[#allocation10 + $0x28] sm:$0xff]  }
 0x9b3   :  { %v5436_v30 = vmax.f32 %v13247_v36, %v5360_v13  ;;  %v5363_v18 = vadd.f32 %v13349_v34, %v5362_v7  ;;  %v5364_v3 = vpop.f32.mrb[127].mxu1  ;;  %v10349_v34 = vld [vmem:[#allocation10 + $0x10] sm:$0xff]   ;;  %v13428_v7 = vld [vmem:[#allocation10 + $0x60] sm:$0xff]  }
 0x9b4   :  { %v5530_v39 = vld [vmem:[#allocation2 + $0x19] sm:$0xff] }
 0x9b5   :  { %v5552_v43 = vpack.c.bf16 %v5530_v39, %v5529_v50  ;;  %5461 = vst.msk [vmem:[#allocation2 + $0x30] sm:$0xff] %vm5454_vm4, %v5436_v30  ;;  %v5437_v59 = vmax.f32 %v13253_v60, %v5363_v18 }
 0x9b6   :  { %v5531_v60 = vld [vmem:[#allocation2 + $0x21] sm:$0xff] }
 0x9b7   :  { %5462 = vst.msk [vmem:[#allocation2 + $0x38] sm:$0xff] %vm5454_vm4, %v5437_v59  ;;  %9204 = vmatmul.mubr.msk.bf16.vlgmr.msra.gmra.mrb[160].mxu1 %vm5454_vm4, %v5552_v43 }
 0x9b8   :  { %v5367_v29 = vpop.f32.mrb[128].mxu1  ;;  %9228 = vmatpush3.bf16.msra.mxu1 %v13363_v20  ;;  %v10350_v20 = vld [vmem:[#allocation10 + $0x18] sm:$0xff]  }
 0x9b9   :  { %v5368_v36 = vadd.f32 %v13351_v63, %v5367_v29  ;;  %v5369_v14 = vpop.f32.mrb[129].mxu1  ;;  %9229 = vmatprep.subr.bf16.mxu1 %v10348_v46 }
 0x9ba   :  { %v5370_v6 = vpop.f32.mrb[130].mxu1 }
 0x9bb   :  { %v5438_v48 = vmax.f32 %v13260_v5, %v5368_v36  ;;  %v5371_v23 = vadd.f32 %v13353_v49, %v5370_v6  ;;  %v5372_v37 = vpop.f32.mrb[131].mxu1 }
 0x9bc   :  { %v5532_v38 = vld [vmem:[#allocation2 + $0x29] sm:$0xff]  ;;  %9230 = vmatpush3.bf16.msra.mxu1 %v10348_v46 }
 0x9bd   :  { %5463 = vst.msk [vmem:[#allocation2 + $0x40] sm:$0xff] %vm5454_vm4, %v5438_v48  ;;  %v5439_v27 = vmax.f32 %v13266_v62, %v5371_v23  ;;  %v5553_v19 = vpack.c.bf16 %v5532_v38, %v5531_v60  ;;  %9231 = vmatprep.subr.bf16.mxu1 %v10349_v34 }
 0x9be   :  { %v5533_v22 = vld [vmem:[#allocation2 + $0x31] sm:$0xff] }
 0x9bf   :  { %5464 = vst.msk [vmem:[#allocation2 + $0x48] sm:$0xff] %vm5454_vm4, %v5439_v27  ;;  %9207 = vmatprep.mubr.msk.bf16.mxu1 %vm5454_vm4, %v5553_v19 }
 0x9c0   :  { %v5375_v63 = vpop.f32.mrb[132].mxu1  ;;  %9232 = vmatpush3.bf16.msra.mxu1 %v10349_v34 }
 0x9c1   :  { %v5376_v5 = vadd.f32 %v13355_v24, %v5375_v63  ;;  %v5377_v49 = vpop.f32.mrb[133].mxu1  ;;  %9233 = vmatprep.subr.bf16.mxu1 %v10350_v20 }
 0x9c2   :  { %v5378_v31 = vpop.f32.mrb[134].mxu1 }
 0x9c3   :  { %v5440_v15 = vmax.f32 %v13273_v56, %v5376_v5  ;;  %v5379_v51 = vadd.f32 %v13357_v52, %v5378_v31  ;;  %v5380_v62 = vpop.f32.mrb[135].mxu1 }
 0x9c4   :  { %v5534_v25 = vld [vmem:[#allocation2 + $0x39] sm:$0xff]  ;;  %9234 = vmatpush3.bf16.msra.mxu1 %v10350_v20 }
 0x9c5   :  { %5465 = vst.msk [vmem:[#allocation2 + $0x50] sm:$0xff] %vm5454_vm4, %v5440_v15  ;;  %v5441_v40 = vmax.f32 %v13279_v44, %v5379_v51  ;;  %v5554_v13 = vpack.c.bf16 %v5534_v25, %v5533_v22  ;;  %9235 = vmatprep.subr.bf16.mxu1 %v10351_v33 }
 0x9c6   :  { %v5535_v50 = vld [vmem:[#allocation2 + $0x41] sm:$0xff] }
 0x9c7   :  { %5466 = vst.msk [vmem:[#allocation2 + $0x58] sm:$0xff] %vm5454_vm4, %v5441_v40  ;;  %9208 = vmatmul.mubr.msk.bf16.gmra.mrb[164].mxu1 %vm5454_vm4, %v5554_v13 }
 0x9c8   :  { %v5383_v24 = vpop.f32.mrb[136].mxu1  ;;  %9236 = vmatpush3.bf16.msra.mxu1 %v10351_v33 }
 0x9c9   :  { %v5384_v56 = vadd.f32 %v13359_v54, %v5383_v24  ;;  %v5385_v52 = vpop.f32.mrb[137].mxu1  ;;  %9237 = vmatprep.subr.bf16.mxu1 %v10352_v58 }
 0x9ca   :  { %v5386_v30 = vpop.f32.mrb[138].mxu1 }
 0x9cb   :  { %v5442_v18 = vmax.f32 %v13286_v0, %v5384_v56  ;;  %v5387_v44 = vadd.f32 %v13361_v9, %v5386_v30  ;;  %v5388_v3 = vpop.f32.mrb[139].mxu1 }
 0x9cc   :  { %v5536_v39 = vld [vmem:[#allocation2 + $0x49] sm:$0xff]  ;;  %9238 = vmatpush3.bf16.msra.mxu1 %v10352_v58 }
 0x9cd   :  { %5467 = vst.msk [vmem:[#allocation2 + $0x60] sm:$0xff] %vm5454_vm4, %v5442_v18  ;;  %v5443_v43 = vmax.f32 %v13292_v4, %v5387_v44  ;;  %v5555_v59 = vpack.c.bf16 %v5536_v39, %v5535_v50  ;;  %9263 = vmatprep.subr.bf16.mxu1 %v13428_v7 }
 0x9ce   :  { %v5537_v34 = vld [vmem:[#allocation2 + $0x51] sm:$0xff] }
 0x9cf   :  { %5468 = vst.msk [vmem:[#allocation2 + $0x68] sm:$0xff] %vm5454_vm4, %v5443_v43  ;;  %9211 = vmatprep.mubr.msk.bf16.mxu1 %vm5454_vm4, %v5555_v59  ;;  %v5480_v59 = vld [vmem:[#allocation2 + $0x8] sm:$0xff] }
 0x9d0   :  { %v5391_v54 = vpop.f32.mrb[140].mxu1 }
 0x9d1   :  { %v5392_v0 = vadd.f32 %v13365_v41, %v5391_v54  ;;  %v5393_v46 = vpop.f32.mrb[141].mxu1 }
 0x9d2   :  { %v5394_v9 = vpop.f32.mrb[142].mxu1 }
 0x9d3   :  { %v5444_v29 = vmax.f32 %v13299_v57, %v5392_v0  ;;  %v5395_v36 = vadd.f32 %v13368_v45, %v5394_v9  ;;  %v5396_v14 = vpop.f32.mrb[143].mxu1  ;;  %v5479_v0 = vld [vmem:[#allocation2] sm:$0xff]  ;;  %v5484_v9 = vld [vmem:[#allocation2 + $0x28] sm:$0xff] }
 0x9d4   :  { %v5538_v6 = vld [vmem:[#allocation2 + $0x59] sm:$0xff]  ;;  %v5503_v46 = vpack.c.bf16 %v5480_v59, %v5479_v0 }
 0x9d5   :  { %5469 = vst.msk [vmem:[#allocation2 + $0x70] sm:$0xff] %vm5454_vm4, %v5444_v29  ;;  %v5445_v4 = vmax.f32 %v13305_v53, %v5395_v36  ;;  %v5556_v48 = vpack.c.bf16 %v5538_v6, %v5537_v34  ;;  %v5481_v29 = vld [vmem:[#allocation2 + $0x10] sm:$0xff]  ;;  %v5483_v14 = vld [vmem:[#allocation2 + $0x20] sm:$0xff] }
 0x9d6   :  { %v5539_v27 = vld [vmem:[#allocation2 + $0x61] sm:$0xff]  ;;  %v10354_v34 = vld [vmem:[#allocation10 + $0x68] sm:$0xff]   ;;  %v5505_v6 = vpack.c.bf16 %v5484_v9, %v5483_v14 }
 0x9d7   :  { %5470 = vst.msk [vmem:[#allocation2 + $0x78] sm:$0xff] %vm5454_vm4, %v5445_v4  ;;  %9212 = vmatmul.mubr.msk.bf16.gmra.mrb[168].mxu1 %vm5454_vm4, %v5556_v48  ;;  %v10355_v4 = vld [vmem:[#allocation10 + $0x70] sm:$0xff]   ;;  %v10371_v59 = vld [vmem:[%s13791_s10] sm:$0xff]  }
 0x9d8   :  { %v5399_v23 = vpop.f32.mrb[144].mxu1  ;;  %v5486_v48 = vld [vmem:[#allocation2 + $0x38] sm:$0xff]  ;;  %9411 = vmatprep.subr.bf16.mxu0 %v10371_v59 }
 0x9d9   :  { %v5400_v41 = vadd.f32 %v13370_v10, %v5399_v23  ;;  %v5401_v37 = vpop.f32.mrb[145].mxu1  ;;  %v5488_v23 = vld [vmem:[#allocation2 + $0x48] sm:$0xff]  ;;  %9412 = vmatpush3.bf16.msra.mxu0 %v10371_v59 }
 0x9da   :  { %v5402_v60 = vpop.f32.mrb[146].mxu1 }
 0x9db   :  { %v5446_v57 = vmax.f32 %v13312_v17, %v5400_v41  ;;  %v5403_v45 = vadd.f32 %v13372_v32, %v5402_v60  ;;  %v5404_v38 = vpop.f32.mrb[147].mxu1  ;;  %v5485_v41 = vld [vmem:[#allocation2 + $0x30] sm:$0xff]  ;;  %v5487_v60 = vld [vmem:[#allocation2 + $0x40] sm:$0xff] }
 0x9dc   :  { %v5540_v19 = vld [vmem:[#allocation2 + $0x69] sm:$0xff]  ;;  %v5506_v37 = vpack.c.bf16 %v5486_v48, %v5485_v41 }
 0x9dd   :  { %5471 = vst.msk [vmem:[#allocation2 + $0x80] sm:$0xff] %vm5454_vm4, %v5446_v57  ;;  %v5447_v53 = vmax.f32 %v13315_v2, %v5403_v45  ;;  %v5557_v20 = vpack.c.bf16 %v5540_v19, %v5539_v27  ;;  %v10356_v57 = vld [vmem:[#allocation10 + $0x78] sm:$0xff]   ;;  %v5507_v45 = vpack.c.bf16 %v5488_v23, %v5487_v60  ;;  %v10357_v38 = vld [vmem:[#allocation10 + $0x80] sm:$0xff]   ;;  %v5489_v19 = vld [vmem:[#allocation2 + $0x50] sm:$0xff] }
 0x9de   :  { %v5541_v31 = vld [vmem:[#allocation2 + $0x71] sm:$0xff]  ;;  %v10380_v23 = vld [vmem:[%s13791_s10 + $0x20] sm:$0xff]  }
 0x9df   :  { %5472 = vst.msk [vmem:[#allocation2 + $0x88] sm:$0xff] %vm5454_vm4, %v5447_v53  ;;  %9215 = vmatprep.mubr.msk.bf16.mxu1 %vm5454_vm4, %v5557_v20  ;;  %v5490_v27 = vld [vmem:[#allocation2 + $0x58] sm:$0xff]  ;;  %v5491_v20 = vld [vmem:[#allocation2 + $0x60] sm:$0xff]  ;;  %v5991_v0 = vld [vmem:[#allocation2 + $0x6a] sm:$0xff] }
 0x9e0   :  { %v5407_v63 = vpop.f32.mrb[148].mxu1  ;;  %v5508_v53 = vpack.c.bf16 %v5490_v27, %v5489_v19  ;;  %v5992_v41 = vld [vmem:[#allocation2 + $0x72] sm:$0xff] }
 0x9e1   :  { %v5408_v10 = vadd.f32 %v13374_v55, %v5407_v63  ;;  %v5409_v5 = vpop.f32.mrb[149].mxu1  ;;  %v10358_v63 = vld [vmem:[#allocation10 + $0x88] sm:$0xff]  }
 0x9e2   :  { %v5410_v49 = vpop.f32.mrb[150].mxu1  ;;  %v10359_v5 = vld [vmem:[#allocation10 + $0x90] sm:$0xff]  }
 0x9e3   :  { %v5448_v17 = vmax.f32 %v13318_v42, %v5408_v10  ;;  %v5411_v32 = vadd.f32 %v13376_v26, %v5410_v49  ;;  %v5412_v33 = vpop.f32.mrb[151].mxu1  ;;  %v5494_v49 = vld [vmem:[#allocation2 + $0x78] sm:$0xff] }
 0x9e4   :  { %v5542_v15 = vld [vmem:[#allocation2 + $0x79] sm:$0xff] }
 0x9e5   :  { %5473 = vst.msk [vmem:[#allocation2 + $0x90] sm:$0xff] %vm5454_vm4, %v5448_v17  ;;  %v5449_v2 = vmax.f32 %v13321_v1, %v5411_v32  ;;  %v5558_v51 = vpack.c.bf16 %v5542_v15, %v5541_v31  ;;  %v5493_v32 = vld [vmem:[#allocation2 + $0x70] sm:$0xff]  ;;  %v5495_v31 = vld [vmem:[#allocation2 + $0x80] sm:$0xff] }
 0x9e6   :  { %v5543_v13 = vld [vmem:[#allocation2 + $0x81] sm:$0xff]  ;;  %v5510_v33 = vpack.c.bf16 %v5494_v49, %v5493_v32 }
 0x9e7   :  { %5474 = vst.msk [vmem:[#allocation2 + $0x98] sm:$0xff] %vm5454_vm4, %v5449_v2  ;;  %9216 = vmatmul.mubr.msk.bf16.gmra.mrb[172].mxu1 %vm5454_vm4, %v5558_v51  ;;  %v5496_v17 = vld [vmem:[#allocation2 + $0x88] sm:$0xff] }
 0x9e8   :  { %v5415_v62 = vpop.f32.mrb[152].mxu1  ;;  %v5511_v15 = vpack.c.bf16 %v5496_v17, %v5495_v31  ;;  %v5994_v60 = vld [vmem:[#allocation2 + $0x82] sm:$0xff]  ;;  %v6257_v31 = vld [vmem:[#allocation2 + $0x2b] sm:$0xff] }
 0x9e9   :  { %v5416_v55 = vadd.f32 %v13378_v47, %v5415_v62  ;;  %v5417_v22 = vpop.f32.mrb[153].mxu1  ;;  %v6252_v17 = vld [vmem:[#allocation2 + $0x3] sm:$0xff] }
 0x9ea   :  { %v5418_v25 = vpop.f32.mrb[154].mxu1 }
 0x9eb   :  { %v5450_v42 = vmax.f32 %v13324_v28, %v5416_v55  ;;  %v5419_v26 = vadd.f32 %v13380_v12, %v5418_v25  ;;  %v5420_v40 = vpop.f32.mrb[155].mxu1 }
 0x9ec   :  { %v5544_v58 = vld [vmem:[#allocation2 + $0x89] sm:$0xff] }
 0x9ed   :  { %5475 = vst.msk [vmem:[#allocation2 + $0xa0] sm:$0xff] %vm5454_vm4, %v5450_v42  ;;  %v5451_v1 = vmax.f32 %v13327_v35, %v5419_v26  ;;  %v5559_v24 = vpack.c.bf16 %v5544_v58, %v5543_v13  ;;  %v5497_v62 = vld [vmem:[#allocation2 + $0x90] sm:$0xff]  ;;  %v5978_v58 = vld [vmem:[#allocation2 + $0x2] sm:$0xff] }
 0x9ee   :  { %v5545_v44 = vld [vmem:[#allocation2 + $0x91] sm:$0xff] }
 0x9ef   :  { %5476 = vst.msk [vmem:[#allocation2 + $0xa8] sm:$0xff] %vm5454_vm4, %v5451_v1  ;;  %9219 = vmatprep.mubr.msk.bf16.mxu1 %vm5454_vm4, %v5559_v24  ;;  %v5498_v2 = vld [vmem:[#allocation2 + $0x98] sm:$0xff]  ;;  %v5979_v26 = vld [vmem:[#allocation2 + $0xa] sm:$0xff] }
 0x9f0   :  { %v5423_v56 = vpop.f32.mrb[156].mxu1  ;;  %v5512_v55 = vpack.c.bf16 %v5498_v2, %v5497_v62  ;;  %v6002_v1 = vpack.c.bf16 %v5979_v26, %v5978_v58  ;;  %v5981_v24 = vld [vmem:[#allocation2 + $0x1a] sm:$0xff]  ;;  %v5995_v48 = vld [vmem:[#allocation2 + $0x8a] sm:$0xff] }
 0x9f1   :  { %v5424_v47 = vadd.f32 %v13382_v11, %v5423_v56  ;;  %v5425_v52 = vpop.f32.mrb[157].mxu1  ;;  %v5983_v56 = vld [vmem:[#allocation2 + $0x2a] sm:$0xff]  ;;  %v6258_v26 = vld [vmem:[#allocation2 + $0x33] sm:$0xff] }
 0x9f2   :  { %v5426_v30 = vpop.f32.mrb[158].mxu1  ;;  %v10366_v62 = vld [vmem:[#allocation10 + $0xc8] sm:$0xff]   ;;  %v10368_v58 = vld [vmem:[#allocation10 + $0xd8] sm:$0xff]  }
 0x9f3   :  { %v5452_v28 = vmax.f32 %v13330_v21, %v5424_v47  ;;  %v5427_v12 = vadd.f32 %v13384_v16, %v5426_v30  ;;  %v5428_v18 = vpop.f32.mrb[159].mxu1  ;;  %v5980_v47 = vld [vmem:[#allocation2 + $0x12] sm:$0xff]  ;;  %v5982_v30 = vld [vmem:[#allocation2 + $0x22] sm:$0xff] }
 0x9f4   :  { %v5546_v3 = vld [vmem:[#allocation2 + $0x99] sm:$0xff]  ;;  %v6003_v52 = vpack.c.bf16 %v5981_v24, %v5980_v47  ;;  %v10361_v18 = vld [vmem:[#allocation10 + $0xa0] sm:$0xff]   ;;  %v6265_v47 = vld [vmem:[#allocation2 + $0x6b] sm:$0xff] }
 0x9f5   :  { %5477 = vst.msk [vmem:[#allocation2 + $0xb0] sm:$0xff] %vm5454_vm4, %v5452_v28  ;;  %v5453_v35 = vmax.f32 %v13333_v61, %v5427_v12  ;;  %v5560_v50 = vpack.c.bf16 %v5546_v3, %v5545_v44  ;;  %v5482_v61 = vld [vmem:[#allocation2 + $0x18] sm:$0xff]  ;;  %v5499_v22 = vld [vmem:[#allocation2 + $0xa0] sm:$0xff]  ;;  %v6004_v12 = vpack.c.bf16 %v5983_v56, %v5982_v30  ;;  %v5987_v3 = vld [vmem:[#allocation2 + $0x4a] sm:$0xff] }
 0x9f6   :  { %v5547_v39 = vld [vmem:[#allocation2 + $0xa1] sm:$0xff]  ;;  %v5504_v36 = vpack.c.bf16 %v5482_v61, %v5481_v29  ;;  %v5988_v61 = vld [vmem:[#allocation2 + $0x52] sm:$0xff] }
 0x9f7   :  { %5478 = vst.msk [vmem:[#allocation2 + $0xb8] sm:$0xff] %vm5454_vm4, %v5453_v35  ;;  %9220 = vmatmul.mubr.msk.bf16.gmra.mrb[176].mxu1 %vm5454_vm4, %v5560_v50  ;;  %v5500_v51 = vld [vmem:[#allocation2 + $0xa8] sm:$0xff]  ;;  %v10360_v28 = vld [vmem:[#allocation10 + $0x98] sm:$0xff]   ;;  %v5984_v35 = vld [vmem:[#allocation2 + $0x32] sm:$0xff] }
 0x9f8   :  { %v5513_v25 = vpack.c.bf16 %v5500_v51, %v5499_v22  ;;  %v5985_v44 = vld [vmem:[#allocation2 + $0x3a] sm:$0xff]  ;;  %v5990_v29 = vld [vmem:[#allocation2 + $0x62] sm:$0xff]  ;;  %v10367_v22 = vld [vmem:[#allocation10 + $0xd0] sm:$0xff]  }
 0x9f9   :  { %v6005_v50 = vpack.c.bf16 %v5985_v44, %v5984_v35  ;;  %v6008_v14 = vpack.c.bf16 %v5991_v0, %v5990_v29  ;;  %v6256_v51 = vld [vmem:[#allocation2 + $0x23] sm:$0xff]  ;;  %v6263_v56 = vld [vmem:[#allocation2 + $0x5b] sm:$0xff]  ;;  %v6269_v35 = vld [vmem:[#allocation2 + $0x8b] sm:$0xff] }
 0x9fa   :  { %v10369_v24 = vld [vmem:[#allocation10 + $0xe0] sm:$0xff]   ;;  %v6527_v29 = vld [vmem:[#allocation2 + $0xc] sm:$0xff] }
 0x9fb   :  { %v10372_v44 = vld [vmem:[%s13790_s9] sm:$0xff]  }
 0x9fc   :  { %v5548_v11 = vld [vmem:[#allocation2 + $0xa9] sm:$0xff]  ;;  %v6271_v59 = vld [vmem:[#allocation2 + $0x9b] sm:$0xff] }
 0x9fd   :  { %v5561_v43 = vpack.c.bf16 %v5548_v11, %v5547_v39  ;;  %v5501_v40 = vld [vmem:[#allocation2 + $0xb0] sm:$0xff]  ;;  %v5986_v39 = vld [vmem:[#allocation2 + $0x42] sm:$0xff] }
 0x9fe   :  { %v5549_v54 = vld [vmem:[#allocation2 + $0xb1] sm:$0xff]  ;;  %v5550_v21 = vld [vmem:[#allocation2 + $0xb9] sm:$0xf]  ;;  %v6272_v0 = vld [vmem:[#allocation2 + $0xa3] sm:$0xff] }
 0x9ff   :  { %9223 = vmatprep.mubr.msk.bf16.mxu1 %vm5454_vm4, %v5561_v43  ;;  %v5562_v16 = vpack.c.bf16 %v5550_v21, %v5549_v54  ;;  %v5502_v42 = vld [vmem:[#allocation2 + $0xb8] sm:$0xf]  ;;  %v10362_v11 = vld [vmem:[#allocation10 + $0xa8] sm:$0xff]   ;;  %v6006_v43 = vpack.c.bf16 %v5987_v3, %v5986_v39 }
 0xa00   :  { %v5514_v13 = vpack.c.bf16 %v5502_v42, %v5501_v40  ;;  %v10373_v54 = vld [vmem:[%s13791_s10 + $0x8] sm:$0xff]   ;;  %v10363_v21 = vld [vmem:[#allocation10 + $0xb0] sm:$0xff]   ;;  %v6267_v3 = vld [vmem:[#allocation2 + $0x7b] sm:$0xff] }
 0xa01   :  { %9224 = vmatmul.mubr.msk.bf16.gmra.mrb[180].mxu1 %vm5454_vm4, %v5562_v16  ;;  %v5989_v16 = vld [vmem:[#allocation2 + $0x5a] sm:$0xff]  ;;  %9413 = vmatprep.subr.bf16.mxu0 %v10373_v54  ;;  %v5999_v27 = vld [vmem:[#allocation2 + $0xaa] sm:$0xff] }
 0xa02   :  { %9239 = vmatprep.mubr.msk.bf16.mxu1 %vm5454_vm4, %v5503_v46  ;;  %v10376_v46 = vld [vmem:[%s13791_s10 + $0x10] sm:$0xff]   ;;  %v6007_v9 = vpack.c.bf16 %v5989_v16, %v5988_v61  ;;  %9414 = vmatpush3.bf16.msra.mxu0 %v10373_v54 }
 0xa03   :  { %9415 = vmatprep.subr.bf16.mxu0 %v10376_v46  ;;  %v6261_v42 = vld [vmem:[#allocation2 + $0x4b] sm:$0xff]  ;;  %v6274_v61 = vld [vmem:[#allocation2 + $0xb3] sm:$0xff] }
 0xa04   :  { %v6273_v54 = vld [vmem:[#allocation2 + $0xab] sm:$0xff] }
 0xa06   :  { %9416 = vmatpush3.bf16.msra.mxu0 %v10376_v46  ;;  %v6286_v46 = vpack.c.bf16 %v6273_v54, %v6272_v0 }
 0xa09   :  { %9240 = vmatmul.mubr.msk.bf16.vlgmr.msra.gmra.mrb[160].mxu1 %vm5454_vm4, %v5504_v36  ;;  %v10364_v36 = vld [vmem:[#allocation10 + $0xb8] sm:$0xff]  }
 0xa0a   :  { %9243 = vmatprep.mubr.msk.bf16.mxu1 %vm5454_vm4, %v5505_v6  ;;  %9264 = vmatpush3.bf16.msra.mxu1 %v13428_v7  ;;  %v5492_v7 = vld [vmem:[#allocation2 + $0x68] sm:$0xff] }
 0xa0b   :  { %9265 = vmatprep.subr.bf16.mxu1 %v10354_v34  ;;  %v5509_v10 = vpack.c.bf16 %v5492_v7, %v5491_v20  ;;  %v10365_v6 = vld [vmem:[#allocation10 + $0xc0] sm:$0xff]   ;;  %v5996_v7 = vld [vmem:[#allocation2 + $0x92] sm:$0xff] }
 0xa0e   :  { %9266 = vmatpush3.bf16.msra.mxu1 %v10354_v34  ;;  %v10378_v34 = vld [vmem:[%s13791_s10 + $0x18] sm:$0xff]  }
 0xa0f   :  { %9267 = vmatprep.subr.bf16.mxu1 %v10355_v4  ;;  %9417 = vmatprep.subr.bf16.mxu0 %v10378_v34 }
 0xa10   :  { %9418 = vmatpush3.bf16.msra.mxu0 %v10378_v34 }
 0xa11   :  { %9244 = vmatmul.mubr.msk.bf16.gmra.mrb[164].mxu1 %vm5454_vm4, %v5506_v37  ;;  %9419 = vmatprep.subr.bf16.mxu0 %v10380_v23 }
 0xa12   :  { %9247 = vmatprep.mubr.msk.bf16.mxu1 %vm5454_vm4, %v5507_v45  ;;  %9268 = vmatpush3.bf16.msra.mxu1 %v10355_v4  ;;  %v5993_v4 = vld [vmem:[#allocation2 + $0x7a] sm:$0xff]  ;;  %v10382_v45 = vld [vmem:[%s13791_s10 + $0x28] sm:$0xff]  }
 0xa13   :  { %9269 = vmatprep.subr.bf16.mxu1 %v10356_v57  ;;  %v6009_v37 = vpack.c.bf16 %v5993_v4, %v5992_v41  ;;  %v6531_v4 = vld [vmem:[#allocation2 + $0x2c] sm:$0xff]  ;;  %v6530_v41 = vld [vmem:[#allocation2 + $0x24] sm:$0xff] }
 0xa14   :  { %9420 = vmatpush3.bf16.msra.mxu0 %v10380_v23 }
 0xa15   :  { %9421 = vmatprep.subr.bf16.mxu0 %v10382_v45 }
 0xa16   :  { %9270 = vmatpush3.bf16.msra.mxu1 %v10356_v57  ;;  %v6010_v57 = vpack.c.bf16 %v5995_v48, %v5994_v60  ;;  %v6528_v48 = vld [vmem:[#allocation2 + $0x14] sm:$0xff]  ;;  %v6552_v60 = vpack.c.bf16 %v6531_v4, %v6530_v41 }
 0xa17   :  { %9271 = vmatprep.subr.bf16.mxu1 %v10357_v38 }
 0xa18   :  { %9422 = vmatpush3.bf16.msra.mxu0 %v10382_v45  ;;  %v6533_v45 = vld [vmem:[#allocation2 + $0x3c] sm:$0xff] }
 0xa19   :  { %9248 = vmatmul.mubr.msk.bf16.gmra.mrb[168].mxu1 %vm5454_vm4, %v5508_v53  ;;  %v5998_v53 = vld [vmem:[#allocation2 + $0xa2] sm:$0xff] }
 0xa1a   :  { %9251 = vmatprep.mubr.msk.bf16.mxu1 %vm5454_vm4, %v5509_v10  ;;  %9272 = vmatpush3.bf16.msra.mxu1 %v10357_v38  ;;  %v5997_v38 = vld [vmem:[#allocation2 + $0x9a] sm:$0xff]  ;;  %v6012_v20 = vpack.c.bf16 %v5999_v27, %v5998_v53 }
 0xa1b   :  { %9273 = vmatprep.subr.bf16.mxu1 %v10358_v63  ;;  %v6011_v19 = vpack.c.bf16 %v5997_v38, %v5996_v7  ;;  %v6001_v10 = vld [vmem:[#allocation2 + $0xba] sm:$0xf]  ;;  %v6535_v38 = vld [vmem:[#allocation2 + $0x4c] sm:$0xff] }
 0xa1c   :  { %v6532_v27 = vld [vmem:[#allocation2 + $0x34] sm:$0xff] }
 0xa1d   :  { %v6553_v7 = vpack.c.bf16 %v6533_v45, %v6532_v27  ;;  %v10377_v53 = vld [vmem:[%s13790_s9 + $0x18] sm:$0xff]  }
 0xa1e   :  { %9274 = vmatpush3.bf16.msra.mxu1 %v10358_v63  ;;  %v6000_v63 = vld [vmem:[#allocation2 + $0xb2] sm:$0xff] }
 0xa1f   :  { %9299 = vmatprep.subr.bf16.mxu1 %v10359_v5  ;;  %v6013_v49 = vpack.c.bf16 %v6001_v10, %v6000_v63  ;;  %v10379_v63 = vld [vmem:[%s13790_s9 + $0x20] sm:$0xff]  }
 0xa20   :  { %v6537_v10 = vld [vmem:[#allocation2 + $0x5c] sm:$0xff] }
 0xa21   :  { %9252 = vmatmul.mubr.msk.bf16.gmra.mrb[172].mxu1 %vm5454_vm4, %v5510_v33  ;;  %v6255_v33 = vld [vmem:[#allocation2 + $0x1b] sm:$0xff] }
 0xa22   :  { %9255 = vmatprep.mubr.msk.bf16.mxu1 %vm5454_vm4, %v5511_v15  ;;  %v6254_v15 = vld [vmem:[#allocation2 + $0x13] sm:$0xff] }
 0xa23   :  { %v6277_v2 = vpack.c.bf16 %v6255_v33, %v6254_v15  ;;  %v10381_v33 = vld [vmem:[%s13790_s9 + $0x28] sm:$0xff]   ;;  %v6541_v15 = vld [vmem:[#allocation2 + $0x7c] sm:$0xff] }
 0xa29   :  { %9256 = vmatmul.mubr.msk.bf16.gmra.mrb[176].mxu1 %vm5454_vm4, %v5512_v55  ;;  %v6278_v55 = vpack.c.bf16 %v6257_v31, %v6256_v51  ;;  %v6540_v51 = vld [vmem:[#allocation2 + $0x74] sm:$0xff] }
 0xa2a   :  { %9259 = vmatprep.mubr.msk.bf16.mxu1 %vm5454_vm4, %v5513_v25  ;;  %v6259_v25 = vld [vmem:[#allocation2 + $0x3b] sm:$0xff] }
 0xa2b   :  { %v6279_v40 = vpack.c.bf16 %v6259_v25, %v6258_v26  ;;  %v6545_v25 = vld [vmem:[#allocation2 + $0x9c] sm:$0xff]  ;;  %v6544_v26 = vld [vmem:[#allocation2 + $0x94] sm:$0xff] }
 0xa31   :  { %9260 = vmatmul.mubr.msk.bf16.gmra.mrb[180].mxu1 %vm5454_vm4, %v5514_v13  ;;  %v6260_v13 = vld [vmem:[#allocation2 + $0x43] sm:$0xff] }
 0xa32   :  { %9275 = vmatprep.mubr.msk.bf16.mxu1 %vm5454_vm4, %v6002_v1  ;;  %v6280_v1 = vpack.c.bf16 %v6261_v42, %v6260_v13  ;;  %v6547_v42 = vld [vmem:[#allocation2 + $0xac] sm:$0xff]  ;;  %v6546_v13 = vld [vmem:[#allocation2 + $0xa4] sm:$0xff] }
 0xa39   :  { %9276 = vmatmul.mubr.msk.bf16.vlgmr.msra.gmra.mrb[160].mxu1 %vm5454_vm4, %v6003_v52  ;;  %v6262_v52 = vld [vmem:[#allocation2 + $0x53] sm:$0xff] }
 0xa3a   :  { %9279 = vmatprep.mubr.msk.bf16.mxu1 %vm5454_vm4, %v6004_v12  ;;  %9300 = vmatpush3.bf16.msra.mxu1 %v10359_v5  ;;  %v6253_v5 = vld [vmem:[#allocation2 + $0xb] sm:$0xff]  ;;  %v6281_v30 = vpack.c.bf16 %v6263_v56, %v6262_v52 }
 0xa3b   :  { %9301 = vmatprep.subr.bf16.mxu1 %v10360_v28  ;;  %v6276_v32 = vpack.c.bf16 %v6253_v5, %v6252_v17  ;;  %v10370_v12 = vld [vmem:[#allocation10 + $0xe8] sm:$0xff]  }
 0xa3c   :  { %v6539_v5 = vld [vmem:[#allocation2 + $0x6c] sm:$0xff] }
 0xa3d   :  { %v10384_v52 = vld [vmem:[%s13791_s10 + $0x30] sm:$0xff]  }
 0xa3e   :  { %9302 = vmatpush3.bf16.msra.mxu1 %v10360_v28  ;;  %v6264_v28 = vld [vmem:[#allocation2 + $0x63] sm:$0xff]  ;;  %9423 = vmatprep.subr.bf16.mxu0 %v10384_v52 }
 0xa3f   :  { %9303 = vmatprep.subr.bf16.mxu1 %v10361_v18  ;;  %9424 = vmatpush3.bf16.msra.mxu0 %v10384_v52 }
 0xa41   :  { %9280 = vmatmul.mubr.msk.bf16.gmra.mrb[164].mxu1 %vm5454_vm4, %v6005_v50  ;;  %v6266_v50 = vld [vmem:[#allocation2 + $0x73] sm:$0xff] }
 0xa42   :  { %9283 = vmatprep.mubr.msk.bf16.mxu1 %vm5454_vm4, %v6006_v43  ;;  %9304 = vmatpush3.bf16.msra.mxu1 %v10361_v18  ;;  %v6282_v18 = vpack.c.bf16 %v6265_v47, %v6264_v28  ;;  %v6283_v39 = vpack.c.bf16 %v6267_v3, %v6266_v50  ;;  %v10383_v47 = vld [vmem:[%s13790_s9 + $0x30] sm:$0xff]   ;;  %v10386_v28 = vld [vmem:[%s13791_s10 + $0x38] sm:$0xff]  }
 0xa43   :  { %9305 = vmatprep.subr.bf16.mxu1 %v10362_v11  ;;  %9425 = vmatprep.subr.bf16.mxu0 %v10386_v28 }
 0xa44   :  { %9426 = vmatpush3.bf16.msra.mxu0 %v10386_v28 }
 0xa45   :  { %7469 = vmatprep.subr.bf16.mxu0 %v13852_v8 }
 0xa46   :  { %9306 = vmatpush3.bf16.msra.mxu1 %v10362_v11  ;;  %v6268_v11 = vld [vmem:[#allocation2 + $0x83] sm:$0xff] }
 0xa47   :  { %9307 = vmatprep.subr.bf16.mxu1 %v10363_v21  ;;  %v6284_v43 = vpack.c.bf16 %v6269_v35, %v6268_v11 }
 0xa49   :  { %9284 = vmatmul.mubr.msk.bf16.gmra.mrb[168].mxu1 %vm5454_vm4, %v6007_v9  ;;  %v6275_v9 = vld [vmem:[#allocation2 + $0xbb] sm:$0xf] }
 0xa4a   :  { %9287 = vmatprep.mubr.msk.bf16.mxu1 %vm5454_vm4, %v6008_v14  ;;  %9308 = vmatpush3.bf16.msra.mxu1 %v10363_v21  ;;  %v6270_v21 = vld [vmem:[#allocation2 + $0x93] sm:$0xff]  ;;  %v6526_v14 = vld [vmem:[#allocation2 + $0x4] sm:$0xff] }
 0xa4b   :  { %9309 = vmatprep.subr.bf16.mxu1 %v10364_v36  ;;  %v6285_v16 = vpack.c.bf16 %v6271_v59, %v6270_v21  ;;  %v6550_v34 = vpack.c.bf16 %v6527_v29, %v6526_v14 }
 0xa4e   :  { %9310 = vmatpush3.bf16.msra.mxu1 %v10364_v36  ;;  %v6287_v36 = vpack.c.bf16 %v6275_v9, %v6274_v61 }
 0xa4f   :  { %9335 = vmatprep.subr.bf16.mxu1 %v10365_v6 }
 0xa51   :  { %9288 = vmatmul.mubr.msk.bf16.gmra.mrb[172].mxu1 %vm5454_vm4, %v6009_v37  ;;  %v10374_v37 = vld [vmem:[%s13790_s9 + $0x8] sm:$0xff]  }
 0xa52   :  { %9291 = vmatprep.mubr.msk.bf16.mxu1 %vm5454_vm4, %v6010_v57  ;;  %v10375_v57 = vld [vmem:[%s13790_s9 + $0x10] sm:$0xff]  }
 0xa59   :  { %9292 = vmatmul.mubr.msk.bf16.gmra.mrb[176].mxu1 %vm5454_vm4, %v6011_v19  ;;  %v6534_v19 = vld [vmem:[#allocation2 + $0x44] sm:$0xff] }
 0xa5a   :  { %9295 = vmatprep.mubr.msk.bf16.mxu1 %vm5454_vm4, %v6012_v20  ;;  %v6554_v20 = vpack.c.bf16 %v6535_v38, %v6534_v19 }
 0xa61   :  { %9296 = vmatmul.mubr.msk.bf16.gmra.mrb[180].mxu1 %vm5454_vm4, %v6013_v49  ;;  %v6536_v49 = vld [vmem:[#allocation2 + $0x54] sm:$0xff] }
 0xa62   :  { %9311 = vmatprep.mubr.msk.bf16.mxu1 %vm5454_vm4, %v6276_v32  ;;  %v6555_v17 = vpack.c.bf16 %v6537_v10, %v6536_v49  ;;  %v6538_v32 = vld [vmem:[#allocation2 + $0x64] sm:$0xff] }
 0xa63   :  { %v6556_v31 = vpack.c.bf16 %v6539_v5, %v6538_v32 }
 0xa69   :  { %9312 = vmatmul.mubr.msk.bf16.vlgmr.msra.gmra.mrb[160].mxu1 %vm5454_vm4, %v6277_v2  ;;  %v6543_v2 = vld [vmem:[#allocation2 + $0x8c] sm:$0xff] }
 0xa6a   :  { %9315 = vmatprep.mubr.msk.bf16.mxu1 %vm5454_vm4, %v6278_v55  ;;  %9336 = vmatpush3.bf16.msra.mxu1 %v10365_v6  ;;  %v6529_v6 = vld [vmem:[#allocation2 + $0x1c] sm:$0xff]  ;;  %v6542_v55 = vld [vmem:[#allocation2 + $0x84] sm:$0xff] }
 0xa6b   :  { %9337 = vmatprep.subr.bf16.mxu1 %v10366_v62  ;;  %v6551_v23 = vpack.c.bf16 %v6529_v6, %v6528_v48 }
 0xa6e   :  { %9338 = vmatpush3.bf16.msra.mxu1 %v10366_v62  ;;  %v6557_v62 = vpack.c.bf16 %v6541_v15, %v6540_v51 }
 0xa6f   :  { %9339 = vmatprep.subr.bf16.mxu1 %v10367_v22 }
 0xa71   :  { %9316 = vmatmul.mubr.msk.bf16.gmra.mrb[164].mxu1 %vm5454_vm4, %v6279_v40  ;;  %v6559_v40 = vpack.c.bf16 %v6545_v25, %v6544_v26 }
 0xa72   :  { %9319 = vmatprep.mubr.msk.bf16.mxu1 %vm5454_vm4, %v6280_v1  ;;  %9340 = vmatpush3.bf16.msra.mxu1 %v10367_v22  ;;  %v6558_v22 = vpack.c.bf16 %v6543_v2, %v6542_v55  ;;  %v6548_v1 = vld [vmem:[#allocation2 + $0xb4] sm:$0xff] }
 0xa73   :  { %9341 = vmatprep.subr.bf16.mxu1 %v10368_v58 }
 0xa76   :  { %9342 = vmatpush3.bf16.msra.mxu1 %v10368_v58  ;;  %v6560_v58 = vpack.c.bf16 %v6547_v42, %v6546_v13 }
 0xa77   :  { %9343 = vmatprep.subr.bf16.mxu1 %v10369_v24 }
 0xa79   :  { %9320 = vmatmul.mubr.msk.bf16.gmra.mrb[168].mxu1 %vm5454_vm4, %v6281_v30  ;;  %v10385_v30 = vld [vmem:[%s13790_s9 + $0x38] sm:$0xff]  }
 0xa7a   :  { %9323 = vmatprep.mubr.msk.bf16.mxu1 %vm5454_vm4, %v6282_v18  ;;  %9344 = vmatpush3.bf16.msra.mxu1 %v10369_v24  ;;  %v6549_v24 = vld [vmem:[#allocation2 + $0xbc] sm:$0xf] }
 0xa7b   :  { %9345 = vmatprep.subr.bf16.mxu1 %v10370_v12  ;;  %v6561_v56 = vpack.c.bf16 %v6549_v24, %v6548_v1 }
 0xa7e   :  { %9346 = vmatpush3.bf16.msra.mxu1 %v10370_v12  ;;  %v13573_v12 = vld [vmem:[#allocation11] ss:$0 sm:$0xff] }
 0xa7f   :  { %9371 = vmatprep.subr.bf16.mxu1 %v10372_v44 }
 0xa81   :  { %9324 = vmatmul.mubr.msk.bf16.gmra.mrb[172].mxu1 %vm5454_vm4, %v6283_v39 }
 0xa82   :  { %9327 = vmatprep.mubr.msk.bf16.mxu1 %vm5454_vm4, %v6284_v43 }
 0xa89   :  { %9328 = vmatmul.mubr.msk.bf16.gmra.mrb[176].mxu1 %vm5454_vm4, %v6285_v16 }
 0xa8a   :  { %9331 = vmatprep.mubr.msk.bf16.mxu1 %vm5454_vm4, %v6286_v46 }
 0xa91   :  { %9332 = vmatmul.mubr.msk.bf16.gmra.mrb[180].mxu1 %vm5454_vm4, %v6287_v36 }
 0xa92   :  { %9347 = vmatprep.mubr.msk.bf16.mxu1 %vm5454_vm4, %v6550_v34 }
 0xa99   :  { %9348 = vmatmul.mubr.msk.bf16.vlgmr.msra.gmra.mrb[160].mxu1 %vm5454_vm4, %v6551_v23 }
 0xa9a   :  { %9351 = vmatprep.mubr.msk.bf16.mxu1 %vm5454_vm4, %v6552_v60  ;;  %9372 = vmatpush3.bf16.msra.mxu1 %v10372_v44 }
 0xa9b   :  { %9373 = vmatprep.subr.bf16.mxu1 %v10374_v37 }
 0xa9e   :  { %9374 = vmatpush3.bf16.msra.mxu1 %v10374_v37 }
 0xa9f   :  { %9375 = vmatprep.subr.bf16.mxu1 %v10375_v57 }
 0xaa1   :  { %9352 = vmatmul.mubr.msk.bf16.gmra.mrb[164].mxu1 %vm5454_vm4, %v6553_v7 }
 0xaa2   :  { %9355 = vmatprep.mubr.msk.bf16.mxu1 %vm5454_vm4, %v6554_v20  ;;  %9376 = vmatpush3.bf16.msra.mxu1 %v10375_v57 }
 0xaa3   :  { %9377 = vmatprep.subr.bf16.mxu1 %v10377_v53 }
 0xaa6   :  { %9378 = vmatpush3.bf16.msra.mxu1 %v10377_v53 }
 0xaa7   :  { %9379 = vmatprep.subr.bf16.mxu1 %v10379_v63 }
 0xaa9   :  { %9356 = vmatmul.mubr.msk.bf16.gmra.mrb[168].mxu1 %vm5454_vm4, %v6555_v17 }
 0xaaa   :  { %9359 = vmatprep.mubr.msk.bf16.mxu1 %vm5454_vm4, %v6556_v31  ;;  %9380 = vmatpush3.bf16.msra.mxu1 %v10379_v63 }
 0xaab   :  { %9381 = vmatprep.subr.bf16.mxu1 %v10381_v33 }
 0xaae   :  { %9382 = vmatpush3.bf16.msra.mxu1 %v10381_v33 }
 0xaaf   :  { %9383 = vmatprep.subr.bf16.mxu1 %v10383_v47 }
 0xab1   :  { %9360 = vmatmul.mubr.msk.bf16.gmra.mrb[172].mxu1 %vm5454_vm4, %v6557_v62 }
 0xab2   :  { %9363 = vmatprep.mubr.msk.bf16.mxu1 %vm5454_vm4, %v6558_v22  ;;  %9384 = vmatpush3.bf16.msra.mxu1 %v10383_v47 }
 0xab3   :  { %9385 = vmatprep.subr.bf16.mxu1 %v10385_v30 }
 0xab6   :  { %9386 = vmatpush3.bf16.msra.mxu1 %v10385_v30 }
 0xab7   :  { %7348 = vmatprep.subr.bf16.mxu1 %v13852_v8 }
 0xab9   :  { %9364 = vmatmul.mubr.msk.bf16.gmra.mrb[176].mxu1 %vm5454_vm4, %v6559_v40 }
 0xaba   :  { %9367 = vmatprep.mubr.msk.bf16.mxu1 %vm5454_vm4, %v6560_v58 }
 0xac1   :  { %9368 = vmatmul.mubr.msk.bf16.gmra.mrb[180].mxu1 %vm5454_vm4, %v6561_v56 }
 0xb6c   :  { %v9349_v18 = vpop.f32.mrb[160].mxu1 }
 0xb6d   :  { %v6809_v44 = vadd.f32 %v9349_v18, %v13573_v12  ;;  %v6681_v3 = vpop.f32.mrb[161].mxu1 }
 0xb6e   :  { %v6807_v35 = vadd.f32 %v13573_v12, %v6681_v3  ;;  %v9350_v50 = vpop.f32.mrb[162].mxu1 }
 0xb6f   :  { %v6810_v39 = vadd.f32 %v9350_v50, %v13573_v12  ;;  %v6684_v11 = vpop.f32.mrb[163].mxu1  ;;  %v6833_v59 = vmax.f32 %v6809_v44, 0.0 }
 0xb70   :  { %v6808_v43 = vadd.f32 %v13573_v12, %v6684_v11  ;;  %v6831_v21 = vmax.f32 %v6807_v35, 0.0 }
 0xb71   :  { %v6834_v54 = vmax.f32 %v6810_v39, 0.0 }
 0xb72   :  { %v6832_v16 = vmax.f32 %v6808_v43, 0.0 }
 0xb73   :  { %v6856_v0 = vpack.c.bf16 %v6834_v54, %v6833_v59 }
 0xb74   :  { %v6855_v46 = vpack.c.bf16 %v6832_v16, %v6831_v21  ;;  %v9353_v61 = vpop.f32.mrb[164].mxu1 }
 0xb75   :  { %v6813_v9 = vadd.f32 %v9353_v61, %v13573_v12  ;;  %v6697_v29 = vpop.f32.mrb[165].mxu1 }
 0xb76   :  { %v6811_v36 = vadd.f32 %v13573_v12, %v6697_v29  ;;  %v9354_v14 = vpop.f32.mrb[166].mxu1  ;;  %9387 = vmatprep.mubr.bf16.mxu1 %v6855_v46  ;;  %9427 = vmatprep.mubr.bf16.mxu0 %v6855_v46 }
 0xb77   :  { %v6814_v34 = vadd.f32 %v9354_v14, %v13573_v12  ;;  %v6700_v6 = vpop.f32.mrb[167].mxu1  ;;  %9388 = vmatmul.mubr.bf16.vlgmr.msra.gmra.mrb[184].mxu1 %v6856_v0  ;;  %9428 = vmatmul.mubr.bf16.vlgmr.msra.gmra.mrb[112].mxu0 %v6856_v0  ;;  %v6837_v48 = vmax.f32 %v6813_v9, 0.0 }
 0xb78   :  { %v6812_v4 = vadd.f32 %v13573_v12, %v6700_v6  ;;  %v6835_v41 = vmax.f32 %v6811_v36, 0.0 }
 0xb79   :  { %v6838_v23 = vmax.f32 %v6814_v34, 0.0 }
 0xb7a   :  { %v6836_v37 = vmax.f32 %v6812_v4, 0.0 }
 0xb7b   :  { %v6858_v60 = vpack.c.bf16 %v6838_v23, %v6837_v48  ;;  %v10389_v48 = vld [vmem:[%s13792_s11 + $0x4] ss:$8 sps:$4 sm:$0xff]   ;;  %v10392_v23 = vld [vmem:[#allocation13 + $0x4] ss:$8 sps:$4 sm:$0xff]  }
 0xb7c   :  { %v6857_v57 = vpack.c.bf16 %v6836_v37, %v6835_v41  ;;  %v9357_v45 = vpop.f32.mrb[168].mxu1 }
 0xb7d   :  { %v6817_v38 = vadd.f32 %v9357_v45, %v13573_v12  ;;  %v6713_v27 = vpop.f32.mrb[169].mxu1 }
 0xb7e   :  { %v6815_v7 = vadd.f32 %v13573_v12, %v6713_v27  ;;  %v9358_v19 = vpop.f32.mrb[170].mxu1  ;;  %9391 = vmatprep.mubr.bf16.mxu1 %v6857_v57  ;;  %9431 = vmatprep.mubr.bf16.mxu0 %v6857_v57 }
 0xb7f   :  { %v6818_v53 = vadd.f32 %v9358_v19, %v13573_v12  ;;  %v6716_v20 = vpop.f32.mrb[171].mxu1  ;;  %9392 = vmatmul.mubr.bf16.gmra.mrb[188].mxu1 %v6858_v60  ;;  %9432 = vmatmul.mubr.bf16.gmra.mrb[116].mxu0 %v6858_v60  ;;  %v6841_v10 = vmax.f32 %v6817_v38, 0.0 }
 0xb80   :  { %v6816_v63 = vadd.f32 %v13573_v12, %v6716_v20  ;;  %v6839_v49 = vmax.f32 %v6815_v7, 0.0 }
 0xb81   :  { %v6842_v5 = vmax.f32 %v6818_v53, 0.0 }
 0xb82   :  { %v6840_v17 = vmax.f32 %v6816_v63, 0.0 }
 0xb83   :  { %v6860_v32 = vpack.c.bf16 %v6842_v5, %v6841_v10 }
 0xb84   :  { %v6859_v33 = vpack.c.bf16 %v6840_v17, %v6839_v49  ;;  %v9361_v31 = vpop.f32.mrb[172].mxu1 }
 0xb85   :  { %v6821_v15 = vadd.f32 %v9361_v31, %v13573_v12  ;;  %v6729_v2 = vpop.f32.mrb[173].mxu1 }
 0xb86   :  { %v6819_v51 = vadd.f32 %v13573_v12, %v6729_v2  ;;  %v9362_v62 = vpop.f32.mrb[174].mxu1  ;;  %9395 = vmatprep.mubr.bf16.mxu1 %v6859_v33  ;;  %9435 = vmatprep.mubr.bf16.mxu0 %v6859_v33 }
 0xb87   :  { %v6822_v55 = vadd.f32 %v9362_v62, %v13573_v12  ;;  %v6732_v22 = vpop.f32.mrb[175].mxu1  ;;  %9396 = vmatmul.mubr.bf16.gmra.mrb[192].mxu1 %v6860_v32  ;;  %9436 = vmatmul.mubr.bf16.gmra.mrb[120].mxu0 %v6860_v32  ;;  %v6845_v42 = vmax.f32 %v6821_v15, 0.0 }
 0xb88   :  { %v6820_v25 = vadd.f32 %v13573_v12, %v6732_v22  ;;  %v6843_v40 = vmax.f32 %v6819_v51, 0.0 }
 0xb89   :  { %v6846_v26 = vmax.f32 %v6822_v55, 0.0 }
 0xb8a   :  { %v6844_v13 = vmax.f32 %v6820_v25, 0.0 }
 0xb8b   :  { %v6862_v58 = vpack.c.bf16 %v6846_v26, %v6845_v42 }
 0xb8c   :  { %v6861_v1 = vpack.c.bf16 %v6844_v13, %v6843_v40  ;;  %v9365_v24 = vpop.f32.mrb[176].mxu1 }
 0xb8d   :  { %v6825_v56 = vadd.f32 %v9365_v24, %v13573_v12  ;;  %v6745_v47 = vpop.f32.mrb[177].mxu1 }
 0xb8e   :  { %v6823_v52 = vadd.f32 %v13573_v12, %v6745_v47  ;;  %v9366_v30 = vpop.f32.mrb[178].mxu1  ;;  %9399 = vmatprep.mubr.bf16.mxu1 %v6861_v1  ;;  %9439 = vmatprep.mubr.bf16.mxu0 %v6861_v1 }
 0xb8f   :  { %v6826_v28 = vadd.f32 %v9366_v30, %v13573_v12  ;;  %v6748_v18 = vpop.f32.mrb[179].mxu1  ;;  %9400 = vmatmul.mubr.bf16.gmra.mrb[196].mxu1 %v6862_v58  ;;  %9440 = vmatmul.mubr.bf16.gmra.mrb[124].mxu0 %v6862_v58  ;;  %v6849_v3 = vmax.f32 %v6825_v56, 0.0 }
 0xb90   :  { %v6824_v44 = vadd.f32 %v13573_v12, %v6748_v18  ;;  %v6847_v50 = vmax.f32 %v6823_v52, 0.0 }
 0xb91   :  { %v6850_v35 = vmax.f32 %v6826_v28, 0.0 }
 0xb92   :  { %v6848_v39 = vmax.f32 %v6824_v44, 0.0 }
 0xb93   :  { %v6864_v11 = vpack.c.bf16 %v6850_v35, %v6849_v3 }
 0xb94   :  { %v6863_v43 = vpack.c.bf16 %v6848_v39, %v6847_v50  ;;  %v9369_v59 = vpop.f32.mrb[180].mxu1 }
 0xb95   :  { %v6829_v54 = vadd.f32 %v9369_v59, %v13573_v12  ;;  %v6761_v21 = vpop.f32.mrb[181].mxu1 }
 0xb96   :  { %v6827_v16 = vadd.f32 %v13573_v12, %v6761_v21  ;;  %v9370_v0 = vpop.f32.mrb[182].mxu1  ;;  %9403 = vmatprep.mubr.bf16.mxu1 %v6863_v43  ;;  %9443 = vmatprep.mubr.bf16.mxu0 %v6863_v43 }
 0xb97   :  { %v6830_v46 = vadd.f32 %v9370_v0, %v13573_v12  ;;  %v6764_v61 = vpop.f32.mrb[183].mxu1  ;;  %9404 = vmatmul.mubr.bf16.gmra.mrb[200].mxu1 %v6864_v11  ;;  %9444 = vmatmul.mubr.bf16.gmra.mrb[128].mxu0 %v6864_v11  ;;  %v6853_v29 = vmax.f32 %v6829_v54, 0.0 }
 0xb98   :  { %v6828_v9 = vadd.f32 %v13573_v12, %v6764_v61  ;;  %v6851_v14 = vmax.f32 %v6827_v16, 0.0 }
 0xb99   :  { %v6854_v36 = vmax.f32 %v6830_v46, 0.0 }
 0xb9a   :  { %v6852_v34 = vmax.f32 %v6828_v9, 0.0 }
 0xb9b   :  { %v6866_v6 = vpack.c.bf16 %v6854_v36, %v6853_v29 }
 0xb9c   :  { %v6865_v4 = vpack.c.bf16 %v6852_v34, %v6851_v14 }
 0xb9e   :  { %9407 = vmatprep.mubr.bf16.mxu1 %v6865_v4  ;;  %9447 = vmatprep.mubr.bf16.mxu0 %v6865_v4 }
 0xb9f   :  { %9408 = vmatmul.mubr.bf16.gmra.mrb[204].mxu1 %v6866_v6  ;;  %9448 = vmatmul.mubr.bf16.gmra.mrb[132].mxu0 %v6866_v6 }
 0xba0   :  { %8771 = vmatprep.mubr.msk.bf16.mxu1 %vm4562_vm3, %v10389_v48  ;;  %8783 = vmatprep.mubr.msk.bf16.mxu0 %vm4562_vm3, %v10392_v23 }
 0xc4a   :  { %v9389_v12 = vpop.f32.mrb[184].mxu1  ;;  %v9429_v41 = vpop.f32.mrb[112].mxu0 }
 0xc4b   :  { %v7255_v37 = vmax.f32 %v9389_v12, %v9429_v41  ;;  %v6965_v60 = vpop.f32.mrb[185].mxu1  ;;  %v7158_v57 = vpop.f32.mrb[113].mxu0 }
 0xc4c   :  { %v7253_v45 = vmax.f32 %v6965_v60, %v7158_v57  ;;  %v9390_v38 = vpop.f32.mrb[186].mxu1  ;;  %v9430_v27 = vpop.f32.mrb[114].mxu0 }
 0xc4d   :  { %v7256_v7 = vmax.f32 %v9390_v38, %v9430_v27  ;;  %v6968_v19 = vpop.f32.mrb[187].mxu1  ;;  %v7161_v53 = vpop.f32.mrb[115].mxu0 }
 0xc4e   :  { %v7254_v20 = vmax.f32 %v6968_v19, %v7161_v53 }
 0xc4f   :  { %v7278_v63 = vpack.c.bf16 %v7256_v7, %v7255_v37 }
 0xc50   :  { %v7277_v10 = vpack.c.bf16 %v7254_v20, %v7253_v45 }
 0xc52   :  { %v9393_v5 = vpop.f32.mrb[188].mxu1  ;;  %v9433_v49 = vpop.f32.mrb[116].mxu0  ;;  %7349 = vmatpush1.bf16.msra.mxu1 %v7277_v10  ;;  %7470 = vmatpush1.bf16.msra.mxu0 %v7277_v10 }
 0xc53   :  { %v7259_v17 = vmax.f32 %v9393_v5, %v9433_v49  ;;  %v6981_v32 = vpop.f32.mrb[189].mxu1  ;;  %v7174_v33 = vpop.f32.mrb[117].mxu0  ;;  %7350 = vmatprep.subr.bf16.mxu1 %v13852_v8  ;;  %7471 = vmatprep.subr.bf16.mxu0 %v13852_v8 }
 0xc54   :  { %v7257_v31 = vmax.f32 %v6981_v32, %v7174_v33  ;;  %v9394_v15 = vpop.f32.mrb[190].mxu1  ;;  %v9434_v2 = vpop.f32.mrb[118].mxu0 }
 0xc55   :  { %v7260_v51 = vmax.f32 %v9394_v15, %v9434_v2  ;;  %v6984_v62 = vpop.f32.mrb[191].mxu1  ;;  %v7177_v55 = vpop.f32.mrb[119].mxu0 }
 0xc56   :  { %v7258_v22 = vmax.f32 %v6984_v62, %v7177_v55  ;;  %7351 = vmatpush1.bf16.msra.mxu1 %v7278_v63  ;;  %7472 = vmatpush1.bf16.msra.mxu0 %v7278_v63  ;;  %v10390_v62 = vld [vmem:[#allocation13] ss:$8 sps:$4 sm:$0xff]  }
 0xc57   :  { %v7280_v25 = vpack.c.bf16 %v7260_v51, %v7259_v17  ;;  %7352 = vmatprep.subr.bf16.mxu1 %v13852_v8  ;;  %7473 = vmatprep.subr.bf16.mxu0 %v13852_v8  ;;  %v10387_v51 = vld [vmem:[%s13792_s11] ss:$8 sps:$4 sm:$0xff]   ;;  %v10395_v55 = vld [vmem:[%s13792_s11 + $0x14] ss:$8 sps:$4 sm:$0xff]  }
 0xc58   :  { %v7279_v42 = vpack.c.bf16 %v7258_v22, %v7257_v31  ;;  %v10396_v22 = vld [vmem:[#allocation13 + $0x14] ss:$8 sps:$4 sm:$0xff]  }
 0xc5a   :  { %v9397_v26 = vpop.f32.mrb[192].mxu1  ;;  %v9437_v40 = vpop.f32.mrb[120].mxu0  ;;  %7353 = vmatpush1.bf16.msra.mxu1 %v7279_v42  ;;  %7474 = vmatpush1.bf16.msra.mxu0 %v7279_v42  ;;  %v10401_v42 = vld [vmem:[%s13792_s11 + $0x24] ss:$8 sps:$4 sm:$0xff]  }
 0xc5b   :  { %v7263_v13 = vmax.f32 %v9397_v26, %v9437_v40  ;;  %v6997_v58 = vpop.f32.mrb[193].mxu1  ;;  %v7190_v1 = vpop.f32.mrb[121].mxu0  ;;  %7354 = vmatprep.subr.bf16.mxu1 %v13852_v8  ;;  %7475 = vmatprep.subr.bf16.mxu0 %v13852_v8  ;;  %v10402_v26 = vld [vmem:[#allocation13 + $0x24] ss:$8 sps:$4 sm:$0xff]  }
 0xc5c   :  { %v7261_v24 = vmax.f32 %v6997_v58, %v7190_v1  ;;  %v9398_v56 = vpop.f32.mrb[194].mxu1  ;;  %v9438_v47 = vpop.f32.mrb[122].mxu0  ;;  %v10399_v40 = vld [vmem:[%s13792_s11 + $0x20] ss:$8 sps:$4 sm:$0xff]   ;;  %v10407_v58 = vld [vmem:[%s13792_s11 + $0x34] ss:$8 sps:$4 sm:$0xff]  }
 0xc5d   :  { %v7264_v52 = vmax.f32 %v9398_v56, %v9438_v47  ;;  %v7000_v30 = vpop.f32.mrb[195].mxu1  ;;  %v7193_v28 = vpop.f32.mrb[123].mxu0  ;;  %v10408_v1 = vld [vmem:[#allocation13 + $0x34] ss:$8 sps:$4 sm:$0xff]   ;;  %v10410_v56 = vld [vmem:[#allocation13 + $0x30] ss:$8 sps:$4 sm:$0xff]  }
 0xc5e   :  { %v7262_v18 = vmax.f32 %v7000_v30, %v7193_v28  ;;  %7355 = vmatpush1.bf16.msra.mxu1 %v7280_v25  ;;  %7476 = vmatpush1.bf16.msra.mxu0 %v7280_v25  ;;  %v10398_v25 = vld [vmem:[#allocation13 + $0x10] ss:$8 sps:$4 sm:$0xff]   ;;  %v10761_v47 = vmov 0.0  }
 0xc5f   :  { %v7282_v44 = vpack.c.bf16 %v7264_v52, %v7263_v13  ;;  %7356 = vmatprep.subr.bf16.mxu1 %v13852_v8  ;;  %7477 = vmatprep.subr.bf16.mxu0 %v13852_v8  ;;  %v10404_v13 = vld [vmem:[#allocation13 + $0x20] ss:$8 sps:$4 sm:$0xff]  }
 0xc60   :  { %v7281_v3 = vpack.c.bf16 %v7262_v18, %v7261_v24  ;;  %v10405_v24 = vld [vmem:[%s13792_s11 + $0x30] ss:$8 sps:$4 sm:$0xff]  }
 0xc62   :  { %v9401_v35 = vpop.f32.mrb[196].mxu1  ;;  %v9441_v50 = vpop.f32.mrb[124].mxu0  ;;  %7357 = vmatpush1.bf16.msra.mxu1 %v7281_v3  ;;  %7478 = vmatpush1.bf16.msra.mxu0 %v7281_v3 }
 0xc63   :  { %v7267_v39 = vmax.f32 %v9401_v35, %v9441_v50  ;;  %v7013_v11 = vpop.f32.mrb[197].mxu1  ;;  %v7206_v43 = vpop.f32.mrb[125].mxu0  ;;  %7358 = vmatprep.subr.bf16.mxu1 %v13852_v8  ;;  %7479 = vmatprep.subr.bf16.mxu0 %v13852_v8 }
 0xc64   :  { %v7265_v59 = vmax.f32 %v7013_v11, %v7206_v43  ;;  %v9402_v54 = vpop.f32.mrb[198].mxu1  ;;  %v9442_v21 = vpop.f32.mrb[126].mxu0 }
 0xc65   :  { %v7268_v16 = vmax.f32 %v9402_v54, %v9442_v21  ;;  %v7016_v0 = vpop.f32.mrb[199].mxu1  ;;  %v7209_v46 = vpop.f32.mrb[127].mxu0 }
 0xc66   :  { %v7266_v61 = vmax.f32 %v7016_v0, %v7209_v46  ;;  %7359 = vmatpush1.bf16.msra.mxu1 %v7282_v44  ;;  %7480 = vmatpush1.bf16.msra.mxu0 %v7282_v44 }
 0xc67   :  { %v7284_v9 = vpack.c.bf16 %v7268_v16, %v7267_v39  ;;  %7360 = vmatprep.subr.bf16.mxu1 %v13852_v8  ;;  %7481 = vmatprep.subr.bf16.mxu0 %v13852_v8 }
 0xc68   :  { %v7283_v29 = vpack.c.bf16 %v7266_v61, %v7265_v59 }
 0xc6a   :  { %v9405_v36 = vpop.f32.mrb[200].mxu1  ;;  %v9445_v14 = vpop.f32.mrb[128].mxu0  ;;  %7361 = vmatpush1.bf16.msra.mxu1 %v7283_v29  ;;  %7482 = vmatpush1.bf16.msra.mxu0 %v7283_v29 }
 0xc6b   :  { %v7271_v34 = vmax.f32 %v9405_v36, %v9445_v14  ;;  %v7029_v6 = vpop.f32.mrb[201].mxu1  ;;  %v7222_v4 = vpop.f32.mrb[129].mxu0  ;;  %7362 = vmatprep.subr.bf16.mxu1 %v13852_v8  ;;  %7483 = vmatprep.subr.bf16.mxu0 %v13852_v8 }
 0xc6c   :  { %v7269_v48 = vmax.f32 %v7029_v6, %v7222_v4  ;;  %v9406_v23 = vpop.f32.mrb[202].mxu1  ;;  %v9446_v12 = vpop.f32.mrb[130].mxu0 }
 0xc6d   :  { %v7272_v41 = vmax.f32 %v9406_v23, %v9446_v12  ;;  %v7032_v37 = vpop.f32.mrb[203].mxu1  ;;  %v7225_v60 = vpop.f32.mrb[131].mxu0 }
 0xc6e   :  { %v7270_v57 = vmax.f32 %v7032_v37, %v7225_v60  ;;  %7363 = vmatpush1.bf16.msra.mxu1 %v7284_v9  ;;  %7484 = vmatpush1.bf16.msra.mxu0 %v7284_v9 }
 0xc6f   :  { %v7286_v45 = vpack.c.bf16 %v7272_v41, %v7271_v34  ;;  %7364 = vmatprep.subr.bf16.mxu1 %v13852_v8  ;;  %7485 = vmatprep.subr.bf16.mxu0 %v13852_v8 }
 0xc70   :  { %v7285_v38 = vpack.c.bf16 %v7270_v57, %v7269_v48 }
 0xc72   :  { %v9409_v27 = vpop.f32.mrb[204].mxu1  ;;  %v9449_v7 = vpop.f32.mrb[132].mxu0  ;;  %7365 = vmatpush1.bf16.msra.mxu1 %v7285_v38  ;;  %7486 = vmatpush1.bf16.msra.mxu0 %v7285_v38 }
 0xc73   :  { %v7275_v19 = vmax.f32 %v9409_v27, %v9449_v7  ;;  %v7045_v53 = vpop.f32.mrb[205].mxu1  ;;  %v7238_v20 = vpop.f32.mrb[133].mxu0  ;;  %7366 = vmatprep.subr.bf16.mxu1 %v13852_v8  ;;  %7487 = vmatprep.subr.bf16.mxu0 %v13852_v8 }
 0xc74   :  { %v7273_v63 = vmax.f32 %v7045_v53, %v7238_v20  ;;  %v9410_v10 = vpop.f32.mrb[206].mxu1  ;;  %v9450_v5 = vpop.f32.mrb[134].mxu0 }
 0xc75   :  { %v7276_v49 = vmax.f32 %v9410_v10, %v9450_v5  ;;  %v7048_v17 = vpop.f32.mrb[207].mxu1  ;;  %v7241_v32 = vpop.f32.mrb[135].mxu0 }
 0xc76   :  { %v7274_v33 = vmax.f32 %v7048_v17, %v7241_v32  ;;  %7367 = vmatpush1.bf16.msra.mxu1 %v7286_v45  ;;  %7488 = vmatpush1.bf16.msra.mxu0 %v7286_v45  ;;  %v10411_v32 = vld [vmem:[#allocation14 + $0x8] sm:$0xff]  }
 0xc77   :  { %v7288_v31 = vpack.c.bf16 %v7276_v49, %v7275_v19  ;;  %7368 = vmatprep.subr.bf16.mxu1 %v13852_v8  ;;  %7489 = vmatprep.subr.bf16.mxu0 %v13852_v8 }
 0xc78   :  { %v7287_v15 = vpack.c.bf16 %v7274_v33, %v7273_v63  ;;  %v10412_v33 = vld [vmem:[#allocation14] sm:$0xff]  }
 0xc79   :  { %v7346_v2 = vsel %vm512_vm0, %v7288_v31, 0  ;;  %v10413_v31 = vld [vmem:[#allocation16 + $0x20] sm:$0xff]  }
 0xc7a   :  { %7369 = vmatpush1.bf16.msra.mxu1 %v7287_v15  ;;  %7490 = vmatpush1.bf16.msra.mxu0 %v7287_v15  ;;  %v10414_v15 = vld [vmem:[#allocation16 + $0x28] sm:$0xff]  }
 0xc7b   :  { %7370 = vmatprep.subr.bf16.mxu1 %v13852_v8  ;;  %7491 = vmatprep.subr.bf16.mxu0 %v13852_v8  ;;  %v10393_v8 = vld [vmem:[%s13792_s11 + $0x10] ss:$8 sps:$4 sm:$0xff]  }
 0xc7e   :  { %7371 = vmatpush1.bf16.msra.mxu1 %v7346_v2  ;;  %7492 = vmatpush1.bf16.msra.mxu0 %v7346_v2  ;;  %v10415_v2 = vld [vmem:[#allocation16 + $0x30] sm:$0xff]  }
 0xc7f   :  { %9463 = vmatprep.subr.bf16.mxu0 %v10761_v47  ;;  %9451 = vmatprep.subr.bf16.mxu1 %v10761_v47 }
 0xc81   :  { %7381 = vmatmul.mubr.bf16.vlgmr.msra.gmra.mrb[208].mxu1 %v10387_v51  ;;  %7502 = vmatmul.mubr.bf16.vlgmr.msra.gmra.mrb[136].mxu0 %v10390_v62  ;;  %v10419_v51 = vld [vmem:[#allocation16] sm:$0xff]   ;;  %v10420_v62 = vld [vmem:[#allocation16 + $0x8] sm:$0xff]  }
 0xc82   :  { %8772 = vmatprep.mubr.msk.bf16.mxu1 %vm4562_vm3, %v10395_v55  ;;  %8784 = vmatprep.mubr.msk.bf16.mxu0 %vm4562_vm3, %v10396_v22  ;;  %v10421_v55 = vld [vmem:[#allocation16 + $0x10] sm:$0xff]   ;;  %v10416_v22 = vld [vmem:[#allocation16 + $0x38] sm:$0xff]  }
 0xc89   :  { %7389 = vmatmul.mubr.bf16.gmra.mrb[212].mxu1 %v10393_v8  ;;  %7510 = vmatmul.mubr.bf16.gmra.mrb[140].mxu0 %v10398_v25  ;;  %v10422_v8 = vld [vmem:[#allocation16 + $0x18] sm:$0xff]  }
 0xc8a   :  { %8773 = vmatprep.mubr.msk.bf16.mxu1 %vm4562_vm3, %v10401_v42  ;;  %8785 = vmatprep.mubr.msk.bf16.mxu0 %vm4562_vm3, %v10402_v26 }
 0xc91   :  { %7397 = vmatmul.mubr.bf16.gmra.mrb[216].mxu1 %v10399_v40  ;;  %7518 = vmatmul.mubr.bf16.gmra.mrb[144].mxu0 %v10404_v13 }
 0xc92   :  { %8774 = vmatprep.mubr.msk.bf16.mxu1 %vm4562_vm3, %v10407_v58  ;;  %8786 = vmatprep.mubr.msk.bf16.mxu0 %vm4562_vm3, %v10408_v1 }
 0xc99   :  { %7405 = vmatmul.mubr.bf16.gmra.mrb[220].mxu1 %v10405_v24  ;;  %7526 = vmatmul.mubr.bf16.gmra.mrb[148].mxu0 %v10410_v56 }
 0xc9a   :  { %9471 = vmatprep.mubr.msk.bf16.mxu0 %vm10762_vm5, %v10761_v47  ;;  %9459 = vmatprep.mubr.msk.bf16.mxu1 %vm10762_vm5, %v10761_v47 }
 0xd54   :  { %v7382_v52 = vpop.f32.mrb[208].mxu1  ;;  %v7503_v30 = vpop.f32.mrb[136].mxu0 }
 0xd55   :  { %v7534_v28 = vmax.f32 %v7382_v52, %v7503_v30  ;;  %v7384_v18 = vpop.f32.mrb[209].mxu1  ;;  %v7505_v44 = vpop.f32.mrb[137].mxu0  ;;  %v10423_v52 = vld [vmem:[#allocation16 + $0x40] sm:$0xff]  }
 0xd56   :  { %v7385_v3 = vpop.f32.mrb[210].mxu1  ;;  %v7506_v35 = vpop.f32.mrb[138].mxu0  ;;  %v10417_v18 = vld [vmem:[#allocation14 + $0x10] sm:$0xff]   ;;  %v10418_v44 = vld [vmem:[#allocation14 + $0x18] sm:$0xff]  }
 0xd57   :  { %v7535_v50 = vmax.f32 %v7385_v3, %v7506_v35  ;;  %v7387_v39 = vpop.f32.mrb[211].mxu1  ;;  %v7508_v11 = vpop.f32.mrb[139].mxu0  ;;  %v10425_v3 = vld [vmem:[#allocation16 + $0x50] sm:$0xff]   ;;  %v10426_v35 = vld [vmem:[#allocation16 + $0x58] sm:$0xff]  }
 0xd59   :  { %v13660_v43 = vpack.c.bf16 %v7535_v50, %v7534_v28  ;;  %v10424_v28 = vld [vmem:[#allocation16 + $0x48] sm:$0xff]  }
 0xd5a   :  { %v10431_v50 = vld [vmem:[%s13797_s16] sm:$0xff]  }
 0xd5b   :  { %9464 = vmatpush3.bf16.msra.mxu0 %v13660_v43  ;;  %9452 = vmatpush3.bf16.msra.mxu1 %v13660_v43 }
 0xd5c   :  { %v7390_v59 = vpop.f32.mrb[212].mxu1  ;;  %v7511_v54 = vpop.f32.mrb[140].mxu0  ;;  %9465 = vmatprep.subr.bf16.mxu0 %v10761_v47  ;;  %9453 = vmatprep.subr.bf16.mxu1 %v10761_v47 }
 0xd5d   :  { %v7536_v21 = vmax.f32 %v7390_v59, %v7511_v54  ;;  %v7392_v16 = vpop.f32.mrb[213].mxu1  ;;  %v7513_v0 = vpop.f32.mrb[141].mxu0 }
 0xd5e   :  { %v7393_v46 = vpop.f32.mrb[214].mxu1  ;;  %v7514_v61 = vpop.f32.mrb[142].mxu0 }
 0xd5f   :  { %v7537_v9 = vmax.f32 %v7393_v46, %v7514_v61  ;;  %v7395_v29 = vpop.f32.mrb[215].mxu1  ;;  %v7516_v36 = vpop.f32.mrb[143].mxu0 }
 0xd61   :  { %v13666_v14 = vpack.c.bf16 %v7537_v9, %v7536_v21 }
 0xd63   :  { %9466 = vmatpush3.bf16.msra.mxu0 %v13666_v14  ;;  %9454 = vmatpush3.bf16.msra.mxu1 %v13666_v14 }
 0xd64   :  { %v7398_v34 = vpop.f32.mrb[216].mxu1  ;;  %v7519_v6 = vpop.f32.mrb[144].mxu0  ;;  %9467 = vmatprep.subr.bf16.mxu0 %v10761_v47  ;;  %9455 = vmatprep.subr.bf16.mxu1 %v10761_v47 }
 0xd65   :  { %v7538_v4 = vmax.f32 %v7398_v34, %v7519_v6  ;;  %v7400_v48 = vpop.f32.mrb[217].mxu1  ;;  %v7521_v23 = vpop.f32.mrb[145].mxu0 }
 0xd66   :  { %v7401_v12 = vpop.f32.mrb[218].mxu1  ;;  %v7522_v41 = vpop.f32.mrb[146].mxu0  ;;  %v10429_v48 = vld [vmem:[#allocation16 + $0x70] sm:$0xff]   ;;  %v10430_v23 = vld [vmem:[#allocation16 + $0x78] sm:$0xff]  }
 0xd67   :  { %v7539_v37 = vmax.f32 %v7401_v12, %v7522_v41  ;;  %v7403_v60 = vpop.f32.mrb[219].mxu1  ;;  %v7524_v57 = vpop.f32.mrb[147].mxu0 }
 0xd69   :  { %v13672_v45 = vpack.c.bf16 %v7539_v37, %v7538_v4  ;;  %v10428_v4 = vld [vmem:[#allocation16 + $0x68] sm:$0xff]  }
 0xd6b   :  { %9468 = vmatpush3.bf16.msra.mxu0 %v13672_v45  ;;  %9456 = vmatpush3.bf16.msra.mxu1 %v13672_v45 }
 0xd6c   :  { %v7406_v38 = vpop.f32.mrb[220].mxu1  ;;  %v7527_v27 = vpop.f32.mrb[148].mxu0  ;;  %9469 = vmatprep.subr.bf16.mxu0 %v10761_v47  ;;  %9457 = vmatprep.subr.bf16.mxu1 %v10761_v47 }
 0xd6d   :  { %v7540_v7 = vmax.f32 %v7406_v38, %v7527_v27  ;;  %v7408_v19 = vpop.f32.mrb[221].mxu1  ;;  %v7529_v53 = vpop.f32.mrb[149].mxu0  ;;  %v10433_v38 = vld [vmem:[%s13797_s16 + $0x10] sm:$0xff]   ;;  %v10434_v27 = vld [vmem:[%s13797_s16 + $0x18] sm:$0xff]  }
 0xd6e   :  { %v7409_v20 = vpop.f32.mrb[222].mxu1  ;;  %v7530_v63 = vpop.f32.mrb[150].mxu0  ;;  %v10436_v19 = vld [vmem:[%s13797_s16 + $0x28] sm:$0xff]   ;;  %v10437_v53 = vld [vmem:[%s13797_s16 + $0x30] sm:$0xff]  }
 0xd6f   :  { %v7541_v10 = vmax.f32 %v7409_v20, %v7530_v63  ;;  %v7411_v5 = vpop.f32.mrb[223].mxu1  ;;  %v7532_v49 = vpop.f32.mrb[151].mxu0  ;;  %v10438_v20 = vld [vmem:[%s13797_s16 + $0x38] sm:$0xff]  }
 0xd70   :  { %v10439_v63 = vld [vmem:[#allocation20] sm:$0xff]  }
 0xd71   :  { %v13678_v17 = vpack.c.bf16 %v7541_v10, %v7540_v7  ;;  %v10435_v7 = vld [vmem:[%s13797_s16 + $0x20] sm:$0xff]  }
 0xd72   :  { %v10440_v10 = vld [vmem:[#allocation20 + $0x8] sm:$0xff]  }
 0xd73   :  { %9470 = vmatpush3.bf16.msra.mxu0 %v13678_v17  ;;  %9458 = vmatpush3.bf16.msra.mxu1 %v13678_v17 }
 0xd74   :  { %9475 = vmatprep.subr.bf16.mxu1 %v10761_v47  ;;  %9487 = vmatprep.subr.bf16.mxu0 %v10761_v47 }
 0xd76   :  { %9472 = vmatmul.mubr.msk.bf16.vlgmr.msra.gmra.mrb[152].mxu0 %vm3507_vm2, %v10411_v32  ;;  %9460 = vmatmul.mubr.msk.bf16.vlgmr.msra.gmra.mrb[224].mxu1 %vm3507_vm2, %v10412_v33 }
 0xd77   :  { %9476 = vmatpush3.bf16.msra.mxu1 %v10413_v31  ;;  %9483 = vmatprep.mubr.msk.bf16.mxu1 %vm10762_vm5, %v10761_v47 }
 0xd78   :  { %9477 = vmatprep.subr.bf16.mxu1 %v10761_v47  ;;  %9495 = vmatprep.mubr.msk.bf16.mxu0 %vm10762_vm5, %v10761_v47 }
 0xd79   :  { %9488 = vmatpush3.bf16.msra.mxu0 %v10419_v51 }
 0xd7a   :  { %9489 = vmatprep.subr.bf16.mxu0 %v10761_v47 }
 0xd7b   :  { %9478 = vmatpush3.bf16.msra.mxu1 %v10414_v15 }
 0xd7c   :  { %9479 = vmatprep.subr.bf16.mxu1 %v10761_v47 }
 0xd7d   :  { %9490 = vmatpush3.bf16.msra.mxu0 %v10420_v62 }
 0xd7e   :  { %9491 = vmatprep.subr.bf16.mxu0 %v10761_v47 }
 0xd7f   :  { %9480 = vmatpush3.bf16.msra.mxu1 %v10415_v2  ;;  %v8815_v2 = vld [vmem:[#allocation17] ss:$0 sm:$0xff] }
 0xd80   :  { %9481 = vmatprep.subr.bf16.mxu1 %v10761_v47 }
 0xd81   :  { %9492 = vmatpush3.bf16.msra.mxu0 %v10421_v55 }
 0xd82   :  { %9493 = vmatprep.subr.bf16.mxu0 %v10761_v47 }
 0xd83   :  { %9482 = vmatpush3.bf16.msra.mxu1 %v10416_v22 }
 0xd84   :  { %9499 = vmatprep.subr.bf16.mxu1 %v10761_v47 }
 0xd85   :  { %9494 = vmatpush3.bf16.msra.mxu0 %v10422_v8 }
 0xd86   :  { %9511 = vmatprep.subr.bf16.mxu0 %v10761_v47 }
 0xe49   :  { %v7651_v25 = vpop.f32.mrb[152].mxu0  ;;  %v7590_v42 = vpop.f32.mrb[224].mxu1 }
 0xe4a   :  { %v9473_v26 = vpop.f32.mrb[153].mxu0  ;;  %v9461_v40 = vpop.f32.mrb[225].mxu1 }
 0xe4b   :  { %v7654_v13 = vpop.f32.mrb[154].mxu0  ;;  %v7593_v58 = vpop.f32.mrb[226].mxu1 }
 0xe4c   :  { %v7658_v1 = vpack.c.bf16 %v7654_v13, %v7651_v25  ;;  %v7597_v24 = vpack.c.bf16 %v7593_v58, %v7590_v42  ;;  %v9474_v56 = vpop.f32.mrb[155].mxu0  ;;  %v9462_v30 = vpop.f32.mrb[227].mxu1  ;;  %v10441_v58 = vld [vmem:[#allocation20 + $0x10] sm:$0xff]  }
 0xe4e   :  { %9484 = vmatmul.mubr.msk.bf16.vlgmr.msra.gmra.mrb[228].mxu1 %vm3507_vm2, %v7658_v1  ;;  %9496 = vmatmul.mubr.msk.bf16.vlgmr.msra.gmra.mrb[156].mxu0 %vm3507_vm2, %v7597_v24  ;;  %v10442_v1 = vld [vmem:[#allocation20 + $0x18] sm:$0xff]  }
 0xe4f   :  { %9500 = vmatpush3.bf16.msra.mxu1 %v13660_v43  ;;  %9507 = vmatprep.mubr.msk.bf16.mxu1 %vm10762_vm5, %v10761_v47  ;;  %v8816_v24 = vld [vmem:[#allocation19] ss:$0 sm:$0xff] }
 0xe50   :  { %9501 = vmatprep.subr.bf16.mxu1 %v10761_v47  ;;  %9512 = vmatpush3.bf16.msra.mxu0 %v10423_v52 }
 0xe51   :  { %9513 = vmatprep.subr.bf16.mxu0 %v10761_v47  ;;  %9519 = vmatprep.mubr.msk.bf16.mxu0 %vm10762_vm5, %v10761_v47 }
 0xe53   :  { %9502 = vmatpush3.bf16.msra.mxu1 %v13666_v14 }
 0xe54   :  { %9503 = vmatprep.subr.bf16.mxu1 %v10761_v47  ;;  %9514 = vmatpush3.bf16.msra.mxu0 %v10424_v28 }
 0xe55   :  { %9515 = vmatprep.subr.bf16.mxu0 %v10761_v47 }
 0xe57   :  { %9504 = vmatpush3.bf16.msra.mxu1 %v13672_v45 }
 0xe58   :  { %9505 = vmatprep.subr.bf16.mxu1 %v10761_v47  ;;  %9516 = vmatpush3.bf16.msra.mxu0 %v10425_v3 }
 0xe59   :  { %9517 = vmatprep.subr.bf16.mxu0 %v10761_v47 }
 0xe5b   :  { %9506 = vmatpush3.bf16.msra.mxu1 %v13678_v17 }
 0xe5c   :  { %9523 = vmatprep.subr.bf16.mxu1 %v10761_v47  ;;  %9518 = vmatpush3.bf16.msra.mxu0 %v10426_v35 }
 0xe5d   :  { %9535 = vmatprep.subr.bf16.mxu0 %v10761_v47 }
 0xe5e   :  { %9508 = vmatmul.mubr.msk.bf16.vlgmr.msra.gmra.mrb[232].mxu1 %vm3507_vm2, %v10417_v18 }
 0xe5f   :  { %9524 = vmatpush3.bf16.msra.mxu1 %v13660_v43  ;;  %9531 = vmatprep.mubr.msk.bf16.mxu1 %vm10762_vm5, %v10761_v47 }
 0xe60   :  { %9525 = vmatprep.subr.bf16.mxu1 %v10761_v47 }
 0xe63   :  { %9526 = vmatpush3.bf16.msra.mxu1 %v13666_v14  ;;  %v10427_v14 = vld [vmem:[#allocation16 + $0x60] sm:$0xff]  }
 0xe64   :  { %9527 = vmatprep.subr.bf16.mxu1 %v10761_v47 }
 0xe67   :  { %9528 = vmatpush3.bf16.msra.mxu1 %v13672_v45  ;;  %v10432_v45 = vld [vmem:[%s13797_s16 + $0x8] sm:$0xff]  }
 0xe68   :  { %9529 = vmatprep.subr.bf16.mxu1 %v10761_v47 }
 0xe6b   :  { %9530 = vmatpush3.bf16.msra.mxu1 %v13678_v17 }
 0xe6c   :  { %9547 = vmatprep.subr.bf16.mxu1 %v10761_v47 }
 0xe6e   :  { %9532 = vmatmul.mubr.msk.bf16.vlgmr.msra.gmra.mrb[236].mxu1 %vm3507_vm2, %v10418_v44 }
 0xe6f   :  { %9563 = vmatprep.mubr.msk.bf16.mxu1 %vm10762_vm5, %v10761_v47  ;;  %9548 = vmatpush3.bf16.msra.mxu1 %v10431_v50 }
 0xe70   :  { %9549 = vmatprep.subr.bf16.mxu1 %v10761_v47 }
 0xe73   :  { %9550 = vmatpush3.bf16.msra.mxu1 %v10432_v45 }
 0xe74   :  { %9551 = vmatprep.subr.bf16.mxu1 %v10761_v47 }
 0xe77   :  { %9552 = vmatpush3.bf16.msra.mxu1 %v10433_v38 }
 0xe78   :  { %9553 = vmatprep.subr.bf16.mxu1 %v10761_v47 }
 0xe7b   :  { %9554 = vmatpush3.bf16.msra.mxu1 %v10434_v27 }
 0xe7c   :  { %9555 = vmatprep.subr.bf16.mxu1 %v10761_v47 }
 0xe7f   :  { %9556 = vmatpush3.bf16.msra.mxu1 %v10435_v7 }
 0xe80   :  { %9557 = vmatprep.subr.bf16.mxu1 %v10761_v47 }
 0xe83   :  { %9558 = vmatpush3.bf16.msra.mxu1 %v10436_v19 }
 0xe84   :  { %9559 = vmatprep.subr.bf16.mxu1 %v10761_v47 }
 0xe87   :  { %9560 = vmatpush3.bf16.msra.mxu1 %v10437_v53 }
 0xe88   :  { %9561 = vmatprep.subr.bf16.mxu1 %v10761_v47 }
 0xe8b   :  { %9562 = vmatpush3.bf16.msra.mxu1 %v10438_v20 }
 0xf21   :  { %v7729_v39 = vpop.f32.mrb[228].mxu1  ;;  %v7797_v11 = vpop.f32.mrb[156].mxu0 }
 0xf22   :  { %v9485_v43 = vpop.f32.mrb[229].mxu1  ;;  %v7798_v59 = vadd.f32 %v7797_v11, %v7729_v39  ;;  %v9497_v54 = vpop.f32.mrb[157].mxu0  ;;  %v8825_v39 = vld [vmem:[#allocation22] ss:$0 sm:$0xff] }
 0xf23   :  { %v7732_v21 = vpop.f32.mrb[230].mxu1  ;;  %v7800_v16 = vpop.f32.mrb[158].mxu0 }
 0xf24   :  { %v9486_v0 = vpop.f32.mrb[231].mxu1  ;;  %v7801_v46 = vadd.f32 %v7800_v16, %v7732_v21  ;;  %v9498_v61 = vpop.f32.mrb[159].mxu0 }
 0xf31   :  { %v7849_v9 = vpop.f32.mrb[232].mxu1 }
 0xf32   :  { %v9509_v29 = vpop.f32.mrb[233].mxu1 }
 0xf33   :  { %v7852_v36 = vpop.f32.mrb[234].mxu1 }
 0xf34   :  { %v7856_v34 = vpack.c.bf16 %v7852_v36, %v7849_v9  ;;  %v9510_v6 = vpop.f32.mrb[235].mxu1 }
 0xf36   :  { %9520 = vmatmul.mubr.msk.bf16.vlgmr.msra.gmra.mrb[160].mxu0 %vm3507_vm2, %v7856_v34 }
 0xf37   :  { %9536 = vmatpush3.bf16.msra.mxu0 %v10427_v14  ;;  %9543 = vmatprep.mubr.msk.bf16.mxu0 %vm10762_vm5, %v10761_v47 }
 0xf38   :  { %9537 = vmatprep.subr.bf16.mxu0 %v10761_v47 }
 0xf3b   :  { %9538 = vmatpush3.bf16.msra.mxu0 %v10428_v4 }
 0xf3c   :  { %9539 = vmatprep.subr.bf16.mxu0 %v10761_v47 }
 0xf3f   :  { %9540 = vmatpush3.bf16.msra.mxu0 %v10429_v48 }
 0xf40   :  { %9541 = vmatprep.subr.bf16.mxu0 %v10761_v47 }
 0xf41   :  { %v7981_v12 = vpop.f32.mrb[236].mxu1 }
 0xf42   :  { %v9533_v41 = vpop.f32.mrb[237].mxu1 }
 0xf43   :  { %v7984_v37 = vpop.f32.mrb[238].mxu1  ;;  %9542 = vmatpush3.bf16.msra.mxu0 %v10430_v23 }
 0xf44   :  { %v7988_v60 = vpack.c.bf16 %v7984_v37, %v7981_v12  ;;  %v9534_v57 = vpop.f32.mrb[239].mxu1  ;;  %9567 = vmatprep.subr.bf16.mxu0 %v10761_v47 }
 0xf46   :  { %9544 = vmatmul.mubr.msk.bf16.vlgmr.msra.gmra.mrb[164].mxu0 %vm3507_vm2, %v7988_v60 }
 0xf47   :  { %9575 = vmatprep.mubr.msk.bf16.mxu0 %vm10762_vm5, %v10761_v47  ;;  %9568 = vmatpush3.bf16.msra.mxu0 %v10439_v63 }
 0xf48   :  { %9569 = vmatprep.subr.bf16.mxu0 %v10761_v47 }
 0xf4b   :  { %9570 = vmatpush3.bf16.msra.mxu0 %v10440_v10 }
 0xf4c   :  { %9571 = vmatprep.subr.bf16.mxu0 %v10761_v47 }
 0xf4f   :  { %9572 = vmatpush3.bf16.msra.mxu0 %v10441_v58 }
 0xf50   :  { %9573 = vmatprep.subr.bf16.mxu0 %v10761_v47 }
 0xf53   :  { %9574 = vmatpush3.bf16.msra.mxu0 %v10442_v1 }
0x1009   :  { %v7927_v5 = vpop.f32.mrb[160].mxu0 }
0x100a   :  { %v7934_v49 = vadd.f32 %v7927_v5, %v7798_v59  ;;  %v9521_v17 = vpop.f32.mrb[161].mxu0 }
0x100b   :  { %v7930_v32 = vpop.f32.mrb[162].mxu0 }
0x100c   :  { %v7935_v33 = vadd.f32 %v7930_v32, %v7801_v46  ;;  %v9522_v31 = vpop.f32.mrb[163].mxu0 }
0x1019   :  { %v8059_v15 = vpop.f32.mrb[164].mxu0 }
0x101a   :  { %v8066_v51 = vadd.f32 %v8059_v15, %v7934_v49  ;;  %v9545_v62 = vpop.f32.mrb[165].mxu0 }
0x101b   :  { %v8062_v55 = vpop.f32.mrb[166].mxu0 }
0x101c   :  { %v8075_v22 = vadd.f32 %v8815_v2, %v8066_v51  ;;  %v8067_v8 = vadd.f32 %v8062_v55, %v7935_v33  ;;  %v9546_v25 = vpop.f32.mrb[167].mxu0 }
0x101e   :  { %v8076_v42 = vadd.f32 %v8815_v2, %v8067_v8  ;;  %v8077_v26 = vmax.f32 %v8075_v22, 0.0 }
0x1020   :  { %v8078_v40 = vmax.f32 %v8076_v42, 0.0 }
0x1022   :  { %v8079_v13 = vpack.c.bf16 %v8078_v40, %v8077_v26 }
0x1024   :  { %9564 = vmatmul.mubr.bf16.vlgmr.msra.gmra.mrb[240].mxu1 %v8079_v13 }
0x10f7   :  { %v8185_v56 = vpop.f32.mrb[240].mxu1 }
0x10f8   :  { %v8186_v52 = vadd.f32 %v8816_v24, %v8185_v56  ;;  %v9565_v30 = vpop.f32.mrb[241].mxu1 }
0x10f9   :  { %v8188_v28 = vpop.f32.mrb[242].mxu1 }
0x10fa   :  { %v8189_v18 = vadd.f32 %v8816_v24, %v8188_v28  ;;  %v9566_v44 = vpop.f32.mrb[243].mxu1  ;;  %v8192_v3 = vmax.f32 %v8186_v52, 0.0 }
0x10fc   :  { %v8193_v35 = vmax.f32 %v8189_v18, 0.0 }
0x10fe   :  { %v8194_v50 = vpack.c.bf16 %v8193_v35, %v8192_v3 }
0x1100   :  { %9576 = vmatmul.mubr.msk.bf16.vlgmr.msra.gmra.mrb[168].mxu0 %vm3507_vm2, %v8194_v50 }
0x11d3   :  { %v8271_v11 = vpop.f32.mrb[168].mxu0 }
0x11d4   :  { %v8272_v43 = vadd.f32 %v8825_v39, %v8271_v11  ;;  %v9577_v59 = vpop.f32.mrb[169].mxu0 }
0x11d5   :  { %v8274_v54 = vpop.f32.mrb[170].mxu0 }
0x11d6   :  { %8278 = vst [vmem:[%s13860_s1] sm:$0xff] %v8272_v43  ;;  %v8275_v47 = vadd.f32 %v8825_v39, %v8274_v54  ;;  %v9578_v21 = vpop.f32.mrb[171].mxu0 }
0x11d8   :  { %8279 = vst [vmem:[%s13860_s1 + $0x8] sm:$0xff] %v8275_v47 }
0x11d9   :  { %8284 = vsyncpa [#allocation4], 1 }
0x11da   :  { %8285 = vsyncpa [#allocation6], 1 }
0x11db   :  { %8286 = vsyncpa [#allocation9], 1 }
0x11dc   :  { %8287 = vsyncpa [#allocation12], 1 }
0x11dd   :  { %8288 = vsyncpa [#allocation15], 1 }
0x11de   :  { %8289 = vsyncpa [#allocation18], 1 }
0x11df   :  { %8290 = vsyncpa [#allocation21], 1 }

</bundles_post_ra>
